<compile_context>
chip_gen: v7x
topology: tpu7x:2x2x1
jax: 0.10.0
libtpu: 0.0.40
codegen_flags: <defaults>
</compile_context>

<pallas_src>
import numpy as np

import jax
import jax.numpy as jnp
from jax.experimental import pallas as pl
from jax.experimental.pallas import tpu as pltpu


# --------------------------------- fused kernel ------------------------------------

def _net_kernel(x_ref, t1_ref, b1_ref, t2_ref, b2_ref,
                fc1w_ref, fc1b_ref, fc2w_ref, fc2b_ref, fc3w_ref, fc3b_ref,
                o_ref):
    f32 = jnp.float32
    xb = x_ref[...].astype(jnp.bfloat16)                                # (TB, 784)

    # conv1 as one Toeplitz matmul; columns = [phase(a,c) | ch, u, v], each phase
    # block zero-padded 864 -> 896 so the pool slices below are 128-lane aligned.
    z1 = jnp.dot(xb, t1_ref[...], preferred_element_type=f32)           # (TB, 3584)
    pooled1 = jnp.maximum(jnp.maximum(z1[:, 0:896], z1[:, 896:1792]),
                          jnp.maximum(z1[:, 1792:2688], z1[:, 2688:3584]))
    # max-pool commutes with the per-channel bias + ReLU (both monotone in z).
    h1 = jnp.maximum(pooled1 + b1_ref[...], 0.0).astype(jnp.bfloat16)   # (TB, 896)

    # conv2 as one Toeplitz matmul; columns = [phase | co, y, x] (256-wide blocks).
    z2 = jnp.dot(h1, t2_ref[...], preferred_element_type=f32)           # (TB, 1024)
    pooled2 = jnp.maximum(jnp.maximum(z2[:, 0:256], z2[:, 256:512]),
                          jnp.maximum(z2[:, 512:768], z2[:, 768:1024]))
    h2 = jnp.maximum(pooled2 + b2_ref[...], 0.0).astype(jnp.bfloat16)   # (TB, 256) PyTorch flatten order

    # fc1 (single K=256 matmul) -> fc2 -> fc3 (weights lane-padded 10 -> 128).
    a1 = jnp.maximum(jnp.dot(h2, fc1w_ref[...], preferred_element_type=f32)
                     + fc1b_ref[...], 0.0).astype(jnp.bfloat16)          # (TB, 120)
    a2 = jnp.maximum(jnp.dot(a1, fc2w_ref[...], preferred_element_type=f32)
                     + fc2b_ref[...], 0.0).astype(jnp.bfloat16)          # (TB, 84)
    o_ref[...] = (jnp.dot(a2, fc3w_ref[...], preferred_element_type=f32)
                  + fc3b_ref[...]).astype(o_ref.dtype)                   # (TB, 128)


# ------------------------------------ wrapper ---------------------------------------

def _pick_batch_tile(batch):
    """Multiple-of-8 batch tile, capped at 256 (v7x 64 MiB VMEM safe), and giving
    at least 2 grid steps when the batch allows it (v7x megacore)."""
    if batch < 16:
        return 8
    return max(8, min(256, (batch // 2) // 8 * 8))


def net_forward(params, x):
    """x: (B, 1, 28, 28) f32 -> logits (B, 10) f32.  `params` from prepare_params()."""
    batch = x.shape[0]
    xf = x.reshape(batch, 28 * 28)
    tb = _pick_batch_tile(batch)
    padded = -(-batch // tb) * tb
    if padded != batch:
        xf = jnp.pad(xf, ((0, padded - batch), (0, 0)))
    grid = (padded // tb,)

    def wspec(shape):
        return pl.BlockSpec(shape, lambda t: (0, 0))

    mxu_elems = 784 * 3584 + 896 * 1024 + 256 * 120 + 120 * 84 + 84 * 128
    flops = 2 * padded * mxu_elems
    bytes_accessed = (padded * (784 + 128) * 4            # image in, padded logits out
                      + 2 * mxu_elems                      # bf16 weights (read once)
                      + 4 * (896 + 256 + 120 + 84 + 128))  # f32 bias rows

    out = pl.pallas_call(
        _net_kernel,
        out_shape=jax.ShapeDtypeStruct((padded, 128), jnp.float32),
        grid=grid,
        in_specs=[
            pl.BlockSpec((tb, 784), lambda t: (t, 0)),
            wspec((784, 3584)), wspec((1, 896)),
            wspec((896, 1024)), wspec((1, 256)),
            wspec((256, 120)), wspec((1, 120)),
            wspec((120, 84)), wspec((1, 84)),
            wspec((84, 128)), wspec((1, 128)),
        ],
        out_specs=pl.BlockSpec((tb, 128), lambda t: (t, 0)),
        compiler_params=pltpu.CompilerParams(
            dimension_semantics=("parallel",),
            vmem_limit_bytes=48 * 1024 * 1024,
        ),
        cost_estimate=pl.CostEstimate(flops=flops, transcendentals=0,
                                      bytes_accessed=bytes_accessed),
    )(xf, params["t1"], params["b1"], params["t2"], params["b2"],
      params["fc1_w"], params["fc1_b"], params["fc2_w"], params["fc2_b"],
      params["fc3_w"], params["fc3_b"])
    return out[:batch, :10]


# ---------------------------------- parameters --------------------------------------

def init_params(key):
    """PyTorch-layout parameters with nn.Conv2d / nn.Linear style uniform init."""
    ks = jax.random.split(key, 10)

    def u(k, shape, fan_in):
        bound = 1.0 / np.sqrt(fan_in)
        return jax.random.uniform(k, shape, jnp.float32, -bound, bound)

    return {
        "conv1_w": u(ks[0], (6, 1, 5, 5), 25), "conv1_b": u(ks[1], (6,), 25),
        "conv2_w": u(ks[2], (16, 6, 5, 5), 150), "conv2_b": u(ks[3], (16,), 150),
        "fc1_w": u(ks[4], (120, 256), 256), "fc1_b": u(ks[5], (120,), 256),
        "fc2_w": u(ks[6], (84, 120), 120), "fc2_b": u(ks[7], (84,), 120),
        "fc3_w": u(ks[8], (10, 84), 84), "fc3_b": u(ks[9], (10,), 84),
    }


def prepare_params(raw):
    """One-time weight re-layout: convs become Toeplitz ('conv-as-matmul') matrices
    whose output columns are grouped by 2x2 pool phase (phase blocks lane-padded to
    a multiple of 128), FC weights pre-transposed, fc3 lane-padded 10 -> 128.
    Matmul operands are bf16; biases stay f32."""
    f32, bf16 = jnp.float32, jnp.bfloat16

    # conv1:  (B,784) @ T1 (784, 4*896)
    # col = phase*896 + ch*144 + u*12 + v   (phase = (a,c) pool offset, u,v in [0,12))
    # row = (2u+a+i)*28 + (2v+c+j),  value = w1[ch,i,j]   (unique (row,col) pairs)
    A, C, CH, I, J, U, V = np.meshgrid(
        np.arange(2), np.arange(2), np.arange(6),
        np.arange(5), np.arange(5), np.arange(12), np.arange(12), indexing="ij")
    rows1 = ((2 * U + A + I) * 28 + (2 * V + C + J)).ravel()
    cols1 = ((A * 2 + C) * 896 + CH * 144 + U * 12 + V).ravel()
    w1 = raw["conv1_w"].reshape(6, 5, 5)
    t1 = jnp.zeros((784, 3584), f32).at[rows1, cols1].set(
        w1[CH.ravel(), I.ravel(), J.ravel()])
    b1 = jnp.zeros((1, 896), f32).at[0, :864].set(jnp.repeat(raw["conv1_b"], 144))

    # conv2:  (B,896) @ T2 (896, 4*256)
    # row = ci*144 + (2y+p+i)*12 + (2x+q+j)  (matches h1 layout; rows 864..895 stay 0)
    # col = phase*256 + co*16 + y*4 + x      (PyTorch flatten order after pooling)
    P, Q, CO, CI, I2, J2, Y, X = np.meshgrid(
        np.arange(2), np.arange(2), np.arange(16), np.arange(6),
        np.arange(5), np.arange(5), np.arange(4), np.arange(4), indexing="ij")
    rows2 = (CI * 144 + (2 * Y + P + I2) * 12 + (2 * X + Q + J2)).ravel()
    cols2 = ((P * 2 + Q) * 256 + CO * 16 + Y * 4 + X).ravel()
    w2 = raw["conv2_w"]
    t2 = jnp.zeros((896, 1024), f32).at[rows2, cols2].set(
        w2[CO.ravel(), CI.ravel(), I2.ravel(), J2.ravel()])
    b2 = jnp.zeros((1, 256), f32).at[0, :].set(jnp.repeat(raw["conv2_b"], 16))

    fc3w = jnp.zeros((84, 128), f32).at[:, :10].set(raw["fc3_w"].T)
    fc3b = jnp.zeros((1, 128), f32).at[0, :10].set(raw["fc3_b"])

    return {
        "t1": t1.astype(bf16), "b1": b1,
        "t2": t2.astype(bf16), "b2": b2,
        "fc1_w": raw["fc1_w"].T.astype(bf16), "fc1_b": raw["fc1_b"].reshape(1, 120).astype(f32),
        "fc2_w": raw["fc2_w"].T.astype(bf16), "fc2_b": raw["fc2_b"].reshape(1, 84).astype(f32),
        "fc3_w": fc3w.astype(bf16), "fc3_b": fc3b,
    }


# ------------------------------- pure-JAX reference ----------------------------------

def _reference_forward(raw, x):
    dn = ("NCHW", "OIHW", "NCHW")
    y = jax.lax.conv_general_dilated(x, raw["conv1_w"], (1, 1), "VALID", dimension_numbers=dn)
    y = jax.nn.relu(y + raw["conv1_b"].reshape(1, 6, 1, 1))
    y = y.reshape(y.shape[0], 6, 12, 2, 12, 2).max(axis=(3, 5))
    y = jax.lax.conv_general_dilated(y, raw["conv2_w"], (1, 1), "VALID", dimension_numbers=dn)
    y = jax.nn.relu(y + raw["conv2_b"].reshape(1, 16, 1, 1))
    y = y.reshape(y.shape[0], 16, 4, 2, 4, 2).max(axis=(3, 5))
    y = y.reshape(y.shape[0], 256)
    y = jax.nn.relu(y @ raw["fc1_w"].T + raw["fc1_b"])
    y = jax.nn.relu(y @ raw["fc2_w"].T + raw["fc2_b"])
    return y @ raw["fc3_w"].T + raw["fc3_b"]


# -------------------------------------- main -----------------------------------------

if __name__ == "__main__":
    x = jax.random.normal(jax.random.PRNGKey(0), (2, 1, 28, 28), jnp.float32)
    raw_params = init_params(jax.random.PRNGKey(42))
    params = prepare_params(raw_params)          # one-time weight re-layout (not per forward)

    logits = jax.jit(net_forward)(params, x)
    jax.block_until_ready(logits)

    assert logits.shape == (2, 10) and logits.dtype == jnp.float32

    # loose tolerance: kernel uses bf16 matmul operands with f32 accumulation
    ref = jax.jit(_reference_forward)(raw_params, x)
    max_err = float(jnp.max(jnp.abs(logits - ref)))
    assert max_err < 0.06, f"mismatch vs f32 reference: {max_err}"

    print("KERNEL_OK")
</pallas_src>

<mosaic_0001>
module attributes {stable_mosaic.version = 11 : i64} {
  func.func @_net_kernel(%arg0: i32, %arg1: memref<8x784xf32, #tpu.memory_space<vmem>>, %arg2: memref<784x3584xbf16, #tpu.memory_space<vmem>>, %arg3: memref<1x896xf32, #tpu.memory_space<vmem>>, %arg4: memref<896x1024xbf16, #tpu.memory_space<vmem>>, %arg5: memref<1x256xf32, #tpu.memory_space<vmem>>, %arg6: memref<256x120xbf16, #tpu.memory_space<vmem>>, %arg7: memref<1x120xf32, #tpu.memory_space<vmem>>, %arg8: memref<120x84xbf16, #tpu.memory_space<vmem>>, %arg9: memref<1x84xf32, #tpu.memory_space<vmem>>, %arg10: memref<84x128xbf16, #tpu.memory_space<vmem>>, %arg11: memref<1x128xf32, #tpu.memory_space<vmem>>, %arg12: memref<8x128xf32, #tpu.memory_space<vmem>>) attributes {dimension_semantics = [#tpu.dimension_semantics<parallel>], iteration_bounds = array<i64: 1>, scalar_prefetch = 0 : i64, scratch_operands = 0 : i64, tpu.core_type = #tpu.core_type<tc>, window_params = [{transform_indices = @transform_0, window_bounds = array<i64: 8, 784>}, {pipeline_mode = #tpu.pipeline_mode<synchronous>, transform_indices = @transform_1, window_bounds = array<i64: 784, 3584>}, {pipeline_mode = #tpu.pipeline_mode<synchronous>, transform_indices = @transform_2, window_bounds = array<i64: 1, 896>}, {pipeline_mode = #tpu.pipeline_mode<synchronous>, transform_indices = @transform_3, window_bounds = array<i64: 896, 1024>}, {pipeline_mode = #tpu.pipeline_mode<synchronous>, transform_indices = @transform_4, window_bounds = array<i64: 1, 256>}, {pipeline_mode = #tpu.pipeline_mode<synchronous>, transform_indices = @transform_5, window_bounds = array<i64: 256, 120>}, {pipeline_mode = #tpu.pipeline_mode<synchronous>, transform_indices = @transform_6, window_bounds = array<i64: 1, 120>}, {pipeline_mode = #tpu.pipeline_mode<synchronous>, transform_indices = @transform_7, window_bounds = array<i64: 120, 84>}, {pipeline_mode = #tpu.pipeline_mode<synchronous>, transform_indices = @transform_8, window_bounds = array<i64: 1, 84>}, {pipeline_mode = #tpu.pipeline_mode<synchronous>, transform_indices = @transform_9, window_bounds = array<i64: 84, 128>}, {pipeline_mode = #tpu.pipeline_mode<synchronous>, transform_indices = @transform_10, window_bounds = array<i64: 1, 128>}, {transform_indices = @transform_11, window_bounds = array<i64: 8, 128>}]} {
    %c0 = arith.constant 0 : index
    %c0_0 = arith.constant 0 : index
    %0 = vector.load %arg1[%c0, %c0_0] : memref<8x784xf32, #tpu.memory_space<vmem>>, vector<8x784xf32>
    %1 = arith.truncf %0 : vector<8x784xf32> to vector<8x784xbf16>
    %c0_1 = arith.constant 0 : index
    %c0_2 = arith.constant 0 : index
    %2 = vector.load %arg2[%c0_1, %c0_2] : memref<784x3584xbf16, #tpu.memory_space<vmem>>, vector<784x3584xbf16>
    %cst = arith.constant dense<0.000000e+00> : vector<8x3584xf32>
    %3 = tpu.matmul %1, %2, %cst {dimension_numbers = #tpu.dot_dimension_numbers<[1], [0], [0], [1], [0, 0, 1, 1], [], []>} : vector<8x784xbf16>, vector<784x3584xbf16>, vector<8x3584xf32> -> vector<8x3584xf32>
    %4 = vector.extract_strided_slice %3 {offsets = [0, 0], sizes = [8, 896], strides = [1, 1]} : vector<8x3584xf32> to vector<8x896xf32>
    %5 = vector.extract_strided_slice %3 {offsets = [0, 896], sizes = [8, 896], strides = [1, 1]} : vector<8x3584xf32> to vector<8x896xf32>
    %6 = arith.maximumf %4, %5 : vector<8x896xf32>
    %7 = vector.extract_strided_slice %3 {offsets = [0, 1792], sizes = [8, 896], strides = [1, 1]} : vector<8x3584xf32> to vector<8x896xf32>
    %8 = vector.extract_strided_slice %3 {offsets = [0, 2688], sizes = [8, 896], strides = [1, 1]} : vector<8x3584xf32> to vector<8x896xf32>
    %9 = arith.maximumf %7, %8 : vector<8x896xf32>
    %10 = arith.maximumf %6, %9 : vector<8x896xf32>
    %c0_3 = arith.constant 0 : index
    %c0_4 = arith.constant 0 : index
    %11 = vector.load %arg3[%c0_3, %c0_4] : memref<1x896xf32, #tpu.memory_space<vmem>>, vector<1x896xf32>
    %12 = vector.broadcast %11 : vector<1x896xf32> to vector<8x896xf32>
    %13 = arith.addf %10, %12 : vector<8x896xf32>
    %cst_5 = arith.constant 0.000000e+00 : f32
    %14 = vector.broadcast %cst_5 : f32 to vector<8x896xf32>
    %15 = arith.maximumf %13, %14 : vector<8x896xf32>
    %16 = arith.truncf %15 : vector<8x896xf32> to vector<8x896xbf16>
    %c0_6 = arith.constant 0 : index
    %c0_7 = arith.constant 0 : index
    %17 = vector.load %arg4[%c0_6, %c0_7] : memref<896x1024xbf16, #tpu.memory_space<vmem>>, vector<896x1024xbf16>
    %cst_8 = arith.constant dense<0.000000e+00> : vector<8x1024xf32>
    %18 = tpu.matmul %16, %17, %cst_8 {dimension_numbers = #tpu.dot_dimension_numbers<[1], [0], [0], [1], [0, 0, 1, 1], [], []>} : vector<8x896xbf16>, vector<896x1024xbf16>, vector<8x1024xf32> -> vector<8x1024xf32>
    %19 = vector.extract_strided_slice %18 {offsets = [0, 0], sizes = [8, 256], strides = [1, 1]} : vector<8x1024xf32> to vector<8x256xf32>
    %20 = vector.extract_strided_slice %18 {offsets = [0, 256], sizes = [8, 256], strides = [1, 1]} : vector<8x1024xf32> to vector<8x256xf32>
    %21 = arith.maximumf %19, %20 : vector<8x256xf32>
    %22 = vector.extract_strided_slice %18 {offsets = [0, 512], sizes = [8, 256], strides = [1, 1]} : vector<8x1024xf32> to vector<8x256xf32>
    %23 = vector.extract_strided_slice %18 {offsets = [0, 768], sizes = [8, 256], strides = [1, 1]} : vector<8x1024xf32> to vector<8x256xf32>
    %24 = arith.maximumf %22, %23 : vector<8x256xf32>
    %25 = arith.maximumf %21, %24 : vector<8x256xf32>
    %c0_9 = arith.constant 0 : index
    %c0_10 = arith.constant 0 : index
    %26 = vector.load %arg5[%c0_9, %c0_10] : memref<1x256xf32, #tpu.memory_space<vmem>>, vector<1x256xf32>
    %27 = vector.broadcast %26 : vector<1x256xf32> to vector<8x256xf32>
    %28 = arith.addf %25, %27 : vector<8x256xf32>
    %cst_11 = arith.constant 0.000000e+00 : f32
    %29 = vector.broadcast %cst_11 : f32 to vector<8x256xf32>
    %30 = arith.maximumf %28, %29 : vector<8x256xf32>
    %31 = arith.truncf %30 : vector<8x256xf32> to vector<8x256xbf16>
    %c0_12 = arith.constant 0 : index
    %c0_13 = arith.constant 0 : index
    %32 = vector.load %arg6[%c0_12, %c0_13] : memref<256x120xbf16, #tpu.memory_space<vmem>>, vector<256x120xbf16>
    %cst_14 = arith.constant dense<0.000000e+00> : vector<8x120xf32>
    %33 = tpu.matmul %31, %32, %cst_14 {dimension_numbers = #tpu.dot_dimension_numbers<[1], [0], [0], [1], [0, 0, 1, 1], [], []>} : vector<8x256xbf16>, vector<256x120xbf16>, vector<8x120xf32> -> vector<8x120xf32>
    %c0_15 = arith.constant 0 : index
    %c0_16 = arith.constant 0 : index
    %34 = vector.load %arg7[%c0_15, %c0_16] : memref<1x120xf32, #tpu.memory_space<vmem>>, vector<1x120xf32>
    %35 = vector.broadcast %34 : vector<1x120xf32> to vector<8x120xf32>
    %36 = arith.addf %33, %35 : vector<8x120xf32>
    %cst_17 = arith.constant 0.000000e+00 : f32
    %37 = vector.broadcast %cst_17 : f32 to vector<8x120xf32>
    %38 = arith.maximumf %36, %37 : vector<8x120xf32>
    %39 = arith.truncf %38 : vector<8x120xf32> to vector<8x120xbf16>
    %c0_18 = arith.constant 0 : index
    %c0_19 = arith.constant 0 : index
    %40 = vector.load %arg8[%c0_18, %c0_19] : memref<120x84xbf16, #tpu.memory_space<vmem>>, vector<120x84xbf16>
    %cst_20 = arith.constant dense<0.000000e+00> : vector<8x84xf32>
    %41 = tpu.matmul %39, %40, %cst_20 {dimension_numbers = #tpu.dot_dimension_numbers<[1], [0], [0], [1], [0, 0, 1, 1], [], []>} : vector<8x120xbf16>, vector<120x84xbf16>, vector<8x84xf32> -> vector<8x84xf32>
    %c0_21 = arith.constant 0 : index
    %c0_22 = arith.constant 0 : index
    %42 = vector.load %arg9[%c0_21, %c0_22] : memref<1x84xf32, #tpu.memory_space<vmem>>, vector<1x84xf32>
    %43 = vector.broadcast %42 : vector<1x84xf32> to vector<8x84xf32>
    %44 = arith.addf %41, %43 : vector<8x84xf32>
    %cst_23 = arith.constant 0.000000e+00 : f32
    %45 = vector.broadcast %cst_23 : f32 to vector<8x84xf32>
    %46 = arith.maximumf %44, %45 : vector<8x84xf32>
    %47 = arith.truncf %46 : vector<8x84xf32> to vector<8x84xbf16>
    %c0_24 = arith.constant 0 : index
    %c0_25 = arith.constant 0 : index
    %48 = vector.load %arg10[%c0_24, %c0_25] : memref<84x128xbf16, #tpu.memory_space<vmem>>, vector<84x128xbf16>
    %cst_26 = arith.constant dense<0.000000e+00> : vector<8x128xf32>
    %49 = tpu.matmul %47, %48, %cst_26 {dimension_numbers = #tpu.dot_dimension_numbers<[1], [0], [0], [1], [0, 0, 1, 1], [], []>} : vector<8x84xbf16>, vector<84x128xbf16>, vector<8x128xf32> -> vector<8x128xf32>
    %c0_27 = arith.constant 0 : index
    %c0_28 = arith.constant 0 : index
    %50 = vector.load %arg11[%c0_27, %c0_28] : memref<1x128xf32, #tpu.memory_space<vmem>>, vector<1x128xf32>
    %51 = vector.broadcast %50 : vector<1x128xf32> to vector<8x128xf32>
    %52 = arith.addf %49, %51 : vector<8x128xf32>
    %c0_29 = arith.constant 0 : index
    %c0_30 = arith.constant 0 : index
    %53 = vector.load %arg12[%c0_29, %c0_30] : memref<8x128xf32, #tpu.memory_space<vmem>>, vector<8x128xf32>
    tpu.vector_store %arg12[%c0_29, %c0_30], %52 {strides = array<i32>} : memref<8x128xf32, #tpu.memory_space<vmem>>, vector<8x128xf32>,
    return
  }
  func.func @transform_0(%arg0: i32) -> (i32, i32) {
    %c0_i32 = arith.constant 0 : i32
    %c0_i32_0 = arith.constant 0 : i32
    return %arg0, %c0_i32 : i32, i32
  }
  func.func @transform_1(%arg0: i32) -> (i32, i32) {
    %c0_i32 = arith.constant 0 : i32
    %c0_i32_0 = arith.constant 0 : i32
    %c0_i32_1 = arith.constant 0 : i32
    return %c0_i32, %c0_i32_0 : i32, i32
  }
  func.func @transform_2(%arg0: i32) -> (i32, i32) {
    %c0_i32 = arith.constant 0 : i32
    %c0_i32_0 = arith.constant 0 : i32
    %c0_i32_1 = arith.constant 0 : i32
    return %c0_i32, %c0_i32_0 : i32, i32
  }
  func.func @transform_3(%arg0: i32) -> (i32, i32) {
    %c0_i32 = arith.constant 0 : i32
    %c0_i32_0 = arith.constant 0 : i32
    %c0_i32_1 = arith.constant 0 : i32
    return %c0_i32, %c0_i32_0 : i32, i32
  }
  func.func @transform_4(%arg0: i32) -> (i32, i32) {
    %c0_i32 = arith.constant 0 : i32
    %c0_i32_0 = arith.constant 0 : i32
    %c0_i32_1 = arith.constant 0 : i32
    return %c0_i32, %c0_i32_0 : i32, i32
  }
  func.func @transform_5(%arg0: i32) -> (i32, i32) {
    %c0_i32 = arith.constant 0 : i32
    %c0_i32_0 = arith.constant 0 : i32
    %c0_i32_1 = arith.constant 0 : i32
    return %c0_i32, %c0_i32_0 : i32, i32
  }
  func.func @transform_6(%arg0: i32) -> (i32, i32) {
    %c0_i32 = arith.constant 0 : i32
    %c0_i32_0 = arith.constant 0 : i32
    %c0_i32_1 = arith.constant 0 : i32
    return %c0_i32, %c0_i32_0 : i32, i32
  }
  func.func @transform_7(%arg0: i32) -> (i32, i32) {
    %c0_i32 = arith.constant 0 : i32
    %c0_i32_0 = arith.constant 0 : i32
    %c0_i32_1 = arith.constant 0 : i32
    return %c0_i32, %c0_i32_0 : i32, i32
  }
  func.func @transform_8(%arg0: i32) -> (i32, i32) {
    %c0_i32 = arith.constant 0 : i32
    %c0_i32_0 = arith.constant 0 : i32
    %c0_i32_1 = arith.constant 0 : i32
    return %c0_i32, %c0_i32_0 : i32, i32
  }
  func.func @transform_9(%arg0: i32) -> (i32, i32) {
    %c0_i32 = arith.constant 0 : i32
    %c0_i32_0 = arith.constant 0 : i32
    %c0_i32_1 = arith.constant 0 : i32
    return %c0_i32, %c0_i32_0 : i32, i32
  }
  func.func @transform_10(%arg0: i32) -> (i32, i32) {
    %c0_i32 = arith.constant 0 : i32
    %c0_i32_0 = arith.constant 0 : i32
    %c0_i32_1 = arith.constant 0 : i32
    return %c0_i32, %c0_i32_0 : i32, i32
  }
  func.func @transform_11(%arg0: i32) -> (i32, i32) {
    %c0_i32 = arith.constant 0 : i32
    %c0_i32_0 = arith.constant 0 : i32
    return %arg0, %c0_i32 : i32, i32
  }
}

</mosaic_0001>

<bundles_post_ra>
// kernel: net_forward.1
= control target key start
LH: loop header
LB: loop body
LE: loop exit
PB: predicated region body
PF: predicated region fallthrough
CT: control target
= control target key end

     0   :  { %16 = vsyncpa [#allocation3], 0  ;;  %s19624_s0 = inlined_call_operand.vmem [shape: f32[8,784], index: 0, kind: input, shape index: {}]   ;;  %s19625_s1 = inlined_call_operand.hbm [shape: bf16[784,3584], index: 1, kind: input, shape index: {}]   ;;  %s19626_s2 = inlined_call_operand.hbm [shape: f32[1,896], index: 2, kind: input, shape index: {}]   ;;  %s19627_s3 = inlined_call_operand.hbm [shape: bf16[896,1024], index: 3, kind: input, shape index: {}]   ;;  %s19628_s4 = inlined_call_operand.hbm [shape: f32[1,256], index: 4, kind: input, shape index: {}]   ;;  %s19629_s5 = inlined_call_operand.vmem [shape: bf16[256,120], index: 5, kind: input, shape index: {}]   ;;  %s19630_s6 = inlined_call_operand.hbm [shape: f32[1,120], index: 6, kind: input, shape index: {}]   ;;  %s19631_s7 = inlined_call_operand.vmem [shape: bf16[120,84], index: 7, kind: input, shape index: {}]   ;;  %s19632_s8 = inlined_call_operand.hbm [shape: f32[1,84], index: 8, kind: input, shape index: {}]   ;;  %s19633_s9 = inlined_call_operand.hbm [shape: bf16[84,128], index: 9, kind: input, shape index: {}]   ;;  %s19634_s10 = inlined_call_operand.hbm [shape: f32[1,128], index: 10, kind: input, shape index: {}]   ;;  %s19635_s11 = inlined_call_operand.vmem [shape: f32[8,128], index: 11, kind: output, shape index: {}]  }
   0x1   :  { %17 = vsyncpa [#allocation5], 0 }
   0x2   :  { %18 = vsyncpa [#allocation8], 0 }
   0x3   :  { %19 = vsyncpa [#allocation11], 0 }
   0x4   :  { %20 = vsyncpa [#allocation14], 0  ;;  %s18981_s17 = smov [#allocation4]   ;;  %s18982_s19 = smov [#allocation7]  }
   0x5   :  { %s41_s18 = sshll.u32 %s18981_s17, 4  ;;  %s63_s20 = sshll.u32 %s18982_s19, 4  ;;  %s42_s18 = int_to_ptr.vmem [resolvable:$true] %s41_s18  ;;  %s64_s20 = int_to_ptr.vmem [resolvable:$true] %s63_s20 }
   0x6   :  { %s18795_s23 = scalar_lea.hbm %s19626_s2, 112 }
   0x7   :  { %p18796_p0 = scmp.ne.s32.totalorder %s19626_s2, %s18795_s23  ;;  %p18799_p1 = scmp.lt.u32.totalorder %s18795_s23, %s19626_s2 }
   0x9   :  { %p18801_p2 = pnand %p18799_p1, %p18796_p0 }
   0xb   :  { %18804 = shalt.err (!%p18801_p2)
}
   0xc   :  { %s18805_s28 = scalar_lea.vmem %s42_s18, 112  ;;  %s18809_s29 = scalar_lea.vmem %s42_s18, 128 }
   0xd   :  { %p18806_p3 = scmp.ne.s32.totalorder %s42_s18, %s18805_s28  ;;  %p18810_p4 = scmp.lt.s32.totalorder %s42_s18, %s42_s18 }
   0xe   :  { %p18811_p5 = scmp.lt.s32.totalorder %s18809_s29, %s18805_s28 }
  0x10   :  { %p18812_p6 = por %p18811_p5, %p18810_p4 }
  0x12   :  { %p18813_p7 = pnand %p18812_p6, %p18806_p3 }
  0x14   :  { %18816 = shalt.err (!%p18813_p7)
}
  0x15   :  { %44 = dma.hbm_to_vmem [thread:$0]  %s19626_s2, 112, %s42_s18, [#allocation5]  }
  0x16   :  { %s18817_s15 = scalar_lea.hbm %s19628_s4, 32 }
  0x17   :  { %p18818_p8 = scmp.ne.s32.totalorder %s19628_s4, %s18817_s15  ;;  %p18821_p9 = scmp.lt.u32.totalorder %s18817_s15, %s19628_s4 }
  0x19   :  { %p18823_p10 = pnand %p18821_p9, %p18818_p8 }
  0x1b   :  { %18826 = shalt.err (!%p18823_p10)
}
  0x1c   :  { %s18827_s22 = scalar_lea.vmem %s64_s20, 32  ;;  %p18832_p12 = scmp.lt.s32.totalorder %s64_s20, %s64_s20 }
  0x1d   :  { %p18828_p11 = scmp.ne.s32.totalorder %s64_s20, %s18827_s22  ;;  %p18833_p13 = scmp.lt.s32.totalorder %s18827_s22, %s18827_s22 }
  0x1f   :  { %p18834_p0 = por %p18833_p13, %p18832_p12 }
  0x21   :  { %p18835_p1 = pnand %p18834_p0, %p18828_p11 }
  0x23   :  { %18838 = shalt.err (!%p18835_p1)
}
  0x24   :  { %66 = dma.hbm_to_vmem [thread:$0]  %s19628_s4, 32, %s64_s20, [#allocation8]  }
  0x25   :  { %s18983_s23 = smov [#allocation10]   ;;  %s18984_s25 = smov [#allocation2]  }
  0x26   :  { %s87_s24 = sshll.u32 %s18983_s23, 4  ;;  %s28_s26 = sshll.u32 %s18984_s25, 4  ;;  %s88_s24 = int_to_ptr.vmem [resolvable:$true] %s87_s24  ;;  %s19082_s26 = int_to_ptr.vmem [resolvable:$true] %s28_s26 }
  0x27   :  { %s18839_s29 = scalar_lea.hbm %s19632_s8, 16 }
  0x28   :  { %p18840_p2 = scmp.ne.s32.totalorder %s19632_s8, %s18839_s29  ;;  %p18843_p3 = scmp.lt.u32.totalorder %s18839_s29, %s19632_s8 }
  0x2a   :  { %p18845_p4 = pnand %p18843_p3, %p18840_p2 }
  0x2c   :  { %18848 = shalt.err (!%p18845_p4)
}
  0x2d   :  { %s18849_s4 = scalar_lea.vmem %s88_s24, 16  ;;  %s18853_s20 = scalar_lea.vmem %s88_s24, 32 }
  0x2e   :  { %p18850_p5 = scmp.ne.s32.totalorder %s88_s24, %s18849_s4  ;;  %p18854_p6 = scmp.lt.s32.totalorder %s88_s24, %s88_s24 }
  0x2f   :  { %p18855_p7 = scmp.lt.s32.totalorder %s18853_s20, %s18849_s4 }
  0x31   :  { %p18856_p8 = por %p18855_p7, %p18854_p6 }
  0x33   :  { %p18857_p9 = pnand %p18856_p8, %p18850_p5 }
  0x35   :  { %18860 = shalt.err (!%p18857_p9)
}
  0x36   :  { %90 = dma.hbm_to_vmem [thread:$0]  %s19632_s8, 16, %s88_s24, [#allocation11]  }
  0x37   :  { %s18861_s21 = scalar_lea.hbm %s19625_s1, 175616 }
  0x38   :  { %p18862_p10 = scmp.ne.s32.totalorder %s19625_s1, %s18861_s21  ;;  %p18865_p11 = scmp.lt.u32.totalorder %s18861_s21, %s19625_s1 }
  0x3a   :  { %p18867_p12 = pnand %p18865_p11, %p18862_p10 }
  0x3c   :  { %18870 = shalt.err (!%p18867_p12)
}
  0x3d   :  { %s18871_s25 = scalar_lea.vmem %s19082_s26, 175616  ;;  %p18876_p0 = scmp.lt.s32.totalorder %s19082_s26, %s19082_s26 }
  0x3e   :  { %p18872_p13 = scmp.ne.s32.totalorder %s19082_s26, %s18871_s25  ;;  %p18877_p1 = scmp.lt.s32.totalorder %s18871_s25, %s18871_s25 }
  0x40   :  { %p18878_p2 = por %p18877_p1, %p18876_p0 }
  0x42   :  { %p18879_p3 = pnand %p18878_p2, %p18872_p13 }
  0x44   :  { %18882 = shalt.err (!%p18879_p3)
}
  0x45   :  { %s18985_s8 = smov 1792   ;;  %s18986_s24 = smov 112  }
  0x46   :  { %34 = dma.hbm_to_vmem [thread:$0]  %s19625_s1, 175616, %s19082_s26, [#allocation3], %s18985_s8, %s18985_s8, %s18986_s24  }
  0x47   :  { %s18987_s29 = smov [#allocation6]   ;;  %s18883_s14 = scalar_lea.hbm %s19627_s3, 57344 }
  0x48   :  { %s50_s30 = sshll.u32 %s18987_s29, 4  ;;  %p18884_p4 = scmp.ne.s32.totalorder %s19627_s3, %s18883_s14  ;;  %s51_s30 = int_to_ptr.vmem [resolvable:$true] %s50_s30 }
  0x49   :  { %p18887_p5 = scmp.lt.u32.totalorder %s18883_s14, %s19627_s3 }
  0x4b   :  { %p18889_p6 = pnand %p18887_p5, %p18884_p4 }
  0x4d   :  { %18892 = shalt.err (!%p18889_p6)
}
  0x4e   :  { %s18893_s17 = scalar_lea.vmem %s51_s30, 57344  ;;  %p18898_p8 = scmp.lt.s32.totalorder %s51_s30, %s51_s30 }
  0x4f   :  { %p18894_p7 = scmp.ne.s32.totalorder %s51_s30, %s18893_s17  ;;  %p18899_p9 = scmp.lt.s32.totalorder %s18893_s17, %s18893_s17 }
  0x51   :  { %p18900_p10 = por %p18899_p9, %p18898_p8 }
  0x53   :  { %p18901_p11 = pnand %p18900_p10, %p18894_p7 }
  0x55   :  { %18904 = shalt.err (!%p18901_p11)
}
  0x56   :  { %s18988_s1 = smov 512   ;;  %s18989_s26 = smov 32  }
  0x57   :  { %56 = dma.hbm_to_vmem [thread:$0]  %s19627_s3, 57344, %s51_s30, [#allocation5], %s18988_s1, %s18988_s1, %s18989_s26  }
  0x58   :  { %s18990_s22 = smov [#allocation9]   ;;  %s18991_s18 = smov [#allocation12]  }
  0x59   :  { %s75_s2 = sshll.u32 %s18990_s22, 4  ;;  %s96_s23 = sshll.u32 %s18991_s18, 4  ;;  %s76_s2 = int_to_ptr.vmem [resolvable:$true] %s75_s2  ;;  %s97_s23 = int_to_ptr.vmem [resolvable:$true] %s96_s23 }
  0x5a   :  { %s18905_s24 = scalar_lea.hbm %s19630_s6, 16 }
  0x5b   :  { %p18906_p12 = scmp.ne.s32.totalorder %s19630_s6, %s18905_s24  ;;  %p18909_p13 = scmp.lt.u32.totalorder %s18905_s24, %s19630_s6 }
  0x5d   :  { %p18911_p0 = pnand %p18909_p13, %p18906_p12 }
  0x5f   :  { %18914 = shalt.err (!%p18911_p0)
}
  0x60   :  { %s18915_s3 = scalar_lea.vmem %s76_s2, 16  ;;  %s18919_s30 = scalar_lea.vmem %s76_s2, 32 }
  0x61   :  { %p18916_p1 = scmp.ne.s32.totalorder %s76_s2, %s18915_s3  ;;  %p18920_p2 = scmp.lt.s32.totalorder %s76_s2, %s76_s2 }
  0x62   :  { %p18921_p3 = scmp.lt.s32.totalorder %s18919_s30, %s18915_s3 }
  0x64   :  { %p18922_p4 = por %p18921_p3, %p18920_p2 }
  0x66   :  { %p18923_p5 = pnand %p18922_p4, %p18916_p1 }
  0x68   :  { %18926 = shalt.err (!%p18923_p5)
}
  0x69   :  { %78 = dma.hbm_to_vmem [thread:$0]  %s19630_s6, 16, %s76_s2, [#allocation8]  }
  0x6a   :  { %s18927_s15 = scalar_lea.hbm %s19633_s9, 704 }
  0x6b   :  { %p18928_p6 = scmp.ne.s32.totalorder %s19633_s9, %s18927_s15  ;;  %p18931_p7 = scmp.lt.u32.totalorder %s18927_s15, %s19633_s9 }
  0x6d   :  { %p18933_p8 = pnand %p18931_p7, %p18928_p6 }
  0x6f   :  { %18936 = shalt.err (!%p18933_p8)
}
  0x70   :  { %s18937_s19 = scalar_lea.vmem %s97_s23, 704  ;;  %p18942_p10 = scmp.lt.s32.totalorder %s97_s23, %s97_s23 }
  0x71   :  { %p18938_p9 = scmp.ne.s32.totalorder %s97_s23, %s18937_s19  ;;  %p18943_p11 = scmp.lt.s32.totalorder %s18937_s19, %s18937_s19 }
  0x73   :  { %p18944_p12 = por %p18943_p11, %p18942_p10 }
  0x75   :  { %p18945_p13 = pnand %p18944_p12, %p18938_p9 }
  0x77   :  { %18948 = shalt.err (!%p18945_p13)
}
  0x78   :  { %s18992_s6 = smov 64   ;;  %s18993_s21 = smov 4  }
  0x79   :  { %102 = dma.hbm_to_vmem [thread:$0]  %s19633_s9, 704, %s97_s23, [#allocation11], %s18992_s6, %s18992_s6, %s18993_s21  }
  0x7a   :  { %s18994_s18 = smov [#allocation13]   ;;  %s18949_s27 = scalar_lea.hbm %s19634_s10, 16 }
  0x7b   :  { %s109_s25 = sshll.u32 %s18994_s18, 4  ;;  %p18950_p0 = scmp.ne.s32.totalorder %s19634_s10, %s18949_s27  ;;  %s110_s25 = int_to_ptr.vmem [resolvable:$true] %s109_s25 }
  0x7c   :  { %p18953_p1 = scmp.lt.u32.totalorder %s18949_s27, %s19634_s10 }
  0x7e   :  { %p18955_p2 = pnand %p18953_p1, %p18950_p0 }
  0x80   :  { %18958 = shalt.err (!%p18955_p2)
}
  0x81   :  { %s18959_s30 = scalar_lea.vmem %s110_s25, 16  ;;  %s18963_s9 = scalar_lea.vmem %s110_s25, 32 }
  0x82   :  { %p18960_p3 = scmp.ne.s32.totalorder %s110_s25, %s18959_s30  ;;  %p18964_p4 = scmp.lt.s32.totalorder %s110_s25, %s110_s25 }
  0x83   :  { %p18965_p5 = scmp.lt.s32.totalorder %s18963_s9, %s18959_s30 }
  0x85   :  { %p18966_p6 = por %p18965_p5, %p18964_p4 }
  0x87   :  { %p18967_p7 = pnand %p18966_p6, %p18960_p3 }
  0x89   :  { %18970 = shalt.err (!%p18967_p7)
}
  0x8a   :  { %112 = dma.hbm_to_vmem [thread:$0]  %s19634_s10, 16, %s110_s25, [#allocation14]  }
  0x8b   :  { %18971 = dma.done.wait [#allocation3], 175616  }
  0x8c   :  { %18972 = vsyncadd [#allocation3], 4294791680 }
  0x8d   :  { %18973 = dma.done.wait [#allocation5], 57456  }
  0x8e   :  { %18974 = vsyncadd [#allocation5], 4294909840 }
  0x8f   :  { %18975 = dma.done.wait [#allocation8], 48  }
  0x90   :  { %18976 = vsyncadd [#allocation8], 4294967248 }
  0x91   :  { %18977 = dma.done.wait [#allocation11], 720  }
  0x92   :  { %18978 = vsyncadd [#allocation11], 4294966576 }
  0x93   :  { %18979 = dma.done.wait [#allocation14], 16  }
  0x94   :  { %18980 = vsyncadd [#allocation14], 4294967280  ;;  %v18995_v0 = vmov 0   ;;  %v16706_v1 = vld [vmem:[#allocation2 + $0x4] ss:$112 sps:$4 sm:$0xff]   ;;  %vm8384_vm0 = vcmask 130048  }
  0x95   :  { %8543 = vmatprep.mubr.bf16.mxu1 %v18995_v0  ;;  %v16708_v2 = vld [vmem:[#allocation2 + $0x2a04] ss:$112 sps:$4 sm:$0xff]   ;;  %8388 = vmatprep.subr.bf16.mxu0 %v16706_v1  ;;  %v16710_v3 = vld [vmem:[#allocation2] ss:$112 sps:$4 sm:$0xff]   ;;  %v16714_v6 = vld [vmem:[#allocation2 + $0x8] ss:$112 sps:$4 sm:$0xff]  }
  0x96   :  { %v16711_v4 = vld [vmem:[#allocation2 + $0x2a00] ss:$112 sps:$4 sm:$0xff]   ;;  %8511 = vmatprep.subr.bf16.mxu1 %v16708_v2  ;;  %v16712_v5 = vld [vmem:[#allocation2 + $0xe4] ss:$112 sps:$4 sm:$0xff]   ;;  %8389 = vmatpush1.bf16.msra.mxu0 %v16710_v3  ;;  %v16716_v7 = vld [vmem:[#allocation2 + $0xc] ss:$112 sps:$4 sm:$0xff]  }
  0x97   :  { %8512 = vmatpush1.bf16.msra.mxu1 %v16711_v4  ;;  %8390 = vmatprep.subr.bf16.mxu0 %v16712_v5  ;;  %v16717_v8 = vld [vmem:[#allocation2 + $0xe0] ss:$112 sps:$4 sm:$0xff]   ;;  %v16718_v11 = vld [vmem:[#allocation2 + $0x1c4] ss:$112 sps:$4 sm:$0xff]   ;;  %v16720_v12 = vld [vmem:[#allocation2 + $0xe8] ss:$112 sps:$4 sm:$0xff]  }
  0x98   :  { %v144_v9 = vld [vmem:[%s19624_s0 + $0x30] sm:$0xff]  ;;  %8552 = vmatprep.subr.bf16.mxu1 %v16716_v7  ;;  %v16722_v13 = vld [vmem:[#allocation2 + $0xec] ss:$112 sps:$4 sm:$0xff]   ;;  %v16726_v18 = vld [vmem:[#allocation2 + $0x1c8] ss:$112 sps:$4 sm:$0xff]   ;;  %vm14379_vm1 = vcmask 1043456  }
  0x99   :  { %v19165_v10 = vpack.c.bf16 %v144_v9, %v144_v9  ;;  %v16723_v14 = vld [vmem:[#allocation2 + $0x1c0] ss:$112 sps:$4 sm:$0xff]   ;;  %v16724_v15 = vld [vmem:[#allocation2 + $0x2a4] ss:$112 sps:$4 sm:$0xff]   ;;  %v16728_v16 = vld [vmem:[#allocation2 + $0x1cc] ss:$112 sps:$4 sm:$0xff]  }
  0x9a   :  { %8391 = vmatpush1.bf16.msra.mxu0 %v16717_v8  ;;  %v16729_v17 = vld [vmem:[#allocation2 + $0x2a0] ss:$112 sps:$4 sm:$0xff]   ;;  %v16730_v19 = vld [vmem:[#allocation2 + $0x384] ss:$112 sps:$4 sm:$0xff]   ;;  %v16734_v20 = vld [vmem:[#allocation2 + $0x2ac] ss:$112 sps:$4 sm:$0xff]  }
  0x9b   :  { %15906 = vmatmul.mubr.msk.bf16.vlgmr.msra.gmra.mrb[0].mxu1 %vm8384_vm0, %v19165_v10  ;;  %8392 = vmatprep.subr.bf16.mxu0 %v16718_v11  ;;  %v16732_v21 = vld [vmem:[#allocation2 + $0x2a8] ss:$112 sps:$4 sm:$0xff]   ;;  %v16735_v22 = vld [vmem:[#allocation2 + $0x380] ss:$112 sps:$4 sm:$0xff]   ;;  %v16736_v23 = vld [vmem:[#allocation2 + $0x464] ss:$112 sps:$4 sm:$0xff]  }
  0x9c   :  { %8553 = vmatpush1.bf16.msra.mxu1 %v16714_v6  ;;  %v16740_v24 = vld [vmem:[#allocation2 + $0x38c] ss:$112 sps:$4 sm:$0xff]   ;;  %v16741_v25 = vld [vmem:[#allocation2 + $0x460] ss:$112 sps:$4 sm:$0xff]   ;;  %v16738_v26 = vld [vmem:[#allocation2 + $0x388] ss:$112 sps:$4 sm:$0xff]  }
  0x9d   :  { %8554 = vmatprep.subr.bf16.mxu1 %v16722_v13  ;;  %v16742_v27 = vld [vmem:[#allocation2 + $0x544] ss:$112 sps:$4 sm:$0xff]   ;;  %v16746_v28 = vld [vmem:[#allocation2 + $0x46c] ss:$112 sps:$4 sm:$0xff]   ;;  %v16744_v29 = vld [vmem:[#allocation2 + $0x468] ss:$112 sps:$4 sm:$0xff]  }
  0x9e   :  { %8393 = vmatpush1.bf16.msra.mxu0 %v16723_v14  ;;  %v16747_v30 = vld [vmem:[#allocation2 + $0x540] ss:$112 sps:$4 sm:$0xff]   ;;  %v16748_v31 = vld [vmem:[#allocation2 + $0x624] ss:$112 sps:$4 sm:$0xff]   ;;  %v16752_v32 = vld [vmem:[#allocation2 + $0x54c] ss:$112 sps:$4 sm:$0xff]  }
  0x9f   :  { %8394 = vmatprep.subr.bf16.mxu0 %v16724_v15  ;;  %v16753_v33 = vld [vmem:[#allocation2 + $0x620] ss:$112 sps:$4 sm:$0xff]   ;;  %v16750_v34 = vld [vmem:[#allocation2 + $0x548] ss:$112 sps:$4 sm:$0xff]   ;;  %v16754_v35 = vld [vmem:[#allocation2 + $0x704] ss:$112 sps:$4 sm:$0xff]  }
  0xa0   :  { %8555 = vmatpush1.bf16.msra.mxu1 %v16720_v12  ;;  %v16758_v36 = vld [vmem:[#allocation2 + $0x62c] ss:$112 sps:$4 sm:$0xff]   ;;  %v16756_v37 = vld [vmem:[#allocation2 + $0x628] ss:$112 sps:$4 sm:$0xff]   ;;  %v16759_v38 = vld [vmem:[#allocation2 + $0x700] ss:$112 sps:$4 sm:$0xff]  }
  0xa1   :  { %8556 = vmatprep.subr.bf16.mxu1 %v16728_v16  ;;  %v16760_v39 = vld [vmem:[#allocation2 + $0x7e4] ss:$112 sps:$4 sm:$0xff]   ;;  %v16764_v40 = vld [vmem:[#allocation2 + $0x70c] ss:$112 sps:$4 sm:$0xff]   ;;  %v16765_v41 = vld [vmem:[#allocation2 + $0x7e0] ss:$112 sps:$4 sm:$0xff]  }
  0xa2   :  { %8395 = vmatpush1.bf16.msra.mxu0 %v16729_v17  ;;  %v16762_v42 = vld [vmem:[#allocation2 + $0x708] ss:$112 sps:$4 sm:$0xff]   ;;  %v16766_v43 = vld [vmem:[#allocation2 + $0x8c4] ss:$112 sps:$4 sm:$0xff]   ;;  %v16770_v44 = vld [vmem:[#allocation2 + $0x7ec] ss:$112 sps:$4 sm:$0xff]  }
  0xa3   :  { %8396 = vmatprep.subr.bf16.mxu0 %v16730_v19  ;;  %v16768_v45 = vld [vmem:[#allocation2 + $0x7e8] ss:$112 sps:$4 sm:$0xff]   ;;  %v16771_v46 = vld [vmem:[#allocation2 + $0x8c0] ss:$112 sps:$4 sm:$0xff]   ;;  %v16772_v47 = vld [vmem:[#allocation2 + $0x9a4] ss:$112 sps:$4 sm:$0xff]  }
  0xa4   :  { %8557 = vmatpush1.bf16.msra.mxu1 %v16726_v18  ;;  %v16776_v48 = vld [vmem:[#allocation2 + $0x8cc] ss:$112 sps:$4 sm:$0xff]   ;;  %v16777_v50 = vld [vmem:[#allocation2 + $0x9a0] ss:$112 sps:$4 sm:$0xff]   ;;  %v16774_v52 = vld [vmem:[#allocation2 + $0x8c8] ss:$112 sps:$4 sm:$0xff]  }
  0xa5   :  { %8558 = vmatprep.subr.bf16.mxu1 %v16734_v20  ;;  %v139_v49 = vld [vmem:[%s19624_s0 + $0x8] sm:$0xff]  ;;  %v16778_v53 = vld [vmem:[#allocation2 + $0xa84] ss:$112 sps:$4 sm:$0xff]   ;;  %v16783_v56 = vld [vmem:[#allocation2 + $0xa80] ss:$112 sps:$4 sm:$0xff]   ;;  %vm18997_vm2 = vmmov 0  }
  0xa6   :  { %8397 = vmatpush1.bf16.msra.mxu0 %v16735_v22  ;;  %v19172_v51 = vpack.c.bf16 %v139_v49, %v139_v49  ;;  %v16782_v54 = vld [vmem:[#allocation2 + $0x9ac] ss:$112 sps:$4 sm:$0xff]   ;;  %v16780_v55 = vld [vmem:[#allocation2 + $0x9a8] ss:$112 sps:$4 sm:$0xff]   ;;  %v16784_v57 = vld [vmem:[#allocation2 + $0xb64] ss:$112 sps:$4 sm:$0xff]  }
  0xa7   :  { %8398 = vmatprep.subr.bf16.mxu0 %v16736_v23  ;;  %v16788_v58 = vld [vmem:[#allocation2 + $0xa8c] ss:$112 sps:$4 sm:$0xff]   ;;  %v16786_v59 = vld [vmem:[#allocation2 + $0xa88] ss:$112 sps:$4 sm:$0xff]   ;;  %v16789_v60 = vld [vmem:[#allocation2 + $0xb60] ss:$112 sps:$4 sm:$0xff]  }
  0xa8   :  { %8559 = vmatpush1.bf16.msra.mxu1 %v16732_v21  ;;  %8420 = vmatprep.mubr.bf16.mxu0 %v19172_v51  ;;  %v16790_v61 = vld [vmem:[#allocation2 + $0xc44] ss:$112 sps:$4 sm:$0xff]   ;;  %v16794_v62 = vld [vmem:[#allocation2 + $0xb6c] ss:$112 sps:$4 sm:$0xff]   ;;  %v16792_v63 = vld [vmem:[#allocation2 + $0xb68] ss:$112 sps:$4 sm:$0xff]  }
  0xa9   :  { %8560 = vmatprep.subr.bf16.mxu1 %v16740_v24  ;;  %8584 = vmatprep.mubr.bf16.mxu1 %v19172_v51  ;;  %v16795_v1 = vld [vmem:[#allocation2 + $0xc40] ss:$112 sps:$4 sm:$0xff]   ;;  %v16796_v2 = vld [vmem:[#allocation2 + $0xd24] ss:$112 sps:$4 sm:$0xff]   ;;  %v16800_v3 = vld [vmem:[#allocation2 + $0xc4c] ss:$112 sps:$4 sm:$0xff]  }
  0xaa   :  { %8399 = vmatpush1.bf16.msra.mxu0 %v16741_v25  ;;  %v16798_v4 = vld [vmem:[#allocation2 + $0xc48] ss:$112 sps:$4 sm:$0xff]   ;;  %v16801_v5 = vld [vmem:[#allocation2 + $0xd20] ss:$112 sps:$4 sm:$0xff]   ;;  %v16804_v7 = vld [vmem:[#allocation2 + $0xe04] ss:$112 sps:$4 sm:$0xff]  }
  0xab   :  { %8400 = vmatprep.subr.bf16.mxu0 %v16742_v27  ;;  %v138_v6 = vld [vmem:[%s19624_s0] sm:$0xff]  ;;  %v16807_v8 = vld [vmem:[#allocation2 + $0xd2c] ss:$112 sps:$4 sm:$0xff]   ;;  %v16805_v12 = vld [vmem:[#allocation2 + $0xd28] ss:$112 sps:$4 sm:$0xff]   ;;  %vm14375_vm3 = vcmask 982016  }
  0xac   :  { %8561 = vmatpush1.bf16.msra.mxu1 %v16738_v26  ;;  %v19179_v9 = vpack.c.bf16 %v138_v6, %v138_v6  ;;  %v16802_v11 = vld [vmem:[#allocation2 + $0xe00] ss:$112 sps:$4 sm:$0xff]   ;;  %v16810_v13 = vld [vmem:[#allocation2 + $0xee4] ss:$112 sps:$4 sm:$0xff]   ;;  %v16813_v14 = vld [vmem:[#allocation2 + $0xe0c] ss:$112 sps:$4 sm:$0xff]  }
  0xad   :  { %8562 = vmatprep.subr.bf16.mxu1 %v16746_v28  ;;  %v16808_v15 = vld [vmem:[#allocation2 + $0xee0] ss:$112 sps:$4 sm:$0xff]   ;;  %v16811_v16 = vld [vmem:[#allocation2 + $0xe08] ss:$112 sps:$4 sm:$0xff]   ;;  %v16816_v17 = vld [vmem:[#allocation2 + $0xfc4] ss:$112 sps:$4 sm:$0xff]  }
  0xae   :  { %8401 = vmatpush1.bf16.msra.mxu0 %v16747_v30  ;;  %v16819_v18 = vld [vmem:[#allocation2 + $0xeec] ss:$112 sps:$4 sm:$0xff]   ;;  %v16814_v19 = vld [vmem:[#allocation2 + $0xfc0] ss:$112 sps:$4 sm:$0xff]   ;;  %v16817_v20 = vld [vmem:[#allocation2 + $0xee8] ss:$112 sps:$4 sm:$0xff]  }
  0xaf   :  { %8402 = vmatprep.subr.bf16.mxu0 %v16748_v31  ;;  %v16822_v21 = vld [vmem:[#allocation2 + $0x10a4] ss:$112 sps:$4 sm:$0xff]   ;;  %v16825_v22 = vld [vmem:[#allocation2 + $0xfcc] ss:$112 sps:$4 sm:$0xff]   ;;  %v16820_v23 = vld [vmem:[#allocation2 + $0x10a0] ss:$112 sps:$4 sm:$0xff]  }
  0xb0   :  { %8563 = vmatpush1.bf16.msra.mxu1 %v16744_v29  ;;  %v16823_v24 = vld [vmem:[#allocation2 + $0xfc8] ss:$112 sps:$4 sm:$0xff]   ;;  %v16828_v25 = vld [vmem:[#allocation2 + $0x1184] ss:$112 sps:$4 sm:$0xff]   ;;  %v16831_v26 = vld [vmem:[#allocation2 + $0x10ac] ss:$112 sps:$4 sm:$0xff]  }
  0xb1   :  { %8564 = vmatprep.subr.bf16.mxu1 %v16752_v32  ;;  %v16826_v27 = vld [vmem:[#allocation2 + $0x1180] ss:$112 sps:$4 sm:$0xff]   ;;  %v16829_v28 = vld [vmem:[#allocation2 + $0x10a8] ss:$112 sps:$4 sm:$0xff]   ;;  %v16834_v29 = vld [vmem:[#allocation2 + $0x1264] ss:$112 sps:$4 sm:$0xff]  }
  0xb2   :  { %8403 = vmatpush1.bf16.msra.mxu0 %v16753_v33  ;;  %v16837_v30 = vld [vmem:[#allocation2 + $0x118c] ss:$112 sps:$4 sm:$0xff]   ;;  %v16832_v31 = vld [vmem:[#allocation2 + $0x1260] ss:$112 sps:$4 sm:$0xff]   ;;  %v16835_v32 = vld [vmem:[#allocation2 + $0x1188] ss:$112 sps:$4 sm:$0xff]  }
  0xb3   :  { %8404 = vmatprep.subr.bf16.mxu0 %v16754_v35  ;;  %v16840_v33 = vld [vmem:[#allocation2 + $0x1344] ss:$112 sps:$4 sm:$0xff]   ;;  %v141_v35 = vld [vmem:[%s19624_s0 + $0x18] sm:$0xff]  ;;  %v16856_v49 = vld [vmem:[#allocation2 + $0x15e0] ss:$112 sps:$4 sm:$0xff]   ;;  %vm14480_vm4 = vcmask 1041408  }
  0xb4   :  { %8565 = vmatpush1.bf16.msra.mxu1 %v16750_v34  ;;  %v16843_v34 = vld [vmem:[#allocation2 + $0x126c] ss:$112 sps:$4 sm:$0xff]   ;;  %vm14476_vm5 = vcmask 687104  }
  0xb5   :  { %8566 = vmatprep.subr.bf16.mxu1 %v16758_v36  ;;  %v19186_v36 = vpack.c.bf16 %v141_v35, %v141_v35  ;;  %v16891_v6 = vld [vmem:[#allocation2 + $0x196c] ss:$112 sps:$4 sm:$0xff]   ;;  %v16924_v35 = vld [vmem:[#allocation2 + $0x1f84] ss:$112 sps:$4 sm:$0xff]  }
  0xb6   :  { %8405 = vmatpush1.bf16.msra.mxu0 %v16759_v38  ;;  %v16841_v38 = vld [vmem:[#allocation2 + $0x1268] ss:$112 sps:$4 sm:$0xff]  }
  0xb7   :  { %8406 = vmatprep.subr.bf16.mxu0 %v16760_v39  ;;  %v16846_v39 = vld [vmem:[#allocation2 + $0x1424] ss:$112 sps:$4 sm:$0xff]  }
  0xb8   :  { %8567 = vmatpush1.bf16.msra.mxu1 %v16756_v37  ;;  %v16838_v37 = vld [vmem:[#allocation2 + $0x1340] ss:$112 sps:$4 sm:$0xff]  }
  0xb9   :  { %8568 = vmatprep.subr.bf16.mxu1 %v16764_v40  ;;  %v16849_v40 = vld [vmem:[#allocation2 + $0x134c] ss:$112 sps:$4 sm:$0xff]  }
  0xba   :  { %8407 = vmatpush1.bf16.msra.mxu0 %v16765_v41  ;;  %v16844_v41 = vld [vmem:[#allocation2 + $0x1420] ss:$112 sps:$4 sm:$0xff]  }
  0xbb   :  { %8408 = vmatprep.subr.bf16.mxu0 %v16766_v43  ;;  %v16852_v43 = vld [vmem:[#allocation2 + $0x1504] ss:$112 sps:$4 sm:$0xff]  }
  0xbc   :  { %8569 = vmatpush1.bf16.msra.mxu1 %v16762_v42  ;;  %v16847_v42 = vld [vmem:[#allocation2 + $0x1348] ss:$112 sps:$4 sm:$0xff]  }
  0xbd   :  { %8570 = vmatprep.subr.bf16.mxu1 %v16770_v44  ;;  %v16855_v44 = vld [vmem:[#allocation2 + $0x142c] ss:$112 sps:$4 sm:$0xff]  }
  0xbe   :  { %8409 = vmatpush1.bf16.msra.mxu0 %v16771_v46  ;;  %v16853_v46 = vld [vmem:[#allocation2 + $0x1428] ss:$112 sps:$4 sm:$0xff]  }
  0xbf   :  { %8410 = vmatprep.subr.bf16.mxu0 %v16772_v47  ;;  %v16858_v47 = vld [vmem:[#allocation2 + $0x15e4] ss:$112 sps:$4 sm:$0xff]  }
  0xc0   :  { %8571 = vmatpush1.bf16.msra.mxu1 %v16768_v45  ;;  %v16850_v45 = vld [vmem:[#allocation2 + $0x1500] ss:$112 sps:$4 sm:$0xff]  }
  0xc1   :  { %8572 = vmatprep.subr.bf16.mxu1 %v16776_v48  ;;  %v16861_v48 = vld [vmem:[#allocation2 + $0x150c] ss:$112 sps:$4 sm:$0xff]  }
  0xc2   :  { %8411 = vmatpush1.bf16.msra.mxu0 %v16777_v50  ;;  %v16859_v50 = vld [vmem:[#allocation2 + $0x1508] ss:$112 sps:$4 sm:$0xff]  }
  0xc3   :  { %8412 = vmatprep.subr.bf16.mxu0 %v16778_v53  ;;  %v16867_v53 = vld [vmem:[#allocation2 + $0x15ec] ss:$112 sps:$4 sm:$0xff]  }
  0xc4   :  { %8573 = vmatpush1.bf16.msra.mxu1 %v16774_v52  ;;  %v16864_v52 = vld [vmem:[#allocation2 + $0x16c4] ss:$112 sps:$4 sm:$0xff]  }
  0xc5   :  { %8574 = vmatprep.subr.bf16.mxu1 %v16782_v54  ;;  %v16862_v54 = vld [vmem:[#allocation2 + $0x16c0] ss:$112 sps:$4 sm:$0xff]  }
  0xc6   :  { %8413 = vmatpush1.bf16.msra.mxu0 %v16783_v56  ;;  %v16870_v56 = vld [vmem:[#allocation2 + $0x17a4] ss:$112 sps:$4 sm:$0xff]  }
  0xc7   :  { %8414 = vmatprep.subr.bf16.mxu0 %v16784_v57  ;;  %v16873_v57 = vld [vmem:[#allocation2 + $0x16cc] ss:$112 sps:$4 sm:$0xff]  }
  0xc8   :  { %8575 = vmatpush1.bf16.msra.mxu1 %v16780_v55  ;;  %v16865_v55 = vld [vmem:[#allocation2 + $0x15e8] ss:$112 sps:$4 sm:$0xff]  }
  0xc9   :  { %8576 = vmatprep.subr.bf16.mxu1 %v16788_v58  ;;  %v16868_v58 = vld [vmem:[#allocation2 + $0x17a0] ss:$112 sps:$4 sm:$0xff]  }
  0xca   :  { %8415 = vmatpush1.bf16.msra.mxu0 %v16789_v60  ;;  %v16876_v60 = vld [vmem:[#allocation2 + $0x1884] ss:$112 sps:$4 sm:$0xff]  }
  0xcb   :  { %8416 = vmatprep.subr.bf16.mxu0 %v16790_v61  ;;  %v16879_v61 = vld [vmem:[#allocation2 + $0x17ac] ss:$112 sps:$4 sm:$0xff]  }
  0xcc   :  { %8577 = vmatpush1.bf16.msra.mxu1 %v16786_v59  ;;  %v16871_v59 = vld [vmem:[#allocation2 + $0x16c8] ss:$112 sps:$4 sm:$0xff]  }
  0xcd   :  { %8578 = vmatprep.subr.bf16.mxu1 %v16794_v62  ;;  %v16874_v62 = vld [vmem:[#allocation2 + $0x1880] ss:$112 sps:$4 sm:$0xff]  }
  0xce   :  { %8417 = vmatpush1.bf16.msra.mxu0 %v16795_v1  ;;  %v16882_v1 = vld [vmem:[#allocation2 + $0x1964] ss:$112 sps:$4 sm:$0xff]  }
  0xcf   :  { %8418 = vmatprep.subr.bf16.mxu0 %v16796_v2  ;;  %v16885_v2 = vld [vmem:[#allocation2 + $0x188c] ss:$112 sps:$4 sm:$0xff]  }
  0xd0   :  { %8579 = vmatpush1.bf16.msra.mxu1 %v16792_v63  ;;  %v16877_v63 = vld [vmem:[#allocation2 + $0x17a8] ss:$112 sps:$4 sm:$0xff]  }
  0xd1   :  { %8580 = vmatprep.subr.bf16.mxu1 %v16800_v3  ;;  %v16880_v3 = vld [vmem:[#allocation2 + $0x1960] ss:$112 sps:$4 sm:$0xff]  }
  0xd2   :  { %8419 = vmatpush1.bf16.msra.mxu0 %v16801_v5  ;;  %v16888_v5 = vld [vmem:[#allocation2 + $0x1a44] ss:$112 sps:$4 sm:$0xff]  }
  0xd3   :  { %8429 = vmatprep.subr.bf16.mxu0 %v16804_v7  ;;  %v16886_v7 = vld [vmem:[#allocation2 + $0x1a40] ss:$112 sps:$4 sm:$0xff]  }
  0xd4   :  { %8581 = vmatpush1.bf16.msra.mxu1 %v16798_v4  ;;  %v16883_v4 = vld [vmem:[#allocation2 + $0x1888] ss:$112 sps:$4 sm:$0xff]  }
  0xd5   :  { %8582 = vmatprep.subr.bf16.mxu1 %v16807_v8  ;;  %8421 = vmatmul.mubr.bf16.vlgmr.msra.gmra.mrb[0].mxu0 %v19179_v9  ;;  %v16889_v8 = vld [vmem:[#allocation2 + $0x1968] ss:$112 sps:$4 sm:$0xff]  }
  0xd6   :  { %8430 = vmatpush1.bf16.msra.mxu0 %v16802_v11  ;;  %8461 = vmatprep.mubr.bf16.mxu0 %v19186_v36  ;;  %v16894_v11 = vld [vmem:[#allocation2 + $0x1b24] ss:$112 sps:$4 sm:$0xff]  }
  0xd7   :  { %8431 = vmatprep.subr.bf16.mxu0 %v16810_v13  ;;  %v16892_v13 = vld [vmem:[#allocation2 + $0x1b20] ss:$112 sps:$4 sm:$0xff]  }
  0xd8   :  { %8583 = vmatpush1.bf16.msra.mxu1 %v16805_v12  ;;  %v16897_v12 = vld [vmem:[#allocation2 + $0x1a4c] ss:$112 sps:$4 sm:$0xff]  }
  0xd9   :  { %8593 = vmatprep.subr.bf16.mxu1 %v16813_v14  ;;  %v140_v14 = vld [vmem:[%s19624_s0 + $0x10] sm:$0xff] }
  0xda   :  { %8432 = vmatpush1.bf16.msra.mxu0 %v16808_v15  ;;  %v16895_v15 = vld [vmem:[#allocation2 + $0x1a48] ss:$112 sps:$4 sm:$0xff]  }
  0xdb   :  { %8585 = vmatmul.mubr.bf16.vlgmr.msra.gmra.mrb[4].mxu1 %v19179_v9  ;;  %8433 = vmatprep.subr.bf16.mxu0 %v16816_v17  ;;  %v16903_v17 = vld [vmem:[#allocation2 + $0x1b2c] ss:$112 sps:$4 sm:$0xff]  }
  0xdc   :  { %8594 = vmatpush1.bf16.msra.mxu1 %v16811_v16  ;;  %8625 = vmatprep.mubr.bf16.mxu1 %v19186_v36  ;;  %v16900_v16 = vld [vmem:[#allocation2 + $0x1c04] ss:$112 sps:$4 sm:$0xff]  }
  0xdd   :  { %8595 = vmatprep.subr.bf16.mxu1 %v16819_v18  ;;  %v19193_v18 = vpack.c.bf16 %v140_v14, %v140_v14  ;;  %v16976_v14 = vld [vmem:[#allocation2 + $0x2760] ss:$112 sps:$4 sm:$0xff]  }
  0xde   :  { %8434 = vmatpush1.bf16.msra.mxu0 %v16814_v19  ;;  %v16898_v19 = vld [vmem:[#allocation2 + $0x1c00] ss:$112 sps:$4 sm:$0xff]  }
  0xdf   :  { %8435 = vmatprep.subr.bf16.mxu0 %v16822_v21  ;;  %v16906_v21 = vld [vmem:[#allocation2 + $0x1ce4] ss:$112 sps:$4 sm:$0xff]  }
  0xe0   :  { %8596 = vmatpush1.bf16.msra.mxu1 %v16817_v20  ;;  %v16901_v20 = vld [vmem:[#allocation2 + $0x1b28] ss:$112 sps:$4 sm:$0xff]  }
  0xe1   :  { %8597 = vmatprep.subr.bf16.mxu1 %v16825_v22  ;;  %v143_v22 = vld [vmem:[%s19624_s0 + $0x28] sm:$0xff] }
  0xe2   :  { %8436 = vmatpush1.bf16.msra.mxu0 %v16820_v23  ;;  %v16909_v23 = vld [vmem:[#allocation2 + $0x1c0c] ss:$112 sps:$4 sm:$0xff]  }
  0xe3   :  { %8437 = vmatprep.subr.bf16.mxu0 %v16828_v25  ;;  %v16904_v25 = vld [vmem:[#allocation2 + $0x1ce0] ss:$112 sps:$4 sm:$0xff]  }
  0xe4   :  { %8598 = vmatpush1.bf16.msra.mxu1 %v16823_v24  ;;  %v19198_v24 = vpack.c.bf16 %v143_v22, %v143_v22  ;;  %v16993_v22 = vld [vmem:[#allocation2 + $0x284c] ss:$112 sps:$4 sm:$0xff]  }
  0xe5   :  { %8599 = vmatprep.subr.bf16.mxu1 %v16831_v26  ;;  %v16907_v26 = vld [vmem:[#allocation2 + $0x1c08] ss:$112 sps:$4 sm:$0xff]  }
  0xe6   :  { %8438 = vmatpush1.bf16.msra.mxu0 %v16826_v27  ;;  %v16912_v27 = vld [vmem:[#allocation2 + $0x1dc4] ss:$112 sps:$4 sm:$0xff]  }
  0xe7   :  { %8439 = vmatprep.subr.bf16.mxu0 %v16834_v29  ;;  %v16910_v29 = vld [vmem:[#allocation2 + $0x1dc0] ss:$112 sps:$4 sm:$0xff]  }
  0xe8   :  { %8600 = vmatpush1.bf16.msra.mxu1 %v16829_v28  ;;  %v16915_v28 = vld [vmem:[#allocation2 + $0x1cec] ss:$112 sps:$4 sm:$0xff]  }
  0xe9   :  { %8601 = vmatprep.subr.bf16.mxu1 %v16837_v30  ;;  %v16913_v30 = vld [vmem:[#allocation2 + $0x1ce8] ss:$112 sps:$4 sm:$0xff]  }
  0xea   :  { %8440 = vmatpush1.bf16.msra.mxu0 %v16832_v31  ;;  %v16918_v31 = vld [vmem:[#allocation2 + $0x1ea4] ss:$112 sps:$4 sm:$0xff]  }
  0xeb   :  { %8441 = vmatprep.subr.bf16.mxu0 %v16840_v33  ;;  %v16916_v33 = vld [vmem:[#allocation2 + $0x1ea0] ss:$112 sps:$4 sm:$0xff]  }
  0xec   :  { %8602 = vmatpush1.bf16.msra.mxu1 %v16835_v32  ;;  %v16921_v32 = vld [vmem:[#allocation2 + $0x1dcc] ss:$112 sps:$4 sm:$0xff]  }
  0xed   :  { %8603 = vmatprep.subr.bf16.mxu1 %v16843_v34  ;;  %v16919_v34 = vld [vmem:[#allocation2 + $0x1dc8] ss:$112 sps:$4 sm:$0xff]  }
  0xee   :  { %8442 = vmatpush1.bf16.msra.mxu0 %v16838_v37  ;;  %v16927_v37 = vld [vmem:[#allocation2 + $0x1eac] ss:$112 sps:$4 sm:$0xff]  }
  0xef   :  { %8443 = vmatprep.subr.bf16.mxu0 %v16846_v39  ;;  %v16925_v39 = vld [vmem:[#allocation2 + $0x1ea8] ss:$112 sps:$4 sm:$0xff]  }
  0xf0   :  { %8604 = vmatpush1.bf16.msra.mxu1 %v16841_v38  ;;  %v16922_v38 = vld [vmem:[#allocation2 + $0x1f80] ss:$112 sps:$4 sm:$0xff]  }
  0xf1   :  { %8605 = vmatprep.subr.bf16.mxu1 %v16849_v40  ;;  %v16930_v40 = vld [vmem:[#allocation2 + $0x2064] ss:$112 sps:$4 sm:$0xff]  }
  0xf2   :  { %8444 = vmatpush1.bf16.msra.mxu0 %v16844_v41  ;;  %v16933_v41 = vld [vmem:[#allocation2 + $0x1f8c] ss:$112 sps:$4 sm:$0xff]  }
  0xf3   :  { %8445 = vmatprep.subr.bf16.mxu0 %v16852_v43  ;;  %v16931_v43 = vld [vmem:[#allocation2 + $0x1f88] ss:$112 sps:$4 sm:$0xff]  }
  0xf4   :  { %8606 = vmatpush1.bf16.msra.mxu1 %v16847_v42  ;;  %v16928_v42 = vld [vmem:[#allocation2 + $0x2060] ss:$112 sps:$4 sm:$0xff]  }
  0xf5   :  { %8607 = vmatprep.subr.bf16.mxu1 %v16855_v44  ;;  %v16936_v44 = vld [vmem:[#allocation2 + $0x2144] ss:$112 sps:$4 sm:$0xff]  }
  0xf6   :  { %8446 = vmatpush1.bf16.msra.mxu0 %v16850_v45  ;;  %v16939_v45 = vld [vmem:[#allocation2 + $0x206c] ss:$112 sps:$4 sm:$0xff]  }
  0xf7   :  { %8447 = vmatprep.subr.bf16.mxu0 %v16858_v47  ;;  %v16937_v47 = vld [vmem:[#allocation2 + $0x2068] ss:$112 sps:$4 sm:$0xff]  }
  0xf8   :  { %8608 = vmatpush1.bf16.msra.mxu1 %v16853_v46  ;;  %v16934_v46 = vld [vmem:[#allocation2 + $0x2140] ss:$112 sps:$4 sm:$0xff]  }
  0xf9   :  { %8609 = vmatprep.subr.bf16.mxu1 %v16861_v48  ;;  %v16942_v48 = vld [vmem:[#allocation2 + $0x2224] ss:$112 sps:$4 sm:$0xff]  }
  0xfa   :  { %8448 = vmatpush1.bf16.msra.mxu0 %v16856_v49  ;;  %v16945_v49 = vld [vmem:[#allocation2 + $0x214c] ss:$112 sps:$4 sm:$0xff]  }
  0xfb   :  { %8449 = vmatprep.subr.bf16.mxu0 %v16864_v52  ;;  %v16943_v52 = vld [vmem:[#allocation2 + $0x2148] ss:$112 sps:$4 sm:$0xff]  }
  0xfc   :  { %8610 = vmatpush1.bf16.msra.mxu1 %v16859_v50  ;;  %v16940_v50 = vld [vmem:[#allocation2 + $0x2220] ss:$112 sps:$4 sm:$0xff]  }
  0xfd   :  { %8611 = vmatprep.subr.bf16.mxu1 %v16867_v53  ;;  %v16948_v53 = vld [vmem:[#allocation2 + $0x2304] ss:$112 sps:$4 sm:$0xff]  }
  0xfe   :  { %8450 = vmatpush1.bf16.msra.mxu0 %v16862_v54  ;;  %v16951_v54 = vld [vmem:[#allocation2 + $0x222c] ss:$112 sps:$4 sm:$0xff]  }
  0xff   :  { %8451 = vmatprep.subr.bf16.mxu0 %v16870_v56  ;;  %v16949_v56 = vld [vmem:[#allocation2 + $0x2228] ss:$112 sps:$4 sm:$0xff]  }
 0x100   :  { %8612 = vmatpush1.bf16.msra.mxu1 %v16865_v55  ;;  %v16946_v55 = vld [vmem:[#allocation2 + $0x2300] ss:$112 sps:$4 sm:$0xff]  }
 0x101   :  { %8613 = vmatprep.subr.bf16.mxu1 %v16873_v57  ;;  %v16954_v57 = vld [vmem:[#allocation2 + $0x23e4] ss:$112 sps:$4 sm:$0xff]  }
 0x102   :  { %8452 = vmatpush1.bf16.msra.mxu0 %v16868_v58  ;;  %v16957_v58 = vld [vmem:[#allocation2 + $0x230c] ss:$112 sps:$4 sm:$0xff]  }
 0x103   :  { %8453 = vmatprep.subr.bf16.mxu0 %v16876_v60  ;;  %v16955_v60 = vld [vmem:[#allocation2 + $0x2308] ss:$112 sps:$4 sm:$0xff]  }
 0x104   :  { %8614 = vmatpush1.bf16.msra.mxu1 %v16871_v59  ;;  %v16952_v59 = vld [vmem:[#allocation2 + $0x23e0] ss:$112 sps:$4 sm:$0xff]  }
 0x105   :  { %8615 = vmatprep.subr.bf16.mxu1 %v16879_v61  ;;  %v16960_v61 = vld [vmem:[#allocation2 + $0x24c4] ss:$112 sps:$4 sm:$0xff]  }
 0x106   :  { %8454 = vmatpush1.bf16.msra.mxu0 %v16874_v62  ;;  %v16963_v62 = vld [vmem:[#allocation2 + $0x23ec] ss:$112 sps:$4 sm:$0xff]  }
 0x107   :  { %8455 = vmatprep.subr.bf16.mxu0 %v16882_v1  ;;  %v16961_v1 = vld [vmem:[#allocation2 + $0x23e8] ss:$112 sps:$4 sm:$0xff]  }
 0x108   :  { %8616 = vmatpush1.bf16.msra.mxu1 %v16877_v63  ;;  %v16958_v63 = vld [vmem:[#allocation2 + $0x24c0] ss:$112 sps:$4 sm:$0xff]  }
 0x109   :  { %8617 = vmatprep.subr.bf16.mxu1 %v16885_v2  ;;  %v16966_v2 = vld [vmem:[#allocation2 + $0x25a4] ss:$112 sps:$4 sm:$0xff]  }
 0x10a   :  { %8456 = vmatpush1.bf16.msra.mxu0 %v16880_v3  ;;  %v16969_v3 = vld [vmem:[#allocation2 + $0x24cc] ss:$112 sps:$4 sm:$0xff]  }
 0x10b   :  { %8457 = vmatprep.subr.bf16.mxu0 %v16888_v5  ;;  %v16967_v5 = vld [vmem:[#allocation2 + $0x24c8] ss:$112 sps:$4 sm:$0xff]  }
 0x10c   :  { %8618 = vmatpush1.bf16.msra.mxu1 %v16883_v4  ;;  %v16964_v4 = vld [vmem:[#allocation2 + $0x25a0] ss:$112 sps:$4 sm:$0xff]  }
 0x10d   :  { %8619 = vmatprep.subr.bf16.mxu1 %v16891_v6  ;;  %v16972_v6 = vld [vmem:[#allocation2 + $0x2684] ss:$112 sps:$4 sm:$0xff]  }
 0x10e   :  { %8458 = vmatpush1.bf16.msra.mxu0 %v16886_v7  ;;  %v16975_v7 = vld [vmem:[#allocation2 + $0x25ac] ss:$112 sps:$4 sm:$0xff]  }
 0x10f   :  { %8459 = vmatprep.subr.bf16.mxu0 %v16894_v11  ;;  %v16973_v11 = vld [vmem:[#allocation2 + $0x25a8] ss:$112 sps:$4 sm:$0xff]  }
 0x110   :  { %8620 = vmatpush1.bf16.msra.mxu1 %v16889_v8  ;;  %v16970_v8 = vld [vmem:[#allocation2 + $0x2680] ss:$112 sps:$4 sm:$0xff]  }
 0x111   :  { %8621 = vmatprep.subr.bf16.mxu1 %v16897_v12  ;;  %v16978_v12 = vld [vmem:[#allocation2 + $0x2764] ss:$112 sps:$4 sm:$0xff]  }
 0x112   :  { %8460 = vmatpush1.bf16.msra.mxu0 %v16892_v13  ;;  %v16981_v13 = vld [vmem:[#allocation2 + $0x268c] ss:$112 sps:$4 sm:$0xff]  }
 0x113   :  { %8470 = vmatprep.subr.bf16.mxu0 %v16900_v16  ;;  %v16984_v16 = vld [vmem:[#allocation2 + $0x2844] ss:$112 sps:$4 sm:$0xff]  }
 0x114   :  { %8622 = vmatpush1.bf16.msra.mxu1 %v16895_v15  ;;  %v16979_v15 = vld [vmem:[#allocation2 + $0x2688] ss:$112 sps:$4 sm:$0xff]  }
 0x115   :  { %8623 = vmatprep.subr.bf16.mxu1 %v16903_v17  ;;  %8462 = vmatmul.mubr.bf16.vlgmr.msra.gmra.mrb[0].mxu0 %v19193_v18  ;;  %v16987_v17 = vld [vmem:[#allocation2 + $0x276c] ss:$112 sps:$4 sm:$0xff]  }
 0x116   :  { %8471 = vmatpush1.bf16.msra.mxu0 %v16898_v19  ;;  %8502 = vmatprep.mubr.bf16.mxu0 %v19198_v24  ;;  %v16982_v19 = vld [vmem:[#allocation2 + $0x2840] ss:$112 sps:$4 sm:$0xff]  }
 0x117   :  { %8472 = vmatprep.subr.bf16.mxu0 %v16906_v21  ;;  %v16990_v21 = vld [vmem:[#allocation2 + $0x2924] ss:$112 sps:$4 sm:$0xff]  }
 0x118   :  { %8624 = vmatpush1.bf16.msra.mxu1 %v16901_v20  ;;  %v16985_v20 = vld [vmem:[#allocation2 + $0x2768] ss:$112 sps:$4 sm:$0xff]  }
 0x119   :  { %8634 = vmatprep.subr.bf16.mxu1 %v16909_v23  ;;  %v16988_v23 = vld [vmem:[#allocation2 + $0x2920] ss:$112 sps:$4 sm:$0xff]  }
 0x11a   :  { %8473 = vmatpush1.bf16.msra.mxu0 %v16904_v25  ;;  %v16991_v25 = vld [vmem:[#allocation2 + $0x2848] ss:$112 sps:$4 sm:$0xff]  }
 0x11b   :  { %8626 = vmatmul.mubr.bf16.vlgmr.msra.gmra.mrb[4].mxu1 %v19193_v18  ;;  %8474 = vmatprep.subr.bf16.mxu0 %v16912_v27  ;;  %v16999_v27 = vld [vmem:[#allocation2 + $0x14] ss:$112 sps:$4 sm:$0xff]  }
 0x11c   :  { %8635 = vmatpush1.bf16.msra.mxu1 %v16907_v26  ;;  %8666 = vmatprep.mubr.bf16.mxu1 %v19198_v24  ;;  %v142_v26 = vld [vmem:[%s19624_s0 + $0x20] sm:$0xff] }
 0x11d   :  { %8636 = vmatprep.subr.bf16.mxu1 %v16915_v28  ;;  %v16996_v28 = vld [vmem:[#allocation2 + $0x292c] ss:$112 sps:$4 sm:$0xff]  }
 0x11e   :  { %8475 = vmatpush1.bf16.msra.mxu0 %v16910_v29  ;;  %v19207_v29 = vpack.c.bf16 %v142_v26, %v142_v26  ;;  %v17071_v26 = vld [vmem:[#allocation2 + $0x71c] ss:$112 sps:$4 sm:$0xff]  }
 0x11f   :  { %8476 = vmatprep.subr.bf16.mxu0 %v16918_v31  ;;  %v16997_v31 = vld [vmem:[#allocation2 + $0x10] ss:$112 sps:$4 sm:$0xff]  }
 0x120   :  { %8637 = vmatpush1.bf16.msra.mxu1 %v16913_v30  ;;  %v16994_v30 = vld [vmem:[#allocation2 + $0x2928] ss:$112 sps:$4 sm:$0xff]  }
 0x121   :  { %8638 = vmatprep.subr.bf16.mxu1 %v16921_v32  ;;  %v17002_v32 = vld [vmem:[#allocation2 + $0xf4] ss:$112 sps:$4 sm:$0xff]  }
 0x122   :  { %8477 = vmatpush1.bf16.msra.mxu0 %v16916_v33  ;;  %v17008_v33 = vld [vmem:[#allocation2 + $0x2a0c] ss:$112 sps:$4 sm:$0xff]  }
 0x123   :  { %8478 = vmatprep.subr.bf16.mxu0 %v16924_v35  ;;  %v17005_v35 = vld [vmem:[#allocation2 + $0x1d4] ss:$112 sps:$4 sm:$0xff]  }
 0x124   :  { %8639 = vmatpush1.bf16.msra.mxu1 %v16919_v34  ;;  %v17000_v34 = vld [vmem:[#allocation2 + $0xf0] ss:$112 sps:$4 sm:$0xff]  }
 0x125   :  { %8640 = vmatprep.subr.bf16.mxu1 %v16927_v37  ;;  %v17006_v37 = vld [vmem:[#allocation2 + $0x2a08] ss:$112 sps:$4 sm:$0xff]  }
 0x126   :  { %8479 = vmatpush1.bf16.msra.mxu0 %v16922_v38  ;;  %v17017_v38 = vld [vmem:[#allocation2 + $0x2a14] ss:$112 sps:$4 sm:$0xff]  }
 0x127   :  { %8480 = vmatprep.subr.bf16.mxu0 %v16930_v40  ;;  %v17011_v40 = vld [vmem:[#allocation2 + $0x2b4] ss:$112 sps:$4 sm:$0xff]  }
 0x128   :  { %8641 = vmatpush1.bf16.msra.mxu1 %v16925_v39  ;;  %v17003_v39 = vld [vmem:[#allocation2 + $0x1d0] ss:$112 sps:$4 sm:$0xff]  }
 0x129   :  { %8642 = vmatprep.subr.bf16.mxu1 %v16933_v41  ;;  %v17009_v41 = vld [vmem:[#allocation2 + $0x2b0] ss:$112 sps:$4 sm:$0xff]  }
 0x12a   :  { %8481 = vmatpush1.bf16.msra.mxu0 %v16928_v42  ;;  %v17014_v42 = vld [vmem:[#allocation2 + $0x394] ss:$112 sps:$4 sm:$0xff]  }
 0x12b   :  { %8482 = vmatprep.subr.bf16.mxu0 %v16936_v44  ;;  %v17015_v44 = vld [vmem:[#allocation2 + $0x2a10] ss:$112 sps:$4 sm:$0xff]  }
 0x12c   :  { %8643 = vmatpush1.bf16.msra.mxu1 %v16931_v43  ;;  %v17012_v43 = vld [vmem:[#allocation2 + $0x390] ss:$112 sps:$4 sm:$0xff]  }
 0x12d   :  { %8644 = vmatprep.subr.bf16.mxu1 %v16939_v45  ;;  %v17020_v45 = vld [vmem:[#allocation2 + $0x474] ss:$112 sps:$4 sm:$0xff]  }
 0x12e   :  { %8483 = vmatpush1.bf16.msra.mxu0 %v16934_v46  ;;  %v17023_v46 = vld [vmem:[#allocation2 + $0x1c] ss:$112 sps:$4 sm:$0xff]  }
 0x12f   :  { %8484 = vmatprep.subr.bf16.mxu0 %v16942_v48  ;;  %v17026_v48 = vld [vmem:[#allocation2 + $0x554] ss:$112 sps:$4 sm:$0xff]  }
 0x130   :  { %8645 = vmatpush1.bf16.msra.mxu1 %v16937_v47  ;;  %v17018_v47 = vld [vmem:[#allocation2 + $0x470] ss:$112 sps:$4 sm:$0xff]  }
 0x131   :  { %8646 = vmatprep.subr.bf16.mxu1 %v16945_v49  ;;  %v17021_v49 = vld [vmem:[#allocation2 + $0x18] ss:$112 sps:$4 sm:$0xff]  }
 0x132   :  { %8485 = vmatpush1.bf16.msra.mxu0 %v16940_v50  ;;  %v17024_v50 = vld [vmem:[#allocation2 + $0x550] ss:$112 sps:$4 sm:$0xff]  }
 0x133   :  { %8486 = vmatprep.subr.bf16.mxu0 %v16948_v53  ;;  %v17029_v53 = vld [vmem:[#allocation2 + $0xfc] ss:$112 sps:$4 sm:$0xff]  }
 0x134   :  { %8647 = vmatpush1.bf16.msra.mxu1 %v16943_v52  ;;  %v17032_v52 = vld [vmem:[#allocation2 + $0x634] ss:$112 sps:$4 sm:$0xff]  }
 0x135   :  { %8648 = vmatprep.subr.bf16.mxu1 %v16951_v54 }
 0x136   :  { %8487 = vmatpush1.bf16.msra.mxu0 %v16946_v55  ;;  %v17027_v55 = vld [vmem:[#allocation2 + $0xf8] ss:$112 sps:$4 sm:$0xff]  }
 0x137   :  { %8488 = vmatprep.subr.bf16.mxu0 %v16954_v57 }
 0x138   :  { %8649 = vmatpush1.bf16.msra.mxu1 %v16949_v56  ;;  %v17030_v56 = vld [vmem:[#allocation2 + $0x630] ss:$112 sps:$4 sm:$0xff]  }
 0x139   :  { %8650 = vmatprep.subr.bf16.mxu1 %v16957_v58  ;;  %v17038_v58 = vld [vmem:[#allocation2 + $0x714] ss:$112 sps:$4 sm:$0xff]  }
 0x13a   :  { %8489 = vmatpush1.bf16.msra.mxu0 %v16952_v59 }
 0x13b   :  { %8490 = vmatprep.subr.bf16.mxu0 %v16960_v61 }
 0x13c   :  { %8651 = vmatpush1.bf16.msra.mxu1 %v16955_v60  ;;  %v17035_v60 = vld [vmem:[#allocation2 + $0x1dc] ss:$112 sps:$4 sm:$0xff]  }
 0x13d   :  { %8652 = vmatprep.subr.bf16.mxu1 %v16963_v62  ;;  %v17033_v62 = vld [vmem:[#allocation2 + $0x1d8] ss:$112 sps:$4 sm:$0xff]  }
 0x13e   :  { %8491 = vmatpush1.bf16.msra.mxu0 %v16958_v63  ;;  %v17036_v63 = vld [vmem:[#allocation2 + $0x710] ss:$112 sps:$4 sm:$0xff]  }
 0x13f   :  { %8492 = vmatprep.subr.bf16.mxu0 %v16966_v2  ;;  %v17041_v2 = vld [vmem:[#allocation2 + $0x2bc] ss:$112 sps:$4 sm:$0xff]  }
 0x140   :  { %8653 = vmatpush1.bf16.msra.mxu1 %v16961_v1  ;;  %v17044_v1 = vld [vmem:[#allocation2 + $0x7f4] ss:$112 sps:$4 sm:$0xff]  }
 0x141   :  { %8654 = vmatprep.subr.bf16.mxu1 %v16969_v3  ;;  %v17039_v3 = vld [vmem:[#allocation2 + $0x2b8] ss:$112 sps:$4 sm:$0xff]  }
 0x142   :  { %8493 = vmatpush1.bf16.msra.mxu0 %v16964_v4  ;;  %v17042_v4 = vld [vmem:[#allocation2 + $0x7f0] ss:$112 sps:$4 sm:$0xff]  }
 0x143   :  { %8494 = vmatprep.subr.bf16.mxu0 %v16972_v6  ;;  %v17047_v6 = vld [vmem:[#allocation2 + $0x39c] ss:$112 sps:$4 sm:$0xff]  }
 0x144   :  { %8655 = vmatpush1.bf16.msra.mxu1 %v16967_v5  ;;  %v17050_v5 = vld [vmem:[#allocation2 + $0x8d4] ss:$112 sps:$4 sm:$0xff]  }
 0x145   :  { %8656 = vmatprep.subr.bf16.mxu1 %v16975_v7  ;;  %v17045_v7 = vld [vmem:[#allocation2 + $0x398] ss:$112 sps:$4 sm:$0xff]  }
 0x146   :  { %8495 = vmatpush1.bf16.msra.mxu0 %v16970_v8  ;;  %v17048_v8 = vld [vmem:[#allocation2 + $0x8d0] ss:$112 sps:$4 sm:$0xff]  }
 0x147   :  { %8496 = vmatprep.subr.bf16.mxu0 %v16978_v12  ;;  %v17053_v12 = vld [vmem:[#allocation2 + $0x47c] ss:$112 sps:$4 sm:$0xff]  }
 0x148   :  { %8657 = vmatpush1.bf16.msra.mxu1 %v16973_v11  ;;  %v17056_v11 = vld [vmem:[#allocation2 + $0x9b4] ss:$112 sps:$4 sm:$0xff]  }
 0x149   :  { %8658 = vmatprep.subr.bf16.mxu1 %v16981_v13  ;;  %v17051_v13 = vld [vmem:[#allocation2 + $0x478] ss:$112 sps:$4 sm:$0xff]  }
 0x14a   :  { %8497 = vmatpush1.bf16.msra.mxu0 %v16976_v14  ;;  %v17054_v14 = vld [vmem:[#allocation2 + $0x9b0] ss:$112 sps:$4 sm:$0xff]  }
 0x14b   :  { %8498 = vmatprep.subr.bf16.mxu0 %v16984_v16  ;;  %v17059_v16 = vld [vmem:[#allocation2 + $0x55c] ss:$112 sps:$4 sm:$0xff]  }
 0x14c   :  { %8659 = vmatpush1.bf16.msra.mxu1 %v16979_v15  ;;  %v17062_v15 = vld [vmem:[#allocation2 + $0xa94] ss:$112 sps:$4 sm:$0xff]  }
 0x14d   :  { %8660 = vmatprep.subr.bf16.mxu1 %v16987_v17  ;;  %v17057_v17 = vld [vmem:[#allocation2 + $0x558] ss:$112 sps:$4 sm:$0xff]  }
 0x14e   :  { %8499 = vmatpush1.bf16.msra.mxu0 %v16982_v19  ;;  %v17060_v19 = vld [vmem:[#allocation2 + $0xa90] ss:$112 sps:$4 sm:$0xff]  }
 0x14f   :  { %8500 = vmatprep.subr.bf16.mxu0 %v16990_v21  ;;  %v17065_v21 = vld [vmem:[#allocation2 + $0x63c] ss:$112 sps:$4 sm:$0xff]  }
 0x150   :  { %8661 = vmatpush1.bf16.msra.mxu1 %v16985_v20  ;;  %v17068_v20 = vld [vmem:[#allocation2 + $0xb74] ss:$112 sps:$4 sm:$0xff]  }
 0x151   :  { %8662 = vmatprep.subr.bf16.mxu1 %v16993_v22  ;;  %v17063_v22 = vld [vmem:[#allocation2 + $0x638] ss:$112 sps:$4 sm:$0xff]  }
 0x152   :  { %8501 = vmatpush1.bf16.msra.mxu0 %v16988_v23  ;;  %v17066_v23 = vld [vmem:[#allocation2 + $0xb70] ss:$112 sps:$4 sm:$0xff]  }
 0x153   :  { %8716 = vmatprep.subr.bf16.mxu0 %v16999_v27  ;;  %v17069_v27 = vld [vmem:[#allocation2 + $0x718] ss:$112 sps:$4 sm:$0xff]  }
 0x154   :  { %8663 = vmatpush1.bf16.msra.mxu1 %v16991_v25  ;;  %v17074_v25 = vld [vmem:[#allocation2 + $0xc54] ss:$112 sps:$4 sm:$0xff]  }
 0x155   :  { %8664 = vmatprep.subr.bf16.mxu1 %v16996_v28  ;;  %8503 = vmatmul.mubr.bf16.vlgmr.msra.gmra.mrb[0].mxu0 %v19207_v29  ;;  %v17072_v28 = vld [vmem:[#allocation2 + $0xc50] ss:$112 sps:$4 sm:$0xff]  }
 0x156   :  { %8717 = vmatpush1.bf16.msra.mxu0 %v16997_v31  ;;  %8748 = vmatprep.mubr.bf16.mxu0 %v19172_v51  ;;  %v17077_v31 = vld [vmem:[#allocation2 + $0x7fc] ss:$112 sps:$4 sm:$0xff]  }
 0x157   :  { %8718 = vmatprep.subr.bf16.mxu0 %v17002_v32  ;;  %v17078_v32 = vld [vmem:[#allocation2 + $0xd30] ss:$112 sps:$4 sm:$0xff]  }
 0x158   :  { %8665 = vmatpush1.bf16.msra.mxu1 %v16994_v30  ;;  %v17080_v30 = vld [vmem:[#allocation2 + $0xd34] ss:$112 sps:$4 sm:$0xff]  }
 0x159   :  { %8675 = vmatprep.subr.bf16.mxu1 %v17008_v33  ;;  %v17075_v33 = vld [vmem:[#allocation2 + $0x7f8] ss:$112 sps:$4 sm:$0xff]  }
 0x15a   :  { %8719 = vmatpush1.bf16.msra.mxu0 %v17000_v34  ;;  %v17086_v34 = vld [vmem:[#allocation2 + $0xe14] ss:$112 sps:$4 sm:$0xff]  }
 0x15b   :  { %8667 = vmatmul.mubr.bf16.vlgmr.msra.gmra.mrb[4].mxu1 %v19207_v29  ;;  %8720 = vmatprep.subr.bf16.mxu0 %v17005_v35  ;;  %v17083_v35 = vld [vmem:[#allocation2 + $0x8dc] ss:$112 sps:$4 sm:$0xff]  }
 0x15c   :  { %8676 = vmatpush1.bf16.msra.mxu1 %v17006_v37  ;;  %8707 = vmatprep.mubr.bf16.mxu1 %v18995_v0  ;;  %v17084_v37 = vld [vmem:[#allocation2 + $0xe10] ss:$112 sps:$4 sm:$0xff]  }
 0x15d   :  { %8839 = vmatprep.subr.bf16.mxu1 %v17017_v38  ;;  %v17081_v38 = vld [vmem:[#allocation2 + $0x8d8] ss:$112 sps:$4 sm:$0xff]  }
 0x15e   :  { %8721 = vmatpush1.bf16.msra.mxu0 %v17003_v39  ;;  %v17089_v39 = vld [vmem:[#allocation2 + $0x9bc] ss:$112 sps:$4 sm:$0xff]  }
 0x15f   :  { %8722 = vmatprep.subr.bf16.mxu0 %v17011_v40  ;;  %v17092_v40 = vld [vmem:[#allocation2 + $0xef4] ss:$112 sps:$4 sm:$0xff]  }
 0x162   :  { %8723 = vmatpush1.bf16.msra.mxu0 %v17009_v41  ;;  %v17087_v41 = vld [vmem:[#allocation2 + $0x9b8] ss:$112 sps:$4 sm:$0xff]  }
 0x163   :  { %8724 = vmatprep.subr.bf16.mxu0 %v17014_v42  ;;  %v17090_v42 = vld [vmem:[#allocation2 + $0xef0] ss:$112 sps:$4 sm:$0xff]  }
 0x166   :  { %8725 = vmatpush1.bf16.msra.mxu0 %v17012_v43  ;;  %v17095_v43 = vld [vmem:[#allocation2 + $0xa9c] ss:$112 sps:$4 sm:$0xff]  }
 0x167   :  { %15907 = vmatmul.mubr.msk.bf16.vlgmr.msra.gmra.mrb[4].mxu1 %vm8384_vm0, %v19165_v10  ;;  %8726 = vmatprep.subr.bf16.mxu0 %v17020_v45  ;;  %v17093_v45 = vld [vmem:[#allocation2 + $0xa98] ss:$112 sps:$4 sm:$0xff]  }
 0x168   :  { %8840 = vmatpush1.bf16.msra.mxu1 %v17015_v44  ;;  %8871 = vmatprep.mubr.bf16.mxu1 %v18995_v0  ;;  %v17098_v44 = vld [vmem:[#allocation2 + $0xfd4] ss:$112 sps:$4 sm:$0xff]  }
 0x169   :  { %8880 = vmatprep.subr.bf16.mxu1 %v17023_v46  ;;  %v17096_v46 = vld [vmem:[#allocation2 + $0xfd0] ss:$112 sps:$4 sm:$0xff]  }
 0x16a   :  { %8727 = vmatpush1.bf16.msra.mxu0 %v17018_v47  ;;  %v17101_v47 = vld [vmem:[#allocation2 + $0xb7c] ss:$112 sps:$4 sm:$0xff]  }
 0x16b   :  { %8728 = vmatprep.subr.bf16.mxu0 %v17026_v48  ;;  %v17104_v48 = vld [vmem:[#allocation2 + $0x10b4] ss:$112 sps:$4 sm:$0xff]  }
 0x16e   :  { %v19216_v54 = vpop.f32.mrb[0].mxu1  ;;  %8729 = vmatpush1.bf16.msra.mxu0 %v17024_v50  ;;  %v17102_v50 = vld [vmem:[#allocation2 + $0x10b0] ss:$112 sps:$4 sm:$0xff]  }
 0x16f   :  { %15908 = vmatmul.mubr.msk.bf16.vlgmr.msra.gmra.mrb[8].mxu1 %vm8384_vm0, %v19165_v10  ;;  %v19220_v57 = vpop.f32.mrb[1].mxu1  ;;  %8730 = vmatprep.subr.bf16.mxu0 %v17032_v52  ;;  %v17107_v52 = vld [vmem:[#allocation2 + $0xc5c] ss:$112 sps:$4 sm:$0xff]  }
 0x170   :  { %8881 = vmatpush1.bf16.msra.mxu1 %v17021_v49  ;;  %v8549_v59 = vpop.f32.mrb[2].mxu1  ;;  %8912 = vmatprep.mubr.bf16.mxu1 %v19172_v51  ;;  %v17099_v49 = vld [vmem:[#allocation2 + $0xb78] ss:$112 sps:$4 sm:$0xff]  }
 0x171   :  { %8882 = vmatprep.subr.bf16.mxu1 %v17029_v53  ;;  %v8550_v61 = vpop.f32.mrb[3].mxu1  ;;  %v17110_v53 = vld [vmem:[#allocation2 + $0x1194] ss:$112 sps:$4 sm:$0xff]  }
 0x172   :  { %8731 = vmatpush1.bf16.msra.mxu0 %v17030_v56  ;;  %v17108_v56 = vld [vmem:[#allocation2 + $0x1190] ss:$112 sps:$4 sm:$0xff]   ;;  %v17116_v59 = vld [vmem:[#allocation2 + $0x1274] ss:$112 sps:$4 sm:$0xff]  }
 0x173   :  { %8732 = vmatprep.subr.bf16.mxu0 %v17038_v58  ;;  %v17113_v58 = vld [vmem:[#allocation2 + $0xd3c] ss:$112 sps:$4 sm:$0xff]   ;;  %v17114_v61 = vld [vmem:[#allocation2 + $0x1270] ss:$112 sps:$4 sm:$0xff]  }
 0x174   :  { %8883 = vmatpush1.bf16.msra.mxu1 %v17027_v55  ;;  %v17105_v55 = vld [vmem:[#allocation2 + $0xc58] ss:$112 sps:$4 sm:$0xff]  }
 0x175   :  { %8884 = vmatprep.subr.bf16.mxu1 %v17035_v60  ;;  %v17111_v60 = vld [vmem:[#allocation2 + $0xd38] ss:$112 sps:$4 sm:$0xff]  }
 0x176   :  { %8733 = vmatpush1.bf16.msra.mxu0 %v17036_v63  ;;  %v17119_v63 = vld [vmem:[#allocation2 + $0xe1c] ss:$112 sps:$4 sm:$0xff]  }
 0x177   :  { %8734 = vmatprep.subr.bf16.mxu0 %v17044_v1  ;;  %v17117_v1 = vld [vmem:[#allocation2 + $0xe18] ss:$112 sps:$4 sm:$0xff]  }
 0x178   :  { %8885 = vmatpush1.bf16.msra.mxu1 %v17033_v62  ;;  %v17122_v62 = vld [vmem:[#allocation2 + $0x1354] ss:$112 sps:$4 sm:$0xff]  }
 0x179   :  { %8886 = vmatprep.subr.bf16.mxu1 %v17041_v2  ;;  %v17120_v2 = vld [vmem:[#allocation2 + $0x1350] ss:$112 sps:$4 sm:$0xff]  }
 0x17a   :  { %8735 = vmatpush1.bf16.msra.mxu0 %v17042_v4  ;;  %v17128_v4 = vld [vmem:[#allocation2 + $0x1434] ss:$112 sps:$4 sm:$0xff]  }
 0x17b   :  { %8736 = vmatprep.subr.bf16.mxu0 %v17050_v5  ;;  %v17123_v5 = vld [vmem:[#allocation2 + $0xef8] ss:$112 sps:$4 sm:$0xff]  }
 0x17c   :  { %8887 = vmatpush1.bf16.msra.mxu1 %v17039_v3  ;;  %v17125_v3 = vld [vmem:[#allocation2 + $0xefc] ss:$112 sps:$4 sm:$0xff]  }
 0x17d   :  { %8888 = vmatprep.subr.bf16.mxu1 %v17047_v6  ;;  %v17126_v6 = vld [vmem:[#allocation2 + $0x1430] ss:$112 sps:$4 sm:$0xff]  }
 0x17e   :  { %8737 = vmatpush1.bf16.msra.mxu0 %v17048_v8  ;;  %v17134_v8 = vld [vmem:[#allocation2 + $0x1514] ss:$112 sps:$4 sm:$0xff]  }
 0x17f   :  { %8738 = vmatprep.subr.bf16.mxu0 %v17056_v11  ;;  %v17129_v11 = vld [vmem:[#allocation2 + $0xfd8] ss:$112 sps:$4 sm:$0xff]  }
 0x180   :  { %8889 = vmatpush1.bf16.msra.mxu1 %v17045_v7  ;;  %v17131_v7 = vld [vmem:[#allocation2 + $0xfdc] ss:$112 sps:$4 sm:$0xff]  }
 0x181   :  { %8890 = vmatprep.subr.bf16.mxu1 %v17053_v12  ;;  %v17132_v12 = vld [vmem:[#allocation2 + $0x1510] ss:$112 sps:$4 sm:$0xff]  }
 0x182   :  { %8739 = vmatpush1.bf16.msra.mxu0 %v17054_v14  ;;  %v17140_v14 = vld [vmem:[#allocation2 + $0x15f4] ss:$112 sps:$4 sm:$0xff]  }
 0x183   :  { %8740 = vmatprep.subr.bf16.mxu0 %v17062_v15  ;;  %v17138_v15 = vld [vmem:[#allocation2 + $0x15f0] ss:$112 sps:$4 sm:$0xff]  }
 0x184   :  { %8891 = vmatpush1.bf16.msra.mxu1 %v17051_v13  ;;  %v17137_v13 = vld [vmem:[#allocation2 + $0x10bc] ss:$112 sps:$4 sm:$0xff]  }
 0x185   :  { %8892 = vmatprep.subr.bf16.mxu1 %v17059_v16  ;;  %v17135_v16 = vld [vmem:[#allocation2 + $0x10b8] ss:$112 sps:$4 sm:$0xff]  }
 0x186   :  { %8741 = vmatpush1.bf16.msra.mxu0 %v17060_v19  ;;  %v17146_v19 = vld [vmem:[#allocation2 + $0x16d4] ss:$112 sps:$4 sm:$0xff]  }
 0x187   :  { %8742 = vmatprep.subr.bf16.mxu0 %v17068_v20  ;;  %v17141_v20 = vld [vmem:[#allocation2 + $0x1198] ss:$112 sps:$4 sm:$0xff]  }
 0x188   :  { %8893 = vmatpush1.bf16.msra.mxu1 %v17057_v17  ;;  %v17143_v17 = vld [vmem:[#allocation2 + $0x119c] ss:$112 sps:$4 sm:$0xff]  }
 0x189   :  { %8894 = vmatprep.subr.bf16.mxu1 %v17065_v21  ;;  %v17144_v21 = vld [vmem:[#allocation2 + $0x16d0] ss:$112 sps:$4 sm:$0xff]  }
 0x18a   :  { %8743 = vmatpush1.bf16.msra.mxu0 %v17066_v23  ;;  %v17149_v23 = vld [vmem:[#allocation2 + $0x127c] ss:$112 sps:$4 sm:$0xff]  }
 0x18b   :  { %8744 = vmatprep.subr.bf16.mxu0 %v17074_v25  ;;  %v17150_v25 = vld [vmem:[#allocation2 + $0x17b0] ss:$112 sps:$4 sm:$0xff]  }
 0x18c   :  { %8895 = vmatpush1.bf16.msra.mxu1 %v17063_v22  ;;  %v17152_v22 = vld [vmem:[#allocation2 + $0x17b4] ss:$112 sps:$4 sm:$0xff]  }
 0x18d   :  { %8896 = vmatprep.subr.bf16.mxu1 %v17071_v26  ;;  %v17147_v26 = vld [vmem:[#allocation2 + $0x1278] ss:$112 sps:$4 sm:$0xff]  }
 0x18e   :  { %8745 = vmatpush1.bf16.msra.mxu0 %v17072_v28  ;;  %v17158_v28 = vld [vmem:[#allocation2 + $0x1894] ss:$112 sps:$4 sm:$0xff]  }
 0x18f   :  { %8746 = vmatprep.subr.bf16.mxu0 %v17080_v30  ;;  %v17156_v30 = vld [vmem:[#allocation2 + $0x1890] ss:$112 sps:$4 sm:$0xff]  }
 0x190   :  { %8897 = vmatpush1.bf16.msra.mxu1 %v17069_v27  ;;  %v17155_v27 = vld [vmem:[#allocation2 + $0x135c] ss:$112 sps:$4 sm:$0xff]  }
 0x191   :  { %8898 = vmatprep.subr.bf16.mxu1 %v17077_v31  ;;  %v17153_v31 = vld [vmem:[#allocation2 + $0x1358] ss:$112 sps:$4 sm:$0xff]  }
 0x192   :  { %8747 = vmatpush1.bf16.msra.mxu0 %v17078_v32  ;;  %v17161_v32 = vld [vmem:[#allocation2 + $0x143c] ss:$112 sps:$4 sm:$0xff]  }
 0x193   :  { %8757 = vmatprep.subr.bf16.mxu0 %v17086_v34  ;;  %v17162_v34 = vld [vmem:[#allocation2 + $0x1970] ss:$112 sps:$4 sm:$0xff]  }
 0x194   :  { %8899 = vmatpush1.bf16.msra.mxu1 %v17075_v33  ;;  %v17164_v33 = vld [vmem:[#allocation2 + $0x1974] ss:$112 sps:$4 sm:$0xff]  }
 0x195   :  { %8900 = vmatprep.subr.bf16.mxu1 %v17083_v35  ;;  %8749 = vmatmul.mubr.bf16.vlgmr.msra.gmra.mrb[4].mxu0 %v19179_v9  ;;  %v17159_v35 = vld [vmem:[#allocation2 + $0x1438] ss:$112 sps:$4 sm:$0xff]  }
 0x196   :  { %8758 = vmatpush1.bf16.msra.mxu0 %v17084_v37  ;;  %8789 = vmatprep.mubr.bf16.mxu0 %v19186_v36  ;;  %v17167_v37 = vld [vmem:[#allocation2 + $0x151c] ss:$112 sps:$4 sm:$0xff]  }
 0x197   :  { %8759 = vmatprep.subr.bf16.mxu0 %v17092_v40  ;;  %v17165_v40 = vld [vmem:[#allocation2 + $0x1518] ss:$112 sps:$4 sm:$0xff]  }
 0x198   :  { %8901 = vmatpush1.bf16.msra.mxu1 %v17081_v38  ;;  %v17170_v38 = vld [vmem:[#allocation2 + $0x1a54] ss:$112 sps:$4 sm:$0xff]  }
 0x199   :  { %8902 = vmatprep.subr.bf16.mxu1 %v17089_v39  ;;  %v17168_v39 = vld [vmem:[#allocation2 + $0x1a50] ss:$112 sps:$4 sm:$0xff]  }
 0x19a   :  { %8760 = vmatpush1.bf16.msra.mxu0 %v17090_v42  ;;  %v17176_v42 = vld [vmem:[#allocation2 + $0x1b34] ss:$112 sps:$4 sm:$0xff]  }
 0x19b   :  { %8761 = vmatprep.subr.bf16.mxu0 %v17098_v44  ;;  %v17171_v44 = vld [vmem:[#allocation2 + $0x15f8] ss:$112 sps:$4 sm:$0xff]  }
 0x19c   :  { %8903 = vmatpush1.bf16.msra.mxu1 %v17087_v41  ;;  %v17173_v41 = vld [vmem:[#allocation2 + $0x15fc] ss:$112 sps:$4 sm:$0xff]  }
 0x19d   :  { %8904 = vmatprep.subr.bf16.mxu1 %v17095_v43  ;;  %v17174_v43 = vld [vmem:[#allocation2 + $0x1b30] ss:$112 sps:$4 sm:$0xff]  }
 0x19e   :  { %8762 = vmatpush1.bf16.msra.mxu0 %v17096_v46  ;;  %v17182_v46 = vld [vmem:[#allocation2 + $0x1c14] ss:$112 sps:$4 sm:$0xff]  }
 0x19f   :  { %8763 = vmatprep.subr.bf16.mxu0 %v17104_v48  ;;  %v17177_v48 = vld [vmem:[#allocation2 + $0x16d8] ss:$112 sps:$4 sm:$0xff]  }
 0x1a0   :  { %8905 = vmatpush1.bf16.msra.mxu1 %v17093_v45  ;;  %v17179_v45 = vld [vmem:[#allocation2 + $0x16dc] ss:$112 sps:$4 sm:$0xff]  }
 0x1a1   :  { %8906 = vmatprep.subr.bf16.mxu1 %v17101_v47  ;;  %v17180_v47 = vld [vmem:[#allocation2 + $0x1c10] ss:$112 sps:$4 sm:$0xff]  }
 0x1a2   :  { %8764 = vmatpush1.bf16.msra.mxu0 %v17102_v50  ;;  %v17188_v50 = vld [vmem:[#allocation2 + $0x1cf4] ss:$112 sps:$4 sm:$0xff]  }
 0x1a3   :  { %8765 = vmatprep.subr.bf16.mxu0 %v17110_v53  ;;  %v17183_v53 = vld [vmem:[#allocation2 + $0x17b8] ss:$112 sps:$4 sm:$0xff]  }
 0x1a4   :  { %8907 = vmatpush1.bf16.msra.mxu1 %v17099_v49  ;;  %v17185_v49 = vld [vmem:[#allocation2 + $0x17bc] ss:$112 sps:$4 sm:$0xff]  }
 0x1a5   :  { %8908 = vmatprep.subr.bf16.mxu1 %v17107_v52  ;;  %v17186_v52 = vld [vmem:[#allocation2 + $0x1cf0] ss:$112 sps:$4 sm:$0xff]  }
 0x1a6   :  { %8766 = vmatpush1.bf16.msra.mxu0 %v17108_v56  ;;  %v17194_v56 = vld [vmem:[#allocation2 + $0x1dd4] ss:$112 sps:$4 sm:$0xff]  }
 0x1a7   :  { %8767 = vmatprep.subr.bf16.mxu0 %v17116_v59  ;;  %v17189_v59 = vld [vmem:[#allocation2 + $0x1898] ss:$112 sps:$4 sm:$0xff]  }
 0x1a8   :  { %8909 = vmatpush1.bf16.msra.mxu1 %v17105_v55  ;;  %v17191_v55 = vld [vmem:[#allocation2 + $0x189c] ss:$112 sps:$4 sm:$0xff]  }
 0x1a9   :  { %8910 = vmatprep.subr.bf16.mxu1 %v17113_v58  ;;  %v17192_v58 = vld [vmem:[#allocation2 + $0x1dd0] ss:$112 sps:$4 sm:$0xff]  }
 0x1aa   :  { %8768 = vmatpush1.bf16.msra.mxu0 %v17114_v61  ;;  %v17200_v61 = vld [vmem:[#allocation2 + $0x1eb4] ss:$112 sps:$4 sm:$0xff]  }
 0x1ab   :  { %8769 = vmatprep.subr.bf16.mxu0 %v17122_v62  ;;  %v17198_v62 = vld [vmem:[#allocation2 + $0x1eb0] ss:$112 sps:$4 sm:$0xff]  }
 0x1ac   :  { %8911 = vmatpush1.bf16.msra.mxu1 %v17111_v60  ;;  %v17197_v60 = vld [vmem:[#allocation2 + $0x197c] ss:$112 sps:$4 sm:$0xff]  }
 0x1ad   :  { %8921 = vmatprep.subr.bf16.mxu1 %v17119_v63  ;;  %v17195_v63 = vld [vmem:[#allocation2 + $0x1978] ss:$112 sps:$4 sm:$0xff]  }
 0x1ae   :  { %8770 = vmatpush1.bf16.msra.mxu0 %v17120_v2  ;;  %v17206_v2 = vld [vmem:[#allocation2 + $0x1f94] ss:$112 sps:$4 sm:$0xff]  }
 0x1af   :  { %8913 = vmatmul.mubr.bf16.vlgmr.msra.gmra.mrb[12].mxu1 %v19179_v9  ;;  %8771 = vmatprep.subr.bf16.mxu0 %v17128_v4  ;;  %v17201_v4 = vld [vmem:[#allocation2 + $0x1a58] ss:$112 sps:$4 sm:$0xff]  }
 0x1b0   :  { %8922 = vmatpush1.bf16.msra.mxu1 %v17117_v1  ;;  %8953 = vmatprep.mubr.bf16.mxu1 %v19186_v36  ;;  %v17203_v1 = vld [vmem:[#allocation2 + $0x1a5c] ss:$112 sps:$4 sm:$0xff]  }
 0x1b1   :  { %8923 = vmatprep.subr.bf16.mxu1 %v17125_v3  ;;  %v17204_v3 = vld [vmem:[#allocation2 + $0x1f90] ss:$112 sps:$4 sm:$0xff]  }
 0x1b2   :  { %8772 = vmatpush1.bf16.msra.mxu0 %v17126_v6  ;;  %v17212_v6 = vld [vmem:[#allocation2 + $0x2074] ss:$112 sps:$4 sm:$0xff]  }
 0x1b3   :  { %8773 = vmatprep.subr.bf16.mxu0 %v17134_v8  ;;  %v17207_v8 = vld [vmem:[#allocation2 + $0x1b38] ss:$112 sps:$4 sm:$0xff]  }
 0x1b4   :  { %8924 = vmatpush1.bf16.msra.mxu1 %v17123_v5  ;;  %v17209_v5 = vld [vmem:[#allocation2 + $0x1b3c] ss:$112 sps:$4 sm:$0xff]  }
 0x1b5   :  { %8925 = vmatprep.subr.bf16.mxu1 %v17131_v7  ;;  %v17210_v7 = vld [vmem:[#allocation2 + $0x2070] ss:$112 sps:$4 sm:$0xff]  }
 0x1b6   :  { %8774 = vmatpush1.bf16.msra.mxu0 %v17132_v12  ;;  %v17218_v12 = vld [vmem:[#allocation2 + $0x2154] ss:$112 sps:$4 sm:$0xff]  }
 0x1b7   :  { %8775 = vmatprep.subr.bf16.mxu0 %v17140_v14  ;;  %v17213_v14 = vld [vmem:[#allocation2 + $0x1c18] ss:$112 sps:$4 sm:$0xff]  }
 0x1b8   :  { %8926 = vmatpush1.bf16.msra.mxu1 %v17129_v11  ;;  %v17215_v11 = vld [vmem:[#allocation2 + $0x1c1c] ss:$112 sps:$4 sm:$0xff]  }
 0x1b9   :  { %8927 = vmatprep.subr.bf16.mxu1 %v17137_v13  ;;  %v17216_v13 = vld [vmem:[#allocation2 + $0x2150] ss:$112 sps:$4 sm:$0xff]  }
 0x1ba   :  { %8776 = vmatpush1.bf16.msra.mxu0 %v17138_v15  ;;  %v17221_v15 = vld [vmem:[#allocation2 + $0x1cfc] ss:$112 sps:$4 sm:$0xff]  }
 0x1bb   :  { %8777 = vmatprep.subr.bf16.mxu0 %v17146_v19  ;;  %v17219_v19 = vld [vmem:[#allocation2 + $0x1cf8] ss:$112 sps:$4 sm:$0xff]  }
 0x1bc   :  { %8928 = vmatpush1.bf16.msra.mxu1 %v17135_v16  ;;  %v17224_v16 = vld [vmem:[#allocation2 + $0x2234] ss:$112 sps:$4 sm:$0xff]  }
 0x1bd   :  { %8929 = vmatprep.subr.bf16.mxu1 %v17143_v17  ;;  %v17222_v17 = vld [vmem:[#allocation2 + $0x2230] ss:$112 sps:$4 sm:$0xff]  }
 0x1be   :  { %8778 = vmatpush1.bf16.msra.mxu0 %v17144_v21  ;;  %v17230_v21 = vld [vmem:[#allocation2 + $0x2314] ss:$112 sps:$4 sm:$0xff]  }
 0x1bf   :  { %8779 = vmatprep.subr.bf16.mxu0 %v17152_v22  ;;  %v17228_v22 = vld [vmem:[#allocation2 + $0x2310] ss:$112 sps:$4 sm:$0xff]  }
 0x1c0   :  { %8930 = vmatpush1.bf16.msra.mxu1 %v17141_v20  ;;  %v17227_v20 = vld [vmem:[#allocation2 + $0x1ddc] ss:$112 sps:$4 sm:$0xff]  }
 0x1c1   :  { %8931 = vmatprep.subr.bf16.mxu1 %v17149_v23  ;;  %v17225_v23 = vld [vmem:[#allocation2 + $0x1dd8] ss:$112 sps:$4 sm:$0xff]  }
 0x1c2   :  { %8780 = vmatpush1.bf16.msra.mxu0 %v17150_v25  ;;  %v17233_v25 = vld [vmem:[#allocation2 + $0x1ebc] ss:$112 sps:$4 sm:$0xff]  }
 0x1c3   :  { %8781 = vmatprep.subr.bf16.mxu0 %v17158_v28  ;;  %v17231_v28 = vld [vmem:[#allocation2 + $0x1eb8] ss:$112 sps:$4 sm:$0xff]  }
 0x1c4   :  { %8932 = vmatpush1.bf16.msra.mxu1 %v17147_v26  ;;  %v17236_v26 = vld [vmem:[#allocation2 + $0x23f4] ss:$112 sps:$4 sm:$0xff]  }
 0x1c5   :  { %8933 = vmatprep.subr.bf16.mxu1 %v17155_v27  ;;  %v17234_v27 = vld [vmem:[#allocation2 + $0x23f0] ss:$112 sps:$4 sm:$0xff]  }
 0x1c6   :  { %8782 = vmatpush1.bf16.msra.mxu0 %v17156_v30  ;;  %v17239_v30 = vld [vmem:[#allocation2 + $0x1f9c] ss:$112 sps:$4 sm:$0xff]  }
 0x1c7   :  { %8783 = vmatprep.subr.bf16.mxu0 %v17164_v33  ;;  %v17237_v33 = vld [vmem:[#allocation2 + $0x1f98] ss:$112 sps:$4 sm:$0xff]  }
 0x1c8   :  { %8934 = vmatpush1.bf16.msra.mxu1 %v17153_v31  ;;  %v17242_v31 = vld [vmem:[#allocation2 + $0x24d4] ss:$112 sps:$4 sm:$0xff]  }
 0x1c9   :  { %8935 = vmatprep.subr.bf16.mxu1 %v17161_v32  ;;  %v17240_v32 = vld [vmem:[#allocation2 + $0x24d0] ss:$112 sps:$4 sm:$0xff]  }
 0x1ca   :  { %8784 = vmatpush1.bf16.msra.mxu0 %v17162_v34  ;;  %v17245_v34 = vld [vmem:[#allocation2 + $0x207c] ss:$112 sps:$4 sm:$0xff]  }
 0x1cb   :  { %8785 = vmatprep.subr.bf16.mxu0 %v17170_v38  ;;  %v17243_v38 = vld [vmem:[#allocation2 + $0x2078] ss:$112 sps:$4 sm:$0xff]  }
 0x1cc   :  { %8936 = vmatpush1.bf16.msra.mxu1 %v17159_v35  ;;  %v17248_v35 = vld [vmem:[#allocation2 + $0x25b4] ss:$112 sps:$4 sm:$0xff]  }
 0x1cd   :  { %8937 = vmatprep.subr.bf16.mxu1 %v17167_v37  ;;  %v17246_v37 = vld [vmem:[#allocation2 + $0x25b0] ss:$112 sps:$4 sm:$0xff]  }
 0x1ce   :  { %8786 = vmatpush1.bf16.msra.mxu0 %v17168_v39  ;;  %v17251_v39 = vld [vmem:[#allocation2 + $0x215c] ss:$112 sps:$4 sm:$0xff]  }
 0x1cf   :  { %8787 = vmatprep.subr.bf16.mxu0 %v17176_v42  ;;  %v17249_v42 = vld [vmem:[#allocation2 + $0x2158] ss:$112 sps:$4 sm:$0xff]  }
 0x1d0   :  { %8938 = vmatpush1.bf16.msra.mxu1 %v17165_v40  ;;  %v17254_v40 = vld [vmem:[#allocation2 + $0x2694] ss:$112 sps:$4 sm:$0xff]  }
 0x1d1   :  { %8939 = vmatprep.subr.bf16.mxu1 %v17173_v41  ;;  %v17252_v41 = vld [vmem:[#allocation2 + $0x2690] ss:$112 sps:$4 sm:$0xff]  }
 0x1d2   :  { %8788 = vmatpush1.bf16.msra.mxu0 %v17174_v43  ;;  %v17257_v43 = vld [vmem:[#allocation2 + $0x223c] ss:$112 sps:$4 sm:$0xff]  }
 0x1d3   :  { %8798 = vmatprep.subr.bf16.mxu0 %v17182_v46  ;;  %v17255_v46 = vld [vmem:[#allocation2 + $0x2238] ss:$112 sps:$4 sm:$0xff]  }
 0x1d4   :  { %8940 = vmatpush1.bf16.msra.mxu1 %v17171_v44  ;;  %v17260_v44 = vld [vmem:[#allocation2 + $0x2774] ss:$112 sps:$4 sm:$0xff]  }
 0x1d5   :  { %8941 = vmatprep.subr.bf16.mxu1 %v17179_v45  ;;  %8790 = vmatmul.mubr.bf16.vlgmr.msra.gmra.mrb[4].mxu0 %v19193_v18  ;;  %v17258_v45 = vld [vmem:[#allocation2 + $0x2770] ss:$112 sps:$4 sm:$0xff]  }
 0x1d6   :  { %8799 = vmatpush1.bf16.msra.mxu0 %v17180_v47  ;;  %8830 = vmatprep.mubr.bf16.mxu0 %v19198_v24  ;;  %v17263_v47 = vld [vmem:[#allocation2 + $0x231c] ss:$112 sps:$4 sm:$0xff]  }
 0x1d7   :  { %8800 = vmatprep.subr.bf16.mxu0 %v17188_v50  ;;  %v17261_v50 = vld [vmem:[#allocation2 + $0x2318] ss:$112 sps:$4 sm:$0xff]  }
 0x1d8   :  { %8942 = vmatpush1.bf16.msra.mxu1 %v17177_v48  ;;  %v17266_v48 = vld [vmem:[#allocation2 + $0x2854] ss:$112 sps:$4 sm:$0xff]  }
 0x1d9   :  { %8943 = vmatprep.subr.bf16.mxu1 %v17185_v49  ;;  %v17264_v49 = vld [vmem:[#allocation2 + $0x2850] ss:$112 sps:$4 sm:$0xff]  }
 0x1da   :  { %8801 = vmatpush1.bf16.msra.mxu0 %v17186_v52  ;;  %v17269_v52 = vld [vmem:[#allocation2 + $0x23fc] ss:$112 sps:$4 sm:$0xff]  }
 0x1db   :  { %8802 = vmatprep.subr.bf16.mxu0 %v17194_v56  ;;  %v17267_v56 = vld [vmem:[#allocation2 + $0x23f8] ss:$112 sps:$4 sm:$0xff]  }
 0x1dc   :  { %8944 = vmatpush1.bf16.msra.mxu1 %v17183_v53  ;;  %v17272_v53 = vld [vmem:[#allocation2 + $0x2934] ss:$112 sps:$4 sm:$0xff]  }
 0x1dd   :  { %8945 = vmatprep.subr.bf16.mxu1 %v17191_v55  ;;  %v17270_v55 = vld [vmem:[#allocation2 + $0x2930] ss:$112 sps:$4 sm:$0xff]  }
 0x1de   :  { %8803 = vmatpush1.bf16.msra.mxu0 %v17192_v58  ;;  %v17275_v58 = vld [vmem:[#allocation2 + $0x24dc] ss:$112 sps:$4 sm:$0xff]  }
 0x1df   :  { %8804 = vmatprep.subr.bf16.mxu0 %v17200_v61  ;;  %v17273_v61 = vld [vmem:[#allocation2 + $0x24d8] ss:$112 sps:$4 sm:$0xff]  }
 0x1e0   :  { %8946 = vmatpush1.bf16.msra.mxu1 %v17189_v59  ;;  %v17278_v59 = vld [vmem:[#allocation2 + $0x24] ss:$112 sps:$4 sm:$0xff]  }
 0x1e1   :  { %8947 = vmatprep.subr.bf16.mxu1 %v17197_v60  ;;  %v17276_v60 = vld [vmem:[#allocation2 + $0x20] ss:$112 sps:$4 sm:$0xff]  }
 0x1e2   :  { %8805 = vmatpush1.bf16.msra.mxu0 %v17198_v62  ;;  %v17281_v62 = vld [vmem:[#allocation2 + $0x25bc] ss:$112 sps:$4 sm:$0xff]  }
 0x1e3   :  { %8806 = vmatprep.subr.bf16.mxu0 %v17206_v2  ;;  %v17279_v2 = vld [vmem:[#allocation2 + $0x25b8] ss:$112 sps:$4 sm:$0xff]  }
 0x1e4   :  { %8948 = vmatpush1.bf16.msra.mxu1 %v17195_v63  ;;  %v17284_v63 = vld [vmem:[#allocation2 + $0x104] ss:$112 sps:$4 sm:$0xff]  }
 0x1e5   :  { %8949 = vmatprep.subr.bf16.mxu1 %v17203_v1  ;;  %v17282_v1 = vld [vmem:[#allocation2 + $0x100] ss:$112 sps:$4 sm:$0xff]  }
 0x1e6   :  { %8807 = vmatpush1.bf16.msra.mxu0 %v17204_v3  ;;  %v17287_v3 = vld [vmem:[#allocation2 + $0x269c] ss:$112 sps:$4 sm:$0xff]  }
 0x1e7   :  { %8808 = vmatprep.subr.bf16.mxu0 %v17212_v6  ;;  %v17285_v6 = vld [vmem:[#allocation2 + $0x2698] ss:$112 sps:$4 sm:$0xff]  }
 0x1e8   :  { %8950 = vmatpush1.bf16.msra.mxu1 %v17201_v4  ;;  %v17290_v4 = vld [vmem:[#allocation2 + $0x1e4] ss:$112 sps:$4 sm:$0xff]  }
 0x1e9   :  { %8951 = vmatprep.subr.bf16.mxu1 %v17209_v5  ;;  %v17288_v5 = vld [vmem:[#allocation2 + $0x1e0] ss:$112 sps:$4 sm:$0xff]  }
 0x1ea   :  { %8809 = vmatpush1.bf16.msra.mxu0 %v17210_v7  ;;  %v17293_v7 = vld [vmem:[#allocation2 + $0x277c] ss:$112 sps:$4 sm:$0xff]  }
 0x1eb   :  { %8810 = vmatprep.subr.bf16.mxu0 %v17218_v12  ;;  %v17291_v12 = vld [vmem:[#allocation2 + $0x2778] ss:$112 sps:$4 sm:$0xff]  }
 0x1ec   :  { %8952 = vmatpush1.bf16.msra.mxu1 %v17207_v8  ;;  %v17296_v8 = vld [vmem:[#allocation2 + $0x2c4] ss:$112 sps:$4 sm:$0xff]  }
 0x1ed   :  { %8962 = vmatprep.subr.bf16.mxu1 %v17215_v11  ;;  %v17294_v11 = vld [vmem:[#allocation2 + $0x2c0] ss:$112 sps:$4 sm:$0xff]  }
 0x1ee   :  { %8811 = vmatpush1.bf16.msra.mxu0 %v17216_v13  ;;  %v17299_v13 = vld [vmem:[#allocation2 + $0x285c] ss:$112 sps:$4 sm:$0xff]  }
 0x1ef   :  { %8954 = vmatmul.mubr.bf16.vlgmr.msra.gmra.mrb[12].mxu1 %v19193_v18  ;;  %8812 = vmatprep.subr.bf16.mxu0 %v17224_v16  ;;  %v17297_v16 = vld [vmem:[#allocation2 + $0x2858] ss:$112 sps:$4 sm:$0xff]  }
 0x1f0   :  { %8963 = vmatpush1.bf16.msra.mxu1 %v17213_v14  ;;  %8994 = vmatprep.mubr.bf16.mxu1 %v19198_v24  ;;  %v17302_v14 = vld [vmem:[#allocation2 + $0x3a4] ss:$112 sps:$4 sm:$0xff]  }
 0x1f1   :  { %8964 = vmatprep.subr.bf16.mxu1 %v17221_v15  ;;  %v17300_v15 = vld [vmem:[#allocation2 + $0x3a0] ss:$112 sps:$4 sm:$0xff]  }
 0x1f2   :  { %8813 = vmatpush1.bf16.msra.mxu0 %v17222_v17  ;;  %v17305_v17 = vld [vmem:[#allocation2 + $0x293c] ss:$112 sps:$4 sm:$0xff]  }
 0x1f3   :  { %8814 = vmatprep.subr.bf16.mxu0 %v17230_v21  ;;  %v17303_v21 = vld [vmem:[#allocation2 + $0x2938] ss:$112 sps:$4 sm:$0xff]  }
 0x1f4   :  { %8965 = vmatpush1.bf16.msra.mxu1 %v17219_v19  ;;  %v17308_v19 = vld [vmem:[#allocation2 + $0x484] ss:$112 sps:$4 sm:$0xff]  }
 0x1f5   :  { %8966 = vmatprep.subr.bf16.mxu1 %v17227_v20  ;;  %v17306_v20 = vld [vmem:[#allocation2 + $0x480] ss:$112 sps:$4 sm:$0xff]  }
 0x1f6   :  { %8815 = vmatpush1.bf16.msra.mxu0 %v17228_v22  ;;  %v17311_v22 = vld [vmem:[#allocation2 + $0x564] ss:$112 sps:$4 sm:$0xff]  }
 0x1f7   :  { %8816 = vmatprep.subr.bf16.mxu0 %v17236_v26 }
 0x1f8   :  { %8967 = vmatpush1.bf16.msra.mxu1 %v17225_v23  ;;  %v17317_v23 = vld [vmem:[#allocation2 + $0x2a1c] ss:$112 sps:$4 sm:$0xff]  }
 0x1f9   :  { %8968 = vmatprep.subr.bf16.mxu1 %v17233_v25 }
 0x1fa   :  { %8817 = vmatpush1.bf16.msra.mxu0 %v17234_v27 }
 0x1fb   :  { %8818 = vmatprep.subr.bf16.mxu0 %v17242_v31  ;;  %v17309_v31 = vld [vmem:[#allocation2 + $0x560] ss:$112 sps:$4 sm:$0xff]  }
 0x1fc   :  { %8969 = vmatpush1.bf16.msra.mxu1 %v17231_v28 }
 0x1fd   :  { %8970 = vmatprep.subr.bf16.mxu1 %v17239_v30 }
 0x1fe   :  { %8819 = vmatpush1.bf16.msra.mxu0 %v17240_v32 }
 0x1ff   :  { %8820 = vmatprep.subr.bf16.mxu0 %v17248_v35  ;;  %v17323_v35 = vld [vmem:[#allocation2 + $0x2c] ss:$112 sps:$4 sm:$0xff]  }
 0x200   :  { %8971 = vmatpush1.bf16.msra.mxu1 %v17237_v33  ;;  %v17314_v33 = vld [vmem:[#allocation2 + $0x644] ss:$112 sps:$4 sm:$0xff]  }
 0x201   :  { %8972 = vmatprep.subr.bf16.mxu1 %v17245_v34  ;;  %v17315_v34 = vld [vmem:[#allocation2 + $0x2a18] ss:$112 sps:$4 sm:$0xff]  }
 0x202   :  { %8821 = vmatpush1.bf16.msra.mxu0 %v17246_v37  ;;  %v17312_v37 = vld [vmem:[#allocation2 + $0x640] ss:$112 sps:$4 sm:$0xff]  }
 0x203   :  { %8822 = vmatprep.subr.bf16.mxu0 %v17254_v40  ;;  %v17321_v40 = vld [vmem:[#allocation2 + $0x28] ss:$112 sps:$4 sm:$0xff]  }
 0x204   :  { %8973 = vmatpush1.bf16.msra.mxu1 %v17243_v38  ;;  %v17326_v38 = vld [vmem:[#allocation2 + $0x804] ss:$112 sps:$4 sm:$0xff]  }
 0x205   :  { %8974 = vmatprep.subr.bf16.mxu1 %v17251_v39  ;;  %v17324_v39 = vld [vmem:[#allocation2 + $0x800] ss:$112 sps:$4 sm:$0xff]  }
 0x206   :  { %8823 = vmatpush1.bf16.msra.mxu0 %v17252_v41  ;;  %v17329_v41 = vld [vmem:[#allocation2 + $0x10c] ss:$112 sps:$4 sm:$0xff]  }
 0x207   :  { %8824 = vmatprep.subr.bf16.mxu0 %v17260_v44 }
 0x208   :  { %8975 = vmatpush1.bf16.msra.mxu1 %v17249_v42  ;;  %v17332_v42 = vld [vmem:[#allocation2 + $0x8e4] ss:$112 sps:$4 sm:$0xff]  }
 0x209   :  { %8976 = vmatprep.subr.bf16.mxu1 %v17257_v43 }
 0x20a   :  { %8825 = vmatpush1.bf16.msra.mxu0 %v17258_v45  ;;  %v17330_v45 = vld [vmem:[#allocation2 + $0x8e0] ss:$112 sps:$4 sm:$0xff]  }
 0x20b   :  { %8826 = vmatprep.subr.bf16.mxu0 %v17266_v48  ;;  %v17338_v48 = vld [vmem:[#allocation2 + $0x9c4] ss:$112 sps:$4 sm:$0xff]  }
 0x20c   :  { %8977 = vmatpush1.bf16.msra.mxu1 %v17255_v46 }
 0x20d   :  { %8978 = vmatprep.subr.bf16.mxu1 %v17263_v47  ;;  %v17327_v47 = vld [vmem:[#allocation2 + $0x108] ss:$112 sps:$4 sm:$0xff]  }
 0x20e   :  { %8827 = vmatpush1.bf16.msra.mxu0 %v17264_v49 }
 0x20f   :  { %8828 = vmatprep.subr.bf16.mxu0 %v17272_v53  ;;  %v17333_v53 = vld [vmem:[#allocation2 + $0x1e8] ss:$112 sps:$4 sm:$0xff]  }
 0x210   :  { %8979 = vmatpush1.bf16.msra.mxu1 %v17261_v50  ;;  %v17335_v50 = vld [vmem:[#allocation2 + $0x1ec] ss:$112 sps:$4 sm:$0xff]  }
 0x211   :  { %8980 = vmatprep.subr.bf16.mxu1 %v17269_v52  ;;  %v17336_v52 = vld [vmem:[#allocation2 + $0x9c0] ss:$112 sps:$4 sm:$0xff]  }
 0x212   :  { %8829 = vmatpush1.bf16.msra.mxu0 %v17270_v55  ;;  %v17341_v55 = vld [vmem:[#allocation2 + $0x2cc] ss:$112 sps:$4 sm:$0xff]  }
 0x213   :  { %9044 = vmatprep.subr.bf16.mxu0 %v17278_v59  ;;  %v17342_v59 = vld [vmem:[#allocation2 + $0xaa0] ss:$112 sps:$4 sm:$0xff]  }
 0x214   :  { %8981 = vmatpush1.bf16.msra.mxu1 %v17267_v56  ;;  %v17344_v56 = vld [vmem:[#allocation2 + $0xaa4] ss:$112 sps:$4 sm:$0xff]  }
 0x215   :  { %8982 = vmatprep.subr.bf16.mxu1 %v17275_v58  ;;  %8831 = vmatmul.mubr.bf16.vlgmr.msra.gmra.mrb[4].mxu0 %v19207_v29 }
 0x216   :  { %9045 = vmatpush1.bf16.msra.mxu0 %v17276_v60  ;;  %9076 = vmatprep.mubr.bf16.mxu0 %v19172_v51 }
 0x217   :  { %9046 = vmatprep.subr.bf16.mxu0 %v17284_v63 }
 0x218   :  { %8983 = vmatpush1.bf16.msra.mxu1 %v17273_v61  ;;  %v17339_v61 = vld [vmem:[#allocation2 + $0x2c8] ss:$112 sps:$4 sm:$0xff]  }
 0x219   :  { %8984 = vmatprep.subr.bf16.mxu1 %v17281_v62  ;;  %v17350_v62 = vld [vmem:[#allocation2 + $0xb84] ss:$112 sps:$4 sm:$0xff]  }
 0x21a   :  { %9047 = vmatpush1.bf16.msra.mxu0 %v17282_v1  ;;  %v17347_v1 = vld [vmem:[#allocation2 + $0x3ac] ss:$112 sps:$4 sm:$0xff]  }
 0x21b   :  { %9048 = vmatprep.subr.bf16.mxu0 %v17290_v4  ;;  %v17345_v4 = vld [vmem:[#allocation2 + $0x3a8] ss:$112 sps:$4 sm:$0xff]  }
 0x21c   :  { %8985 = vmatpush1.bf16.msra.mxu1 %v17279_v2 }
 0x21d   :  { %8986 = vmatprep.subr.bf16.mxu1 %v17287_v3  ;;  %v17348_v3 = vld [vmem:[#allocation2 + $0xb80] ss:$112 sps:$4 sm:$0xff]  }
 0x21e   :  { %9049 = vmatpush1.bf16.msra.mxu0 %v17288_v5  ;;  %v17353_v5 = vld [vmem:[#allocation2 + $0x48c] ss:$112 sps:$4 sm:$0xff]  }
 0x21f   :  { %9050 = vmatprep.subr.bf16.mxu0 %v17296_v8  ;;  %v17351_v8 = vld [vmem:[#allocation2 + $0x488] ss:$112 sps:$4 sm:$0xff]  }
 0x220   :  { %8987 = vmatpush1.bf16.msra.mxu1 %v17285_v6  ;;  %v17356_v6 = vld [vmem:[#allocation2 + $0xc64] ss:$112 sps:$4 sm:$0xff]  }
 0x221   :  { %8988 = vmatprep.subr.bf16.mxu1 %v17293_v7  ;;  %v17354_v7 = vld [vmem:[#allocation2 + $0xc60] ss:$112 sps:$4 sm:$0xff]  }
 0x222   :  { %9051 = vmatpush1.bf16.msra.mxu0 %v17294_v11  ;;  %v17359_v11 = vld [vmem:[#allocation2 + $0x56c] ss:$112 sps:$4 sm:$0xff]  }
 0x223   :  { %9052 = vmatprep.subr.bf16.mxu0 %v17302_v14  ;;  %v17357_v14 = vld [vmem:[#allocation2 + $0x568] ss:$112 sps:$4 sm:$0xff]  }
 0x224   :  { %8989 = vmatpush1.bf16.msra.mxu1 %v17291_v12  ;;  %v17362_v12 = vld [vmem:[#allocation2 + $0xd44] ss:$112 sps:$4 sm:$0xff]  }
 0x225   :  { %8990 = vmatprep.subr.bf16.mxu1 %v17299_v13  ;;  %v17360_v13 = vld [vmem:[#allocation2 + $0xd40] ss:$112 sps:$4 sm:$0xff]  }
 0x226   :  { %9053 = vmatpush1.bf16.msra.mxu0 %v17300_v15  ;;  %v17365_v15 = vld [vmem:[#allocation2 + $0x64c] ss:$112 sps:$4 sm:$0xff]  }
 0x227   :  { %9054 = vmatprep.subr.bf16.mxu0 %v17308_v19  ;;  %v17363_v19 = vld [vmem:[#allocation2 + $0x648] ss:$112 sps:$4 sm:$0xff]  }
 0x228   :  { %8991 = vmatpush1.bf16.msra.mxu1 %v17297_v16  ;;  %v8504_v25 = vpop.f32.mrb[0].mxu0  ;;  %v17368_v16 = vld [vmem:[#allocation2 + $0xe24] ss:$112 sps:$4 sm:$0xff]  }
 0x229   :  { %8992 = vmatprep.subr.bf16.mxu1 %v17305_v17  ;;  %v19234_v26 = vadd.f32 %v19216_v54, %v8504_v25  ;;  %v8506_v27 = vpop.f32.mrb[1].mxu0  ;;  %v17320_v54 = vld [vmem:[#allocation2 + $0x724] ss:$112 sps:$4 sm:$0xff]   ;;  %v17366_v17 = vld [vmem:[#allocation2 + $0xe20] ss:$112 sps:$4 sm:$0xff]  }
 0x22a   :  { %v19237_v28 = vadd.f32 %v19220_v57, %v8506_v27  ;;  %v8508_v30 = vpop.f32.mrb[2].mxu0  ;;  %9055 = vmatpush1.bf16.msra.mxu0 %v17306_v20  ;;  %v17318_v57 = vld [vmem:[#allocation2 + $0x720] ss:$112 sps:$4 sm:$0xff]   ;;  %v17371_v20 = vld [vmem:[#allocation2 + $0x72c] ss:$112 sps:$4 sm:$0xff]  }
 0x22b   :  { %v8509_v32 = vpop.f32.mrb[3].mxu0  ;;  %9056 = vmatprep.subr.bf16.mxu0 %v17311_v22  ;;  %v17372_v22 = vld [vmem:[#allocation2 + $0xf00] ss:$112 sps:$4 sm:$0xff]   ;;  %v17377_v25 = vld [vmem:[#allocation2 + $0x80c] ss:$112 sps:$4 sm:$0xff]  }
 0x22c   :  { %8993 = vmatpush1.bf16.msra.mxu1 %v17303_v21  ;;  %v17374_v21 = vld [vmem:[#allocation2 + $0xf04] ss:$112 sps:$4 sm:$0xff]   ;;  %v17378_v30 = vld [vmem:[#allocation2 + $0xfe0] ss:$112 sps:$4 sm:$0xff]   ;;  %v17383_v32 = vld [vmem:[#allocation2 + $0x8ec] ss:$112 sps:$4 sm:$0xff]  }
 0x22d   :  { %9003 = vmatprep.subr.bf16.mxu1 %v17317_v23  ;;  %v17369_v23 = vld [vmem:[#allocation2 + $0x728] ss:$112 sps:$4 sm:$0xff]   ;;  %v17380_v27 = vld [vmem:[#allocation2 + $0xfe4] ss:$112 sps:$4 sm:$0xff]  }
 0x22e   :  { %9057 = vmatpush1.bf16.msra.mxu0 %v17309_v31  ;;  %v17375_v31 = vld [vmem:[#allocation2 + $0x808] ss:$112 sps:$4 sm:$0xff]  }
 0x22f   :  { %8995 = vmatmul.mubr.bf16.vlgmr.msra.gmra.mrb[12].mxu1 %v19207_v29  ;;  %9058 = vmatprep.subr.bf16.mxu0 %v17314_v33  ;;  %v17386_v33 = vld [vmem:[#allocation2 + $0x10c4] ss:$112 sps:$4 sm:$0xff]  }
 0x230   :  { %9004 = vmatpush1.bf16.msra.mxu1 %v17315_v34  ;;  %9035 = vmatprep.mubr.bf16.mxu1 %v18995_v0  ;;  %v17384_v34 = vld [vmem:[#allocation2 + $0x10c0] ss:$112 sps:$4 sm:$0xff]  }
 0x231   :  { %9208 = vmatprep.subr.bf16.mxu1 %v17323_v35  ;;  %v17381_v35 = vld [vmem:[#allocation2 + $0x8e8] ss:$112 sps:$4 sm:$0xff]  }
 0x232   :  { %9059 = vmatpush1.bf16.msra.mxu0 %v17312_v37  ;;  %v17389_v37 = vld [vmem:[#allocation2 + $0x9cc] ss:$112 sps:$4 sm:$0xff]  }
 0x233   :  { %9060 = vmatprep.subr.bf16.mxu0 %v17320_v54  ;;  %v17392_v54 = vld [vmem:[#allocation2 + $0x11a4] ss:$112 sps:$4 sm:$0xff]  }
 0x236   :  { %9061 = vmatpush1.bf16.msra.mxu0 %v17318_v57  ;;  %v17387_v57 = vld [vmem:[#allocation2 + $0x9c8] ss:$112 sps:$4 sm:$0xff]  }
 0x237   :  { %9062 = vmatprep.subr.bf16.mxu0 %v17326_v38  ;;  %v17390_v38 = vld [vmem:[#allocation2 + $0x11a0] ss:$112 sps:$4 sm:$0xff]  }
 0x23a   :  { %v19241_v43 = vpop.f32.mrb[4].mxu1  ;;  %9063 = vmatpush1.bf16.msra.mxu0 %v17324_v39  ;;  %v17395_v39 = vld [vmem:[#allocation2 + $0xaac] ss:$112 sps:$4 sm:$0xff]  }
 0x23b   :  { %15909 = vmatmul.mubr.msk.bf16.vlgmr.msra.gmra.mrb[12].mxu1 %vm8384_vm0, %v19165_v10  ;;  %v19245_v44 = vpop.f32.mrb[5].mxu1  ;;  %9064 = vmatprep.subr.bf16.mxu0 %v17332_v42  ;;  %v17396_v42 = vld [vmem:[#allocation2 + $0x1280] ss:$112 sps:$4 sm:$0xff]  }
 0x23c   :  { %9209 = vmatpush1.bf16.msra.mxu1 %v17321_v40  ;;  %v8713_v46 = vpop.f32.mrb[6].mxu1  ;;  %9240 = vmatprep.mubr.bf16.mxu1 %v19172_v51  ;;  %v17398_v40 = vld [vmem:[#allocation2 + $0x1284] ss:$112 sps:$4 sm:$0xff]  }
 0x23d   :  { %v8714_v49 = vpop.f32.mrb[7].mxu1  ;;  %9210 = vmatprep.subr.bf16.mxu1 %v17329_v41  ;;  %v17393_v41 = vld [vmem:[#allocation2 + $0xaa8] ss:$112 sps:$4 sm:$0xff]   ;;  %v17404_v46 = vld [vmem:[#allocation2 + $0x1364] ss:$112 sps:$4 sm:$0xff]  }
 0x23e   :  { %9065 = vmatpush1.bf16.msra.mxu0 %v17330_v45  ;;  %v17401_v45 = vld [vmem:[#allocation2 + $0xb8c] ss:$112 sps:$4 sm:$0xff]  }
 0x23f   :  { %9066 = vmatprep.subr.bf16.mxu0 %v17338_v48  ;;  %v17402_v48 = vld [vmem:[#allocation2 + $0x1360] ss:$112 sps:$4 sm:$0xff]   ;;  %v17407_v49 = vld [vmem:[#allocation2 + $0xc6c] ss:$112 sps:$4 sm:$0xff]  }
 0x240   :  { %9211 = vmatpush1.bf16.msra.mxu1 %v17327_v47  ;;  %v17399_v47 = vld [vmem:[#allocation2 + $0xb88] ss:$112 sps:$4 sm:$0xff]  }
 0x241   :  { %9212 = vmatprep.subr.bf16.mxu1 %v17335_v50  ;;  %v17410_v50 = vld [vmem:[#allocation2 + $0x1444] ss:$112 sps:$4 sm:$0xff]  }
 0x242   :  { %v19248_v58 = vpop.f32.mrb[8].mxu1  ;;  %9067 = vmatpush1.bf16.msra.mxu0 %v17336_v52  ;;  %v17405_v52 = vld [vmem:[#allocation2 + $0xc68] ss:$112 sps:$4 sm:$0xff]  }
 0x243   :  { %v19250_v60 = vpop.f32.mrb[9].mxu1  ;;  %9068 = vmatprep.subr.bf16.mxu0 %v17344_v56  ;;  %v17416_v56 = vld [vmem:[#allocation2 + $0x1524] ss:$112 sps:$4 sm:$0xff]  }
 0x244   :  { %9213 = vmatpush1.bf16.msra.mxu1 %v17333_v53  ;;  %v8877_v63 = vpop.f32.mrb[10].mxu1  ;;  %v17408_v53 = vld [vmem:[#allocation2 + $0x1440] ss:$112 sps:$4 sm:$0xff]  }
 0x245   :  { %9214 = vmatprep.subr.bf16.mxu1 %v17341_v55  ;;  %v8878_v2 = vpop.f32.mrb[11].mxu1  ;;  %v17413_v55 = vld [vmem:[#allocation2 + $0xd4c] ss:$112 sps:$4 sm:$0xff]   ;;  %v17422_v63 = vld [vmem:[#allocation2 + $0x1604] ss:$112 sps:$4 sm:$0xff]  }
 0x246   :  { %9069 = vmatpush1.bf16.msra.mxu0 %v17342_v59  ;;  %v17411_v59 = vld [vmem:[#allocation2 + $0xd48] ss:$112 sps:$4 sm:$0xff]   ;;  %v17420_v2 = vld [vmem:[#allocation2 + $0x1600] ss:$112 sps:$4 sm:$0xff]  }
 0x247   :  { %9070 = vmatprep.subr.bf16.mxu0 %v17350_v62  ;;  %v17419_v62 = vld [vmem:[#allocation2 + $0xe2c] ss:$112 sps:$4 sm:$0xff]  }
 0x248   :  { %9215 = vmatpush1.bf16.msra.mxu1 %v17339_v61  ;;  %v17414_v61 = vld [vmem:[#allocation2 + $0x1520] ss:$112 sps:$4 sm:$0xff]  }
 0x249   :  { %9216 = vmatprep.subr.bf16.mxu1 %v17347_v1  ;;  %v17417_v1 = vld [vmem:[#allocation2 + $0xe28] ss:$112 sps:$4 sm:$0xff]  }
 0x24a   :  { %9071 = vmatpush1.bf16.msra.mxu0 %v17348_v3  ;;  %v17425_v3 = vld [vmem:[#allocation2 + $0xf0c] ss:$112 sps:$4 sm:$0xff]  }
 0x24b   :  { %9072 = vmatprep.subr.bf16.mxu0 %v17356_v6  ;;  %v17426_v6 = vld [vmem:[#allocation2 + $0x16e0] ss:$112 sps:$4 sm:$0xff]  }
 0x24c   :  { %9217 = vmatpush1.bf16.msra.mxu1 %v17345_v4  ;;  %v17428_v4 = vld [vmem:[#allocation2 + $0x16e4] ss:$112 sps:$4 sm:$0xff]  }
 0x24d   :  { %9218 = vmatprep.subr.bf16.mxu1 %v17353_v5  ;;  %v17423_v5 = vld [vmem:[#allocation2 + $0xf08] ss:$112 sps:$4 sm:$0xff]  }
 0x24e   :  { %9073 = vmatpush1.bf16.msra.mxu0 %v17354_v7  ;;  %v17431_v7 = vld [vmem:[#allocation2 + $0xfec] ss:$112 sps:$4 sm:$0xff]  }
 0x24f   :  { %9074 = vmatprep.subr.bf16.mxu0 %v17362_v12  ;;  %v17432_v12 = vld [vmem:[#allocation2 + $0x17c0] ss:$112 sps:$4 sm:$0xff]  }
 0x250   :  { %9219 = vmatpush1.bf16.msra.mxu1 %v17351_v8  ;;  %v17434_v8 = vld [vmem:[#allocation2 + $0x17c4] ss:$112 sps:$4 sm:$0xff]  }
 0x251   :  { %9220 = vmatprep.subr.bf16.mxu1 %v17359_v11  ;;  %v17429_v11 = vld [vmem:[#allocation2 + $0xfe8] ss:$112 sps:$4 sm:$0xff]  }
 0x252   :  { %9075 = vmatpush1.bf16.msra.mxu0 %v17360_v13  ;;  %v17437_v13 = vld [vmem:[#allocation2 + $0x10cc] ss:$112 sps:$4 sm:$0xff]  }
 0x253   :  { %9085 = vmatprep.subr.bf16.mxu0 %v17368_v16  ;;  %v17435_v16 = vld [vmem:[#allocation2 + $0x10c8] ss:$112 sps:$4 sm:$0xff]  }
 0x254   :  { %9221 = vmatpush1.bf16.msra.mxu1 %v17357_v14  ;;  %v17440_v14 = vld [vmem:[#allocation2 + $0x18a4] ss:$112 sps:$4 sm:$0xff]  }
 0x255   :  { %9222 = vmatprep.subr.bf16.mxu1 %v17365_v15  ;;  %9077 = vmatmul.mubr.bf16.vlgmr.msra.gmra.mrb[8].mxu0 %v19179_v9  ;;  %v17438_v15 = vld [vmem:[#allocation2 + $0x18a0] ss:$112 sps:$4 sm:$0xff]  }
 0x256   :  { %9086 = vmatpush1.bf16.msra.mxu0 %v17366_v17  ;;  %9117 = vmatprep.mubr.bf16.mxu0 %v19186_v36  ;;  %v17443_v17 = vld [vmem:[#allocation2 + $0x11ac] ss:$112 sps:$4 sm:$0xff]  }
 0x257   :  { %9087 = vmatprep.subr.bf16.mxu0 %v17374_v21  ;;  %v17441_v21 = vld [vmem:[#allocation2 + $0x11a8] ss:$112 sps:$4 sm:$0xff]  }
 0x258   :  { %9223 = vmatpush1.bf16.msra.mxu1 %v17363_v19  ;;  %v17446_v19 = vld [vmem:[#allocation2 + $0x1984] ss:$112 sps:$4 sm:$0xff]  }
 0x259   :  { %9224 = vmatprep.subr.bf16.mxu1 %v17371_v20  ;;  %v17444_v20 = vld [vmem:[#allocation2 + $0x1980] ss:$112 sps:$4 sm:$0xff]  }
 0x25a   :  { %9088 = vmatpush1.bf16.msra.mxu0 %v17372_v22  ;;  %v17449_v22 = vld [vmem:[#allocation2 + $0x128c] ss:$112 sps:$4 sm:$0xff]  }
 0x25b   :  { %9089 = vmatprep.subr.bf16.mxu0 %v17380_v27  ;;  %v17447_v27 = vld [vmem:[#allocation2 + $0x1288] ss:$112 sps:$4 sm:$0xff]  }
 0x25c   :  { %9225 = vmatpush1.bf16.msra.mxu1 %v17369_v23  ;;  %v17452_v23 = vld [vmem:[#allocation2 + $0x1a64] ss:$112 sps:$4 sm:$0xff]  }
 0x25d   :  { %9226 = vmatprep.subr.bf16.mxu1 %v17377_v25  ;;  %v17450_v25 = vld [vmem:[#allocation2 + $0x1a60] ss:$112 sps:$4 sm:$0xff]  }
 0x25e   :  { %9090 = vmatpush1.bf16.msra.mxu0 %v17378_v30  ;;  %v17455_v30 = vld [vmem:[#allocation2 + $0x136c] ss:$112 sps:$4 sm:$0xff]  }
 0x25f   :  { %9091 = vmatprep.subr.bf16.mxu0 %v17386_v33  ;;  %v17456_v33 = vld [vmem:[#allocation2 + $0x1b40] ss:$112 sps:$4 sm:$0xff]  }
 0x260   :  { %9227 = vmatpush1.bf16.msra.mxu1 %v17375_v31  ;;  %v17458_v31 = vld [vmem:[#allocation2 + $0x1b44] ss:$112 sps:$4 sm:$0xff]  }
 0x261   :  { %9228 = vmatprep.subr.bf16.mxu1 %v17383_v32  ;;  %v17453_v32 = vld [vmem:[#allocation2 + $0x1368] ss:$112 sps:$4 sm:$0xff]  }
 0x262   :  { %9092 = vmatpush1.bf16.msra.mxu0 %v17384_v34  ;;  %v17464_v34 = vld [vmem:[#allocation2 + $0x1c24] ss:$112 sps:$4 sm:$0xff]  }
 0x263   :  { %9093 = vmatprep.subr.bf16.mxu0 %v17392_v54  ;;  %v17459_v54 = vld [vmem:[#allocation2 + $0x1448] ss:$112 sps:$4 sm:$0xff]  }
 0x264   :  { %9229 = vmatpush1.bf16.msra.mxu1 %v17381_v35  ;;  %v17461_v35 = vld [vmem:[#allocation2 + $0x144c] ss:$112 sps:$4 sm:$0xff]  }
 0x265   :  { %9230 = vmatprep.subr.bf16.mxu1 %v17389_v37  ;;  %v17462_v37 = vld [vmem:[#allocation2 + $0x1c20] ss:$112 sps:$4 sm:$0xff]  }
 0x266   :  { %9094 = vmatpush1.bf16.msra.mxu0 %v17390_v38  ;;  %v17470_v38 = vld [vmem:[#allocation2 + $0x1d04] ss:$112 sps:$4 sm:$0xff]  }
 0x267   :  { %9095 = vmatprep.subr.bf16.mxu0 %v17398_v40  ;;  %v17465_v40 = vld [vmem:[#allocation2 + $0x1528] ss:$112 sps:$4 sm:$0xff]  }
 0x268   :  { %9231 = vmatpush1.bf16.msra.mxu1 %v17387_v57  ;;  %v17467_v57 = vld [vmem:[#allocation2 + $0x152c] ss:$112 sps:$4 sm:$0xff]  }
 0x269   :  { %9232 = vmatprep.subr.bf16.mxu1 %v17395_v39  ;;  %v17468_v39 = vld [vmem:[#allocation2 + $0x1d00] ss:$112 sps:$4 sm:$0xff]  }
 0x26a   :  { %9096 = vmatpush1.bf16.msra.mxu0 %v17396_v42  ;;  %v17476_v42 = vld [vmem:[#allocation2 + $0x1de4] ss:$112 sps:$4 sm:$0xff]  }
 0x26b   :  { %9097 = vmatprep.subr.bf16.mxu0 %v17404_v46  ;;  %v17471_v46 = vld [vmem:[#allocation2 + $0x1608] ss:$112 sps:$4 sm:$0xff]  }
 0x26c   :  { %9233 = vmatpush1.bf16.msra.mxu1 %v17393_v41  ;;  %v17473_v41 = vld [vmem:[#allocation2 + $0x160c] ss:$112 sps:$4 sm:$0xff]  }
 0x26d   :  { %9234 = vmatprep.subr.bf16.mxu1 %v17401_v45  ;;  %v17474_v45 = vld [vmem:[#allocation2 + $0x1de0] ss:$112 sps:$4 sm:$0xff]  }
 0x26e   :  { %9098 = vmatpush1.bf16.msra.mxu0 %v17402_v48  ;;  %v17482_v48 = vld [vmem:[#allocation2 + $0x1ec4] ss:$112 sps:$4 sm:$0xff]  }
 0x26f   :  { %9099 = vmatprep.subr.bf16.mxu0 %v17410_v50  ;;  %v17477_v50 = vld [vmem:[#allocation2 + $0x16e8] ss:$112 sps:$4 sm:$0xff]  }
 0x270   :  { %9235 = vmatpush1.bf16.msra.mxu1 %v17399_v47  ;;  %v17479_v47 = vld [vmem:[#allocation2 + $0x16ec] ss:$112 sps:$4 sm:$0xff]  }
 0x271   :  { %9236 = vmatprep.subr.bf16.mxu1 %v17407_v49  ;;  %v17480_v49 = vld [vmem:[#allocation2 + $0x1ec0] ss:$112 sps:$4 sm:$0xff]  }
 0x272   :  { %9100 = vmatpush1.bf16.msra.mxu0 %v17408_v53  ;;  %v17488_v53 = vld [vmem:[#allocation2 + $0x1fa4] ss:$112 sps:$4 sm:$0xff]  }
 0x273   :  { %9101 = vmatprep.subr.bf16.mxu0 %v17416_v56  ;;  %v17483_v56 = vld [vmem:[#allocation2 + $0x17c8] ss:$112 sps:$4 sm:$0xff]  }
 0x274   :  { %9237 = vmatpush1.bf16.msra.mxu1 %v17405_v52  ;;  %v17485_v52 = vld [vmem:[#allocation2 + $0x17cc] ss:$112 sps:$4 sm:$0xff]  }
 0x275   :  { %9238 = vmatprep.subr.bf16.mxu1 %v17413_v55  ;;  %v17486_v55 = vld [vmem:[#allocation2 + $0x1fa0] ss:$112 sps:$4 sm:$0xff]  }
 0x276   :  { %9102 = vmatpush1.bf16.msra.mxu0 %v17414_v61  ;;  %v17494_v61 = vld [vmem:[#allocation2 + $0x2084] ss:$112 sps:$4 sm:$0xff]  }
 0x277   :  { %9103 = vmatprep.subr.bf16.mxu0 %v17422_v63  ;;  %v17489_v63 = vld [vmem:[#allocation2 + $0x18a8] ss:$112 sps:$4 sm:$0xff]  }
 0x278   :  { %9239 = vmatpush1.bf16.msra.mxu1 %v17411_v59  ;;  %v17491_v59 = vld [vmem:[#allocation2 + $0x18ac] ss:$112 sps:$4 sm:$0xff]  }
 0x279   :  { %9249 = vmatprep.subr.bf16.mxu1 %v17419_v62  ;;  %v17492_v62 = vld [vmem:[#allocation2 + $0x2080] ss:$112 sps:$4 sm:$0xff]  }
 0x27a   :  { %9104 = vmatpush1.bf16.msra.mxu0 %v17420_v2  ;;  %v17500_v2 = vld [vmem:[#allocation2 + $0x2164] ss:$112 sps:$4 sm:$0xff]  }
 0x27b   :  { %9241 = vmatmul.mubr.bf16.vlgmr.msra.gmra.mrb[16].mxu1 %v19179_v9  ;;  %9105 = vmatprep.subr.bf16.mxu0 %v17428_v4  ;;  %v17495_v4 = vld [vmem:[#allocation2 + $0x1988] ss:$112 sps:$4 sm:$0xff]  }
 0x27c   :  { %9250 = vmatpush1.bf16.msra.mxu1 %v17417_v1  ;;  %9281 = vmatprep.mubr.bf16.mxu1 %v19186_v36  ;;  %v17497_v1 = vld [vmem:[#allocation2 + $0x198c] ss:$112 sps:$4 sm:$0xff]  }
 0x27d   :  { %9251 = vmatprep.subr.bf16.mxu1 %v17425_v3  ;;  %v17498_v3 = vld [vmem:[#allocation2 + $0x2160] ss:$112 sps:$4 sm:$0xff]  }
 0x27e   :  { %9106 = vmatpush1.bf16.msra.mxu0 %v17426_v6  ;;  %v17506_v6 = vld [vmem:[#allocation2 + $0x2244] ss:$112 sps:$4 sm:$0xff]  }
 0x27f   :  { %9107 = vmatprep.subr.bf16.mxu0 %v17434_v8  ;;  %v17501_v8 = vld [vmem:[#allocation2 + $0x1a68] ss:$112 sps:$4 sm:$0xff]  }
 0x280   :  { %9252 = vmatpush1.bf16.msra.mxu1 %v17423_v5  ;;  %v17503_v5 = vld [vmem:[#allocation2 + $0x1a6c] ss:$112 sps:$4 sm:$0xff]  }
 0x281   :  { %9253 = vmatprep.subr.bf16.mxu1 %v17431_v7  ;;  %v17504_v7 = vld [vmem:[#allocation2 + $0x2240] ss:$112 sps:$4 sm:$0xff]  }
 0x282   :  { %9108 = vmatpush1.bf16.msra.mxu0 %v17432_v12  ;;  %v17512_v12 = vld [vmem:[#allocation2 + $0x2324] ss:$112 sps:$4 sm:$0xff]  }
 0x283   :  { %9109 = vmatprep.subr.bf16.mxu0 %v17440_v14  ;;  %v17507_v14 = vld [vmem:[#allocation2 + $0x1b48] ss:$112 sps:$4 sm:$0xff]  }
 0x284   :  { %9254 = vmatpush1.bf16.msra.mxu1 %v17429_v11  ;;  %v17509_v11 = vld [vmem:[#allocation2 + $0x1b4c] ss:$112 sps:$4 sm:$0xff]  }
 0x285   :  { %9255 = vmatprep.subr.bf16.mxu1 %v17437_v13  ;;  %v17510_v13 = vld [vmem:[#allocation2 + $0x2320] ss:$112 sps:$4 sm:$0xff]  }
 0x286   :  { %9110 = vmatpush1.bf16.msra.mxu0 %v17438_v15  ;;  %v17515_v15 = vld [vmem:[#allocation2 + $0x1c2c] ss:$112 sps:$4 sm:$0xff]  }
 0x287   :  { %9111 = vmatprep.subr.bf16.mxu0 %v17446_v19  ;;  %v17513_v19 = vld [vmem:[#allocation2 + $0x1c28] ss:$112 sps:$4 sm:$0xff]  }
 0x288   :  { %9256 = vmatpush1.bf16.msra.mxu1 %v17435_v16  ;;  %v17518_v16 = vld [vmem:[#allocation2 + $0x2404] ss:$112 sps:$4 sm:$0xff]  }
 0x289   :  { %9257 = vmatprep.subr.bf16.mxu1 %v17443_v17  ;;  %v17516_v17 = vld [vmem:[#allocation2 + $0x2400] ss:$112 sps:$4 sm:$0xff]  }
 0x28a   :  { %9112 = vmatpush1.bf16.msra.mxu0 %v17444_v20  ;;  %v17521_v20 = vld [vmem:[#allocation2 + $0x1d0c] ss:$112 sps:$4 sm:$0xff]  }
 0x28b   :  { %9113 = vmatprep.subr.bf16.mxu0 %v17452_v23  ;;  %v17519_v23 = vld [vmem:[#allocation2 + $0x1d08] ss:$112 sps:$4 sm:$0xff]  }
 0x28c   :  { %9258 = vmatpush1.bf16.msra.mxu1 %v17441_v21  ;;  %v17524_v21 = vld [vmem:[#allocation2 + $0x24e4] ss:$112 sps:$4 sm:$0xff]  }
 0x28d   :  { %9259 = vmatprep.subr.bf16.mxu1 %v17449_v22  ;;  %v17522_v22 = vld [vmem:[#allocation2 + $0x24e0] ss:$112 sps:$4 sm:$0xff]  }
 0x28e   :  { %9114 = vmatpush1.bf16.msra.mxu0 %v17450_v25  ;;  %v17527_v25 = vld [vmem:[#allocation2 + $0x1dec] ss:$112 sps:$4 sm:$0xff]  }
 0x28f   :  { %9115 = vmatprep.subr.bf16.mxu0 %v17458_v31  ;;  %v17525_v31 = vld [vmem:[#allocation2 + $0x1de8] ss:$112 sps:$4 sm:$0xff]  }
 0x290   :  { %9260 = vmatpush1.bf16.msra.mxu1 %v17447_v27  ;;  %v17530_v27 = vld [vmem:[#allocation2 + $0x25c4] ss:$112 sps:$4 sm:$0xff]  }
 0x291   :  { %9261 = vmatprep.subr.bf16.mxu1 %v17455_v30  ;;  %v17528_v30 = vld [vmem:[#allocation2 + $0x25c0] ss:$112 sps:$4 sm:$0xff]  }
 0x292   :  { %9116 = vmatpush1.bf16.msra.mxu0 %v17456_v33  ;;  %v17536_v33 = vld [vmem:[#allocation2 + $0x26a4] ss:$112 sps:$4 sm:$0xff]  }
 0x293   :  { %9126 = vmatprep.subr.bf16.mxu0 %v17464_v34  ;;  %v17534_v34 = vld [vmem:[#allocation2 + $0x26a0] ss:$112 sps:$4 sm:$0xff]  }
 0x294   :  { %9262 = vmatpush1.bf16.msra.mxu1 %v17453_v32  ;;  %v17533_v32 = vld [vmem:[#allocation2 + $0x1ecc] ss:$112 sps:$4 sm:$0xff]  }
 0x295   :  { %9263 = vmatprep.subr.bf16.mxu1 %v17461_v35  ;;  %9118 = vmatmul.mubr.bf16.vlgmr.msra.gmra.mrb[8].mxu0 %v19193_v18  ;;  %v17531_v35 = vld [vmem:[#allocation2 + $0x1ec8] ss:$112 sps:$4 sm:$0xff]  }
 0x296   :  { %9127 = vmatpush1.bf16.msra.mxu0 %v17462_v37  ;;  %9158 = vmatprep.mubr.bf16.mxu0 %v19198_v24  ;;  %v17539_v37 = vld [vmem:[#allocation2 + $0x1fac] ss:$112 sps:$4 sm:$0xff]  }
 0x297   :  { %9128 = vmatprep.subr.bf16.mxu0 %v17470_v38  ;;  %v17537_v38 = vld [vmem:[#allocation2 + $0x1fa8] ss:$112 sps:$4 sm:$0xff]  }
 0x298   :  { %9264 = vmatpush1.bf16.msra.mxu1 %v17459_v54  ;;  %v17542_v54 = vld [vmem:[#allocation2 + $0x2784] ss:$112 sps:$4 sm:$0xff]  }
 0x299   :  { %9265 = vmatprep.subr.bf16.mxu1 %v17467_v57  ;;  %v17540_v57 = vld [vmem:[#allocation2 + $0x2780] ss:$112 sps:$4 sm:$0xff]  }
 0x29a   :  { %9129 = vmatpush1.bf16.msra.mxu0 %v17468_v39  ;;  %v17545_v39 = vld [vmem:[#allocation2 + $0x208c] ss:$112 sps:$4 sm:$0xff]  }
 0x29b   :  { %9130 = vmatprep.subr.bf16.mxu0 %v17476_v42  ;;  %v17543_v42 = vld [vmem:[#allocation2 + $0x2088] ss:$112 sps:$4 sm:$0xff]  }
 0x29c   :  { %9266 = vmatpush1.bf16.msra.mxu1 %v17465_v40  ;;  %v17548_v40 = vld [vmem:[#allocation2 + $0x2864] ss:$112 sps:$4 sm:$0xff]  }
 0x29d   :  { %9267 = vmatprep.subr.bf16.mxu1 %v17473_v41  ;;  %v17546_v41 = vld [vmem:[#allocation2 + $0x2860] ss:$112 sps:$4 sm:$0xff]  }
 0x29e   :  { %9131 = vmatpush1.bf16.msra.mxu0 %v17474_v45  ;;  %v17551_v45 = vld [vmem:[#allocation2 + $0x216c] ss:$112 sps:$4 sm:$0xff]  }
 0x29f   :  { %9132 = vmatprep.subr.bf16.mxu0 %v17482_v48  ;;  %v17549_v48 = vld [vmem:[#allocation2 + $0x2168] ss:$112 sps:$4 sm:$0xff]  }
 0x2a0   :  { %9268 = vmatpush1.bf16.msra.mxu1 %v17471_v46  ;;  %v17554_v46 = vld [vmem:[#allocation2 + $0x2944] ss:$112 sps:$4 sm:$0xff]  }
 0x2a1   :  { %9269 = vmatprep.subr.bf16.mxu1 %v17479_v47  ;;  %v17552_v47 = vld [vmem:[#allocation2 + $0x2940] ss:$112 sps:$4 sm:$0xff]  }
 0x2a2   :  { %9133 = vmatpush1.bf16.msra.mxu0 %v17480_v49  ;;  %v17557_v49 = vld [vmem:[#allocation2 + $0x224c] ss:$112 sps:$4 sm:$0xff]  }
 0x2a3   :  { %9134 = vmatprep.subr.bf16.mxu0 %v17488_v53  ;;  %v17555_v53 = vld [vmem:[#allocation2 + $0x2248] ss:$112 sps:$4 sm:$0xff]  }
 0x2a4   :  { %9270 = vmatpush1.bf16.msra.mxu1 %v17477_v50  ;;  %v17560_v50 = vld [vmem:[#allocation2 + $0x2a24] ss:$112 sps:$4 sm:$0xff]  }
 0x2a5   :  { %9271 = vmatprep.subr.bf16.mxu1 %v17485_v52  ;;  %v17558_v52 = vld [vmem:[#allocation2 + $0x2a20] ss:$112 sps:$4 sm:$0xff]  }
 0x2a6   :  { %9135 = vmatpush1.bf16.msra.mxu0 %v17486_v55  ;;  %v17563_v55 = vld [vmem:[#allocation2 + $0x232c] ss:$112 sps:$4 sm:$0xff]  }
 0x2a7   :  { %9136 = vmatprep.subr.bf16.mxu0 %v17494_v61  ;;  %v17566_v61 = vld [vmem:[#allocation2 + $0x240c] ss:$112 sps:$4 sm:$0xff]  }
 0x2a8   :  { %9272 = vmatpush1.bf16.msra.mxu1 %v17483_v56  ;;  %v17572_v56 = vld [vmem:[#allocation2 + $0x34] ss:$112 sps:$4 sm:$0xff]  }
 0x2a9   :  { %9273 = vmatprep.subr.bf16.mxu1 %v17491_v59  ;;  %v17561_v59 = vld [vmem:[#allocation2 + $0x2328] ss:$112 sps:$4 sm:$0xff]  }
 0x2aa   :  { %9137 = vmatpush1.bf16.msra.mxu0 %v17492_v62  ;;  %v17564_v62 = vld [vmem:[#allocation2 + $0x2408] ss:$112 sps:$4 sm:$0xff]  }
 0x2ab   :  { %9138 = vmatprep.subr.bf16.mxu0 %v17500_v2  ;;  %v17567_v2 = vld [vmem:[#allocation2 + $0x24e8] ss:$112 sps:$4 sm:$0xff]  }
 0x2ac   :  { %9274 = vmatpush1.bf16.msra.mxu1 %v17489_v63  ;;  %v17569_v63 = vld [vmem:[#allocation2 + $0x24ec] ss:$112 sps:$4 sm:$0xff]  }
 0x2ad   :  { %9275 = vmatprep.subr.bf16.mxu1 %v17497_v1  ;;  %v17570_v1 = vld [vmem:[#allocation2 + $0x30] ss:$112 sps:$4 sm:$0xff]  }
 0x2ae   :  { %9139 = vmatpush1.bf16.msra.mxu0 %v17498_v3  ;;  %v17575_v3 = vld [vmem:[#allocation2 + $0x25cc] ss:$112 sps:$4 sm:$0xff]  }
 0x2af   :  { %9140 = vmatprep.subr.bf16.mxu0 %v17506_v6  ;;  %v17573_v6 = vld [vmem:[#allocation2 + $0x25c8] ss:$112 sps:$4 sm:$0xff]  }
 0x2b0   :  { %9276 = vmatpush1.bf16.msra.mxu1 %v17495_v4  ;;  %v17578_v4 = vld [vmem:[#allocation2 + $0x114] ss:$112 sps:$4 sm:$0xff]  }
 0x2b1   :  { %9277 = vmatprep.subr.bf16.mxu1 %v17503_v5  ;;  %v17576_v5 = vld [vmem:[#allocation2 + $0x110] ss:$112 sps:$4 sm:$0xff]  }
 0x2b2   :  { %9141 = vmatpush1.bf16.msra.mxu0 %v17504_v7  ;;  %v17581_v7 = vld [vmem:[#allocation2 + $0x26ac] ss:$112 sps:$4 sm:$0xff]  }
 0x2b3   :  { %9142 = vmatprep.subr.bf16.mxu0 %v17512_v12  ;;  %v17579_v12 = vld [vmem:[#allocation2 + $0x26a8] ss:$112 sps:$4 sm:$0xff]  }
 0x2b4   :  { %9278 = vmatpush1.bf16.msra.mxu1 %v17501_v8  ;;  %v17584_v8 = vld [vmem:[#allocation2 + $0x1f4] ss:$112 sps:$4 sm:$0xff]  }
 0x2b5   :  { %9279 = vmatprep.subr.bf16.mxu1 %v17509_v11  ;;  %v17582_v11 = vld [vmem:[#allocation2 + $0x1f0] ss:$112 sps:$4 sm:$0xff]  }
 0x2b6   :  { %9143 = vmatpush1.bf16.msra.mxu0 %v17510_v13  ;;  %v17587_v13 = vld [vmem:[#allocation2 + $0x278c] ss:$112 sps:$4 sm:$0xff]  }
 0x2b7   :  { %9144 = vmatprep.subr.bf16.mxu0 %v17518_v16 }
 0x2b8   :  { %9280 = vmatpush1.bf16.msra.mxu1 %v17507_v14  ;;  %v17590_v14 = vld [vmem:[#allocation2 + $0x2d4] ss:$112 sps:$4 sm:$0xff]  }
 0x2b9   :  { %9290 = vmatprep.subr.bf16.mxu1 %v17515_v15 }
 0x2ba   :  { %9145 = vmatpush1.bf16.msra.mxu0 %v17516_v17 }
 0x2bb   :  { %9282 = vmatmul.mubr.bf16.vlgmr.msra.gmra.mrb[16].mxu1 %v19193_v18  ;;  %9146 = vmatprep.subr.bf16.mxu0 %v17524_v21  ;;  %v17588_v21 = vld [vmem:[#allocation2 + $0x2d0] ss:$112 sps:$4 sm:$0xff]  }
 0x2bc   :  { %9291 = vmatpush1.bf16.msra.mxu1 %v17513_v19  ;;  %9322 = vmatprep.mubr.bf16.mxu1 %v19198_v24 }
 0x2bd   :  { %9292 = vmatprep.subr.bf16.mxu1 %v17521_v20 }
 0x2be   :  { %9147 = vmatpush1.bf16.msra.mxu0 %v17522_v22 }
 0x2bf   :  { %9148 = vmatprep.subr.bf16.mxu0 %v17530_v27  ;;  %v17593_v27 = vld [vmem:[#allocation2 + $0x286c] ss:$112 sps:$4 sm:$0xff]  }
 0x2c0   :  { %9293 = vmatpush1.bf16.msra.mxu1 %v17519_v23  ;;  %v17585_v23 = vld [vmem:[#allocation2 + $0x2788] ss:$112 sps:$4 sm:$0xff]  }
 0x2c1   :  { %9294 = vmatprep.subr.bf16.mxu1 %v17527_v25  ;;  %v17596_v25 = vld [vmem:[#allocation2 + $0x3b4] ss:$112 sps:$4 sm:$0xff]  }
 0x2c2   :  { %9149 = vmatpush1.bf16.msra.mxu0 %v17528_v30  ;;  %v17594_v30 = vld [vmem:[#allocation2 + $0x3b0] ss:$112 sps:$4 sm:$0xff]  }
 0x2c3   :  { %9150 = vmatprep.subr.bf16.mxu0 %v17536_v33  ;;  %v17597_v33 = vld [vmem:[#allocation2 + $0x2948] ss:$112 sps:$4 sm:$0xff]  }
 0x2c4   :  { %9295 = vmatpush1.bf16.msra.mxu1 %v17525_v31  ;;  %v17591_v31 = vld [vmem:[#allocation2 + $0x2868] ss:$112 sps:$4 sm:$0xff]  }
 0x2c5   :  { %9296 = vmatprep.subr.bf16.mxu1 %v17533_v32  ;;  %v17602_v32 = vld [vmem:[#allocation2 + $0x494] ss:$112 sps:$4 sm:$0xff]  }
 0x2c6   :  { %9151 = vmatpush1.bf16.msra.mxu0 %v17534_v34  ;;  %v17605_v34 = vld [vmem:[#allocation2 + $0x574] ss:$112 sps:$4 sm:$0xff]  }
 0x2c7   :  { %9152 = vmatprep.subr.bf16.mxu0 %v17542_v54  ;;  %v17608_v54 = vld [vmem:[#allocation2 + $0x654] ss:$112 sps:$4 sm:$0xff]  }
 0x2c8   :  { %9297 = vmatpush1.bf16.msra.mxu1 %v17531_v35  ;;  %v17611_v35 = vld [vmem:[#allocation2 + $0x2a2c] ss:$112 sps:$4 sm:$0xff]  }
 0x2c9   :  { %9298 = vmatprep.subr.bf16.mxu1 %v17539_v37  ;;  %v17603_v37 = vld [vmem:[#allocation2 + $0x570] ss:$112 sps:$4 sm:$0xff]  }
 0x2ca   :  { %9153 = vmatpush1.bf16.msra.mxu0 %v17540_v57  ;;  %v17609_v57 = vld [vmem:[#allocation2 + $0x2a28] ss:$112 sps:$4 sm:$0xff]  }
 0x2cb   :  { %9154 = vmatprep.subr.bf16.mxu0 %v17548_v40  ;;  %v17614_v40 = vld [vmem:[#allocation2 + $0x734] ss:$112 sps:$4 sm:$0xff]  }
 0x2cc   :  { %9299 = vmatpush1.bf16.msra.mxu1 %v17537_v38  ;;  %v17617_v38 = vld [vmem:[#allocation2 + $0x3c] ss:$112 sps:$4 sm:$0xff]  }
 0x2cd   :  { %9300 = vmatprep.subr.bf16.mxu1 %v17545_v39  ;;  %v17606_v39 = vld [vmem:[#allocation2 + $0x650] ss:$112 sps:$4 sm:$0xff]  }
 0x2ce   :  { %9155 = vmatpush1.bf16.msra.mxu0 %v17546_v41  ;;  %v17612_v41 = vld [vmem:[#allocation2 + $0x730] ss:$112 sps:$4 sm:$0xff]  }
 0x2cf   :  { %9156 = vmatprep.subr.bf16.mxu0 %v17554_v46  ;;  %v17615_v46 = vld [vmem:[#allocation2 + $0x38] ss:$112 sps:$4 sm:$0xff]  }
 0x2d0   :  { %9301 = vmatpush1.bf16.msra.mxu1 %v17543_v42  ;;  %v17620_v42 = vld [vmem:[#allocation2 + $0x814] ss:$112 sps:$4 sm:$0xff]  }
 0x2d1   :  { %9302 = vmatprep.subr.bf16.mxu1 %v17551_v45  ;;  %v17618_v45 = vld [vmem:[#allocation2 + $0x810] ss:$112 sps:$4 sm:$0xff]  }
 0x2d2   :  { %9157 = vmatpush1.bf16.msra.mxu0 %v17552_v47  ;;  %v17623_v47 = vld [vmem:[#allocation2 + $0x11c] ss:$112 sps:$4 sm:$0xff]  }
 0x2d3   :  { %9167 = vmatprep.subr.bf16.mxu0 %v17560_v50  ;;  %v17621_v50 = vld [vmem:[#allocation2 + $0x118] ss:$112 sps:$4 sm:$0xff]  }
 0x2d4   :  { %9303 = vmatpush1.bf16.msra.mxu1 %v17549_v48  ;;  %v17626_v48 = vld [vmem:[#allocation2 + $0x8f4] ss:$112 sps:$4 sm:$0xff]  }
 0x2d5   :  { %9304 = vmatprep.subr.bf16.mxu1 %v17557_v49  ;;  %9159 = vmatmul.mubr.bf16.vlgmr.msra.gmra.mrb[8].mxu0 %v19207_v29  ;;  %v17624_v49 = vld [vmem:[#allocation2 + $0x8f0] ss:$112 sps:$4 sm:$0xff]  }
 0x2d6   :  { %9168 = vmatpush1.bf16.msra.mxu0 %v17558_v52  ;;  %9199 = vmatprep.mubr.bf16.mxu0 %v18995_v0  ;;  %v17629_v52 = vld [vmem:[#allocation2 + $0x1fc] ss:$112 sps:$4 sm:$0xff]  }
 0x2d7   :  { %9372 = vmatprep.subr.bf16.mxu0 %v17572_v56  ;;  %v17627_v56 = vld [vmem:[#allocation2 + $0x1f8] ss:$112 sps:$4 sm:$0xff]  }
 0x2d8   :  { %9305 = vmatpush1.bf16.msra.mxu1 %v17555_v53  ;;  %v17632_v53 = vld [vmem:[#allocation2 + $0x9d4] ss:$112 sps:$4 sm:$0xff]  }
 0x2d9   :  { %9306 = vmatprep.subr.bf16.mxu1 %v17563_v55  ;;  %v17630_v55 = vld [vmem:[#allocation2 + $0x9d0] ss:$112 sps:$4 sm:$0xff]  }
 0x2dc   :  { %9307 = vmatpush1.bf16.msra.mxu1 %v17561_v59  ;;  %v17635_v59 = vld [vmem:[#allocation2 + $0x2dc] ss:$112 sps:$4 sm:$0xff]  }
 0x2dd   :  { %9308 = vmatprep.subr.bf16.mxu1 %v17566_v61  ;;  %v17638_v61 = vld [vmem:[#allocation2 + $0xab4] ss:$112 sps:$4 sm:$0xff]  }
 0x2e0   :  { %9309 = vmatpush1.bf16.msra.mxu1 %v17564_v62 }
 0x2e1   :  { %9310 = vmatprep.subr.bf16.mxu1 %v17569_v63  ;;  %15910 = vmatmul.mubr.msk.bf16.vlgmr.msra.gmra.mrb[8].mxu0 %vm8384_vm0, %v19165_v10 }
 0x2e2   :  { %9373 = vmatpush1.bf16.msra.mxu0 %v17570_v1  ;;  %9404 = vmatprep.mubr.bf16.mxu0 %v19172_v51  ;;  %v17636_v1 = vld [vmem:[#allocation2 + $0xab0] ss:$112 sps:$4 sm:$0xff]  }
 0x2e3   :  { %9374 = vmatprep.subr.bf16.mxu0 %v17578_v4  ;;  %v17633_v4 = vld [vmem:[#allocation2 + $0x2d8] ss:$112 sps:$4 sm:$0xff]  }
 0x2e4   :  { %9311 = vmatpush1.bf16.msra.mxu1 %v17567_v2 }
 0x2e5   :  { %9312 = vmatprep.subr.bf16.mxu1 %v17575_v3 }
 0x2e6   :  { %9375 = vmatpush1.bf16.msra.mxu0 %v17576_v5  ;;  %v17644_v5 = vld [vmem:[#allocation2 + $0xb94] ss:$112 sps:$4 sm:$0xff]  }
 0x2e7   :  { %9376 = vmatprep.subr.bf16.mxu0 %v17584_v8  ;;  %v17642_v8 = vld [vmem:[#allocation2 + $0xb90] ss:$112 sps:$4 sm:$0xff]  }
 0x2e8   :  { %9313 = vmatpush1.bf16.msra.mxu1 %v17573_v6  ;;  %v8832_v15 = vpop.f32.mrb[4].mxu0 }
 0x2e9   :  { %9314 = vmatprep.subr.bf16.mxu1 %v17581_v7  ;;  %v19266_v16 = vadd.f32 %v19248_v58, %v8832_v15  ;;  %v8834_v17 = vpop.f32.mrb[5].mxu0  ;;  %v17599_v58 = vld [vmem:[#allocation2 + $0x294c] ss:$112 sps:$4 sm:$0xff]   ;;  %v17645_v15 = vld [vmem:[#allocation2 + $0x498] ss:$112 sps:$4 sm:$0xff]  }
 0x2ea   :  { %v19269_v19 = vadd.f32 %v19250_v60, %v8834_v17  ;;  %9377 = vmatpush1.bf16.msra.mxu0 %v17582_v11  ;;  %v8836_v20 = vpop.f32.mrb[6].mxu0  ;;  %v17600_v60 = vld [vmem:[#allocation2 + $0x490] ss:$112 sps:$4 sm:$0xff]   ;;  %v17641_v7 = vld [vmem:[#allocation2 + $0x3bc] ss:$112 sps:$4 sm:$0xff]  }
 0x2eb   :  { %v8837_v22 = vpop.f32.mrb[7].mxu0  ;;  %9378 = vmatprep.subr.bf16.mxu0 %v17590_v14  ;;  %v17639_v11 = vld [vmem:[#allocation2 + $0x3b8] ss:$112 sps:$4 sm:$0xff]   ;;  %v17648_v14 = vld [vmem:[#allocation2 + $0xc70] ss:$112 sps:$4 sm:$0xff]  }
 0x2ec   :  { %9315 = vmatpush1.bf16.msra.mxu1 %v17579_v12  ;;  %v17647_v12 = vld [vmem:[#allocation2 + $0x49c] ss:$112 sps:$4 sm:$0xff]   ;;  %v17656_v20 = vld [vmem:[#allocation2 + $0xd54] ss:$112 sps:$4 sm:$0xff]   ;;  %v17651_v22 = vld [vmem:[#allocation2 + $0x578] ss:$112 sps:$4 sm:$0xff]  }
 0x2ed   :  { %9316 = vmatprep.subr.bf16.mxu1 %v17587_v13  ;;  %v17650_v13 = vld [vmem:[#allocation2 + $0xc74] ss:$112 sps:$4 sm:$0xff]   ;;  %v17653_v17 = vld [vmem:[#allocation2 + $0x57c] ss:$112 sps:$4 sm:$0xff]  }
 0x2ee   :  { %9379 = vmatpush1.bf16.msra.mxu0 %v17588_v21  ;;  %v17654_v21 = vld [vmem:[#allocation2 + $0xd50] ss:$112 sps:$4 sm:$0xff]  }
 0x2ef   :  { %9380 = vmatprep.subr.bf16.mxu0 %v17596_v25  ;;  %v17662_v25 = vld [vmem:[#allocation2 + $0xe34] ss:$112 sps:$4 sm:$0xff]  }
 0x2f0   :  { %9317 = vmatpush1.bf16.msra.mxu1 %v17585_v23  ;;  %v17659_v23 = vld [vmem:[#allocation2 + $0x65c] ss:$112 sps:$4 sm:$0xff]  }
 0x2f1   :  { %9318 = vmatprep.subr.bf16.mxu1 %v17593_v27  ;;  %v17660_v27 = vld [vmem:[#allocation2 + $0xe30] ss:$112 sps:$4 sm:$0xff]  }
 0x2f2   :  { %9381 = vmatpush1.bf16.msra.mxu0 %v17594_v30  ;;  %v17657_v30 = vld [vmem:[#allocation2 + $0x658] ss:$112 sps:$4 sm:$0xff]  }
 0x2f3   :  { %9382 = vmatprep.subr.bf16.mxu0 %v17602_v32  ;;  %v17666_v32 = vld [vmem:[#allocation2 + $0xf10] ss:$112 sps:$4 sm:$0xff]  }
 0x2f4   :  { %9319 = vmatpush1.bf16.msra.mxu1 %v17591_v31  ;;  %v17665_v31 = vld [vmem:[#allocation2 + $0x73c] ss:$112 sps:$4 sm:$0xff]  }
 0x2f5   :  { %9320 = vmatprep.subr.bf16.mxu1 %v17599_v58  ;;  %v17668_v58 = vld [vmem:[#allocation2 + $0xf14] ss:$112 sps:$4 sm:$0xff]  }
 0x2f6   :  { %9383 = vmatpush1.bf16.msra.mxu0 %v17600_v60  ;;  %v17663_v60 = vld [vmem:[#allocation2 + $0x738] ss:$112 sps:$4 sm:$0xff]  }
 0x2f7   :  { %9384 = vmatprep.subr.bf16.mxu0 %v17605_v34  ;;  %v17674_v34 = vld [vmem:[#allocation2 + $0xff4] ss:$112 sps:$4 sm:$0xff]  }
 0x2f8   :  { %9321 = vmatpush1.bf16.msra.mxu1 %v17597_v33  ;;  %v17671_v33 = vld [vmem:[#allocation2 + $0x81c] ss:$112 sps:$4 sm:$0xff]  }
 0x2f9   :  { %9331 = vmatprep.subr.bf16.mxu1 %v17611_v35  ;;  %v17672_v35 = vld [vmem:[#allocation2 + $0xff0] ss:$112 sps:$4 sm:$0xff]  }
 0x2fa   :  { %9385 = vmatpush1.bf16.msra.mxu0 %v17603_v37  ;;  %v17669_v37 = vld [vmem:[#allocation2 + $0x818] ss:$112 sps:$4 sm:$0xff]  }
 0x2fb   :  { %9323 = vmatmul.mubr.bf16.vlgmr.msra.gmra.mrb[16].mxu1 %v19207_v29  ;;  %9386 = vmatprep.subr.bf16.mxu0 %v17608_v54  ;;  %v17677_v54 = vld [vmem:[#allocation2 + $0x8fc] ss:$112 sps:$4 sm:$0xff]  }
 0x2fc   :  { %9332 = vmatpush1.bf16.msra.mxu1 %v17609_v57  ;;  %9363 = vmatprep.mubr.bf16.mxu1 %v18995_v0  ;;  %v17680_v57 = vld [vmem:[#allocation2 + $0x10d4] ss:$112 sps:$4 sm:$0xff]  }
 0x2fd   :  { %9536 = vmatprep.subr.bf16.mxu1 %v17617_v38  ;;  %v17678_v38 = vld [vmem:[#allocation2 + $0x10d0] ss:$112 sps:$4 sm:$0xff]  }
 0x2fe   :  { %9387 = vmatpush1.bf16.msra.mxu0 %v17606_v39  ;;  %v17675_v39 = vld [vmem:[#allocation2 + $0x8f8] ss:$112 sps:$4 sm:$0xff]  }
 0x2ff   :  { %9388 = vmatprep.subr.bf16.mxu0 %v17614_v40  ;;  %v17683_v40 = vld [vmem:[#allocation2 + $0x9dc] ss:$112 sps:$4 sm:$0xff]  }
 0x302   :  { %9389 = vmatpush1.bf16.msra.mxu0 %v17612_v41  ;;  %v17686_v41 = vld [vmem:[#allocation2 + $0x11b4] ss:$112 sps:$4 sm:$0xff]  }
 0x303   :  { %9390 = vmatprep.subr.bf16.mxu0 %v17620_v42  ;;  %v17681_v42 = vld [vmem:[#allocation2 + $0x9d8] ss:$112 sps:$4 sm:$0xff]  }
 0x306   :  { %9391 = vmatpush1.bf16.msra.mxu0 %v17618_v45  ;;  %v17684_v45 = vld [vmem:[#allocation2 + $0x11b0] ss:$112 sps:$4 sm:$0xff]  }
 0x307   :  { %15911 = vmatmul.mubr.msk.bf16.vlgmr.msra.gmra.mrb[16].mxu1 %vm8384_vm0, %v19165_v10  ;;  %9392 = vmatprep.subr.bf16.mxu0 %v17626_v48  ;;  %v17687_v48 = vld [vmem:[#allocation2 + $0xab8] ss:$112 sps:$4 sm:$0xff]  }
 0x308   :  { %9537 = vmatpush1.bf16.msra.mxu1 %v17615_v46  ;;  %9568 = vmatprep.mubr.bf16.mxu1 %v19172_v51  ;;  %v17689_v46 = vld [vmem:[#allocation2 + $0xabc] ss:$112 sps:$4 sm:$0xff]  }
 0x309   :  { %9538 = vmatprep.subr.bf16.mxu1 %v17623_v47  ;;  %v17692_v47 = vld [vmem:[#allocation2 + $0x1294] ss:$112 sps:$4 sm:$0xff]  }
 0x30a   :  { %9393 = vmatpush1.bf16.msra.mxu0 %v17624_v49  ;;  %v17690_v49 = vld [vmem:[#allocation2 + $0x1290] ss:$112 sps:$4 sm:$0xff]  }
 0x30b   :  { %9394 = vmatprep.subr.bf16.mxu0 %v17632_v53  ;;  %v17693_v53 = vld [vmem:[#allocation2 + $0xb98] ss:$112 sps:$4 sm:$0xff]  }
 0x30c   :  { %9539 = vmatpush1.bf16.msra.mxu1 %v17621_v50  ;;  %v17695_v50 = vld [vmem:[#allocation2 + $0xb9c] ss:$112 sps:$4 sm:$0xff]  }
 0x30d   :  { %9540 = vmatprep.subr.bf16.mxu1 %v17629_v52  ;;  %v17698_v52 = vld [vmem:[#allocation2 + $0x1374] ss:$112 sps:$4 sm:$0xff]  }
 0x30e   :  { %v19276_v62 = vpop.f32.mrb[12].mxu1  ;;  %9395 = vmatpush1.bf16.msra.mxu0 %v17630_v55  ;;  %v17696_v55 = vld [vmem:[#allocation2 + $0x1370] ss:$112 sps:$4 sm:$0xff]  }
 0x30f   :  { %v19278_v63 = vpop.f32.mrb[13].mxu1  ;;  %9396 = vmatprep.subr.bf16.mxu0 %v17638_v61  ;;  %v17699_v61 = vld [vmem:[#allocation2 + $0xc78] ss:$112 sps:$4 sm:$0xff]  }
 0x310   :  { %9541 = vmatpush1.bf16.msra.mxu1 %v17627_v56  ;;  %v10684_v2 = vmax.f32 %v19234_v26, %v19278_v63  ;;  %v9041_v3 = vpop.f32.mrb[14].mxu1  ;;  %v17701_v56 = vld [vmem:[#allocation2 + $0xc7c] ss:$112 sps:$4 sm:$0xff]   ;;  %v18758_v26 = vld [vmem:[#allocation2 + $0x2988] ss:$112 sps:$4 sm:$0xff]  }
 0x311   :  { %v9042_v6 = vpop.f32.mrb[15].mxu1  ;;  %9542 = vmatprep.subr.bf16.mxu1 %v17635_v59  ;;  %v17704_v59 = vld [vmem:[#allocation2 + $0x1454] ss:$112 sps:$4 sm:$0xff]   ;;  %v17707_v3 = vld [vmem:[#allocation2 + $0xd5c] ss:$112 sps:$4 sm:$0xff]  }
 0x312   :  { %9397 = vmatpush1.bf16.msra.mxu0 %v17636_v1  ;;  %v17702_v1 = vld [vmem:[#allocation2 + $0x1450] ss:$112 sps:$4 sm:$0xff]  }
 0x313   :  { %9398 = vmatprep.subr.bf16.mxu0 %v17644_v5  ;;  %v17705_v5 = vld [vmem:[#allocation2 + $0xd58] ss:$112 sps:$4 sm:$0xff]   ;;  %v17708_v6 = vld [vmem:[#allocation2 + $0x1530] ss:$112 sps:$4 sm:$0xff]  }
 0x314   :  { %9543 = vmatpush1.bf16.msra.mxu1 %v17633_v4  ;;  %v17710_v4 = vld [vmem:[#allocation2 + $0x1534] ss:$112 sps:$4 sm:$0xff]  }
 0x315   :  { %9544 = vmatprep.subr.bf16.mxu1 %v17641_v7  ;;  %v17713_v7 = vld [vmem:[#allocation2 + $0xe3c] ss:$112 sps:$4 sm:$0xff]  }
 0x316   :  { %9399 = vmatpush1.bf16.msra.mxu0 %v17642_v8  ;;  %v17716_v8 = vld [vmem:[#allocation2 + $0x1614] ss:$112 sps:$4 sm:$0xff]  }
 0x317   :  { %9400 = vmatprep.subr.bf16.mxu0 %v17650_v13  ;;  %v17719_v13 = vld [vmem:[#allocation2 + $0xf1c] ss:$112 sps:$4 sm:$0xff]  }
 0x318   :  { %9545 = vmatpush1.bf16.msra.mxu1 %v17639_v11  ;;  %v17711_v11 = vld [vmem:[#allocation2 + $0xe38] ss:$112 sps:$4 sm:$0xff]  }
 0x319   :  { %9546 = vmatprep.subr.bf16.mxu1 %v17647_v12  ;;  %v17714_v12 = vld [vmem:[#allocation2 + $0x1610] ss:$112 sps:$4 sm:$0xff]  }
 0x31a   :  { %9401 = vmatpush1.bf16.msra.mxu0 %v17648_v14  ;;  %v17722_v14 = vld [vmem:[#allocation2 + $0x16f4] ss:$112 sps:$4 sm:$0xff]  }
 0x31b   :  { %9402 = vmatprep.subr.bf16.mxu0 %v17656_v20  ;;  %v17725_v20 = vld [vmem:[#allocation2 + $0xffc] ss:$112 sps:$4 sm:$0xff]  }
 0x31c   :  { %9547 = vmatpush1.bf16.msra.mxu1 %v17645_v15  ;;  %v17717_v15 = vld [vmem:[#allocation2 + $0xf18] ss:$112 sps:$4 sm:$0xff]  }
 0x31d   :  { %9548 = vmatprep.subr.bf16.mxu1 %v17653_v17  ;;  %v17720_v17 = vld [vmem:[#allocation2 + $0x16f0] ss:$112 sps:$4 sm:$0xff]  }
 0x31e   :  { %9403 = vmatpush1.bf16.msra.mxu0 %v17654_v21  ;;  %v17728_v21 = vld [vmem:[#allocation2 + $0x17d4] ss:$112 sps:$4 sm:$0xff]  }
 0x31f   :  { %9413 = vmatprep.subr.bf16.mxu0 %v17662_v25  ;;  %v17731_v25 = vld [vmem:[#allocation2 + $0x10dc] ss:$112 sps:$4 sm:$0xff]  }
 0x320   :  { %9549 = vmatpush1.bf16.msra.mxu1 %v17651_v22  ;;  %v17723_v22 = vld [vmem:[#allocation2 + $0xff8] ss:$112 sps:$4 sm:$0xff]  }
 0x321   :  { %9550 = vmatprep.subr.bf16.mxu1 %v17659_v23  ;;  %9405 = vmatmul.mubr.bf16.vlgmr.msra.gmra.mrb[12].mxu0 %v19179_v9  ;;  %v17726_v23 = vld [vmem:[#allocation2 + $0x17d0] ss:$112 sps:$4 sm:$0xff]  }
 0x322   :  { %9414 = vmatpush1.bf16.msra.mxu0 %v17660_v27  ;;  %9445 = vmatprep.mubr.bf16.mxu0 %v19186_v36  ;;  %v17734_v27 = vld [vmem:[#allocation2 + $0x18b4] ss:$112 sps:$4 sm:$0xff]  }
 0x323   :  { %9415 = vmatprep.subr.bf16.mxu0 %v17668_v58  ;;  %v17737_v58 = vld [vmem:[#allocation2 + $0x11bc] ss:$112 sps:$4 sm:$0xff]  }
 0x324   :  { %9551 = vmatpush1.bf16.msra.mxu1 %v17657_v30  ;;  %v17732_v30 = vld [vmem:[#allocation2 + $0x18b0] ss:$112 sps:$4 sm:$0xff]  }
 0x325   :  { %9552 = vmatprep.subr.bf16.mxu1 %v17665_v31  ;;  %v17729_v31 = vld [vmem:[#allocation2 + $0x10d8] ss:$112 sps:$4 sm:$0xff]  }
 0x326   :  { %9416 = vmatpush1.bf16.msra.mxu0 %v17666_v32  ;;  %v17740_v32 = vld [vmem:[#allocation2 + $0x1994] ss:$112 sps:$4 sm:$0xff]  }
 0x327   :  { %9417 = vmatprep.subr.bf16.mxu0 %v17674_v34  ;;  %v17743_v34 = vld [vmem:[#allocation2 + $0x129c] ss:$112 sps:$4 sm:$0xff]  }
 0x328   :  { %9553 = vmatpush1.bf16.msra.mxu1 %v17663_v60  ;;  %v17738_v60 = vld [vmem:[#allocation2 + $0x1990] ss:$112 sps:$4 sm:$0xff]  }
 0x329   :  { %9554 = vmatprep.subr.bf16.mxu1 %v17671_v33  ;;  %v17735_v33 = vld [vmem:[#allocation2 + $0x11b8] ss:$112 sps:$4 sm:$0xff]  }
 0x32a   :  { %9418 = vmatpush1.bf16.msra.mxu0 %v17672_v35  ;;  %v17746_v35 = vld [vmem:[#allocation2 + $0x1a74] ss:$112 sps:$4 sm:$0xff]  }
 0x32b   :  { %9419 = vmatprep.subr.bf16.mxu0 %v17680_v57  ;;  %v17749_v57 = vld [vmem:[#allocation2 + $0x137c] ss:$112 sps:$4 sm:$0xff]  }
 0x32c   :  { %9555 = vmatpush1.bf16.msra.mxu1 %v17669_v37  ;;  %v17744_v37 = vld [vmem:[#allocation2 + $0x1a70] ss:$112 sps:$4 sm:$0xff]  }
 0x32d   :  { %9556 = vmatprep.subr.bf16.mxu1 %v17677_v54  ;;  %v17741_v54 = vld [vmem:[#allocation2 + $0x1298] ss:$112 sps:$4 sm:$0xff]  }
 0x32e   :  { %9420 = vmatpush1.bf16.msra.mxu0 %v17678_v38  ;;  %v17752_v38 = vld [vmem:[#allocation2 + $0x1b54] ss:$112 sps:$4 sm:$0xff]  }
 0x32f   :  { %9421 = vmatprep.subr.bf16.mxu0 %v17686_v41  ;;  %v17758_v41 = vld [vmem:[#allocation2 + $0x1c34] ss:$112 sps:$4 sm:$0xff]  }
 0x330   :  { %9557 = vmatpush1.bf16.msra.mxu1 %v17675_v39  ;;  %v17747_v39 = vld [vmem:[#allocation2 + $0x1378] ss:$112 sps:$4 sm:$0xff]  }
 0x331   :  { %9558 = vmatprep.subr.bf16.mxu1 %v17683_v40  ;;  %v17750_v40 = vld [vmem:[#allocation2 + $0x1b50] ss:$112 sps:$4 sm:$0xff]  }
 0x332   :  { %9422 = vmatpush1.bf16.msra.mxu0 %v17684_v45  ;;  %v17756_v45 = vld [vmem:[#allocation2 + $0x1c30] ss:$112 sps:$4 sm:$0xff]  }
 0x333   :  { %9423 = vmatprep.subr.bf16.mxu0 %v17692_v47  ;;  %v17761_v47 = vld [vmem:[#allocation2 + $0x153c] ss:$112 sps:$4 sm:$0xff]  }
 0x334   :  { %9559 = vmatpush1.bf16.msra.mxu1 %v17681_v42  ;;  %v17755_v42 = vld [vmem:[#allocation2 + $0x145c] ss:$112 sps:$4 sm:$0xff]  }
 0x335   :  { %9560 = vmatprep.subr.bf16.mxu1 %v17689_v46  ;;  %v17753_v46 = vld [vmem:[#allocation2 + $0x1458] ss:$112 sps:$4 sm:$0xff]  }
 0x336   :  { %9424 = vmatpush1.bf16.msra.mxu0 %v17690_v49  ;;  %v17762_v49 = vld [vmem:[#allocation2 + $0x1d10] ss:$112 sps:$4 sm:$0xff]  }
 0x337   :  { %9425 = vmatprep.subr.bf16.mxu0 %v17698_v52  ;;  %v17767_v52 = vld [vmem:[#allocation2 + $0x161c] ss:$112 sps:$4 sm:$0xff]  }
 0x338   :  { %9561 = vmatpush1.bf16.msra.mxu1 %v17687_v48  ;;  %v17764_v48 = vld [vmem:[#allocation2 + $0x1d14] ss:$112 sps:$4 sm:$0xff]  }
 0x339   :  { %9562 = vmatprep.subr.bf16.mxu1 %v17695_v50  ;;  %v17759_v50 = vld [vmem:[#allocation2 + $0x1538] ss:$112 sps:$4 sm:$0xff]  }
 0x33a   :  { %9426 = vmatpush1.bf16.msra.mxu0 %v17696_v55  ;;  %v17768_v55 = vld [vmem:[#allocation2 + $0x1df0] ss:$112 sps:$4 sm:$0xff]  }
 0x33b   :  { %9427 = vmatprep.subr.bf16.mxu0 %v17704_v59  ;;  %v17773_v59 = vld [vmem:[#allocation2 + $0x16fc] ss:$112 sps:$4 sm:$0xff]  }
 0x33c   :  { %9563 = vmatpush1.bf16.msra.mxu1 %v17693_v53  ;;  %v17770_v53 = vld [vmem:[#allocation2 + $0x1df4] ss:$112 sps:$4 sm:$0xff]  }
 0x33d   :  { %9564 = vmatprep.subr.bf16.mxu1 %v17701_v56  ;;  %v17765_v56 = vld [vmem:[#allocation2 + $0x1618] ss:$112 sps:$4 sm:$0xff]  }
 0x33e   :  { %9428 = vmatpush1.bf16.msra.mxu0 %v17702_v1  ;;  %v17774_v1 = vld [vmem:[#allocation2 + $0x1ed0] ss:$112 sps:$4 sm:$0xff]  }
 0x33f   :  { %9429 = vmatprep.subr.bf16.mxu0 %v17710_v4  ;;  %v17779_v4 = vld [vmem:[#allocation2 + $0x17dc] ss:$112 sps:$4 sm:$0xff]  }
 0x340   :  { %9565 = vmatpush1.bf16.msra.mxu1 %v17699_v61  ;;  %v17776_v61 = vld [vmem:[#allocation2 + $0x1ed4] ss:$112 sps:$4 sm:$0xff]  }
 0x341   :  { %9566 = vmatprep.subr.bf16.mxu1 %v17707_v3  ;;  %v17771_v3 = vld [vmem:[#allocation2 + $0x16f8] ss:$112 sps:$4 sm:$0xff]  }
 0x342   :  { %9430 = vmatpush1.bf16.msra.mxu0 %v17708_v6  ;;  %v17780_v6 = vld [vmem:[#allocation2 + $0x1fb0] ss:$112 sps:$4 sm:$0xff]  }
 0x343   :  { %9431 = vmatprep.subr.bf16.mxu0 %v17716_v8  ;;  %v17785_v8 = vld [vmem:[#allocation2 + $0x18bc] ss:$112 sps:$4 sm:$0xff]  }
 0x344   :  { %9567 = vmatpush1.bf16.msra.mxu1 %v17705_v5  ;;  %v17782_v5 = vld [vmem:[#allocation2 + $0x1fb4] ss:$112 sps:$4 sm:$0xff]  }
 0x345   :  { %9577 = vmatprep.subr.bf16.mxu1 %v17713_v7  ;;  %v17777_v7 = vld [vmem:[#allocation2 + $0x17d8] ss:$112 sps:$4 sm:$0xff]  }
 0x346   :  { %9432 = vmatpush1.bf16.msra.mxu0 %v17714_v12  ;;  %v17786_v12 = vld [vmem:[#allocation2 + $0x2090] ss:$112 sps:$4 sm:$0xff]  }
 0x347   :  { %9569 = vmatmul.mubr.bf16.vlgmr.msra.gmra.mrb[20].mxu1 %v19179_v9  ;;  %9433 = vmatprep.subr.bf16.mxu0 %v17722_v14  ;;  %v17791_v14 = vld [vmem:[#allocation2 + $0x199c] ss:$112 sps:$4 sm:$0xff]  }
 0x348   :  { %9578 = vmatpush1.bf16.msra.mxu1 %v17711_v11  ;;  %9609 = vmatprep.mubr.bf16.mxu1 %v19186_v36  ;;  %v17788_v11 = vld [vmem:[#allocation2 + $0x2094] ss:$112 sps:$4 sm:$0xff]  }
 0x349   :  { %9579 = vmatprep.subr.bf16.mxu1 %v17719_v13  ;;  %v17783_v13 = vld [vmem:[#allocation2 + $0x18b8] ss:$112 sps:$4 sm:$0xff]  }
 0x34a   :  { %9434 = vmatpush1.bf16.msra.mxu0 %v17720_v17  ;;  %v17792_v17 = vld [vmem:[#allocation2 + $0x2170] ss:$112 sps:$4 sm:$0xff]  }
 0x34b   :  { %9435 = vmatprep.subr.bf16.mxu0 %v17728_v21  ;;  %v17797_v21 = vld [vmem:[#allocation2 + $0x1a7c] ss:$112 sps:$4 sm:$0xff]  }
 0x34c   :  { %9580 = vmatpush1.bf16.msra.mxu1 %v17717_v15  ;;  %v17794_v15 = vld [vmem:[#allocation2 + $0x2174] ss:$112 sps:$4 sm:$0xff]  }
 0x34d   :  { %9581 = vmatprep.subr.bf16.mxu1 %v17725_v20  ;;  %v17789_v20 = vld [vmem:[#allocation2 + $0x1998] ss:$112 sps:$4 sm:$0xff]  }
 0x34e   :  { %9436 = vmatpush1.bf16.msra.mxu0 %v17726_v23  ;;  %v17798_v23 = vld [vmem:[#allocation2 + $0x2250] ss:$112 sps:$4 sm:$0xff]  }
 0x34f   :  { %9437 = vmatprep.subr.bf16.mxu0 %v17734_v27  ;;  %v17803_v27 = vld [vmem:[#allocation2 + $0x1b5c] ss:$112 sps:$4 sm:$0xff]  }
 0x350   :  { %9582 = vmatpush1.bf16.msra.mxu1 %v17723_v22  ;;  %v17800_v22 = vld [vmem:[#allocation2 + $0x2254] ss:$112 sps:$4 sm:$0xff]  }
 0x351   :  { %9583 = vmatprep.subr.bf16.mxu1 %v17731_v25  ;;  %v17795_v25 = vld [vmem:[#allocation2 + $0x1a78] ss:$112 sps:$4 sm:$0xff]  }
 0x352   :  { %9438 = vmatpush1.bf16.msra.mxu0 %v17732_v30  ;;  %v17806_v30 = vld [vmem:[#allocation2 + $0x2334] ss:$112 sps:$4 sm:$0xff]  }
 0x353   :  { %9439 = vmatprep.subr.bf16.mxu0 %v17740_v32  ;;  %v17809_v32 = vld [vmem:[#allocation2 + $0x1c3c] ss:$112 sps:$4 sm:$0xff]  }
 0x354   :  { %9584 = vmatpush1.bf16.msra.mxu1 %v17729_v31  ;;  %v17804_v31 = vld [vmem:[#allocation2 + $0x2330] ss:$112 sps:$4 sm:$0xff]  }
 0x355   :  { %9585 = vmatprep.subr.bf16.mxu1 %v17737_v58  ;;  %v17801_v58 = vld [vmem:[#allocation2 + $0x1b58] ss:$112 sps:$4 sm:$0xff]  }
 0x356   :  { %9440 = vmatpush1.bf16.msra.mxu0 %v17738_v60  ;;  %v17812_v60 = vld [vmem:[#allocation2 + $0x2414] ss:$112 sps:$4 sm:$0xff]  }
 0x357   :  { %9441 = vmatprep.subr.bf16.mxu0 %v17746_v35  ;;  %v17815_v35 = vld [vmem:[#allocation2 + $0x1d1c] ss:$112 sps:$4 sm:$0xff]  }
 0x358   :  { %9586 = vmatpush1.bf16.msra.mxu1 %v17735_v33  ;;  %v17810_v33 = vld [vmem:[#allocation2 + $0x2410] ss:$112 sps:$4 sm:$0xff]  }
 0x359   :  { %9587 = vmatprep.subr.bf16.mxu1 %v17743_v34  ;;  %v17807_v34 = vld [vmem:[#allocation2 + $0x1c38] ss:$112 sps:$4 sm:$0xff]  }
 0x35a   :  { %9442 = vmatpush1.bf16.msra.mxu0 %v17744_v37  ;;  %v17818_v37 = vld [vmem:[#allocation2 + $0x24f4] ss:$112 sps:$4 sm:$0xff]  }
 0x35b   :  { %9443 = vmatprep.subr.bf16.mxu0 %v17752_v38  ;;  %v17821_v38 = vld [vmem:[#allocation2 + $0x1dfc] ss:$112 sps:$4 sm:$0xff]  }
 0x35c   :  { %9588 = vmatpush1.bf16.msra.mxu1 %v17741_v54  ;;  %v17816_v54 = vld [vmem:[#allocation2 + $0x24f0] ss:$112 sps:$4 sm:$0xff]  }
 0x35d   :  { %9589 = vmatprep.subr.bf16.mxu1 %v17749_v57  ;;  %v17813_v57 = vld [vmem:[#allocation2 + $0x1d18] ss:$112 sps:$4 sm:$0xff]  }
 0x35e   :  { %9444 = vmatpush1.bf16.msra.mxu0 %v17750_v40  ;;  %v17822_v40 = vld [vmem:[#allocation2 + $0x25d0] ss:$112 sps:$4 sm:$0xff]  }
 0x35f   :  { %9454 = vmatprep.subr.bf16.mxu0 %v17758_v41  ;;  %v17819_v41 = vld [vmem:[#allocation2 + $0x1df8] ss:$112 sps:$4 sm:$0xff]  }
 0x360   :  { %9590 = vmatpush1.bf16.msra.mxu1 %v17747_v39  ;;  %v17824_v39 = vld [vmem:[#allocation2 + $0x25d4] ss:$112 sps:$4 sm:$0xff]  }
 0x361   :  { %9591 = vmatprep.subr.bf16.mxu1 %v17755_v42  ;;  %9446 = vmatmul.mubr.bf16.vlgmr.msra.gmra.mrb[12].mxu0 %v19193_v18  ;;  %v17827_v42 = vld [vmem:[#allocation2 + $0x1edc] ss:$112 sps:$4 sm:$0xff]  }
 0x362   :  { %9455 = vmatpush1.bf16.msra.mxu0 %v17756_v45  ;;  %9486 = vmatprep.mubr.bf16.mxu0 %v19198_v24  ;;  %v17830_v45 = vld [vmem:[#allocation2 + $0x26b4] ss:$112 sps:$4 sm:$0xff]  }
 0x363   :  { %9456 = vmatprep.subr.bf16.mxu0 %v17764_v48  ;;  %v17833_v48 = vld [vmem:[#allocation2 + $0x1fbc] ss:$112 sps:$4 sm:$0xff]  }
 0x364   :  { %9592 = vmatpush1.bf16.msra.mxu1 %v17753_v46  ;;  %v17828_v46 = vld [vmem:[#allocation2 + $0x26b0] ss:$112 sps:$4 sm:$0xff]  }
 0x365   :  { %9593 = vmatprep.subr.bf16.mxu1 %v17761_v47  ;;  %v17825_v47 = vld [vmem:[#allocation2 + $0x1ed8] ss:$112 sps:$4 sm:$0xff]  }
 0x366   :  { %9457 = vmatpush1.bf16.msra.mxu0 %v17762_v49  ;;  %v17836_v49 = vld [vmem:[#allocation2 + $0x2794] ss:$112 sps:$4 sm:$0xff]  }
 0x367   :  { %9458 = vmatprep.subr.bf16.mxu0 %v17770_v53  ;;  %v17842_v53 = vld [vmem:[#allocation2 + $0x2874] ss:$112 sps:$4 sm:$0xff]  }
 0x368   :  { %9594 = vmatpush1.bf16.msra.mxu1 %v17759_v50  ;;  %v17834_v50 = vld [vmem:[#allocation2 + $0x2790] ss:$112 sps:$4 sm:$0xff]  }
 0x369   :  { %9595 = vmatprep.subr.bf16.mxu1 %v17767_v52  ;;  %v17831_v52 = vld [vmem:[#allocation2 + $0x1fb8] ss:$112 sps:$4 sm:$0xff]  }
 0x36a   :  { %9459 = vmatpush1.bf16.msra.mxu0 %v17768_v55  ;;  %v17839_v55 = vld [vmem:[#allocation2 + $0x209c] ss:$112 sps:$4 sm:$0xff]  }
 0x36b   :  { %9460 = vmatprep.subr.bf16.mxu0 %v17776_v61  ;;  %v17848_v61 = vld [vmem:[#allocation2 + $0x2954] ss:$112 sps:$4 sm:$0xff]  }
 0x36c   :  { %9596 = vmatpush1.bf16.msra.mxu1 %v17765_v56  ;;  %v17840_v56 = vld [vmem:[#allocation2 + $0x2870] ss:$112 sps:$4 sm:$0xff]  }
 0x36d   :  { %9597 = vmatprep.subr.bf16.mxu1 %v17773_v59  ;;  %v17837_v59 = vld [vmem:[#allocation2 + $0x2098] ss:$112 sps:$4 sm:$0xff]  }
 0x36e   :  { %9461 = vmatpush1.bf16.msra.mxu0 %v17774_v1  ;;  %v17845_v1 = vld [vmem:[#allocation2 + $0x217c] ss:$112 sps:$4 sm:$0xff]  }
 0x36f   :  { %9462 = vmatprep.subr.bf16.mxu0 %v17782_v5  ;;  %v17854_v5 = vld [vmem:[#allocation2 + $0x2a34] ss:$112 sps:$4 sm:$0xff]  }
 0x370   :  { %9598 = vmatpush1.bf16.msra.mxu1 %v17771_v3  ;;  %v17846_v3 = vld [vmem:[#allocation2 + $0x2950] ss:$112 sps:$4 sm:$0xff]  }
 0x371   :  { %9599 = vmatprep.subr.bf16.mxu1 %v17779_v4  ;;  %v17843_v4 = vld [vmem:[#allocation2 + $0x2178] ss:$112 sps:$4 sm:$0xff]  }
 0x372   :  { %9463 = vmatpush1.bf16.msra.mxu0 %v17780_v6  ;;  %v17851_v6 = vld [vmem:[#allocation2 + $0x225c] ss:$112 sps:$4 sm:$0xff]  }
 0x373   :  { %9464 = vmatprep.subr.bf16.mxu0 %v17788_v11  ;;  %v17866_v11 = vld [vmem:[#allocation2 + $0x44] ss:$112 sps:$4 sm:$0xff]  }
 0x374   :  { %9600 = vmatpush1.bf16.msra.mxu1 %v17777_v7  ;;  %v17852_v7 = vld [vmem:[#allocation2 + $0x2a30] ss:$112 sps:$4 sm:$0xff]  }
 0x375   :  { %9601 = vmatprep.subr.bf16.mxu1 %v17785_v8  ;;  %v17849_v8 = vld [vmem:[#allocation2 + $0x2258] ss:$112 sps:$4 sm:$0xff]  }
 0x376   :  { %9465 = vmatpush1.bf16.msra.mxu0 %v17786_v12  ;;  %v17857_v12 = vld [vmem:[#allocation2 + $0x233c] ss:$112 sps:$4 sm:$0xff]  }
 0x377   :  { %9466 = vmatprep.subr.bf16.mxu0 %v17794_v15  ;;  %v17858_v15 = vld [vmem:[#allocation2 + $0x2418] ss:$112 sps:$4 sm:$0xff]  }
 0x378   :  { %9602 = vmatpush1.bf16.msra.mxu1 %v17783_v13  ;;  %v17855_v13 = vld [vmem:[#allocation2 + $0x2338] ss:$112 sps:$4 sm:$0xff]  }
 0x379   :  { %9603 = vmatprep.subr.bf16.mxu1 %v17791_v14  ;;  %v17860_v14 = vld [vmem:[#allocation2 + $0x241c] ss:$112 sps:$4 sm:$0xff]  }
 0x37a   :  { %9467 = vmatpush1.bf16.msra.mxu0 %v17792_v17  ;;  %v17863_v17 = vld [vmem:[#allocation2 + $0x24fc] ss:$112 sps:$4 sm:$0xff]  }
 0x37b   :  { %9468 = vmatprep.subr.bf16.mxu0 %v17800_v22  ;;  %v17872_v22 = vld [vmem:[#allocation2 + $0x124] ss:$112 sps:$4 sm:$0xff]  }
 0x37c   :  { %9604 = vmatpush1.bf16.msra.mxu1 %v17789_v20  ;;  %v17864_v20 = vld [vmem:[#allocation2 + $0x40] ss:$112 sps:$4 sm:$0xff]  }
 0x37d   :  { %9605 = vmatprep.subr.bf16.mxu1 %v17797_v21  ;;  %v17861_v21 = vld [vmem:[#allocation2 + $0x24f8] ss:$112 sps:$4 sm:$0xff]  }
 0x37e   :  { %9469 = vmatpush1.bf16.msra.mxu0 %v17798_v23  ;;  %v17869_v23 = vld [vmem:[#allocation2 + $0x25dc] ss:$112 sps:$4 sm:$0xff]  }
 0x37f   :  { %9470 = vmatprep.subr.bf16.mxu0 %v17806_v30  ;;  %v17878_v30 = vld [vmem:[#allocation2 + $0x204] ss:$112 sps:$4 sm:$0xff]  }
 0x380   :  { %9606 = vmatpush1.bf16.msra.mxu1 %v17795_v25  ;;  %v17870_v25 = vld [vmem:[#allocation2 + $0x120] ss:$112 sps:$4 sm:$0xff]  }
 0x381   :  { %9607 = vmatprep.subr.bf16.mxu1 %v17803_v27  ;;  %v17867_v27 = vld [vmem:[#allocation2 + $0x25d8] ss:$112 sps:$4 sm:$0xff]  }
 0x382   :  { %9471 = vmatpush1.bf16.msra.mxu0 %v17804_v31  ;;  %v17875_v31 = vld [vmem:[#allocation2 + $0x26bc] ss:$112 sps:$4 sm:$0xff]  }
 0x383   :  { %9472 = vmatprep.subr.bf16.mxu0 %v17812_v60  ;;  %v17884_v60 = vld [vmem:[#allocation2 + $0x2e4] ss:$112 sps:$4 sm:$0xff]  }
 0x384   :  { %9608 = vmatpush1.bf16.msra.mxu1 %v17801_v58  ;;  %v17876_v58 = vld [vmem:[#allocation2 + $0x200] ss:$112 sps:$4 sm:$0xff]  }
 0x385   :  { %9618 = vmatprep.subr.bf16.mxu1 %v17809_v32  ;;  %v17873_v32 = vld [vmem:[#allocation2 + $0x26b8] ss:$112 sps:$4 sm:$0xff]  }
 0x386   :  { %9473 = vmatpush1.bf16.msra.mxu0 %v17810_v33 }
 0x387   :  { %9610 = vmatmul.mubr.bf16.vlgmr.msra.gmra.mrb[20].mxu1 %v19193_v18  ;;  %9474 = vmatprep.subr.bf16.mxu0 %v17818_v37 }
 0x388   :  { %9619 = vmatpush1.bf16.msra.mxu1 %v17807_v34  ;;  %9650 = vmatprep.mubr.bf16.mxu1 %v19198_v24  ;;  %v17881_v34 = vld [vmem:[#allocation2 + $0x279c] ss:$112 sps:$4 sm:$0xff]  }
 0x389   :  { %9620 = vmatprep.subr.bf16.mxu1 %v17815_v35 }
 0x38a   :  { %9475 = vmatpush1.bf16.msra.mxu0 %v17816_v54 }
 0x38b   :  { %9476 = vmatprep.subr.bf16.mxu0 %v17824_v39  ;;  %v17879_v39 = vld [vmem:[#allocation2 + $0x2798] ss:$112 sps:$4 sm:$0xff]  }
 0x38c   :  { %9621 = vmatpush1.bf16.msra.mxu1 %v17813_v57 }
 0x38d   :  { %9622 = vmatprep.subr.bf16.mxu1 %v17821_v38  ;;  %v17882_v38 = vld [vmem:[#allocation2 + $0x2e0] ss:$112 sps:$4 sm:$0xff]  }
 0x38e   :  { %9477 = vmatpush1.bf16.msra.mxu0 %v17822_v40 }
 0x38f   :  { %9478 = vmatprep.subr.bf16.mxu0 %v17830_v45  ;;  %v17888_v45 = vld [vmem:[#allocation2 + $0x3c0] ss:$112 sps:$4 sm:$0xff]  }
 0x390   :  { %9623 = vmatpush1.bf16.msra.mxu1 %v17819_v41  ;;  %v17890_v41 = vld [vmem:[#allocation2 + $0x3c4] ss:$112 sps:$4 sm:$0xff]  }
 0x391   :  { %9624 = vmatprep.subr.bf16.mxu1 %v17827_v42  ;;  %v17887_v42 = vld [vmem:[#allocation2 + $0x287c] ss:$112 sps:$4 sm:$0xff]  }
 0x392   :  { %9479 = vmatpush1.bf16.msra.mxu0 %v17828_v46  ;;  %v17885_v46 = vld [vmem:[#allocation2 + $0x2878] ss:$112 sps:$4 sm:$0xff]  }
 0x393   :  { %9480 = vmatprep.subr.bf16.mxu0 %v17836_v49  ;;  %v17894_v49 = vld [vmem:[#allocation2 + $0x4a0] ss:$112 sps:$4 sm:$0xff]  }
 0x394   :  { %9625 = vmatpush1.bf16.msra.mxu1 %v17825_v47  ;;  %v17896_v47 = vld [vmem:[#allocation2 + $0x4a4] ss:$112 sps:$4 sm:$0xff]  }
 0x395   :  { %9626 = vmatprep.subr.bf16.mxu1 %v17833_v48  ;;  %v17893_v48 = vld [vmem:[#allocation2 + $0x295c] ss:$112 sps:$4 sm:$0xff]  }
 0x396   :  { %9481 = vmatpush1.bf16.msra.mxu0 %v17834_v50  ;;  %v17891_v50 = vld [vmem:[#allocation2 + $0x2958] ss:$112 sps:$4 sm:$0xff]  }
 0x397   :  { %9482 = vmatprep.subr.bf16.mxu0 %v17842_v53  ;;  %v17905_v53 = vld [vmem:[#allocation2 + $0x2a3c] ss:$112 sps:$4 sm:$0xff]  }
 0x398   :  { %9627 = vmatpush1.bf16.msra.mxu1 %v17831_v52  ;;  %v17899_v52 = vld [vmem:[#allocation2 + $0x584] ss:$112 sps:$4 sm:$0xff]  }
 0x399   :  { %9628 = vmatprep.subr.bf16.mxu1 %v17839_v55  ;;  %v17897_v55 = vld [vmem:[#allocation2 + $0x580] ss:$112 sps:$4 sm:$0xff]  }
 0x39a   :  { %9483 = vmatpush1.bf16.msra.mxu0 %v17840_v56  ;;  %v17902_v56 = vld [vmem:[#allocation2 + $0x664] ss:$112 sps:$4 sm:$0xff]  }
 0x39b   :  { %9484 = vmatprep.subr.bf16.mxu0 %v17848_v61  ;;  %v17911_v61 = vld [vmem:[#allocation2 + $0x4c] ss:$112 sps:$4 sm:$0xff]  }
 0x39c   :  { %9629 = vmatpush1.bf16.msra.mxu1 %v17837_v59  ;;  %v17903_v59 = vld [vmem:[#allocation2 + $0x2a38] ss:$112 sps:$4 sm:$0xff]  }
 0x39d   :  { %9630 = vmatprep.subr.bf16.mxu1 %v17845_v1  ;;  %v17900_v1 = vld [vmem:[#allocation2 + $0x660] ss:$112 sps:$4 sm:$0xff]  }
 0x39e   :  { %9485 = vmatpush1.bf16.msra.mxu0 %v17846_v3  ;;  %v17908_v3 = vld [vmem:[#allocation2 + $0x744] ss:$112 sps:$4 sm:$0xff]  }
 0x39f   :  { %9495 = vmatprep.subr.bf16.mxu0 %v17854_v5  ;;  %v17914_v5 = vld [vmem:[#allocation2 + $0x824] ss:$112 sps:$4 sm:$0xff]  }
 0x3a0   :  { %9631 = vmatpush1.bf16.msra.mxu1 %v17843_v4  ;;  %v17906_v4 = vld [vmem:[#allocation2 + $0x740] ss:$112 sps:$4 sm:$0xff]  }
 0x3a1   :  { %9632 = vmatprep.subr.bf16.mxu1 %v17851_v6  ;;  %9487 = vmatmul.mubr.bf16.vlgmr.msra.gmra.mrb[12].mxu0 %v19207_v29  ;;  %v17912_v6 = vld [vmem:[#allocation2 + $0x820] ss:$112 sps:$4 sm:$0xff]  }
 0x3a2   :  { %9496 = vmatpush1.bf16.msra.mxu0 %v17852_v7  ;;  %9527 = vmatprep.mubr.bf16.mxu0 %v18995_v0  ;;  %v17909_v7 = vld [vmem:[#allocation2 + $0x48] ss:$112 sps:$4 sm:$0xff]  }
 0x3a3   :  { %9700 = vmatprep.subr.bf16.mxu0 %v17866_v11  ;;  %v17917_v11 = vld [vmem:[#allocation2 + $0x12c] ss:$112 sps:$4 sm:$0xff]  }
 0x3a4   :  { %9633 = vmatpush1.bf16.msra.mxu1 %v17849_v8  ;;  %v17920_v8 = vld [vmem:[#allocation2 + $0x904] ss:$112 sps:$4 sm:$0xff]  }
 0x3a5   :  { %9634 = vmatprep.subr.bf16.mxu1 %v17857_v12  ;;  %v17918_v12 = vld [vmem:[#allocation2 + $0x900] ss:$112 sps:$4 sm:$0xff]  }
 0x3a8   :  { %9635 = vmatpush1.bf16.msra.mxu1 %v17855_v13  ;;  %v17915_v13 = vld [vmem:[#allocation2 + $0x128] ss:$112 sps:$4 sm:$0xff]  }
 0x3a9   :  { %9636 = vmatprep.subr.bf16.mxu1 %v17860_v14  ;;  %v17926_v14 = vld [vmem:[#allocation2 + $0x9e4] ss:$112 sps:$4 sm:$0xff]  }
 0x3ac   :  { %9637 = vmatpush1.bf16.msra.mxu1 %v17858_v15  ;;  %v17923_v15 = vld [vmem:[#allocation2 + $0x20c] ss:$112 sps:$4 sm:$0xff]  }
 0x3ad   :  { %9638 = vmatprep.subr.bf16.mxu1 %v17863_v17  ;;  %15912 = vmatmul.mubr.msk.bf16.vlgmr.msra.gmra.mrb[12].mxu0 %vm8384_vm0, %v19165_v10  ;;  %v17924_v17 = vld [vmem:[#allocation2 + $0x9e0] ss:$112 sps:$4 sm:$0xff]  }
 0x3ae   :  { %9701 = vmatpush1.bf16.msra.mxu0 %v17864_v20  ;;  %9732 = vmatprep.mubr.bf16.mxu0 %v19172_v51  ;;  %v17921_v20 = vld [vmem:[#allocation2 + $0x208] ss:$112 sps:$4 sm:$0xff]  }
 0x3af   :  { %9702 = vmatprep.subr.bf16.mxu0 %v17872_v22  ;;  %v17929_v22 = vld [vmem:[#allocation2 + $0x2ec] ss:$112 sps:$4 sm:$0xff]  }
 0x3b0   :  { %9639 = vmatpush1.bf16.msra.mxu1 %v17861_v21  ;;  %v17932_v21 = vld [vmem:[#allocation2 + $0xac4] ss:$112 sps:$4 sm:$0xff]  }
 0x3b1   :  { %9640 = vmatprep.subr.bf16.mxu1 %v17869_v23 }
 0x3b2   :  { %9703 = vmatpush1.bf16.msra.mxu0 %v17870_v25 }
 0x3b3   :  { %9704 = vmatprep.subr.bf16.mxu0 %v17878_v30  ;;  %v17930_v30 = vld [vmem:[#allocation2 + $0xac0] ss:$112 sps:$4 sm:$0xff]  }
 0x3b4   :  { %9641 = vmatpush1.bf16.msra.mxu1 %v17867_v27  ;;  %v19295_v33 = vpop.f32.mrb[8].mxu0 }
 0x3b5   :  { %9642 = vmatprep.subr.bf16.mxu1 %v17875_v31  ;;  %v10685_v35 = vmax.f32 %v19237_v28, %v19295_v33  ;;  %v19299_v37 = vpop.f32.mrb[9].mxu0 }
 0x3b6   :  { %9705 = vmatpush1.bf16.msra.mxu0 %v17876_v58  ;;  %v10686_v54 = vmax.f32 %v19241_v43, %v19299_v37  ;;  %v9205_v57 = vpop.f32.mrb[10].mxu0  ;;  %v10887_v43 = vld [vmem:[#allocation6 + $0x3e0] sm:$0xff]  ;;  %v10812_v37 = vld [vmem:[#allocation6 + $0x188] sm:$0xff] }
 0x3b7   :  { %v9206_v40 = vpop.f32.mrb[11].mxu0  ;;  %9706 = vmatprep.subr.bf16.mxu0 %v17884_v60  ;;  %v17938_v60 = vld [vmem:[#allocation2 + $0xba4] ss:$112 sps:$4 sm:$0xff]   ;;  %v17935_v57 = vld [vmem:[#allocation2 + $0x3cc] ss:$112 sps:$4 sm:$0xff]  }
 0x3b8   :  { %9643 = vmatpush1.bf16.msra.mxu1 %v17873_v32  ;;  %v17927_v32 = vld [vmem:[#allocation2 + $0x2e8] ss:$112 sps:$4 sm:$0xff]   ;;  %v17944_v40 = vld [vmem:[#allocation2 + $0xc84] ss:$112 sps:$4 sm:$0xff]  }
 0x3b9   :  { %9644 = vmatprep.subr.bf16.mxu1 %v17881_v34 }
 0x3ba   :  { %9707 = vmatpush1.bf16.msra.mxu0 %v17882_v38  ;;  %v17936_v38 = vld [vmem:[#allocation2 + $0xba0] ss:$112 sps:$4 sm:$0xff]  }
 0x3bb   :  { %9708 = vmatprep.subr.bf16.mxu0 %v17890_v41  ;;  %v17941_v41 = vld [vmem:[#allocation2 + $0x4ac] ss:$112 sps:$4 sm:$0xff]  }
 0x3bc   :  { %9645 = vmatpush1.bf16.msra.mxu1 %v17879_v39  ;;  %v17933_v39 = vld [vmem:[#allocation2 + $0x3c8] ss:$112 sps:$4 sm:$0xff]  }
 0x3bd   :  { %9646 = vmatprep.subr.bf16.mxu1 %v17887_v42  ;;  %v17942_v42 = vld [vmem:[#allocation2 + $0xc80] ss:$112 sps:$4 sm:$0xff]  }
 0x3be   :  { %9709 = vmatpush1.bf16.msra.mxu0 %v17888_v45  ;;  %v17939_v45 = vld [vmem:[#allocation2 + $0x4a8] ss:$112 sps:$4 sm:$0xff]  }
 0x3bf   :  { %9710 = vmatprep.subr.bf16.mxu0 %v17896_v47  ;;  %v17947_v47 = vld [vmem:[#allocation2 + $0x58c] ss:$112 sps:$4 sm:$0xff]  }
 0x3c0   :  { %9647 = vmatpush1.bf16.msra.mxu1 %v17885_v46  ;;  %v17950_v46 = vld [vmem:[#allocation2 + $0xd64] ss:$112 sps:$4 sm:$0xff]  }
 0x3c1   :  { %9648 = vmatprep.subr.bf16.mxu1 %v17893_v48  ;;  %v17948_v48 = vld [vmem:[#allocation2 + $0xd60] ss:$112 sps:$4 sm:$0xff]  }
 0x3c2   :  { %9711 = vmatpush1.bf16.msra.mxu0 %v17894_v49  ;;  %v17945_v49 = vld [vmem:[#allocation2 + $0x588] ss:$112 sps:$4 sm:$0xff]  }
 0x3c3   :  { %9712 = vmatprep.subr.bf16.mxu0 %v17899_v52  ;;  %v17953_v52 = vld [vmem:[#allocation2 + $0x66c] ss:$112 sps:$4 sm:$0xff]  }
 0x3c4   :  { %9649 = vmatpush1.bf16.msra.mxu1 %v17891_v50  ;;  %v17956_v50 = vld [vmem:[#allocation2 + $0xe44] ss:$112 sps:$4 sm:$0xff]  }
 0x3c5   :  { %9659 = vmatprep.subr.bf16.mxu1 %v17905_v53  ;;  %v17954_v53 = vld [vmem:[#allocation2 + $0xe40] ss:$112 sps:$4 sm:$0xff]  }
 0x3c6   :  { %9713 = vmatpush1.bf16.msra.mxu0 %v17897_v55  ;;  %v17951_v55 = vld [vmem:[#allocation2 + $0x668] ss:$112 sps:$4 sm:$0xff]  }
 0x3c7   :  { %9651 = vmatmul.mubr.bf16.vlgmr.msra.gmra.mrb[20].mxu1 %v19207_v29  ;;  %9714 = vmatprep.subr.bf16.mxu0 %v17902_v56  ;;  %v17962_v56 = vld [vmem:[#allocation2 + $0xf24] ss:$112 sps:$4 sm:$0xff]  }
 0x3c8   :  { %9660 = vmatpush1.bf16.msra.mxu1 %v17903_v59  ;;  %9691 = vmatprep.mubr.bf16.mxu1 %v18995_v0  ;;  %v17959_v59 = vld [vmem:[#allocation2 + $0x74c] ss:$112 sps:$4 sm:$0xff]  }
 0x3c9   :  { %9864 = vmatprep.subr.bf16.mxu1 %v17911_v61  ;;  %v17960_v61 = vld [vmem:[#allocation2 + $0xf20] ss:$112 sps:$4 sm:$0xff]  }
 0x3ca   :  { %9715 = vmatpush1.bf16.msra.mxu0 %v17900_v1  ;;  %v17957_v1 = vld [vmem:[#allocation2 + $0x748] ss:$112 sps:$4 sm:$0xff]  }
 0x3cb   :  { %9716 = vmatprep.subr.bf16.mxu0 %v17908_v3  ;;  %v17968_v3 = vld [vmem:[#allocation2 + $0x1004] ss:$112 sps:$4 sm:$0xff]  }
 0x3ce   :  { %9717 = vmatpush1.bf16.msra.mxu0 %v17906_v4  ;;  %v17965_v4 = vld [vmem:[#allocation2 + $0x82c] ss:$112 sps:$4 sm:$0xff]  }
 0x3cf   :  { %9718 = vmatprep.subr.bf16.mxu0 %v17914_v5  ;;  %v17966_v5 = vld [vmem:[#allocation2 + $0x1000] ss:$112 sps:$4 sm:$0xff]  }
 0x3d2   :  { %9719 = vmatpush1.bf16.msra.mxu0 %v17912_v6  ;;  %v17963_v6 = vld [vmem:[#allocation2 + $0x828] ss:$112 sps:$4 sm:$0xff]  }
 0x3d3   :  { %15913 = vmatmul.mubr.msk.bf16.vlgmr.msra.gmra.mrb[20].mxu1 %vm8384_vm0, %v19165_v10  ;;  %9720 = vmatprep.subr.bf16.mxu0 %v17920_v8  ;;  %v17971_v8 = vld [vmem:[#allocation2 + $0x90c] ss:$112 sps:$4 sm:$0xff]  }
 0x3d4   :  { %9865 = vmatpush1.bf16.msra.mxu1 %v17909_v7  ;;  %9896 = vmatprep.mubr.bf16.mxu1 %v19172_v51  ;;  %v17974_v7 = vld [vmem:[#allocation2 + $0x10e4] ss:$112 sps:$4 sm:$0xff]  }
 0x3d5   :  { %9866 = vmatprep.subr.bf16.mxu1 %v17917_v11  ;;  %v17972_v11 = vld [vmem:[#allocation2 + $0x10e0] ss:$112 sps:$4 sm:$0xff]  }
 0x3d6   :  { %9721 = vmatpush1.bf16.msra.mxu0 %v17918_v12  ;;  %v17969_v12 = vld [vmem:[#allocation2 + $0x908] ss:$112 sps:$4 sm:$0xff]  }
 0x3d7   :  { %9722 = vmatprep.subr.bf16.mxu0 %v17926_v14  ;;  %v17977_v14 = vld [vmem:[#allocation2 + $0x9ec] ss:$112 sps:$4 sm:$0xff]  }
 0x3d8   :  { %9867 = vmatpush1.bf16.msra.mxu1 %v17915_v13  ;;  %v17980_v13 = vld [vmem:[#allocation2 + $0x11c4] ss:$112 sps:$4 sm:$0xff]  }
 0x3d9   :  { %9868 = vmatprep.subr.bf16.mxu1 %v17923_v15  ;;  %v17978_v15 = vld [vmem:[#allocation2 + $0x11c0] ss:$112 sps:$4 sm:$0xff]  }
 0x3da   :  { %v19308_v23 = vpop.f32.mrb[16].mxu1  ;;  %9723 = vmatpush1.bf16.msra.mxu0 %v17924_v17  ;;  %v17975_v17 = vld [vmem:[#allocation2 + $0x9e8] ss:$112 sps:$4 sm:$0xff]  }
 0x3db   :  { %v10687_v25 = vmax.f32 %v19245_v44, %v19308_v23  ;;  %v19312_v27 = vpop.f32.mrb[17].mxu1  ;;  %9724 = vmatprep.subr.bf16.mxu0 %v17932_v21  ;;  %v17983_v21 = vld [vmem:[#allocation2 + $0xacc] ss:$112 sps:$4 sm:$0xff]  }
 0x3dc   :  { %9869 = vmatpush1.bf16.msra.mxu1 %v17921_v20  ;;  %v10688_v31 = vmax.f32 %v19266_v16, %v19312_v27  ;;  %v9369_v58 = vpop.f32.mrb[18].mxu1  ;;  %v17986_v20 = vld [vmem:[#allocation2 + $0x12a4] ss:$112 sps:$4 sm:$0xff]   ;;  %v11039_v16 = vld [vmem:[#allocation6 + $0x8a0] sm:$0xff] }
 0x3dd   :  { %v9370_v34 = vpop.f32.mrb[19].mxu1  ;;  %9870 = vmatprep.subr.bf16.mxu1 %v17929_v22  ;;  %v17984_v22 = vld [vmem:[#allocation2 + $0x12a0] ss:$112 sps:$4 sm:$0xff]   ;;  %v17992_v58 = vld [vmem:[#allocation2 + $0x1384] ss:$112 sps:$4 sm:$0xff]  }
 0x3de   :  { %9725 = vmatpush1.bf16.msra.mxu0 %v17930_v30  ;;  %v17981_v30 = vld [vmem:[#allocation2 + $0xac8] ss:$112 sps:$4 sm:$0xff]   ;;  %v11036_v27 = vld [vmem:[#allocation6 + $0x888] sm:$0xff] }
 0x3df   :  { %9726 = vmatprep.subr.bf16.mxu0 %v17938_v60  ;;  %v17990_v60 = vld [vmem:[#allocation2 + $0x1380] ss:$112 sps:$4 sm:$0xff]   ;;  %v17987_v34 = vld [vmem:[#allocation2 + $0xba8] ss:$112 sps:$4 sm:$0xff]  }
 0x3e0   :  { %9871 = vmatpush1.bf16.msra.mxu1 %v17927_v32  ;;  %v17989_v32 = vld [vmem:[#allocation2 + $0xbac] ss:$112 sps:$4 sm:$0xff]  }
 0x3e1   :  { %9872 = vmatprep.subr.bf16.mxu1 %v17935_v57  ;;  %v17998_v57 = vld [vmem:[#allocation2 + $0x1464] ss:$112 sps:$4 sm:$0xff]  }
 0x3e2   :  { %9727 = vmatpush1.bf16.msra.mxu0 %v17936_v38  ;;  %v17995_v38 = vld [vmem:[#allocation2 + $0xc8c] ss:$112 sps:$4 sm:$0xff]  }
 0x3e3   :  { %9728 = vmatprep.subr.bf16.mxu0 %v17944_v40  ;;  %v17993_v40 = vld [vmem:[#allocation2 + $0xc88] ss:$112 sps:$4 sm:$0xff]  }
 0x3e4   :  { %9873 = vmatpush1.bf16.msra.mxu1 %v17933_v39  ;;  %v17996_v39 = vld [vmem:[#allocation2 + $0x1460] ss:$112 sps:$4 sm:$0xff]  }
 0x3e5   :  { %9874 = vmatprep.subr.bf16.mxu1 %v17941_v41  ;;  %v18004_v41 = vld [vmem:[#allocation2 + $0x1544] ss:$112 sps:$4 sm:$0xff]  }
 0x3e6   :  { %9729 = vmatpush1.bf16.msra.mxu0 %v17942_v42  ;;  %v18001_v42 = vld [vmem:[#allocation2 + $0xd6c] ss:$112 sps:$4 sm:$0xff]  }
 0x3e7   :  { %9730 = vmatprep.subr.bf16.mxu0 %v17950_v46  ;;  %v17999_v46 = vld [vmem:[#allocation2 + $0xd68] ss:$112 sps:$4 sm:$0xff]  }
 0x3e8   :  { %9875 = vmatpush1.bf16.msra.mxu1 %v17939_v45  ;;  %v18002_v45 = vld [vmem:[#allocation2 + $0x1540] ss:$112 sps:$4 sm:$0xff]  }
 0x3e9   :  { %9876 = vmatprep.subr.bf16.mxu1 %v17947_v47  ;;  %v18010_v47 = vld [vmem:[#allocation2 + $0x1624] ss:$112 sps:$4 sm:$0xff]  }
 0x3ea   :  { %9731 = vmatpush1.bf16.msra.mxu0 %v17948_v48  ;;  %v18007_v48 = vld [vmem:[#allocation2 + $0xe4c] ss:$112 sps:$4 sm:$0xff]  }
 0x3eb   :  { %9741 = vmatprep.subr.bf16.mxu0 %v17956_v50  ;;  %v18005_v50 = vld [vmem:[#allocation2 + $0xe48] ss:$112 sps:$4 sm:$0xff]  }
 0x3ec   :  { %9877 = vmatpush1.bf16.msra.mxu1 %v17945_v49  ;;  %v18008_v49 = vld [vmem:[#allocation2 + $0x1620] ss:$112 sps:$4 sm:$0xff]  }
 0x3ed   :  { %9878 = vmatprep.subr.bf16.mxu1 %v17953_v52  ;;  %9733 = vmatmul.mubr.bf16.vlgmr.msra.gmra.mrb[16].mxu0 %v19179_v9  ;;  %v18016_v52 = vld [vmem:[#allocation2 + $0x1704] ss:$112 sps:$4 sm:$0xff]  }
 0x3ee   :  { %9742 = vmatpush1.bf16.msra.mxu0 %v17954_v53  ;;  %9773 = vmatprep.mubr.bf16.mxu0 %v19186_v36  ;;  %v18013_v53 = vld [vmem:[#allocation2 + $0xf2c] ss:$112 sps:$4 sm:$0xff]  }
 0x3ef   :  { %9743 = vmatprep.subr.bf16.mxu0 %v17962_v56  ;;  %v18011_v56 = vld [vmem:[#allocation2 + $0xf28] ss:$112 sps:$4 sm:$0xff]  }
 0x3f0   :  { %9879 = vmatpush1.bf16.msra.mxu1 %v17951_v55  ;;  %v18014_v55 = vld [vmem:[#allocation2 + $0x1700] ss:$112 sps:$4 sm:$0xff]  }
 0x3f1   :  { %9880 = vmatprep.subr.bf16.mxu1 %v17959_v59  ;;  %v18022_v59 = vld [vmem:[#allocation2 + $0x17e4] ss:$112 sps:$4 sm:$0xff]  }
 0x3f2   :  { %9744 = vmatpush1.bf16.msra.mxu0 %v17960_v61  ;;  %v18019_v61 = vld [vmem:[#allocation2 + $0x100c] ss:$112 sps:$4 sm:$0xff]  }
 0x3f3   :  { %9745 = vmatprep.subr.bf16.mxu0 %v17968_v3  ;;  %v18017_v3 = vld [vmem:[#allocation2 + $0x1008] ss:$112 sps:$4 sm:$0xff]  }
 0x3f4   :  { %9881 = vmatpush1.bf16.msra.mxu1 %v17957_v1  ;;  %v18020_v1 = vld [vmem:[#allocation2 + $0x17e0] ss:$112 sps:$4 sm:$0xff]  }
 0x3f5   :  { %9882 = vmatprep.subr.bf16.mxu1 %v17965_v4  ;;  %v18028_v4 = vld [vmem:[#allocation2 + $0x18c4] ss:$112 sps:$4 sm:$0xff]  }
 0x3f6   :  { %9746 = vmatpush1.bf16.msra.mxu0 %v17966_v5  ;;  %v18025_v5 = vld [vmem:[#allocation2 + $0x10ec] ss:$112 sps:$4 sm:$0xff]  }
 0x3f7   :  { %9747 = vmatprep.subr.bf16.mxu0 %v17974_v7  ;;  %v18023_v7 = vld [vmem:[#allocation2 + $0x10e8] ss:$112 sps:$4 sm:$0xff]  }
 0x3f8   :  { %9883 = vmatpush1.bf16.msra.mxu1 %v17963_v6  ;;  %v18026_v6 = vld [vmem:[#allocation2 + $0x18c0] ss:$112 sps:$4 sm:$0xff]  }
 0x3f9   :  { %9884 = vmatprep.subr.bf16.mxu1 %v17971_v8  ;;  %v18034_v8 = vld [vmem:[#allocation2 + $0x19a4] ss:$112 sps:$4 sm:$0xff]  }
 0x3fa   :  { %9748 = vmatpush1.bf16.msra.mxu0 %v17972_v11  ;;  %v18031_v11 = vld [vmem:[#allocation2 + $0x11cc] ss:$112 sps:$4 sm:$0xff]  }
 0x3fb   :  { %9749 = vmatprep.subr.bf16.mxu0 %v17980_v13  ;;  %v18029_v13 = vld [vmem:[#allocation2 + $0x11c8] ss:$112 sps:$4 sm:$0xff]  }
 0x3fc   :  { %9885 = vmatpush1.bf16.msra.mxu1 %v17969_v12  ;;  %v18032_v12 = vld [vmem:[#allocation2 + $0x19a0] ss:$112 sps:$4 sm:$0xff]  }
 0x3fd   :  { %9886 = vmatprep.subr.bf16.mxu1 %v17977_v14  ;;  %v18040_v14 = vld [vmem:[#allocation2 + $0x1a84] ss:$112 sps:$4 sm:$0xff]  }
 0x3fe   :  { %9750 = vmatpush1.bf16.msra.mxu0 %v17978_v15  ;;  %v18037_v15 = vld [vmem:[#allocation2 + $0x12ac] ss:$112 sps:$4 sm:$0xff]  }
 0x3ff   :  { %9751 = vmatprep.subr.bf16.mxu0 %v17986_v20  ;;  %v18035_v20 = vld [vmem:[#allocation2 + $0x12a8] ss:$112 sps:$4 sm:$0xff]  }
 0x400   :  { %9887 = vmatpush1.bf16.msra.mxu1 %v17975_v17  ;;  %v18038_v17 = vld [vmem:[#allocation2 + $0x1a80] ss:$112 sps:$4 sm:$0xff]  }
 0x401   :  { %9888 = vmatprep.subr.bf16.mxu1 %v17983_v21  ;;  %v18046_v21 = vld [vmem:[#allocation2 + $0x1b64] ss:$112 sps:$4 sm:$0xff]  }
 0x402   :  { %9752 = vmatpush1.bf16.msra.mxu0 %v17984_v22  ;;  %v18043_v22 = vld [vmem:[#allocation2 + $0x138c] ss:$112 sps:$4 sm:$0xff]  }
 0x403   :  { %9753 = vmatprep.subr.bf16.mxu0 %v17992_v58  ;;  %v18041_v58 = vld [vmem:[#allocation2 + $0x1388] ss:$112 sps:$4 sm:$0xff]  }
 0x404   :  { %9889 = vmatpush1.bf16.msra.mxu1 %v17981_v30  ;;  %v18044_v30 = vld [vmem:[#allocation2 + $0x1b60] ss:$112 sps:$4 sm:$0xff]  }
 0x405   :  { %9890 = vmatprep.subr.bf16.mxu1 %v17989_v32  ;;  %v18052_v32 = vld [vmem:[#allocation2 + $0x1c44] ss:$112 sps:$4 sm:$0xff]  }
 0x406   :  { %9754 = vmatpush1.bf16.msra.mxu0 %v17990_v60  ;;  %v18049_v60 = vld [vmem:[#allocation2 + $0x146c] ss:$112 sps:$4 sm:$0xff]  }
 0x407   :  { %9755 = vmatprep.subr.bf16.mxu0 %v17998_v57  ;;  %v18047_v57 = vld [vmem:[#allocation2 + $0x1468] ss:$112 sps:$4 sm:$0xff]  }
 0x408   :  { %9891 = vmatpush1.bf16.msra.mxu1 %v17987_v34  ;;  %v18050_v34 = vld [vmem:[#allocation2 + $0x1c40] ss:$112 sps:$4 sm:$0xff]  }
 0x409   :  { %9892 = vmatprep.subr.bf16.mxu1 %v17995_v38  ;;  %v18058_v38 = vld [vmem:[#allocation2 + $0x1d24] ss:$112 sps:$4 sm:$0xff]  }
 0x40a   :  { %9756 = vmatpush1.bf16.msra.mxu0 %v17996_v39  ;;  %v18055_v39 = vld [vmem:[#allocation2 + $0x154c] ss:$112 sps:$4 sm:$0xff]  }
 0x40b   :  { %9757 = vmatprep.subr.bf16.mxu0 %v18004_v41  ;;  %v18053_v41 = vld [vmem:[#allocation2 + $0x1548] ss:$112 sps:$4 sm:$0xff]  }
 0x40c   :  { %9893 = vmatpush1.bf16.msra.mxu1 %v17993_v40  ;;  %v18056_v40 = vld [vmem:[#allocation2 + $0x1d20] ss:$112 sps:$4 sm:$0xff]  }
 0x40d   :  { %9894 = vmatprep.subr.bf16.mxu1 %v18001_v42  ;;  %v18064_v42 = vld [vmem:[#allocation2 + $0x1e04] ss:$112 sps:$4 sm:$0xff]  }
 0x40e   :  { %9758 = vmatpush1.bf16.msra.mxu0 %v18002_v45  ;;  %v18061_v45 = vld [vmem:[#allocation2 + $0x162c] ss:$112 sps:$4 sm:$0xff]  }
 0x40f   :  { %9759 = vmatprep.subr.bf16.mxu0 %v18010_v47  ;;  %v18059_v47 = vld [vmem:[#allocation2 + $0x1628] ss:$112 sps:$4 sm:$0xff]  }
 0x410   :  { %9895 = vmatpush1.bf16.msra.mxu1 %v17999_v46  ;;  %v18062_v46 = vld [vmem:[#allocation2 + $0x1e00] ss:$112 sps:$4 sm:$0xff]  }
 0x411   :  { %9905 = vmatprep.subr.bf16.mxu1 %v18007_v48  ;;  %v18070_v48 = vld [vmem:[#allocation2 + $0x1ee4] ss:$112 sps:$4 sm:$0xff]  }
 0x412   :  { %9760 = vmatpush1.bf16.msra.mxu0 %v18008_v49  ;;  %v18067_v49 = vld [vmem:[#allocation2 + $0x170c] ss:$112 sps:$4 sm:$0xff]  }
 0x413   :  { %9897 = vmatmul.mubr.bf16.vlgmr.msra.gmra.mrb[24].mxu1 %v19179_v9  ;;  %9761 = vmatprep.subr.bf16.mxu0 %v18016_v52  ;;  %v18065_v52 = vld [vmem:[#allocation2 + $0x1708] ss:$112 sps:$4 sm:$0xff]  }
 0x414   :  { %9906 = vmatpush1.bf16.msra.mxu1 %v18005_v50  ;;  %9937 = vmatprep.mubr.bf16.mxu1 %v19186_v36  ;;  %v18068_v50 = vld [vmem:[#allocation2 + $0x1ee0] ss:$112 sps:$4 sm:$0xff]  }
 0x415   :  { %9907 = vmatprep.subr.bf16.mxu1 %v18013_v53  ;;  %v18076_v53 = vld [vmem:[#allocation2 + $0x1fc4] ss:$112 sps:$4 sm:$0xff]  }
 0x416   :  { %9762 = vmatpush1.bf16.msra.mxu0 %v18014_v55  ;;  %v18073_v55 = vld [vmem:[#allocation2 + $0x17ec] ss:$112 sps:$4 sm:$0xff]  }
 0x417   :  { %9763 = vmatprep.subr.bf16.mxu0 %v18022_v59  ;;  %v18071_v59 = vld [vmem:[#allocation2 + $0x17e8] ss:$112 sps:$4 sm:$0xff]  }
 0x418   :  { %9908 = vmatpush1.bf16.msra.mxu1 %v18011_v56  ;;  %v18074_v56 = vld [vmem:[#allocation2 + $0x1fc0] ss:$112 sps:$4 sm:$0xff]  }
 0x419   :  { %9909 = vmatprep.subr.bf16.mxu1 %v18019_v61  ;;  %v18082_v61 = vld [vmem:[#allocation2 + $0x20a4] ss:$112 sps:$4 sm:$0xff]  }
 0x41a   :  { %9764 = vmatpush1.bf16.msra.mxu0 %v18020_v1  ;;  %v18079_v1 = vld [vmem:[#allocation2 + $0x18cc] ss:$112 sps:$4 sm:$0xff]  }
 0x41b   :  { %9765 = vmatprep.subr.bf16.mxu0 %v18028_v4  ;;  %v18077_v4 = vld [vmem:[#allocation2 + $0x18c8] ss:$112 sps:$4 sm:$0xff]  }
 0x41c   :  { %9910 = vmatpush1.bf16.msra.mxu1 %v18017_v3  ;;  %v18080_v3 = vld [vmem:[#allocation2 + $0x20a0] ss:$112 sps:$4 sm:$0xff]  }
 0x41d   :  { %9911 = vmatprep.subr.bf16.mxu1 %v18025_v5  ;;  %v18088_v5 = vld [vmem:[#allocation2 + $0x2184] ss:$112 sps:$4 sm:$0xff]  }
 0x41e   :  { %9766 = vmatpush1.bf16.msra.mxu0 %v18026_v6  ;;  %v18085_v6 = vld [vmem:[#allocation2 + $0x19ac] ss:$112 sps:$4 sm:$0xff]  }
 0x41f   :  { %9767 = vmatprep.subr.bf16.mxu0 %v18034_v8  ;;  %v18083_v8 = vld [vmem:[#allocation2 + $0x19a8] ss:$112 sps:$4 sm:$0xff]  }
 0x420   :  { %9912 = vmatpush1.bf16.msra.mxu1 %v18023_v7  ;;  %v18086_v7 = vld [vmem:[#allocation2 + $0x2180] ss:$112 sps:$4 sm:$0xff]  }
 0x421   :  { %9913 = vmatprep.subr.bf16.mxu1 %v18031_v11  ;;  %v18094_v11 = vld [vmem:[#allocation2 + $0x2264] ss:$112 sps:$4 sm:$0xff]  }
 0x422   :  { %9768 = vmatpush1.bf16.msra.mxu0 %v18032_v12  ;;  %v18091_v12 = vld [vmem:[#allocation2 + $0x1a8c] ss:$112 sps:$4 sm:$0xff]  }
 0x423   :  { %9769 = vmatprep.subr.bf16.mxu0 %v18040_v14  ;;  %v18089_v14 = vld [vmem:[#allocation2 + $0x1a88] ss:$112 sps:$4 sm:$0xff]  }
 0x424   :  { %9914 = vmatpush1.bf16.msra.mxu1 %v18029_v13  ;;  %v18092_v13 = vld [vmem:[#allocation2 + $0x2260] ss:$112 sps:$4 sm:$0xff]  }
 0x425   :  { %9915 = vmatprep.subr.bf16.mxu1 %v18037_v15  ;;  %v18100_v15 = vld [vmem:[#allocation2 + $0x2344] ss:$112 sps:$4 sm:$0xff]  }
 0x426   :  { %9770 = vmatpush1.bf16.msra.mxu0 %v18038_v17  ;;  %v18097_v17 = vld [vmem:[#allocation2 + $0x1b6c] ss:$112 sps:$4 sm:$0xff]  }
 0x427   :  { %9771 = vmatprep.subr.bf16.mxu0 %v18046_v21  ;;  %v18095_v21 = vld [vmem:[#allocation2 + $0x1b68] ss:$112 sps:$4 sm:$0xff]  }
 0x428   :  { %9916 = vmatpush1.bf16.msra.mxu1 %v18035_v20  ;;  %v18098_v20 = vld [vmem:[#allocation2 + $0x2340] ss:$112 sps:$4 sm:$0xff]  }
 0x429   :  { %9917 = vmatprep.subr.bf16.mxu1 %v18043_v22  ;;  %v18106_v22 = vld [vmem:[#allocation2 + $0x2424] ss:$112 sps:$4 sm:$0xff]  }
 0x42a   :  { %9772 = vmatpush1.bf16.msra.mxu0 %v18044_v30  ;;  %v18103_v30 = vld [vmem:[#allocation2 + $0x1c4c] ss:$112 sps:$4 sm:$0xff]  }
 0x42b   :  { %9782 = vmatprep.subr.bf16.mxu0 %v18052_v32  ;;  %v18101_v32 = vld [vmem:[#allocation2 + $0x1c48] ss:$112 sps:$4 sm:$0xff]  }
 0x42c   :  { %9918 = vmatpush1.bf16.msra.mxu1 %v18041_v58  ;;  %v18104_v58 = vld [vmem:[#allocation2 + $0x2420] ss:$112 sps:$4 sm:$0xff]  }
 0x42d   :  { %9919 = vmatprep.subr.bf16.mxu1 %v18049_v60  ;;  %9774 = vmatmul.mubr.bf16.vlgmr.msra.gmra.mrb[16].mxu0 %v19193_v18  ;;  %v18112_v60 = vld [vmem:[#allocation2 + $0x2504] ss:$112 sps:$4 sm:$0xff]  }
 0x42e   :  { %9783 = vmatpush1.bf16.msra.mxu0 %v18050_v34  ;;  %9814 = vmatprep.mubr.bf16.mxu0 %v19198_v24  ;;  %v18109_v34 = vld [vmem:[#allocation2 + $0x1d2c] ss:$112 sps:$4 sm:$0xff]  }
 0x42f   :  { %9784 = vmatprep.subr.bf16.mxu0 %v18058_v38  ;;  %v18107_v38 = vld [vmem:[#allocation2 + $0x1d28] ss:$112 sps:$4 sm:$0xff]  }
 0x430   :  { %9920 = vmatpush1.bf16.msra.mxu1 %v18047_v57  ;;  %v18110_v57 = vld [vmem:[#allocation2 + $0x2500] ss:$112 sps:$4 sm:$0xff]  }
 0x431   :  { %9921 = vmatprep.subr.bf16.mxu1 %v18055_v39  ;;  %v18118_v39 = vld [vmem:[#allocation2 + $0x25e4] ss:$112 sps:$4 sm:$0xff]  }
 0x432   :  { %9785 = vmatpush1.bf16.msra.mxu0 %v18056_v40  ;;  %v18115_v40 = vld [vmem:[#allocation2 + $0x1e0c] ss:$112 sps:$4 sm:$0xff]  }
 0x433   :  { %9786 = vmatprep.subr.bf16.mxu0 %v18064_v42  ;;  %v18113_v42 = vld [vmem:[#allocation2 + $0x1e08] ss:$112 sps:$4 sm:$0xff]  }
 0x434   :  { %9922 = vmatpush1.bf16.msra.mxu1 %v18053_v41  ;;  %v18116_v41 = vld [vmem:[#allocation2 + $0x25e0] ss:$112 sps:$4 sm:$0xff]  }
 0x435   :  { %9923 = vmatprep.subr.bf16.mxu1 %v18061_v45  ;;  %v18124_v45 = vld [vmem:[#allocation2 + $0x26c4] ss:$112 sps:$4 sm:$0xff]  }
 0x436   :  { %9787 = vmatpush1.bf16.msra.mxu0 %v18062_v46  ;;  %v18121_v46 = vld [vmem:[#allocation2 + $0x1eec] ss:$112 sps:$4 sm:$0xff]  }
 0x437   :  { %9788 = vmatprep.subr.bf16.mxu0 %v18070_v48  ;;  %v18119_v48 = vld [vmem:[#allocation2 + $0x1ee8] ss:$112 sps:$4 sm:$0xff]  }
 0x438   :  { %9924 = vmatpush1.bf16.msra.mxu1 %v18059_v47  ;;  %v18122_v47 = vld [vmem:[#allocation2 + $0x26c0] ss:$112 sps:$4 sm:$0xff]  }
 0x439   :  { %9925 = vmatprep.subr.bf16.mxu1 %v18067_v49  ;;  %v18130_v49 = vld [vmem:[#allocation2 + $0x27a4] ss:$112 sps:$4 sm:$0xff]  }
 0x43a   :  { %9789 = vmatpush1.bf16.msra.mxu0 %v18068_v50  ;;  %v18127_v50 = vld [vmem:[#allocation2 + $0x1fcc] ss:$112 sps:$4 sm:$0xff]  }
 0x43b   :  { %9790 = vmatprep.subr.bf16.mxu0 %v18076_v53  ;;  %v18125_v53 = vld [vmem:[#allocation2 + $0x1fc8] ss:$112 sps:$4 sm:$0xff]  }
 0x43c   :  { %9926 = vmatpush1.bf16.msra.mxu1 %v18065_v52  ;;  %v18128_v52 = vld [vmem:[#allocation2 + $0x27a0] ss:$112 sps:$4 sm:$0xff]  }
 0x43d   :  { %9927 = vmatprep.subr.bf16.mxu1 %v18073_v55  ;;  %v18136_v55 = vld [vmem:[#allocation2 + $0x2884] ss:$112 sps:$4 sm:$0xff]  }
 0x43e   :  { %9791 = vmatpush1.bf16.msra.mxu0 %v18074_v56  ;;  %v18133_v56 = vld [vmem:[#allocation2 + $0x20ac] ss:$112 sps:$4 sm:$0xff]  }
 0x43f   :  { %9792 = vmatprep.subr.bf16.mxu0 %v18082_v61  ;;  %v18131_v61 = vld [vmem:[#allocation2 + $0x20a8] ss:$112 sps:$4 sm:$0xff]  }
 0x440   :  { %9928 = vmatpush1.bf16.msra.mxu1 %v18071_v59  ;;  %v18134_v59 = vld [vmem:[#allocation2 + $0x2880] ss:$112 sps:$4 sm:$0xff]  }
 0x441   :  { %9929 = vmatprep.subr.bf16.mxu1 %v18079_v1  ;;  %v18142_v1 = vld [vmem:[#allocation2 + $0x2964] ss:$112 sps:$4 sm:$0xff]  }
 0x442   :  { %9793 = vmatpush1.bf16.msra.mxu0 %v18080_v3  ;;  %v18139_v3 = vld [vmem:[#allocation2 + $0x218c] ss:$112 sps:$4 sm:$0xff]  }
 0x443   :  { %9794 = vmatprep.subr.bf16.mxu0 %v18088_v5  ;;  %v18137_v5 = vld [vmem:[#allocation2 + $0x2188] ss:$112 sps:$4 sm:$0xff]  }
 0x444   :  { %9930 = vmatpush1.bf16.msra.mxu1 %v18077_v4  ;;  %v18140_v4 = vld [vmem:[#allocation2 + $0x2960] ss:$112 sps:$4 sm:$0xff]  }
 0x445   :  { %9931 = vmatprep.subr.bf16.mxu1 %v18085_v6  ;;  %v18148_v6 = vld [vmem:[#allocation2 + $0x2a44] ss:$112 sps:$4 sm:$0xff]  }
 0x446   :  { %9795 = vmatpush1.bf16.msra.mxu0 %v18086_v7  ;;  %v18145_v7 = vld [vmem:[#allocation2 + $0x226c] ss:$112 sps:$4 sm:$0xff]  }
 0x447   :  { %9796 = vmatprep.subr.bf16.mxu0 %v18094_v11  ;;  %v18143_v11 = vld [vmem:[#allocation2 + $0x2268] ss:$112 sps:$4 sm:$0xff]  }
 0x448   :  { %9932 = vmatpush1.bf16.msra.mxu1 %v18083_v8  ;;  %v18146_v8 = vld [vmem:[#allocation2 + $0x2a40] ss:$112 sps:$4 sm:$0xff]  }
 0x449   :  { %9933 = vmatprep.subr.bf16.mxu1 %v18091_v12  ;;  %v18160_v12 = vld [vmem:[#allocation2 + $0x54] ss:$112 sps:$4 sm:$0xff]  }
 0x44a   :  { %9797 = vmatpush1.bf16.msra.mxu0 %v18092_v13  ;;  %v18151_v13 = vld [vmem:[#allocation2 + $0x234c] ss:$112 sps:$4 sm:$0xff]  }
 0x44b   :  { %9798 = vmatprep.subr.bf16.mxu0 %v18100_v15  ;;  %v18154_v15 = vld [vmem:[#allocation2 + $0x242c] ss:$112 sps:$4 sm:$0xff]  }
 0x44c   :  { %9934 = vmatpush1.bf16.msra.mxu1 %v18089_v14  ;;  %v18149_v14 = vld [vmem:[#allocation2 + $0x2348] ss:$112 sps:$4 sm:$0xff]  }
 0x44d   :  { %9935 = vmatprep.subr.bf16.mxu1 %v18097_v17  ;;  %v18152_v17 = vld [vmem:[#allocation2 + $0x2428] ss:$112 sps:$4 sm:$0xff]  }
 0x44e   :  { %9799 = vmatpush1.bf16.msra.mxu0 %v18098_v20  ;;  %v18157_v20 = vld [vmem:[#allocation2 + $0x250c] ss:$112 sps:$4 sm:$0xff]  }
 0x44f   :  { %9800 = vmatprep.subr.bf16.mxu0 %v18106_v22  ;;  %v18155_v22 = vld [vmem:[#allocation2 + $0x2508] ss:$112 sps:$4 sm:$0xff]  }
 0x450   :  { %9936 = vmatpush1.bf16.msra.mxu1 %v18095_v21  ;;  %v18158_v21 = vld [vmem:[#allocation2 + $0x50] ss:$112 sps:$4 sm:$0xff]  }
 0x451   :  { %9946 = vmatprep.subr.bf16.mxu1 %v18103_v30  ;;  %v18166_v30 = vld [vmem:[#allocation2 + $0x134] ss:$112 sps:$4 sm:$0xff]  }
 0x452   :  { %9801 = vmatpush1.bf16.msra.mxu0 %v18104_v58  ;;  %v18163_v58 = vld [vmem:[#allocation2 + $0x25ec] ss:$112 sps:$4 sm:$0xff]  }
 0x453   :  { %9938 = vmatmul.mubr.bf16.vlgmr.msra.gmra.mrb[24].mxu1 %v19193_v18  ;;  %9802 = vmatprep.subr.bf16.mxu0 %v18112_v60  ;;  %v18161_v60 = vld [vmem:[#allocation2 + $0x25e8] ss:$112 sps:$4 sm:$0xff]  }
 0x454   :  { %9947 = vmatpush1.bf16.msra.mxu1 %v18101_v32  ;;  %9978 = vmatprep.mubr.bf16.mxu1 %v19198_v24  ;;  %v18164_v32 = vld [vmem:[#allocation2 + $0x130] ss:$112 sps:$4 sm:$0xff]  }
 0x455   :  { %9948 = vmatprep.subr.bf16.mxu1 %v18109_v34  ;;  %v18172_v34 = vld [vmem:[#allocation2 + $0x214] ss:$112 sps:$4 sm:$0xff]  }
 0x456   :  { %9803 = vmatpush1.bf16.msra.mxu0 %v18110_v57  ;;  %v18169_v57 = vld [vmem:[#allocation2 + $0x26cc] ss:$112 sps:$4 sm:$0xff]  }
 0x457   :  { %9804 = vmatprep.subr.bf16.mxu0 %v18118_v39  ;;  %v18167_v39 = vld [vmem:[#allocation2 + $0x26c8] ss:$112 sps:$4 sm:$0xff]  }
 0x458   :  { %9949 = vmatpush1.bf16.msra.mxu1 %v18107_v38  ;;  %v18170_v38 = vld [vmem:[#allocation2 + $0x210] ss:$112 sps:$4 sm:$0xff]  }
 0x459   :  { %9950 = vmatprep.subr.bf16.mxu1 %v18115_v40  ;;  %v18178_v40 = vld [vmem:[#allocation2 + $0x2f4] ss:$112 sps:$4 sm:$0xff]  }
 0x45a   :  { %9805 = vmatpush1.bf16.msra.mxu0 %v18116_v41 }
 0x45b   :  { %9806 = vmatprep.subr.bf16.mxu0 %v18124_v45 }
 0x45c   :  { %9951 = vmatpush1.bf16.msra.mxu1 %v18113_v42  ;;  %v18175_v42 = vld [vmem:[#allocation2 + $0x27ac] ss:$112 sps:$4 sm:$0xff]  }
 0x45d   :  { %9952 = vmatprep.subr.bf16.mxu1 %v18121_v46 }
 0x45e   :  { %9807 = vmatpush1.bf16.msra.mxu0 %v18122_v47 }
 0x45f   :  { %9808 = vmatprep.subr.bf16.mxu0 %v18130_v49  ;;  %v18176_v49 = vld [vmem:[#allocation2 + $0x2f0] ss:$112 sps:$4 sm:$0xff]  }
 0x460   :  { %9953 = vmatpush1.bf16.msra.mxu1 %v18119_v48 }
 0x461   :  { %9954 = vmatprep.subr.bf16.mxu1 %v18127_v50  ;;  %v18173_v50 = vld [vmem:[#allocation2 + $0x27a8] ss:$112 sps:$4 sm:$0xff]  }
 0x462   :  { %9809 = vmatpush1.bf16.msra.mxu0 %v18128_v52 }
 0x463   :  { %9810 = vmatprep.subr.bf16.mxu0 %v18136_v55  ;;  %v18181_v55 = vld [vmem:[#allocation2 + $0x288c] ss:$112 sps:$4 sm:$0xff]  }
 0x464   :  { %9955 = vmatpush1.bf16.msra.mxu1 %v18125_v53  ;;  %v18184_v53 = vld [vmem:[#allocation2 + $0x3d4] ss:$112 sps:$4 sm:$0xff]  }
 0x465   :  { %9956 = vmatprep.subr.bf16.mxu1 %v18133_v56  ;;  %v18182_v56 = vld [vmem:[#allocation2 + $0x3d0] ss:$112 sps:$4 sm:$0xff]  }
 0x466   :  { %9811 = vmatpush1.bf16.msra.mxu0 %v18134_v59  ;;  %v18179_v59 = vld [vmem:[#allocation2 + $0x2888] ss:$112 sps:$4 sm:$0xff]  }
 0x467   :  { %9812 = vmatprep.subr.bf16.mxu0 %v18142_v1  ;;  %v18187_v1 = vld [vmem:[#allocation2 + $0x296c] ss:$112 sps:$4 sm:$0xff]  }
 0x468   :  { %9957 = vmatpush1.bf16.msra.mxu1 %v18131_v61  ;;  %v18190_v61 = vld [vmem:[#allocation2 + $0x4b4] ss:$112 sps:$4 sm:$0xff]  }
 0x469   :  { %9958 = vmatprep.subr.bf16.mxu1 %v18139_v3  ;;  %v18188_v3 = vld [vmem:[#allocation2 + $0x4b0] ss:$112 sps:$4 sm:$0xff]  }
 0x46a   :  { %9813 = vmatpush1.bf16.msra.mxu0 %v18140_v4  ;;  %v18185_v4 = vld [vmem:[#allocation2 + $0x2968] ss:$112 sps:$4 sm:$0xff]  }
 0x46b   :  { %9823 = vmatprep.subr.bf16.mxu0 %v18148_v6  ;;  %v18199_v6 = vld [vmem:[#allocation2 + $0x2a4c] ss:$112 sps:$4 sm:$0xff]  }
 0x46c   :  { %9959 = vmatpush1.bf16.msra.mxu1 %v18137_v5  ;;  %v18193_v5 = vld [vmem:[#allocation2 + $0x594] ss:$112 sps:$4 sm:$0xff]  }
 0x46d   :  { %9960 = vmatprep.subr.bf16.mxu1 %v18145_v7  ;;  %9815 = vmatmul.mubr.bf16.vlgmr.msra.gmra.mrb[16].mxu0 %v19207_v29  ;;  %v18191_v7 = vld [vmem:[#allocation2 + $0x590] ss:$112 sps:$4 sm:$0xff]  }
 0x46e   :  { %9824 = vmatpush1.bf16.msra.mxu0 %v18146_v8  ;;  %9855 = vmatprep.mubr.bf16.mxu0 %v18995_v0  ;;  %v18196_v8 = vld [vmem:[#allocation2 + $0x674] ss:$112 sps:$4 sm:$0xff]  }
 0x46f   :  { %10028 = vmatprep.subr.bf16.mxu0 %v18160_v12  ;;  %v18205_v12 = vld [vmem:[#allocation2 + $0x5c] ss:$112 sps:$4 sm:$0xff]  }
 0x470   :  { %9961 = vmatpush1.bf16.msra.mxu1 %v18143_v11  ;;  %v18197_v11 = vld [vmem:[#allocation2 + $0x2a48] ss:$112 sps:$4 sm:$0xff]  }
 0x471   :  { %9962 = vmatprep.subr.bf16.mxu1 %v18151_v13  ;;  %v18194_v13 = vld [vmem:[#allocation2 + $0x670] ss:$112 sps:$4 sm:$0xff]  }
 0x474   :  { %9963 = vmatpush1.bf16.msra.mxu1 %v18149_v14  ;;  %v18202_v14 = vld [vmem:[#allocation2 + $0x754] ss:$112 sps:$4 sm:$0xff]  }
 0x475   :  { %9964 = vmatprep.subr.bf16.mxu1 %v18154_v15  ;;  %v18200_v15 = vld [vmem:[#allocation2 + $0x750] ss:$112 sps:$4 sm:$0xff]  }
 0x478   :  { %9965 = vmatpush1.bf16.msra.mxu1 %v18152_v17  ;;  %v18208_v17 = vld [vmem:[#allocation2 + $0x834] ss:$112 sps:$4 sm:$0xff]  }
 0x479   :  { %9966 = vmatprep.subr.bf16.mxu1 %v18157_v20  ;;  %15914 = vmatmul.mubr.msk.bf16.vlgmr.msra.gmra.mrb[16].mxu0 %vm8384_vm0, %v19165_v10  ;;  %v18206_v20 = vld [vmem:[#allocation2 + $0x830] ss:$112 sps:$4 sm:$0xff]  }
 0x47a   :  { %10029 = vmatpush1.bf16.msra.mxu0 %v18158_v21  ;;  %10060 = vmatprep.mubr.bf16.mxu0 %v19172_v51  ;;  %v18203_v21 = vld [vmem:[#allocation2 + $0x58] ss:$112 sps:$4 sm:$0xff]  }
 0x47b   :  { %10030 = vmatprep.subr.bf16.mxu0 %v18166_v30  ;;  %v18211_v30 = vld [vmem:[#allocation2 + $0x13c] ss:$112 sps:$4 sm:$0xff]  }
 0x47c   :  { %9967 = vmatpush1.bf16.msra.mxu1 %v18155_v22  ;;  %v18214_v22 = vld [vmem:[#allocation2 + $0x914] ss:$112 sps:$4 sm:$0xff]  }
 0x47d   :  { %9968 = vmatprep.subr.bf16.mxu1 %v18163_v58  ;;  %v18212_v58 = vld [vmem:[#allocation2 + $0x910] ss:$112 sps:$4 sm:$0xff]  }
 0x47e   :  { %10031 = vmatpush1.bf16.msra.mxu0 %v18164_v32  ;;  %v18209_v32 = vld [vmem:[#allocation2 + $0x138] ss:$112 sps:$4 sm:$0xff]  }
 0x47f   :  { %10032 = vmatprep.subr.bf16.mxu0 %v18172_v34  ;;  %v18217_v34 = vld [vmem:[#allocation2 + $0x21c] ss:$112 sps:$4 sm:$0xff]  }
 0x480   :  { %9969 = vmatpush1.bf16.msra.mxu1 %v18161_v60  ;;  %v19329_v41 = vpop.f32.mrb[12].mxu0  ;;  %v18220_v60 = vld [vmem:[#allocation2 + $0x9f4] ss:$112 sps:$4 sm:$0xff]  }
 0x481   :  { %9970 = vmatprep.subr.bf16.mxu1 %v18169_v57  ;;  %v10689_v45 = vmax.f32 %v19269_v19, %v19329_v41  ;;  %v19333_v46 = vpop.f32.mrb[13].mxu0  ;;  %v18218_v57 = vld [vmem:[#allocation2 + $0x9f0] ss:$112 sps:$4 sm:$0xff]  }
 0x482   :  { %10033 = vmatpush1.bf16.msra.mxu0 %v18170_v38  ;;  %v10690_v47 = vmax.f32 %v19276_v62, %v19333_v46  ;;  %v9533_v48 = vpop.f32.mrb[14].mxu0  ;;  %v18215_v38 = vld [vmem:[#allocation2 + $0x218] ss:$112 sps:$4 sm:$0xff]   ;;  %v11104_v19 = vld [vmem:[#allocation6 + $0xaa8] sm:$0xff] }
 0x483   :  { %v9534_v52 = vpop.f32.mrb[15].mxu0  ;;  %10034 = vmatprep.subr.bf16.mxu0 %v18178_v40  ;;  %v18223_v40 = vld [vmem:[#allocation2 + $0x2fc] ss:$112 sps:$4 sm:$0xff]  }
 0x484   :  { %9971 = vmatpush1.bf16.msra.mxu1 %v18167_v39  ;;  %v18226_v39 = vld [vmem:[#allocation2 + $0xad4] ss:$112 sps:$4 sm:$0xff]   ;;  %v18221_v52 = vld [vmem:[#allocation2 + $0x2f8] ss:$112 sps:$4 sm:$0xff]  }
 0x485   :  { %9972 = vmatprep.subr.bf16.mxu1 %v18175_v42 }
 0x486   :  { %10035 = vmatpush1.bf16.msra.mxu0 %v18176_v49  ;;  %v18224_v49 = vld [vmem:[#allocation2 + $0xad0] ss:$112 sps:$4 sm:$0xff]  }
 0x487   :  { %10036 = vmatprep.subr.bf16.mxu0 %v18184_v53  ;;  %v18232_v53 = vld [vmem:[#allocation2 + $0xbb4] ss:$112 sps:$4 sm:$0xff]  }
 0x488   :  { %9973 = vmatpush1.bf16.msra.mxu1 %v18173_v50 }
 0x489   :  { %9974 = vmatprep.subr.bf16.mxu1 %v18181_v55 }
 0x48a   :  { %10037 = vmatpush1.bf16.msra.mxu0 %v18182_v56  ;;  %v18229_v56 = vld [vmem:[#allocation2 + $0x3dc] ss:$112 sps:$4 sm:$0xff]  }
 0x48b   :  { %10038 = vmatprep.subr.bf16.mxu0 %v18190_v61  ;;  %v18227_v61 = vld [vmem:[#allocation2 + $0x3d8] ss:$112 sps:$4 sm:$0xff]  }
 0x48c   :  { %9975 = vmatpush1.bf16.msra.mxu1 %v18179_v59  ;;  %v18230_v59 = vld [vmem:[#allocation2 + $0xbb0] ss:$112 sps:$4 sm:$0xff]  }
 0x48d   :  { %9976 = vmatprep.subr.bf16.mxu1 %v18187_v1  ;;  %v18238_v1 = vld [vmem:[#allocation2 + $0xc94] ss:$112 sps:$4 sm:$0xff]  }
 0x48e   :  { %10039 = vmatpush1.bf16.msra.mxu0 %v18188_v3  ;;  %v18235_v3 = vld [vmem:[#allocation2 + $0x4bc] ss:$112 sps:$4 sm:$0xff]  }
 0x48f   :  { %10040 = vmatprep.subr.bf16.mxu0 %v18193_v5  ;;  %v18233_v5 = vld [vmem:[#allocation2 + $0x4b8] ss:$112 sps:$4 sm:$0xff]  }
 0x490   :  { %9977 = vmatpush1.bf16.msra.mxu1 %v18185_v4  ;;  %v18236_v4 = vld [vmem:[#allocation2 + $0xc90] ss:$112 sps:$4 sm:$0xff]  }
 0x491   :  { %9987 = vmatprep.subr.bf16.mxu1 %v18199_v6  ;;  %v18244_v6 = vld [vmem:[#allocation2 + $0xd74] ss:$112 sps:$4 sm:$0xff]  }
 0x492   :  { %10041 = vmatpush1.bf16.msra.mxu0 %v18191_v7  ;;  %v18241_v7 = vld [vmem:[#allocation2 + $0x59c] ss:$112 sps:$4 sm:$0xff]  }
 0x493   :  { %9979 = vmatmul.mubr.bf16.vlgmr.msra.gmra.mrb[24].mxu1 %v19207_v29  ;;  %10042 = vmatprep.subr.bf16.mxu0 %v18196_v8  ;;  %v18242_v8 = vld [vmem:[#allocation2 + $0xd70] ss:$112 sps:$4 sm:$0xff]  }
 0x494   :  { %9988 = vmatpush1.bf16.msra.mxu1 %v18197_v11  ;;  %10019 = vmatprep.mubr.bf16.mxu1 %v18995_v0  ;;  %v18239_v11 = vld [vmem:[#allocation2 + $0x598] ss:$112 sps:$4 sm:$0xff]  }
 0x495   :  { %10192 = vmatprep.subr.bf16.mxu1 %v18205_v12  ;;  %v18250_v12 = vld [vmem:[#allocation2 + $0xe54] ss:$112 sps:$4 sm:$0xff]  }
 0x496   :  { %10043 = vmatpush1.bf16.msra.mxu0 %v18194_v13  ;;  %v18247_v13 = vld [vmem:[#allocation2 + $0x67c] ss:$112 sps:$4 sm:$0xff]  }
 0x497   :  { %10044 = vmatprep.subr.bf16.mxu0 %v18202_v14  ;;  %v18248_v14 = vld [vmem:[#allocation2 + $0xe50] ss:$112 sps:$4 sm:$0xff]  }
 0x49a   :  { %10045 = vmatpush1.bf16.msra.mxu0 %v18200_v15  ;;  %v18245_v15 = vld [vmem:[#allocation2 + $0x678] ss:$112 sps:$4 sm:$0xff]  }
 0x49b   :  { %10046 = vmatprep.subr.bf16.mxu0 %v18208_v17  ;;  %v18256_v17 = vld [vmem:[#allocation2 + $0xf34] ss:$112 sps:$4 sm:$0xff]  }
 0x49e   :  { %10047 = vmatpush1.bf16.msra.mxu0 %v18206_v20  ;;  %v18253_v20 = vld [vmem:[#allocation2 + $0x75c] ss:$112 sps:$4 sm:$0xff]  }
 0x49f   :  { %15915 = vmatmul.mubr.msk.bf16.vlgmr.msra.gmra.mrb[24].mxu1 %vm8384_vm0, %v19165_v10  ;;  %10048 = vmatprep.subr.bf16.mxu0 %v18214_v22  ;;  %v18251_v22 = vld [vmem:[#allocation2 + $0x758] ss:$112 sps:$4 sm:$0xff]  }
 0x4a0   :  { %10193 = vmatpush1.bf16.msra.mxu1 %v18203_v21  ;;  %10224 = vmatprep.mubr.bf16.mxu1 %v19172_v51  ;;  %v18254_v21 = vld [vmem:[#allocation2 + $0xf30] ss:$112 sps:$4 sm:$0xff]  }
 0x4a1   :  { %10194 = vmatprep.subr.bf16.mxu1 %v18211_v30  ;;  %v18262_v30 = vld [vmem:[#allocation2 + $0x1014] ss:$112 sps:$4 sm:$0xff]  }
 0x4a2   :  { %10049 = vmatpush1.bf16.msra.mxu0 %v18212_v58  ;;  %v18259_v58 = vld [vmem:[#allocation2 + $0x83c] ss:$112 sps:$4 sm:$0xff]  }
 0x4a3   :  { %10050 = vmatprep.subr.bf16.mxu0 %v18220_v60  ;;  %v18257_v60 = vld [vmem:[#allocation2 + $0x838] ss:$112 sps:$4 sm:$0xff]  }
 0x4a4   :  { %10195 = vmatpush1.bf16.msra.mxu1 %v18209_v32  ;;  %v18260_v32 = vld [vmem:[#allocation2 + $0x1010] ss:$112 sps:$4 sm:$0xff]  }
 0x4a5   :  { %10196 = vmatprep.subr.bf16.mxu1 %v18217_v34  ;;  %v18268_v34 = vld [vmem:[#allocation2 + $0x10f4] ss:$112 sps:$4 sm:$0xff]  }
 0x4a6   :  { %v19342_v42 = vpop.f32.mrb[20].mxu1  ;;  %10051 = vmatpush1.bf16.msra.mxu0 %v18218_v57  ;;  %v18265_v57 = vld [vmem:[#allocation2 + $0x91c] ss:$112 sps:$4 sm:$0xff]  }
 0x4a7   :  { %v19344_v48 = vpop.f32.mrb[21].mxu1  ;;  %10052 = vmatprep.subr.bf16.mxu0 %v18226_v39  ;;  %v18263_v39 = vld [vmem:[#allocation2 + $0x918] ss:$112 sps:$4 sm:$0xff]  }
 0x4a8   :  { %10197 = vmatpush1.bf16.msra.mxu1 %v18215_v38  ;;  %v9697_v50 = vpop.f32.mrb[22].mxu1  ;;  %v18266_v38 = vld [vmem:[#allocation2 + $0x10f0] ss:$112 sps:$4 sm:$0xff]  }
 0x4a9   :  { %v9698_v55 = vpop.f32.mrb[23].mxu1  ;;  %10198 = vmatprep.subr.bf16.mxu1 %v18223_v40  ;;  %v18274_v40 = vld [vmem:[#allocation2 + $0x11d4] ss:$112 sps:$4 sm:$0xff]   ;;  %v18272_v50 = vld [vmem:[#allocation2 + $0x11d0] ss:$112 sps:$4 sm:$0xff]  }
 0x4aa   :  { %10053 = vmatpush1.bf16.msra.mxu0 %v18224_v49  ;;  %v18271_v49 = vld [vmem:[#allocation2 + $0x9fc] ss:$112 sps:$4 sm:$0xff]  }
 0x4ab   :  { %10054 = vmatprep.subr.bf16.mxu0 %v18232_v53  ;;  %v18280_v53 = vld [vmem:[#allocation2 + $0x12b4] ss:$112 sps:$4 sm:$0xff]   ;;  %v18277_v55 = vld [vmem:[#allocation2 + $0xadc] ss:$112 sps:$4 sm:$0xff]  }
 0x4ac   :  { %10199 = vmatpush1.bf16.msra.mxu1 %v18221_v52  ;;  %v18269_v52 = vld [vmem:[#allocation2 + $0x9f8] ss:$112 sps:$4 sm:$0xff]  }
 0x4ad   :  { %10200 = vmatprep.subr.bf16.mxu1 %v18229_v56  ;;  %v18278_v56 = vld [vmem:[#allocation2 + $0x12b0] ss:$112 sps:$4 sm:$0xff]  }
 0x4ae   :  { %10055 = vmatpush1.bf16.msra.mxu0 %v18230_v59  ;;  %v18275_v59 = vld [vmem:[#allocation2 + $0xad8] ss:$112 sps:$4 sm:$0xff]  }
 0x4af   :  { %10056 = vmatprep.subr.bf16.mxu0 %v18238_v1  ;;  %v18283_v1 = vld [vmem:[#allocation2 + $0xbbc] ss:$112 sps:$4 sm:$0xff]  }
 0x4b0   :  { %10201 = vmatpush1.bf16.msra.mxu1 %v18227_v61  ;;  %v18286_v61 = vld [vmem:[#allocation2 + $0x1394] ss:$112 sps:$4 sm:$0xff]  }
 0x4b1   :  { %10202 = vmatprep.subr.bf16.mxu1 %v18235_v3  ;;  %v18284_v3 = vld [vmem:[#allocation2 + $0x1390] ss:$112 sps:$4 sm:$0xff]  }
 0x4b2   :  { %10057 = vmatpush1.bf16.msra.mxu0 %v18236_v4  ;;  %v18281_v4 = vld [vmem:[#allocation2 + $0xbb8] ss:$112 sps:$4 sm:$0xff]  }
 0x4b3   :  { %10058 = vmatprep.subr.bf16.mxu0 %v18244_v6  ;;  %v18289_v6 = vld [vmem:[#allocation2 + $0xc9c] ss:$112 sps:$4 sm:$0xff]  }
 0x4b4   :  { %10203 = vmatpush1.bf16.msra.mxu1 %v18233_v5  ;;  %v18292_v5 = vld [vmem:[#allocation2 + $0x1474] ss:$112 sps:$4 sm:$0xff]  }
 0x4b5   :  { %10204 = vmatprep.subr.bf16.mxu1 %v18241_v7  ;;  %v18290_v7 = vld [vmem:[#allocation2 + $0x1470] ss:$112 sps:$4 sm:$0xff]  }
 0x4b6   :  { %10059 = vmatpush1.bf16.msra.mxu0 %v18242_v8  ;;  %v18287_v8 = vld [vmem:[#allocation2 + $0xc98] ss:$112 sps:$4 sm:$0xff]  }
 0x4b7   :  { %10069 = vmatprep.subr.bf16.mxu0 %v18250_v12  ;;  %v18295_v12 = vld [vmem:[#allocation2 + $0xd7c] ss:$112 sps:$4 sm:$0xff]  }
 0x4b8   :  { %10205 = vmatpush1.bf16.msra.mxu1 %v18239_v11  ;;  %v18298_v11 = vld [vmem:[#allocation2 + $0x1554] ss:$112 sps:$4 sm:$0xff]  }
 0x4b9   :  { %10206 = vmatprep.subr.bf16.mxu1 %v18247_v13  ;;  %10061 = vmatmul.mubr.bf16.vlgmr.msra.gmra.mrb[20].mxu0 %v19179_v9  ;;  %v18296_v13 = vld [vmem:[#allocation2 + $0x1550] ss:$112 sps:$4 sm:$0xff]  }
 0x4ba   :  { %10070 = vmatpush1.bf16.msra.mxu0 %v18248_v14  ;;  %10101 = vmatprep.mubr.bf16.mxu0 %v19186_v36  ;;  %v18293_v14 = vld [vmem:[#allocation2 + $0xd78] ss:$112 sps:$4 sm:$0xff]  }
 0x4bb   :  { %10071 = vmatprep.subr.bf16.mxu0 %v18256_v17  ;;  %v18301_v17 = vld [vmem:[#allocation2 + $0xe5c] ss:$112 sps:$4 sm:$0xff]  }
 0x4bc   :  { %10207 = vmatpush1.bf16.msra.mxu1 %v18245_v15  ;;  %v18304_v15 = vld [vmem:[#allocation2 + $0x1634] ss:$112 sps:$4 sm:$0xff]  }
 0x4bd   :  { %10208 = vmatprep.subr.bf16.mxu1 %v18253_v20  ;;  %v18302_v20 = vld [vmem:[#allocation2 + $0x1630] ss:$112 sps:$4 sm:$0xff]  }
 0x4be   :  { %10072 = vmatpush1.bf16.msra.mxu0 %v18254_v21  ;;  %v18299_v21 = vld [vmem:[#allocation2 + $0xe58] ss:$112 sps:$4 sm:$0xff]  }
 0x4bf   :  { %10073 = vmatprep.subr.bf16.mxu0 %v18262_v30  ;;  %v18307_v30 = vld [vmem:[#allocation2 + $0xf3c] ss:$112 sps:$4 sm:$0xff]  }
 0x4c0   :  { %10209 = vmatpush1.bf16.msra.mxu1 %v18251_v22  ;;  %v18310_v22 = vld [vmem:[#allocation2 + $0x1714] ss:$112 sps:$4 sm:$0xff]  }
 0x4c1   :  { %10210 = vmatprep.subr.bf16.mxu1 %v18259_v58  ;;  %v18308_v58 = vld [vmem:[#allocation2 + $0x1710] ss:$112 sps:$4 sm:$0xff]  }
 0x4c2   :  { %10074 = vmatpush1.bf16.msra.mxu0 %v18260_v32  ;;  %v18305_v32 = vld [vmem:[#allocation2 + $0xf38] ss:$112 sps:$4 sm:$0xff]  }
 0x4c3   :  { %10075 = vmatprep.subr.bf16.mxu0 %v18268_v34  ;;  %v18313_v34 = vld [vmem:[#allocation2 + $0x101c] ss:$112 sps:$4 sm:$0xff]  }
 0x4c4   :  { %10211 = vmatpush1.bf16.msra.mxu1 %v18257_v60  ;;  %v18316_v60 = vld [vmem:[#allocation2 + $0x17f4] ss:$112 sps:$4 sm:$0xff]  }
 0x4c5   :  { %10212 = vmatprep.subr.bf16.mxu1 %v18265_v57  ;;  %v18314_v57 = vld [vmem:[#allocation2 + $0x17f0] ss:$112 sps:$4 sm:$0xff]  }
 0x4c6   :  { %10076 = vmatpush1.bf16.msra.mxu0 %v18266_v38  ;;  %v18311_v38 = vld [vmem:[#allocation2 + $0x1018] ss:$112 sps:$4 sm:$0xff]  }
 0x4c7   :  { %10077 = vmatprep.subr.bf16.mxu0 %v18274_v40  ;;  %v18319_v40 = vld [vmem:[#allocation2 + $0x10fc] ss:$112 sps:$4 sm:$0xff]  }
 0x4c8   :  { %10213 = vmatpush1.bf16.msra.mxu1 %v18263_v39  ;;  %v18322_v39 = vld [vmem:[#allocation2 + $0x18d4] ss:$112 sps:$4 sm:$0xff]  }
 0x4c9   :  { %10214 = vmatprep.subr.bf16.mxu1 %v18271_v49  ;;  %v18320_v49 = vld [vmem:[#allocation2 + $0x18d0] ss:$112 sps:$4 sm:$0xff]  }
 0x4ca   :  { %10078 = vmatpush1.bf16.msra.mxu0 %v18272_v50  ;;  %v18317_v50 = vld [vmem:[#allocation2 + $0x10f8] ss:$112 sps:$4 sm:$0xff]  }
 0x4cb   :  { %10079 = vmatprep.subr.bf16.mxu0 %v18280_v53  ;;  %v18325_v53 = vld [vmem:[#allocation2 + $0x11dc] ss:$112 sps:$4 sm:$0xff]  }
 0x4cc   :  { %10215 = vmatpush1.bf16.msra.mxu1 %v18269_v52  ;;  %v18328_v52 = vld [vmem:[#allocation2 + $0x19b4] ss:$112 sps:$4 sm:$0xff]  }
 0x4cd   :  { %10216 = vmatprep.subr.bf16.mxu1 %v18277_v55  ;;  %v18326_v55 = vld [vmem:[#allocation2 + $0x19b0] ss:$112 sps:$4 sm:$0xff]  }
 0x4ce   :  { %10080 = vmatpush1.bf16.msra.mxu0 %v18278_v56  ;;  %v18323_v56 = vld [vmem:[#allocation2 + $0x11d8] ss:$112 sps:$4 sm:$0xff]  }
 0x4cf   :  { %10081 = vmatprep.subr.bf16.mxu0 %v18286_v61  ;;  %v18331_v61 = vld [vmem:[#allocation2 + $0x12bc] ss:$112 sps:$4 sm:$0xff]  }
 0x4d0   :  { %10217 = vmatpush1.bf16.msra.mxu1 %v18275_v59  ;;  %v18334_v59 = vld [vmem:[#allocation2 + $0x1a94] ss:$112 sps:$4 sm:$0xff]  }
 0x4d1   :  { %10218 = vmatprep.subr.bf16.mxu1 %v18283_v1  ;;  %v18332_v1 = vld [vmem:[#allocation2 + $0x1a90] ss:$112 sps:$4 sm:$0xff]  }
 0x4d2   :  { %10082 = vmatpush1.bf16.msra.mxu0 %v18284_v3  ;;  %v18329_v3 = vld [vmem:[#allocation2 + $0x12b8] ss:$112 sps:$4 sm:$0xff]  }
 0x4d3   :  { %10083 = vmatprep.subr.bf16.mxu0 %v18292_v5  ;;  %v18337_v5 = vld [vmem:[#allocation2 + $0x139c] ss:$112 sps:$4 sm:$0xff]  }
 0x4d4   :  { %10219 = vmatpush1.bf16.msra.mxu1 %v18281_v4  ;;  %v18340_v4 = vld [vmem:[#allocation2 + $0x1b74] ss:$112 sps:$4 sm:$0xff]  }
 0x4d5   :  { %10220 = vmatprep.subr.bf16.mxu1 %v18289_v6  ;;  %v18338_v6 = vld [vmem:[#allocation2 + $0x1b70] ss:$112 sps:$4 sm:$0xff]  }
 0x4d6   :  { %10084 = vmatpush1.bf16.msra.mxu0 %v18290_v7  ;;  %v18335_v7 = vld [vmem:[#allocation2 + $0x1398] ss:$112 sps:$4 sm:$0xff]  }
 0x4d7   :  { %10085 = vmatprep.subr.bf16.mxu0 %v18298_v11  ;;  %v18343_v11 = vld [vmem:[#allocation2 + $0x147c] ss:$112 sps:$4 sm:$0xff]  }
 0x4d8   :  { %10221 = vmatpush1.bf16.msra.mxu1 %v18287_v8  ;;  %v18346_v8 = vld [vmem:[#allocation2 + $0x1c54] ss:$112 sps:$4 sm:$0xff]  }
 0x4d9   :  { %10222 = vmatprep.subr.bf16.mxu1 %v18295_v12  ;;  %v18344_v12 = vld [vmem:[#allocation2 + $0x1c50] ss:$112 sps:$4 sm:$0xff]  }
 0x4da   :  { %10086 = vmatpush1.bf16.msra.mxu0 %v18296_v13  ;;  %v18341_v13 = vld [vmem:[#allocation2 + $0x1478] ss:$112 sps:$4 sm:$0xff]  }
 0x4db   :  { %10087 = vmatprep.subr.bf16.mxu0 %v18304_v15  ;;  %v18349_v15 = vld [vmem:[#allocation2 + $0x155c] ss:$112 sps:$4 sm:$0xff]  }
 0x4dc   :  { %10223 = vmatpush1.bf16.msra.mxu1 %v18293_v14  ;;  %v18352_v14 = vld [vmem:[#allocation2 + $0x1d34] ss:$112 sps:$4 sm:$0xff]  }
 0x4dd   :  { %10233 = vmatprep.subr.bf16.mxu1 %v18301_v17  ;;  %v18350_v17 = vld [vmem:[#allocation2 + $0x1d30] ss:$112 sps:$4 sm:$0xff]  }
 0x4de   :  { %10088 = vmatpush1.bf16.msra.mxu0 %v18302_v20  ;;  %v18347_v20 = vld [vmem:[#allocation2 + $0x1558] ss:$112 sps:$4 sm:$0xff]  }
 0x4df   :  { %10225 = vmatmul.mubr.bf16.vlgmr.msra.gmra.mrb[28].mxu1 %v19179_v9  ;;  %10089 = vmatprep.subr.bf16.mxu0 %v18310_v22  ;;  %v18355_v22 = vld [vmem:[#allocation2 + $0x163c] ss:$112 sps:$4 sm:$0xff]  }
 0x4e0   :  { %10234 = vmatpush1.bf16.msra.mxu1 %v18299_v21  ;;  %10265 = vmatprep.mubr.bf16.mxu1 %v19186_v36  ;;  %v18358_v21 = vld [vmem:[#allocation2 + $0x1e14] ss:$112 sps:$4 sm:$0xff]  }
 0x4e1   :  { %10235 = vmatprep.subr.bf16.mxu1 %v18307_v30  ;;  %v18356_v30 = vld [vmem:[#allocation2 + $0x1e10] ss:$112 sps:$4 sm:$0xff]  }
 0x4e2   :  { %10090 = vmatpush1.bf16.msra.mxu0 %v18308_v58  ;;  %v18353_v58 = vld [vmem:[#allocation2 + $0x1638] ss:$112 sps:$4 sm:$0xff]  }
 0x4e3   :  { %10091 = vmatprep.subr.bf16.mxu0 %v18316_v60  ;;  %v18361_v60 = vld [vmem:[#allocation2 + $0x171c] ss:$112 sps:$4 sm:$0xff]  }
 0x4e4   :  { %10236 = vmatpush1.bf16.msra.mxu1 %v18305_v32  ;;  %v18364_v32 = vld [vmem:[#allocation2 + $0x1ef4] ss:$112 sps:$4 sm:$0xff]  }
 0x4e5   :  { %10237 = vmatprep.subr.bf16.mxu1 %v18313_v34  ;;  %v18362_v34 = vld [vmem:[#allocation2 + $0x1ef0] ss:$112 sps:$4 sm:$0xff]  }
 0x4e6   :  { %10092 = vmatpush1.bf16.msra.mxu0 %v18314_v57  ;;  %v18359_v57 = vld [vmem:[#allocation2 + $0x1718] ss:$112 sps:$4 sm:$0xff]  }
 0x4e7   :  { %10093 = vmatprep.subr.bf16.mxu0 %v18322_v39  ;;  %v18367_v39 = vld [vmem:[#allocation2 + $0x17fc] ss:$112 sps:$4 sm:$0xff]  }
 0x4e8   :  { %10238 = vmatpush1.bf16.msra.mxu1 %v18311_v38  ;;  %v18370_v38 = vld [vmem:[#allocation2 + $0x1fd4] ss:$112 sps:$4 sm:$0xff]  }
 0x4e9   :  { %10239 = vmatprep.subr.bf16.mxu1 %v18319_v40  ;;  %v18368_v40 = vld [vmem:[#allocation2 + $0x1fd0] ss:$112 sps:$4 sm:$0xff]  }
 0x4ea   :  { %10094 = vmatpush1.bf16.msra.mxu0 %v18320_v49  ;;  %v18365_v49 = vld [vmem:[#allocation2 + $0x17f8] ss:$112 sps:$4 sm:$0xff]  }
 0x4eb   :  { %10095 = vmatprep.subr.bf16.mxu0 %v18328_v52  ;;  %v18373_v52 = vld [vmem:[#allocation2 + $0x18dc] ss:$112 sps:$4 sm:$0xff]  }
 0x4ec   :  { %10240 = vmatpush1.bf16.msra.mxu1 %v18317_v50  ;;  %v18376_v50 = vld [vmem:[#allocation2 + $0x20b4] ss:$112 sps:$4 sm:$0xff]  }
 0x4ed   :  { %10241 = vmatprep.subr.bf16.mxu1 %v18325_v53  ;;  %v18374_v53 = vld [vmem:[#allocation2 + $0x20b0] ss:$112 sps:$4 sm:$0xff]  }
 0x4ee   :  { %10096 = vmatpush1.bf16.msra.mxu0 %v18326_v55  ;;  %v18371_v55 = vld [vmem:[#allocation2 + $0x18d8] ss:$112 sps:$4 sm:$0xff]  }
 0x4ef   :  { %10097 = vmatprep.subr.bf16.mxu0 %v18334_v59  ;;  %v18379_v59 = vld [vmem:[#allocation2 + $0x19bc] ss:$112 sps:$4 sm:$0xff]  }
 0x4f0   :  { %10242 = vmatpush1.bf16.msra.mxu1 %v18323_v56  ;;  %v18382_v56 = vld [vmem:[#allocation2 + $0x2194] ss:$112 sps:$4 sm:$0xff]  }
 0x4f1   :  { %10243 = vmatprep.subr.bf16.mxu1 %v18331_v61  ;;  %v18380_v61 = vld [vmem:[#allocation2 + $0x2190] ss:$112 sps:$4 sm:$0xff]  }
 0x4f2   :  { %10098 = vmatpush1.bf16.msra.mxu0 %v18332_v1  ;;  %v18377_v1 = vld [vmem:[#allocation2 + $0x19b8] ss:$112 sps:$4 sm:$0xff]  }
 0x4f3   :  { %10099 = vmatprep.subr.bf16.mxu0 %v18340_v4  ;;  %v18385_v4 = vld [vmem:[#allocation2 + $0x1a9c] ss:$112 sps:$4 sm:$0xff]  }
 0x4f4   :  { %10244 = vmatpush1.bf16.msra.mxu1 %v18329_v3  ;;  %v18388_v3 = vld [vmem:[#allocation2 + $0x2274] ss:$112 sps:$4 sm:$0xff]  }
 0x4f5   :  { %10245 = vmatprep.subr.bf16.mxu1 %v18337_v5  ;;  %v18386_v5 = vld [vmem:[#allocation2 + $0x2270] ss:$112 sps:$4 sm:$0xff]  }
 0x4f6   :  { %10100 = vmatpush1.bf16.msra.mxu0 %v18338_v6  ;;  %v18383_v6 = vld [vmem:[#allocation2 + $0x1a98] ss:$112 sps:$4 sm:$0xff]  }
 0x4f7   :  { %10110 = vmatprep.subr.bf16.mxu0 %v18346_v8  ;;  %v18391_v8 = vld [vmem:[#allocation2 + $0x1b7c] ss:$112 sps:$4 sm:$0xff]  }
 0x4f8   :  { %10246 = vmatpush1.bf16.msra.mxu1 %v18335_v7  ;;  %v18394_v7 = vld [vmem:[#allocation2 + $0x2354] ss:$112 sps:$4 sm:$0xff]  }
 0x4f9   :  { %10247 = vmatprep.subr.bf16.mxu1 %v18343_v11  ;;  %10102 = vmatmul.mubr.bf16.vlgmr.msra.gmra.mrb[20].mxu0 %v19193_v18  ;;  %v18392_v11 = vld [vmem:[#allocation2 + $0x2350] ss:$112 sps:$4 sm:$0xff]  }
 0x4fa   :  { %10111 = vmatpush1.bf16.msra.mxu0 %v18344_v12  ;;  %10142 = vmatprep.mubr.bf16.mxu0 %v19198_v24  ;;  %v18389_v12 = vld [vmem:[#allocation2 + $0x1b78] ss:$112 sps:$4 sm:$0xff]  }
 0x4fb   :  { %10112 = vmatprep.subr.bf16.mxu0 %v18352_v14  ;;  %v18397_v14 = vld [vmem:[#allocation2 + $0x1c5c] ss:$112 sps:$4 sm:$0xff]  }
 0x4fc   :  { %10248 = vmatpush1.bf16.msra.mxu1 %v18341_v13  ;;  %v18400_v13 = vld [vmem:[#allocation2 + $0x2434] ss:$112 sps:$4 sm:$0xff]  }
 0x4fd   :  { %10249 = vmatprep.subr.bf16.mxu1 %v18349_v15  ;;  %v18398_v15 = vld [vmem:[#allocation2 + $0x2430] ss:$112 sps:$4 sm:$0xff]  }
 0x4fe   :  { %10113 = vmatpush1.bf16.msra.mxu0 %v18350_v17  ;;  %v18395_v17 = vld [vmem:[#allocation2 + $0x1c58] ss:$112 sps:$4 sm:$0xff]  }
 0x4ff   :  { %10114 = vmatprep.subr.bf16.mxu0 %v18358_v21  ;;  %v18403_v21 = vld [vmem:[#allocation2 + $0x1d3c] ss:$112 sps:$4 sm:$0xff]  }
 0x500   :  { %10250 = vmatpush1.bf16.msra.mxu1 %v18347_v20  ;;  %v18406_v20 = vld [vmem:[#allocation2 + $0x2514] ss:$112 sps:$4 sm:$0xff]  }
 0x501   :  { %10251 = vmatprep.subr.bf16.mxu1 %v18355_v22  ;;  %v18404_v22 = vld [vmem:[#allocation2 + $0x2510] ss:$112 sps:$4 sm:$0xff]  }
 0x502   :  { %10115 = vmatpush1.bf16.msra.mxu0 %v18356_v30  ;;  %v18401_v30 = vld [vmem:[#allocation2 + $0x1d38] ss:$112 sps:$4 sm:$0xff]  }
 0x503   :  { %10116 = vmatprep.subr.bf16.mxu0 %v18364_v32  ;;  %v18409_v32 = vld [vmem:[#allocation2 + $0x1e1c] ss:$112 sps:$4 sm:$0xff]  }
 0x504   :  { %10252 = vmatpush1.bf16.msra.mxu1 %v18353_v58  ;;  %v18412_v58 = vld [vmem:[#allocation2 + $0x25f4] ss:$112 sps:$4 sm:$0xff]  }
 0x505   :  { %10253 = vmatprep.subr.bf16.mxu1 %v18361_v60  ;;  %v18410_v60 = vld [vmem:[#allocation2 + $0x25f0] ss:$112 sps:$4 sm:$0xff]  }
 0x506   :  { %10117 = vmatpush1.bf16.msra.mxu0 %v18362_v34  ;;  %v18407_v34 = vld [vmem:[#allocation2 + $0x1e18] ss:$112 sps:$4 sm:$0xff]  }
 0x507   :  { %10118 = vmatprep.subr.bf16.mxu0 %v18370_v38  ;;  %v18415_v38 = vld [vmem:[#allocation2 + $0x1efc] ss:$112 sps:$4 sm:$0xff]  }
 0x508   :  { %10254 = vmatpush1.bf16.msra.mxu1 %v18359_v57  ;;  %v18418_v57 = vld [vmem:[#allocation2 + $0x26d4] ss:$112 sps:$4 sm:$0xff]  }
 0x509   :  { %10255 = vmatprep.subr.bf16.mxu1 %v18367_v39  ;;  %v18416_v39 = vld [vmem:[#allocation2 + $0x26d0] ss:$112 sps:$4 sm:$0xff]  }
 0x50a   :  { %10119 = vmatpush1.bf16.msra.mxu0 %v18368_v40  ;;  %v18413_v40 = vld [vmem:[#allocation2 + $0x1ef8] ss:$112 sps:$4 sm:$0xff]  }
 0x50b   :  { %10120 = vmatprep.subr.bf16.mxu0 %v18376_v50  ;;  %v18421_v50 = vld [vmem:[#allocation2 + $0x1fdc] ss:$112 sps:$4 sm:$0xff]  }
 0x50c   :  { %10256 = vmatpush1.bf16.msra.mxu1 %v18365_v49  ;;  %v18424_v49 = vld [vmem:[#allocation2 + $0x27b4] ss:$112 sps:$4 sm:$0xff]  }
 0x50d   :  { %10257 = vmatprep.subr.bf16.mxu1 %v18373_v52  ;;  %v18422_v52 = vld [vmem:[#allocation2 + $0x27b0] ss:$112 sps:$4 sm:$0xff]  }
 0x50e   :  { %10121 = vmatpush1.bf16.msra.mxu0 %v18374_v53  ;;  %v18419_v53 = vld [vmem:[#allocation2 + $0x1fd8] ss:$112 sps:$4 sm:$0xff]  }
 0x50f   :  { %10122 = vmatprep.subr.bf16.mxu0 %v18382_v56  ;;  %v18427_v56 = vld [vmem:[#allocation2 + $0x20bc] ss:$112 sps:$4 sm:$0xff]  }
 0x510   :  { %10258 = vmatpush1.bf16.msra.mxu1 %v18371_v55  ;;  %v18430_v55 = vld [vmem:[#allocation2 + $0x2894] ss:$112 sps:$4 sm:$0xff]  }
 0x511   :  { %10259 = vmatprep.subr.bf16.mxu1 %v18379_v59  ;;  %v18428_v59 = vld [vmem:[#allocation2 + $0x2890] ss:$112 sps:$4 sm:$0xff]  }
 0x512   :  { %10123 = vmatpush1.bf16.msra.mxu0 %v18380_v61  ;;  %v18425_v61 = vld [vmem:[#allocation2 + $0x20b8] ss:$112 sps:$4 sm:$0xff]  }
 0x513   :  { %10124 = vmatprep.subr.bf16.mxu0 %v18388_v3  ;;  %v18433_v3 = vld [vmem:[#allocation2 + $0x219c] ss:$112 sps:$4 sm:$0xff]  }
 0x514   :  { %10260 = vmatpush1.bf16.msra.mxu1 %v18377_v1  ;;  %v18436_v1 = vld [vmem:[#allocation2 + $0x2974] ss:$112 sps:$4 sm:$0xff]  }
 0x515   :  { %10261 = vmatprep.subr.bf16.mxu1 %v18385_v4  ;;  %v18434_v4 = vld [vmem:[#allocation2 + $0x2970] ss:$112 sps:$4 sm:$0xff]  }
 0x516   :  { %10125 = vmatpush1.bf16.msra.mxu0 %v18386_v5  ;;  %v18431_v5 = vld [vmem:[#allocation2 + $0x2198] ss:$112 sps:$4 sm:$0xff]  }
 0x517   :  { %10126 = vmatprep.subr.bf16.mxu0 %v18394_v7  ;;  %v18439_v7 = vld [vmem:[#allocation2 + $0x227c] ss:$112 sps:$4 sm:$0xff]  }
 0x518   :  { %10262 = vmatpush1.bf16.msra.mxu1 %v18383_v6  ;;  %v18442_v6 = vld [vmem:[#allocation2 + $0x2a54] ss:$112 sps:$4 sm:$0xff]  }
 0x519   :  { %10263 = vmatprep.subr.bf16.mxu1 %v18391_v8  ;;  %v18440_v8 = vld [vmem:[#allocation2 + $0x2a50] ss:$112 sps:$4 sm:$0xff]  }
 0x51a   :  { %10127 = vmatpush1.bf16.msra.mxu0 %v18392_v11  ;;  %v18437_v11 = vld [vmem:[#allocation2 + $0x2278] ss:$112 sps:$4 sm:$0xff]  }
 0x51b   :  { %10128 = vmatprep.subr.bf16.mxu0 %v18400_v13  ;;  %v18445_v13 = vld [vmem:[#allocation2 + $0x235c] ss:$112 sps:$4 sm:$0xff]  }
 0x51c   :  { %10264 = vmatpush1.bf16.msra.mxu1 %v18389_v12  ;;  %v18454_v12 = vld [vmem:[#allocation2 + $0x64] ss:$112 sps:$4 sm:$0xff]  }
 0x51d   :  { %10274 = vmatprep.subr.bf16.mxu1 %v18397_v14  ;;  %v18443_v14 = vld [vmem:[#allocation2 + $0x2358] ss:$112 sps:$4 sm:$0xff]  }
 0x51e   :  { %10129 = vmatpush1.bf16.msra.mxu0 %v18398_v15  ;;  %v18448_v15 = vld [vmem:[#allocation2 + $0x243c] ss:$112 sps:$4 sm:$0xff]  }
 0x51f   :  { %10266 = vmatmul.mubr.bf16.vlgmr.msra.gmra.mrb[28].mxu1 %v19193_v18  ;;  %10130 = vmatprep.subr.bf16.mxu0 %v18406_v20  ;;  %v18451_v20 = vld [vmem:[#allocation2 + $0x251c] ss:$112 sps:$4 sm:$0xff]  }
 0x520   :  { %10275 = vmatpush1.bf16.msra.mxu1 %v18395_v17  ;;  %10306 = vmatprep.mubr.bf16.mxu1 %v19198_v24  ;;  %v18446_v17 = vld [vmem:[#allocation2 + $0x2438] ss:$112 sps:$4 sm:$0xff]  }
 0x521   :  { %10276 = vmatprep.subr.bf16.mxu1 %v18403_v21  ;;  %v18452_v21 = vld [vmem:[#allocation2 + $0x60] ss:$112 sps:$4 sm:$0xff]  }
 0x522   :  { %10131 = vmatpush1.bf16.msra.mxu0 %v18404_v22  ;;  %v18449_v22 = vld [vmem:[#allocation2 + $0x2518] ss:$112 sps:$4 sm:$0xff]  }
 0x523   :  { %10132 = vmatprep.subr.bf16.mxu0 %v18412_v58  ;;  %v18457_v58 = vld [vmem:[#allocation2 + $0x25fc] ss:$112 sps:$4 sm:$0xff]  }
 0x524   :  { %10277 = vmatpush1.bf16.msra.mxu1 %v18401_v30  ;;  %v18460_v30 = vld [vmem:[#allocation2 + $0x144] ss:$112 sps:$4 sm:$0xff]  }
 0x525   :  { %10278 = vmatprep.subr.bf16.mxu1 %v18409_v32  ;;  %v18458_v32 = vld [vmem:[#allocation2 + $0x140] ss:$112 sps:$4 sm:$0xff]  }
 0x526   :  { %10133 = vmatpush1.bf16.msra.mxu0 %v18410_v60  ;;  %v18455_v60 = vld [vmem:[#allocation2 + $0x25f8] ss:$112 sps:$4 sm:$0xff]  }
 0x527   :  { %10134 = vmatprep.subr.bf16.mxu0 %v18418_v57  ;;  %v18463_v57 = vld [vmem:[#allocation2 + $0x26dc] ss:$112 sps:$4 sm:$0xff]  }
 0x528   :  { %10279 = vmatpush1.bf16.msra.mxu1 %v18407_v34  ;;  %v18466_v34 = vld [vmem:[#allocation2 + $0x224] ss:$112 sps:$4 sm:$0xff]  }
 0x529   :  { %10280 = vmatprep.subr.bf16.mxu1 %v18415_v38  ;;  %v18464_v38 = vld [vmem:[#allocation2 + $0x220] ss:$112 sps:$4 sm:$0xff]  }
 0x52a   :  { %10135 = vmatpush1.bf16.msra.mxu0 %v18416_v39  ;;  %v18461_v39 = vld [vmem:[#allocation2 + $0x26d8] ss:$112 sps:$4 sm:$0xff]  }
 0x52b   :  { %10136 = vmatprep.subr.bf16.mxu0 %v18424_v49 }
 0x52c   :  { %10281 = vmatpush1.bf16.msra.mxu1 %v18413_v40  ;;  %v18472_v40 = vld [vmem:[#allocation2 + $0x304] ss:$112 sps:$4 sm:$0xff]  }
 0x52d   :  { %10282 = vmatprep.subr.bf16.mxu1 %v18421_v50  ;;  %v18469_v50 = vld [vmem:[#allocation2 + $0x27bc] ss:$112 sps:$4 sm:$0xff]  }
 0x52e   :  { %10137 = vmatpush1.bf16.msra.mxu0 %v18422_v52 }
 0x52f   :  { %10138 = vmatprep.subr.bf16.mxu0 %v18430_v55  ;;  %v18470_v55 = vld [vmem:[#allocation2 + $0x300] ss:$112 sps:$4 sm:$0xff]  }
 0x530   :  { %10283 = vmatpush1.bf16.msra.mxu1 %v18419_v53 }
 0x531   :  { %10284 = vmatprep.subr.bf16.mxu1 %v18427_v56  ;;  %v18467_v56 = vld [vmem:[#allocation2 + $0x27b8] ss:$112 sps:$4 sm:$0xff]  }
 0x532   :  { %10139 = vmatpush1.bf16.msra.mxu0 %v18428_v59 }
 0x533   :  { %10140 = vmatprep.subr.bf16.mxu0 %v18436_v1  ;;  %v18475_v1 = vld [vmem:[#allocation2 + $0x289c] ss:$112 sps:$4 sm:$0xff]  }
 0x534   :  { %10285 = vmatpush1.bf16.msra.mxu1 %v18425_v61  ;;  %v18478_v61 = vld [vmem:[#allocation2 + $0x3e4] ss:$112 sps:$4 sm:$0xff]  }
 0x535   :  { %10286 = vmatprep.subr.bf16.mxu1 %v18433_v3  ;;  %v18476_v3 = vld [vmem:[#allocation2 + $0x3e0] ss:$112 sps:$4 sm:$0xff]  }
 0x536   :  { %10141 = vmatpush1.bf16.msra.mxu0 %v18434_v4  ;;  %v18473_v4 = vld [vmem:[#allocation2 + $0x2898] ss:$112 sps:$4 sm:$0xff]  }
 0x537   :  { %10151 = vmatprep.subr.bf16.mxu0 %v18442_v6  ;;  %v18481_v6 = vld [vmem:[#allocation2 + $0x297c] ss:$112 sps:$4 sm:$0xff]  }
 0x538   :  { %10287 = vmatpush1.bf16.msra.mxu1 %v18431_v5  ;;  %v18484_v5 = vld [vmem:[#allocation2 + $0x4c4] ss:$112 sps:$4 sm:$0xff]  }
 0x539   :  { %10288 = vmatprep.subr.bf16.mxu1 %v18439_v7  ;;  %10143 = vmatmul.mubr.bf16.vlgmr.msra.gmra.mrb[20].mxu0 %v19207_v29  ;;  %v18482_v7 = vld [vmem:[#allocation2 + $0x4c0] ss:$112 sps:$4 sm:$0xff]  }
 0x53a   :  { %10152 = vmatpush1.bf16.msra.mxu0 %v18440_v8  ;;  %10183 = vmatprep.mubr.bf16.mxu0 %v18995_v0  ;;  %v18479_v8 = vld [vmem:[#allocation2 + $0x2978] ss:$112 sps:$4 sm:$0xff]  }
 0x53b   :  { %10356 = vmatprep.subr.bf16.mxu0 %v18454_v12  ;;  %v18493_v12 = vld [vmem:[#allocation2 + $0x2a5c] ss:$112 sps:$4 sm:$0xff]  }
 0x53c   :  { %10289 = vmatpush1.bf16.msra.mxu1 %v18437_v11  ;;  %v18487_v11 = vld [vmem:[#allocation2 + $0x5a4] ss:$112 sps:$4 sm:$0xff]  }
 0x53d   :  { %10290 = vmatprep.subr.bf16.mxu1 %v18445_v13  ;;  %v18485_v13 = vld [vmem:[#allocation2 + $0x5a0] ss:$112 sps:$4 sm:$0xff]  }
 0x540   :  { %10291 = vmatpush1.bf16.msra.mxu1 %v18443_v14  ;;  %v18490_v14 = vld [vmem:[#allocation2 + $0x684] ss:$112 sps:$4 sm:$0xff]  }
 0x541   :  { %10292 = vmatprep.subr.bf16.mxu1 %v18448_v15  ;;  %v18491_v15 = vld [vmem:[#allocation2 + $0x2a58] ss:$112 sps:$4 sm:$0xff]  }
 0x544   :  { %10293 = vmatpush1.bf16.msra.mxu1 %v18446_v17  ;;  %v18499_v17 = vld [vmem:[#allocation2 + $0x6c] ss:$112 sps:$4 sm:$0xff]  }
 0x545   :  { %10294 = vmatprep.subr.bf16.mxu1 %v18451_v20  ;;  %15916 = vmatmul.mubr.msk.bf16.vlgmr.msra.gmra.mrb[20].mxu0 %vm8384_vm0, %v19165_v10  ;;  %v18488_v20 = vld [vmem:[#allocation2 + $0x680] ss:$112 sps:$4 sm:$0xff]  }
 0x546   :  { %10357 = vmatpush1.bf16.msra.mxu0 %v18452_v21  ;;  %10388 = vmatprep.mubr.bf16.mxu0 %v19172_v51  ;;  %v18496_v21 = vld [vmem:[#allocation2 + $0x764] ss:$112 sps:$4 sm:$0xff]  }
 0x547   :  { %10358 = vmatprep.subr.bf16.mxu0 %v18460_v30  ;;  %v18502_v30 = vld [vmem:[#allocation2 + $0x844] ss:$112 sps:$4 sm:$0xff]  }
 0x548   :  { %10295 = vmatpush1.bf16.msra.mxu1 %v18449_v22  ;;  %v18494_v22 = vld [vmem:[#allocation2 + $0x760] ss:$112 sps:$4 sm:$0xff]  }
 0x549   :  { %10296 = vmatprep.subr.bf16.mxu1 %v18457_v58  ;;  %v18500_v58 = vld [vmem:[#allocation2 + $0x840] ss:$112 sps:$4 sm:$0xff]  }
 0x54a   :  { %10359 = vmatpush1.bf16.msra.mxu0 %v18458_v32  ;;  %v18497_v32 = vld [vmem:[#allocation2 + $0x68] ss:$112 sps:$4 sm:$0xff]  }
 0x54b   :  { %10360 = vmatprep.subr.bf16.mxu0 %v18466_v34  ;;  %v18505_v34 = vld [vmem:[#allocation2 + $0x14c] ss:$112 sps:$4 sm:$0xff]  }
 0x54c   :  { %10297 = vmatpush1.bf16.msra.mxu1 %v18455_v60  ;;  %v19359_v49 = vpop.f32.mrb[16].mxu0  ;;  %v18508_v60 = vld [vmem:[#allocation2 + $0x924] ss:$112 sps:$4 sm:$0xff]  }
 0x54d   :  { %10298 = vmatprep.subr.bf16.mxu1 %v18463_v57  ;;  %v19361_v52 = vpop.f32.mrb[17].mxu0  ;;  %v18506_v57 = vld [vmem:[#allocation2 + $0x920] ss:$112 sps:$4 sm:$0xff]  }
 0x54e   :  { %10361 = vmatpush1.bf16.msra.mxu0 %v18464_v38  ;;  %v9861_v53 = vpop.f32.mrb[18].mxu0  ;;  %v18503_v38 = vld [vmem:[#allocation2 + $0x148] ss:$112 sps:$4 sm:$0xff]  }
 0x54f   :  { %v9862_v59 = vpop.f32.mrb[19].mxu0  ;;  %10362 = vmatprep.subr.bf16.mxu0 %v18472_v40  ;;  %v18511_v40 = vld [vmem:[#allocation2 + $0x22c] ss:$112 sps:$4 sm:$0xff]   ;;  %v18509_v53 = vld [vmem:[#allocation2 + $0x228] ss:$112 sps:$4 sm:$0xff]  }
 0x550   :  { %10299 = vmatpush1.bf16.msra.mxu1 %v18461_v39  ;;  %v18514_v39 = vld [vmem:[#allocation2 + $0xa04] ss:$112 sps:$4 sm:$0xff]  }
 0x551   :  { %10300 = vmatprep.subr.bf16.mxu1 %v18469_v50  ;;  %v18512_v50 = vld [vmem:[#allocation2 + $0xa00] ss:$112 sps:$4 sm:$0xff]  }
 0x552   :  { %10363 = vmatpush1.bf16.msra.mxu0 %v18470_v55  ;;  %v18520_v55 = vld [vmem:[#allocation2 + $0xae4] ss:$112 sps:$4 sm:$0xff]  }
 0x553   :  { %10364 = vmatprep.subr.bf16.mxu0 %v18478_v61 }
 0x554   :  { %10301 = vmatpush1.bf16.msra.mxu1 %v18467_v56  ;;  %v18517_v56 = vld [vmem:[#allocation2 + $0x30c] ss:$112 sps:$4 sm:$0xff]  }
 0x555   :  { %10302 = vmatprep.subr.bf16.mxu1 %v18475_v1  ;;  %v18518_v1 = vld [vmem:[#allocation2 + $0xae0] ss:$112 sps:$4 sm:$0xff]  }
 0x556   :  { %10365 = vmatpush1.bf16.msra.mxu0 %v18476_v3 }
 0x557   :  { %10366 = vmatprep.subr.bf16.mxu0 %v18484_v5  ;;  %v18526_v5 = vld [vmem:[#allocation2 + $0xbc4] ss:$112 sps:$4 sm:$0xff]  }
 0x558   :  { %10303 = vmatpush1.bf16.msra.mxu1 %v18473_v4  ;;  %v18515_v4 = vld [vmem:[#allocation2 + $0x308] ss:$112 sps:$4 sm:$0xff]  }
 0x559   :  { %10304 = vmatprep.subr.bf16.mxu1 %v18481_v6  ;;  %v18523_v6 = vld [vmem:[#allocation2 + $0x3ec] ss:$112 sps:$4 sm:$0xff]  }
 0x55a   :  { %10367 = vmatpush1.bf16.msra.mxu0 %v18482_v7  ;;  %v18524_v7 = vld [vmem:[#allocation2 + $0xbc0] ss:$112 sps:$4 sm:$0xff]  }
 0x55b   :  { %10368 = vmatprep.subr.bf16.mxu0 %v18487_v11  ;;  %v18532_v11 = vld [vmem:[#allocation2 + $0xca4] ss:$112 sps:$4 sm:$0xff]  }
 0x55c   :  { %10305 = vmatpush1.bf16.msra.mxu1 %v18479_v8  ;;  %v18521_v8 = vld [vmem:[#allocation2 + $0x3e8] ss:$112 sps:$4 sm:$0xff]  }
 0x55d   :  { %10315 = vmatprep.subr.bf16.mxu1 %v18493_v12  ;;  %v18529_v12 = vld [vmem:[#allocation2 + $0x4cc] ss:$112 sps:$4 sm:$0xff]  }
 0x55e   :  { %10369 = vmatpush1.bf16.msra.mxu0 %v18485_v13  ;;  %v18530_v13 = vld [vmem:[#allocation2 + $0xca0] ss:$112 sps:$4 sm:$0xff]  }
 0x55f   :  { %10307 = vmatmul.mubr.bf16.vlgmr.msra.gmra.mrb[28].mxu1 %v19207_v29  ;;  %10370 = vmatprep.subr.bf16.mxu0 %v18490_v14  ;;  %v18527_v14 = vld [vmem:[#allocation2 + $0x4c8] ss:$112 sps:$4 sm:$0xff]  }
 0x560   :  { %10316 = vmatpush1.bf16.msra.mxu1 %v18491_v15  ;;  %10347 = vmatprep.mubr.bf16.mxu1 %v18995_v0  ;;  %v18538_v15 = vld [vmem:[#allocation2 + $0xd84] ss:$112 sps:$4 sm:$0xff]  }
 0x561   :  { %10520 = vmatprep.subr.bf16.mxu1 %v18499_v17  ;;  %v18535_v17 = vld [vmem:[#allocation2 + $0x5ac] ss:$112 sps:$4 sm:$0xff]  }
 0x562   :  { %10371 = vmatpush1.bf16.msra.mxu0 %v18488_v20  ;;  %v18536_v20 = vld [vmem:[#allocation2 + $0xd80] ss:$112 sps:$4 sm:$0xff]  }
 0x563   :  { %10372 = vmatprep.subr.bf16.mxu0 %v18496_v21  ;;  %v18533_v21 = vld [vmem:[#allocation2 + $0x5a8] ss:$112 sps:$4 sm:$0xff]  }
 0x566   :  { %10373 = vmatpush1.bf16.msra.mxu0 %v18494_v22  ;;  %v18544_v22 = vld [vmem:[#allocation2 + $0xe64] ss:$112 sps:$4 sm:$0xff]  }
 0x567   :  { %10374 = vmatprep.subr.bf16.mxu0 %v18502_v30  ;;  %v18541_v30 = vld [vmem:[#allocation2 + $0x68c] ss:$112 sps:$4 sm:$0xff]  }
 0x56a   :  { %10375 = vmatpush1.bf16.msra.mxu0 %v18500_v58  ;;  %v18542_v58 = vld [vmem:[#allocation2 + $0xe60] ss:$112 sps:$4 sm:$0xff]  }
 0x56b   :  { %15917 = vmatmul.mubr.msk.bf16.vlgmr.msra.gmra.mrb[28].mxu1 %vm8384_vm0, %v19165_v10  ;;  %10376 = vmatprep.subr.bf16.mxu0 %v18508_v60  ;;  %v18550_v60 = vld [vmem:[#allocation2 + $0xf44] ss:$112 sps:$4 sm:$0xff]  }
 0x56c   :  { %10521 = vmatpush1.bf16.msra.mxu1 %v18497_v32  ;;  %10552 = vmatprep.mubr.bf16.mxu1 %v19172_v51  ;;  %v18539_v32 = vld [vmem:[#allocation2 + $0x688] ss:$112 sps:$4 sm:$0xff]  }
 0x56d   :  { %10522 = vmatprep.subr.bf16.mxu1 %v18505_v34  ;;  %v18547_v34 = vld [vmem:[#allocation2 + $0x76c] ss:$112 sps:$4 sm:$0xff]  }
 0x56e   :  { %10377 = vmatpush1.bf16.msra.mxu0 %v18506_v57  ;;  %v18548_v57 = vld [vmem:[#allocation2 + $0xf40] ss:$112 sps:$4 sm:$0xff]  }
 0x56f   :  { %10378 = vmatprep.subr.bf16.mxu0 %v18514_v39  ;;  %v18556_v39 = vld [vmem:[#allocation2 + $0x1024] ss:$112 sps:$4 sm:$0xff]  }
 0x570   :  { %10523 = vmatpush1.bf16.msra.mxu1 %v18503_v38  ;;  %v18545_v38 = vld [vmem:[#allocation2 + $0x768] ss:$112 sps:$4 sm:$0xff]  }
 0x571   :  { %10524 = vmatprep.subr.bf16.mxu1 %v18511_v40  ;;  %v18553_v40 = vld [vmem:[#allocation2 + $0x84c] ss:$112 sps:$4 sm:$0xff]  }
 0x572   :  { %v19368_v59 = vpop.f32.mrb[24].mxu1  ;;  %10379 = vmatpush1.bf16.msra.mxu0 %v18512_v50  ;;  %v18554_v50 = vld [vmem:[#allocation2 + $0x1020] ss:$112 sps:$4 sm:$0xff]  }
 0x573   :  { %v19370_v61 = vpop.f32.mrb[25].mxu1  ;;  %10380 = vmatprep.subr.bf16.mxu0 %v18520_v55  ;;  %v18562_v55 = vld [vmem:[#allocation2 + $0x1104] ss:$112 sps:$4 sm:$0xff]  }
 0x574   :  { %10525 = vmatpush1.bf16.msra.mxu1 %v18509_v53  ;;  %v10025_v3 = vpop.f32.mrb[26].mxu1  ;;  %v18551_v53 = vld [vmem:[#allocation2 + $0x848] ss:$112 sps:$4 sm:$0xff]  }
 0x575   :  { %v10026_v51 = vpop.f32.mrb[27].mxu1  ;;  %10526 = vmatprep.subr.bf16.mxu1 %v18517_v56  ;;  %v18559_v56 = vld [vmem:[#allocation2 + $0x92c] ss:$112 sps:$4 sm:$0xff]   ;;  %v18557_v3 = vld [vmem:[#allocation2 + $0x928] ss:$112 sps:$4 sm:$0xff]  }
 0x576   :  { %10381 = vmatpush1.bf16.msra.mxu0 %v18518_v1  ;;  %v18560_v1 = vld [vmem:[#allocation2 + $0x1100] ss:$112 sps:$4 sm:$0xff]  }
 0x577   :  { %10382 = vmatprep.subr.bf16.mxu0 %v18526_v5  ;;  %v18565_v5 = vld [vmem:[#allocation2 + $0xa0c] ss:$112 sps:$4 sm:$0xff]   ;;  %v18566_v51 = vld [vmem:[#allocation2 + $0x11e0] ss:$112 sps:$4 sm:$0xff]  }
 0x578   :  { %10527 = vmatpush1.bf16.msra.mxu1 %v18515_v4  ;;  %v18568_v4 = vld [vmem:[#allocation2 + $0x11e4] ss:$112 sps:$4 sm:$0xff]  }
 0x579   :  { %10528 = vmatprep.subr.bf16.mxu1 %v18523_v6  ;;  %v18563_v6 = vld [vmem:[#allocation2 + $0xa08] ss:$112 sps:$4 sm:$0xff]  }
 0x57a   :  { %10383 = vmatpush1.bf16.msra.mxu0 %v18524_v7  ;;  %v18574_v7 = vld [vmem:[#allocation2 + $0x12c4] ss:$112 sps:$4 sm:$0xff]  }
 0x57b   :  { %10384 = vmatprep.subr.bf16.mxu0 %v18532_v11  ;;  %v18572_v11 = vld [vmem:[#allocation2 + $0x12c0] ss:$112 sps:$4 sm:$0xff]  }
 0x57c   :  { %10529 = vmatpush1.bf16.msra.mxu1 %v18521_v8  ;;  %v18571_v8 = vld [vmem:[#allocation2 + $0xaec] ss:$112 sps:$4 sm:$0xff]  }
 0x57d   :  { %10530 = vmatprep.subr.bf16.mxu1 %v18529_v12  ;;  %v18569_v12 = vld [vmem:[#allocation2 + $0xae8] ss:$112 sps:$4 sm:$0xff]  }
 0x57e   :  { %10385 = vmatpush1.bf16.msra.mxu0 %v18530_v13  ;;  %v18580_v13 = vld [vmem:[#allocation2 + $0x13a4] ss:$112 sps:$4 sm:$0xff]  }
 0x57f   :  { %10386 = vmatprep.subr.bf16.mxu0 %v18538_v15  ;;  %v18578_v15 = vld [vmem:[#allocation2 + $0x13a0] ss:$112 sps:$4 sm:$0xff]  }
 0x580   :  { %10531 = vmatpush1.bf16.msra.mxu1 %v18527_v14  ;;  %v18577_v14 = vld [vmem:[#allocation2 + $0xbcc] ss:$112 sps:$4 sm:$0xff]  }
 0x581   :  { %10532 = vmatprep.subr.bf16.mxu1 %v18535_v17  ;;  %v18575_v17 = vld [vmem:[#allocation2 + $0xbc8] ss:$112 sps:$4 sm:$0xff]  }
 0x582   :  { %10387 = vmatpush1.bf16.msra.mxu0 %v18536_v20  ;;  %v18586_v20 = vld [vmem:[#allocation2 + $0x1484] ss:$112 sps:$4 sm:$0xff]  }
 0x583   :  { %10397 = vmatprep.subr.bf16.mxu0 %v18544_v22  ;;  %v18584_v22 = vld [vmem:[#allocation2 + $0x1480] ss:$112 sps:$4 sm:$0xff]  }
 0x584   :  { %10533 = vmatpush1.bf16.msra.mxu1 %v18533_v21  ;;  %v18583_v21 = vld [vmem:[#allocation2 + $0xcac] ss:$112 sps:$4 sm:$0xff]  }
 0x585   :  { %10534 = vmatprep.subr.bf16.mxu1 %v18541_v30  ;;  %10389 = vmatmul.mubr.bf16.vlgmr.msra.gmra.mrb[24].mxu0 %v19179_v9  ;;  %v18581_v30 = vld [vmem:[#allocation2 + $0xca8] ss:$112 sps:$4 sm:$0xff]  }
 0x586   :  { %10398 = vmatpush1.bf16.msra.mxu0 %v18542_v58  ;;  %10429 = vmatprep.mubr.bf16.mxu0 %v19186_v36  ;;  %v18592_v58 = vld [vmem:[#allocation2 + $0x1564] ss:$112 sps:$4 sm:$0xff]  }
 0x587   :  { %10399 = vmatprep.subr.bf16.mxu0 %v18550_v60  ;;  %v18590_v60 = vld [vmem:[#allocation2 + $0x1560] ss:$112 sps:$4 sm:$0xff]  }
 0x588   :  { %10535 = vmatpush1.bf16.msra.mxu1 %v18539_v32  ;;  %v18589_v32 = vld [vmem:[#allocation2 + $0xd8c] ss:$112 sps:$4 sm:$0xff]  }
 0x589   :  { %10536 = vmatprep.subr.bf16.mxu1 %v18547_v34  ;;  %v18587_v34 = vld [vmem:[#allocation2 + $0xd88] ss:$112 sps:$4 sm:$0xff]  }
 0x58a   :  { %10400 = vmatpush1.bf16.msra.mxu0 %v18548_v57  ;;  %v18598_v57 = vld [vmem:[#allocation2 + $0x1644] ss:$112 sps:$4 sm:$0xff]  }
 0x58b   :  { %10401 = vmatprep.subr.bf16.mxu0 %v18556_v39  ;;  %v18596_v39 = vld [vmem:[#allocation2 + $0x1640] ss:$112 sps:$4 sm:$0xff]  }
 0x58c   :  { %10537 = vmatpush1.bf16.msra.mxu1 %v18545_v38  ;;  %v18595_v38 = vld [vmem:[#allocation2 + $0xe6c] ss:$112 sps:$4 sm:$0xff]  }
 0x58d   :  { %10538 = vmatprep.subr.bf16.mxu1 %v18553_v40  ;;  %v18593_v40 = vld [vmem:[#allocation2 + $0xe68] ss:$112 sps:$4 sm:$0xff]  }
 0x58e   :  { %10402 = vmatpush1.bf16.msra.mxu0 %v18554_v50  ;;  %v18604_v50 = vld [vmem:[#allocation2 + $0x1724] ss:$112 sps:$4 sm:$0xff]  }
 0x58f   :  { %10403 = vmatprep.subr.bf16.mxu0 %v18562_v55  ;;  %v18602_v55 = vld [vmem:[#allocation2 + $0x1720] ss:$112 sps:$4 sm:$0xff]  }
 0x590   :  { %10539 = vmatpush1.bf16.msra.mxu1 %v18551_v53  ;;  %v18601_v53 = vld [vmem:[#allocation2 + $0xf4c] ss:$112 sps:$4 sm:$0xff]  }
 0x591   :  { %10540 = vmatprep.subr.bf16.mxu1 %v18559_v56  ;;  %v18599_v56 = vld [vmem:[#allocation2 + $0xf48] ss:$112 sps:$4 sm:$0xff]  }
 0x592   :  { %10404 = vmatpush1.bf16.msra.mxu0 %v18560_v1  ;;  %v18610_v1 = vld [vmem:[#allocation2 + $0x1804] ss:$112 sps:$4 sm:$0xff]  }
 0x593   :  { %10405 = vmatprep.subr.bf16.mxu0 %v18568_v4  ;;  %v18608_v4 = vld [vmem:[#allocation2 + $0x1800] ss:$112 sps:$4 sm:$0xff]  }
 0x594   :  { %10541 = vmatpush1.bf16.msra.mxu1 %v18557_v3  ;;  %v18607_v3 = vld [vmem:[#allocation2 + $0x102c] ss:$112 sps:$4 sm:$0xff]  }
 0x595   :  { %10542 = vmatprep.subr.bf16.mxu1 %v18565_v5  ;;  %v18605_v5 = vld [vmem:[#allocation2 + $0x1028] ss:$112 sps:$4 sm:$0xff]  }
 0x596   :  { %10406 = vmatpush1.bf16.msra.mxu0 %v18566_v51  ;;  %v18616_v51 = vld [vmem:[#allocation2 + $0x18e4] ss:$112 sps:$4 sm:$0xff]  }
 0x597   :  { %10407 = vmatprep.subr.bf16.mxu0 %v18574_v7  ;;  %v18611_v7 = vld [vmem:[#allocation2 + $0x1108] ss:$112 sps:$4 sm:$0xff]  }
 0x598   :  { %10543 = vmatpush1.bf16.msra.mxu1 %v18563_v6  ;;  %v18613_v6 = vld [vmem:[#allocation2 + $0x110c] ss:$112 sps:$4 sm:$0xff]  }
 0x599   :  { %10544 = vmatprep.subr.bf16.mxu1 %v18571_v8  ;;  %v18622_v8 = vld [vmem:[#allocation2 + $0x19c4] ss:$112 sps:$4 sm:$0xff]  }
 0x59a   :  { %10408 = vmatpush1.bf16.msra.mxu0 %v18572_v11  ;;  %v18619_v11 = vld [vmem:[#allocation2 + $0x11ec] ss:$112 sps:$4 sm:$0xff]  }
 0x59b   :  { %10409 = vmatprep.subr.bf16.mxu0 %v18580_v13  ;;  %v18628_v13 = vld [vmem:[#allocation2 + $0x1aa4] ss:$112 sps:$4 sm:$0xff]  }
 0x59c   :  { %10545 = vmatpush1.bf16.msra.mxu1 %v18569_v12  ;;  %v18620_v12 = vld [vmem:[#allocation2 + $0x19c0] ss:$112 sps:$4 sm:$0xff]  }
 0x59d   :  { %10546 = vmatprep.subr.bf16.mxu1 %v18577_v14  ;;  %v18625_v14 = vld [vmem:[#allocation2 + $0x12cc] ss:$112 sps:$4 sm:$0xff]  }
 0x59e   :  { %10410 = vmatpush1.bf16.msra.mxu0 %v18578_v15  ;;  %v18626_v15 = vld [vmem:[#allocation2 + $0x1aa0] ss:$112 sps:$4 sm:$0xff]  }
 0x59f   :  { %10411 = vmatprep.subr.bf16.mxu0 %v18586_v20  ;;  %v18634_v20 = vld [vmem:[#allocation2 + $0x1b84] ss:$112 sps:$4 sm:$0xff]  }
 0x5a0   :  { %10547 = vmatpush1.bf16.msra.mxu1 %v18575_v17  ;;  %v18623_v17 = vld [vmem:[#allocation2 + $0x12c8] ss:$112 sps:$4 sm:$0xff]  }
 0x5a1   :  { %10548 = vmatprep.subr.bf16.mxu1 %v18583_v21  ;;  %v18631_v21 = vld [vmem:[#allocation2 + $0x13ac] ss:$112 sps:$4 sm:$0xff]  }
 0x5a2   :  { %10412 = vmatpush1.bf16.msra.mxu0 %v18584_v22  ;;  %v18632_v22 = vld [vmem:[#allocation2 + $0x1b80] ss:$112 sps:$4 sm:$0xff]  }
 0x5a3   :  { %10413 = vmatprep.subr.bf16.mxu0 %v18592_v58  ;;  %v18640_v58 = vld [vmem:[#allocation2 + $0x1c64] ss:$112 sps:$4 sm:$0xff]  }
 0x5a4   :  { %10549 = vmatpush1.bf16.msra.mxu1 %v18581_v30  ;;  %v18629_v30 = vld [vmem:[#allocation2 + $0x13a8] ss:$112 sps:$4 sm:$0xff]  }
 0x5a5   :  { %10550 = vmatprep.subr.bf16.mxu1 %v18589_v32  ;;  %v18637_v32 = vld [vmem:[#allocation2 + $0x148c] ss:$112 sps:$4 sm:$0xff]  }
 0x5a6   :  { %10414 = vmatpush1.bf16.msra.mxu0 %v18590_v60  ;;  %v18638_v60 = vld [vmem:[#allocation2 + $0x1c60] ss:$112 sps:$4 sm:$0xff]  }
 0x5a7   :  { %10415 = vmatprep.subr.bf16.mxu0 %v18598_v57  ;;  %v18646_v57 = vld [vmem:[#allocation2 + $0x1d44] ss:$112 sps:$4 sm:$0xff]  }
 0x5a8   :  { %10551 = vmatpush1.bf16.msra.mxu1 %v18587_v34  ;;  %v18635_v34 = vld [vmem:[#allocation2 + $0x1488] ss:$112 sps:$4 sm:$0xff]  }
 0x5a9   :  { %10561 = vmatprep.subr.bf16.mxu1 %v18595_v38  ;;  %v18643_v38 = vld [vmem:[#allocation2 + $0x156c] ss:$112 sps:$4 sm:$0xff]  }
 0x5aa   :  { %10416 = vmatpush1.bf16.msra.mxu0 %v18596_v39  ;;  %v18644_v39 = vld [vmem:[#allocation2 + $0x1d40] ss:$112 sps:$4 sm:$0xff]  }
 0x5ab   :  { %10553 = vmatmul.mubr.bf16.vlgmr.msra.gmra.mrb[32].mxu1 %v19179_v9  ;;  %10417 = vmatprep.subr.bf16.mxu0 %v18604_v50  ;;  %v18614_v9 = vld [vmem:[#allocation2 + $0x18e0] ss:$112 sps:$4 sm:$0xff]   ;;  %v18652_v50 = vld [vmem:[#allocation2 + $0x1e24] ss:$112 sps:$4 sm:$0xff]  }
 0x5ac   :  { %10562 = vmatpush1.bf16.msra.mxu1 %v18593_v40  ;;  %10593 = vmatprep.mubr.bf16.mxu1 %v19186_v36  ;;  %v18617_v36 = vld [vmem:[#allocation2 + $0x11e8] ss:$112 sps:$4 sm:$0xff]  }
 0x5ad   :  { %10563 = vmatprep.subr.bf16.mxu1 %v18601_v53  ;;  %v18641_v40 = vld [vmem:[#allocation2 + $0x1568] ss:$112 sps:$4 sm:$0xff]   ;;  %v18649_v53 = vld [vmem:[#allocation2 + $0x164c] ss:$112 sps:$4 sm:$0xff]  }
 0x5ae   :  { %10418 = vmatpush1.bf16.msra.mxu0 %v18602_v55  ;;  %v18650_v55 = vld [vmem:[#allocation2 + $0x1e20] ss:$112 sps:$4 sm:$0xff]  }
 0x5af   :  { %10419 = vmatprep.subr.bf16.mxu0 %v18610_v1  ;;  %v18658_v1 = vld [vmem:[#allocation2 + $0x1f04] ss:$112 sps:$4 sm:$0xff]  }
 0x5b0   :  { %10564 = vmatpush1.bf16.msra.mxu1 %v18599_v56  ;;  %v18647_v56 = vld [vmem:[#allocation2 + $0x1648] ss:$112 sps:$4 sm:$0xff]  }
 0x5b1   :  { %10565 = vmatprep.subr.bf16.mxu1 %v18607_v3  ;;  %v18655_v3 = vld [vmem:[#allocation2 + $0x172c] ss:$112 sps:$4 sm:$0xff]  }
 0x5b2   :  { %10420 = vmatpush1.bf16.msra.mxu0 %v18608_v4  ;;  %v18656_v4 = vld [vmem:[#allocation2 + $0x1f00] ss:$112 sps:$4 sm:$0xff]  }
 0x5b3   :  { %10421 = vmatprep.subr.bf16.mxu0 %v18616_v51  ;;  %v18664_v51 = vld [vmem:[#allocation2 + $0x1fe4] ss:$112 sps:$4 sm:$0xff]  }
 0x5b4   :  { %10566 = vmatpush1.bf16.msra.mxu1 %v18605_v5  ;;  %v18653_v5 = vld [vmem:[#allocation2 + $0x1728] ss:$112 sps:$4 sm:$0xff]  }
 0x5b5   :  { %10567 = vmatprep.subr.bf16.mxu1 %v18613_v6  ;;  %v18661_v6 = vld [vmem:[#allocation2 + $0x180c] ss:$112 sps:$4 sm:$0xff]  }
 0x5b6   :  { %10422 = vmatpush1.bf16.msra.mxu0 %v18614_v9  ;;  %v18662_v9 = vld [vmem:[#allocation2 + $0x1fe0] ss:$112 sps:$4 sm:$0xff]  }
 0x5b7   :  { %10423 = vmatprep.subr.bf16.mxu0 %v18622_v8  ;;  %v18670_v8 = vld [vmem:[#allocation2 + $0x20c4] ss:$112 sps:$4 sm:$0xff]  }
 0x5b8   :  { %10568 = vmatpush1.bf16.msra.mxu1 %v18611_v7  ;;  %v18659_v7 = vld [vmem:[#allocation2 + $0x1808] ss:$112 sps:$4 sm:$0xff]  }
 0x5b9   :  { %10569 = vmatprep.subr.bf16.mxu1 %v18619_v11  ;;  %v18667_v11 = vld [vmem:[#allocation2 + $0x18ec] ss:$112 sps:$4 sm:$0xff]  }
 0x5ba   :  { %10424 = vmatpush1.bf16.msra.mxu0 %v18620_v12  ;;  %v18668_v12 = vld [vmem:[#allocation2 + $0x20c0] ss:$112 sps:$4 sm:$0xff]  }
 0x5bb   :  { %10425 = vmatprep.subr.bf16.mxu0 %v18628_v13  ;;  %v18676_v13 = vld [vmem:[#allocation2 + $0x21a4] ss:$112 sps:$4 sm:$0xff]  }
 0x5bc   :  { %10570 = vmatpush1.bf16.msra.mxu1 %v18617_v36  ;;  %v18665_v36 = vld [vmem:[#allocation2 + $0x18e8] ss:$112 sps:$4 sm:$0xff]  }
 0x5bd   :  { %10571 = vmatprep.subr.bf16.mxu1 %v18625_v14  ;;  %v18673_v14 = vld [vmem:[#allocation2 + $0x19cc] ss:$112 sps:$4 sm:$0xff]  }
 0x5be   :  { %10426 = vmatpush1.bf16.msra.mxu0 %v18626_v15  ;;  %v18674_v15 = vld [vmem:[#allocation2 + $0x21a0] ss:$112 sps:$4 sm:$0xff]  }
 0x5bf   :  { %10427 = vmatprep.subr.bf16.mxu0 %v18634_v20  ;;  %v18682_v20 = vld [vmem:[#allocation2 + $0x2284] ss:$112 sps:$4 sm:$0xff]  }
 0x5c0   :  { %10572 = vmatpush1.bf16.msra.mxu1 %v18623_v17  ;;  %v18671_v17 = vld [vmem:[#allocation2 + $0x19c8] ss:$112 sps:$4 sm:$0xff]  }
 0x5c1   :  { %10573 = vmatprep.subr.bf16.mxu1 %v18631_v21  ;;  %v18679_v21 = vld [vmem:[#allocation2 + $0x1aac] ss:$112 sps:$4 sm:$0xff]  }
 0x5c2   :  { %10428 = vmatpush1.bf16.msra.mxu0 %v18632_v22  ;;  %v18680_v22 = vld [vmem:[#allocation2 + $0x2280] ss:$112 sps:$4 sm:$0xff]  }
 0x5c3   :  { %10438 = vmatprep.subr.bf16.mxu0 %v18640_v58  ;;  %v18688_v58 = vld [vmem:[#allocation2 + $0x2364] ss:$112 sps:$4 sm:$0xff]  }
 0x5c4   :  { %10574 = vmatpush1.bf16.msra.mxu1 %v18629_v30  ;;  %v18677_v30 = vld [vmem:[#allocation2 + $0x1aa8] ss:$112 sps:$4 sm:$0xff]  }
 0x5c5   :  { %10575 = vmatprep.subr.bf16.mxu1 %v18637_v32  ;;  %10430 = vmatmul.mubr.bf16.vlgmr.msra.gmra.mrb[24].mxu0 %v19193_v18  ;;  %v18685_v32 = vld [vmem:[#allocation2 + $0x1b8c] ss:$112 sps:$4 sm:$0xff]  }
 0x5c6   :  { %10439 = vmatpush1.bf16.msra.mxu0 %v18638_v60  ;;  %10470 = vmatprep.mubr.bf16.mxu0 %v19198_v24  ;;  %v18686_v60 = vld [vmem:[#allocation2 + $0x2360] ss:$112 sps:$4 sm:$0xff]  }
 0x5c7   :  { %10440 = vmatprep.subr.bf16.mxu0 %v18646_v57  ;;  %v18694_v57 = vld [vmem:[#allocation2 + $0x2444] ss:$112 sps:$4 sm:$0xff]  }
 0x5c8   :  { %10576 = vmatpush1.bf16.msra.mxu1 %v18635_v34  ;;  %v18683_v34 = vld [vmem:[#allocation2 + $0x1b88] ss:$112 sps:$4 sm:$0xff]  }
 0x5c9   :  { %10577 = vmatprep.subr.bf16.mxu1 %v18643_v38  ;;  %v18691_v38 = vld [vmem:[#allocation2 + $0x1c6c] ss:$112 sps:$4 sm:$0xff]  }
 0x5ca   :  { %10441 = vmatpush1.bf16.msra.mxu0 %v18644_v39  ;;  %v18692_v39 = vld [vmem:[#allocation2 + $0x2440] ss:$112 sps:$4 sm:$0xff]  }
 0x5cb   :  { %10442 = vmatprep.subr.bf16.mxu0 %v18652_v50  ;;  %v18700_v50 = vld [vmem:[#allocation2 + $0x2524] ss:$112 sps:$4 sm:$0xff]  }
 0x5cc   :  { %10578 = vmatpush1.bf16.msra.mxu1 %v18641_v40  ;;  %v18689_v40 = vld [vmem:[#allocation2 + $0x1c68] ss:$112 sps:$4 sm:$0xff]  }
 0x5cd   :  { %10579 = vmatprep.subr.bf16.mxu1 %v18649_v53  ;;  %v18697_v53 = vld [vmem:[#allocation2 + $0x1d4c] ss:$112 sps:$4 sm:$0xff]  }
 0x5ce   :  { %10443 = vmatpush1.bf16.msra.mxu0 %v18650_v55  ;;  %v18698_v55 = vld [vmem:[#allocation2 + $0x2520] ss:$112 sps:$4 sm:$0xff]  }
 0x5cf   :  { %10444 = vmatprep.subr.bf16.mxu0 %v18658_v1  ;;  %v18706_v1 = vld [vmem:[#allocation2 + $0x2604] ss:$112 sps:$4 sm:$0xff]  }
 0x5d0   :  { %10580 = vmatpush1.bf16.msra.mxu1 %v18647_v56  ;;  %v18695_v56 = vld [vmem:[#allocation2 + $0x1d48] ss:$112 sps:$4 sm:$0xff]  }
 0x5d1   :  { %10581 = vmatprep.subr.bf16.mxu1 %v18655_v3  ;;  %v18703_v3 = vld [vmem:[#allocation2 + $0x1e2c] ss:$112 sps:$4 sm:$0xff]  }
 0x5d2   :  { %10445 = vmatpush1.bf16.msra.mxu0 %v18656_v4  ;;  %v18704_v4 = vld [vmem:[#allocation2 + $0x2600] ss:$112 sps:$4 sm:$0xff]  }
 0x5d3   :  { %10446 = vmatprep.subr.bf16.mxu0 %v18664_v51  ;;  %v18712_v51 = vld [vmem:[#allocation2 + $0x26e4] ss:$112 sps:$4 sm:$0xff]  }
 0x5d4   :  { %10582 = vmatpush1.bf16.msra.mxu1 %v18653_v5  ;;  %v18701_v5 = vld [vmem:[#allocation2 + $0x1e28] ss:$112 sps:$4 sm:$0xff]  }
 0x5d5   :  { %10583 = vmatprep.subr.bf16.mxu1 %v18661_v6  ;;  %v18709_v6 = vld [vmem:[#allocation2 + $0x1f0c] ss:$112 sps:$4 sm:$0xff]  }
 0x5d6   :  { %10447 = vmatpush1.bf16.msra.mxu0 %v18662_v9  ;;  %v18707_v9 = vld [vmem:[#allocation2 + $0x1f08] ss:$112 sps:$4 sm:$0xff]  }
 0x5d7   :  { %10448 = vmatprep.subr.bf16.mxu0 %v18670_v8  ;;  %v18715_v8 = vld [vmem:[#allocation2 + $0x1fec] ss:$112 sps:$4 sm:$0xff]  }
 0x5d8   :  { %10584 = vmatpush1.bf16.msra.mxu1 %v18659_v7  ;;  %v18718_v7 = vld [vmem:[#allocation2 + $0x27c4] ss:$112 sps:$4 sm:$0xff]  }
 0x5d9   :  { %10585 = vmatprep.subr.bf16.mxu1 %v18667_v11  ;;  %v18716_v11 = vld [vmem:[#allocation2 + $0x27c0] ss:$112 sps:$4 sm:$0xff]  }
 0x5da   :  { %10449 = vmatpush1.bf16.msra.mxu0 %v18668_v12  ;;  %v18724_v12 = vld [vmem:[#allocation2 + $0x28a4] ss:$112 sps:$4 sm:$0xff]  }
 0x5db   :  { %10450 = vmatprep.subr.bf16.mxu0 %v18676_v13  ;;  %v18722_v13 = vld [vmem:[#allocation2 + $0x28a0] ss:$112 sps:$4 sm:$0xff]  }
 0x5dc   :  { %10586 = vmatpush1.bf16.msra.mxu1 %v18665_v36  ;;  %v18721_v36 = vld [vmem:[#allocation2 + $0x20cc] ss:$112 sps:$4 sm:$0xff]  }
 0x5dd   :  { %10587 = vmatprep.subr.bf16.mxu1 %v18673_v14  ;;  %v18719_v14 = vld [vmem:[#allocation2 + $0x20c8] ss:$112 sps:$4 sm:$0xff]  }
 0x5de   :  { %10451 = vmatpush1.bf16.msra.mxu0 %v18674_v15  ;;  %v18730_v15 = vld [vmem:[#allocation2 + $0x2984] ss:$112 sps:$4 sm:$0xff]  }
 0x5df   :  { %10452 = vmatprep.subr.bf16.mxu0 %v18682_v20  ;;  %v18728_v20 = vld [vmem:[#allocation2 + $0x2980] ss:$112 sps:$4 sm:$0xff]  }
 0x5e0   :  { %10588 = vmatpush1.bf16.msra.mxu1 %v18671_v17  ;;  %v18727_v17 = vld [vmem:[#allocation2 + $0x21ac] ss:$112 sps:$4 sm:$0xff]  }
 0x5e1   :  { %10589 = vmatprep.subr.bf16.mxu1 %v18679_v21  ;;  %v18725_v21 = vld [vmem:[#allocation2 + $0x21a8] ss:$112 sps:$4 sm:$0xff]  }
 0x5e2   :  { %10453 = vmatpush1.bf16.msra.mxu0 %v18680_v22  ;;  %v18736_v22 = vld [vmem:[#allocation2 + $0x2a64] ss:$112 sps:$4 sm:$0xff]  }
 0x5e3   :  { %10454 = vmatprep.subr.bf16.mxu0 %v18688_v58  ;;  %v10763_v58 = vld [vmem:[#allocation6] sm:$0xff] }
 0x5e4   :  { %10590 = vmatpush1.bf16.msra.mxu1 %v18677_v30  ;;  %v18733_v30 = vld [vmem:[#allocation2 + $0x228c] ss:$112 sps:$4 sm:$0xff]  }
 0x5e5   :  { %10591 = vmatprep.subr.bf16.mxu1 %v18685_v32  ;;  %v10767_v32 = vld [vmem:[#allocation6 + $0x20] sm:$0xff] }
 0x5e6   :  { %10455 = vmatpush1.bf16.msra.mxu0 %v18686_v60  ;;  %v18734_v60 = vld [vmem:[#allocation2 + $0x2a60] ss:$112 sps:$4 sm:$0xff]  }
 0x5e7   :  { %10456 = vmatprep.subr.bf16.mxu0 %v18694_v57  ;;  %v15921_v57 = vcombine.high %v10763_v58, %v10767_v32 }
 0x5e8   :  { %10592 = vmatpush1.bf16.msra.mxu1 %v18683_v34  ;;  %v18731_v34 = vld [vmem:[#allocation2 + $0x2288] ss:$112 sps:$4 sm:$0xff]  }
 0x5e9   :  { %10602 = vmatprep.subr.bf16.mxu1 %v18691_v38  ;;  %v18739_v38 = vld [vmem:[#allocation2 + $0x236c] ss:$112 sps:$4 sm:$0xff]  }
 0x5ea   :  { %10457 = vmatpush1.bf16.msra.mxu0 %v18692_v39  ;;  %v18737_v39 = vld [vmem:[#allocation2 + $0x2368] ss:$112 sps:$4 sm:$0xff]  }
 0x5eb   :  { %10594 = vmatmul.mubr.bf16.vlgmr.msra.gmra.mrb[32].mxu1 %v19193_v18  ;;  %10458 = vmatprep.subr.bf16.mxu0 %v18700_v50  ;;  %v18710_v18 = vld [vmem:[#allocation2 + $0x26e0] ss:$112 sps:$4 sm:$0xff]   ;;  %v18740_v50 = vld [vmem:[#allocation2 + $0x2448] ss:$112 sps:$4 sm:$0xff]  }
 0x5ec   :  { %10603 = vmatpush1.bf16.msra.mxu1 %v18689_v40  ;;  %10634 = vmatprep.mubr.bf16.mxu1 %v19198_v24  ;;  %v18713_v24 = vld [vmem:[#allocation2 + $0x1fe8] ss:$112 sps:$4 sm:$0xff]   ;;  %v18742_v40 = vld [vmem:[#allocation2 + $0x244c] ss:$112 sps:$4 sm:$0xff]  }
 0x5ed   :  { %10604 = vmatprep.subr.bf16.mxu1 %v18697_v53  ;;  %v18745_v53 = vld [vmem:[#allocation2 + $0x252c] ss:$112 sps:$4 sm:$0xff]  }
 0x5ee   :  { %10459 = vmatpush1.bf16.msra.mxu0 %v18698_v55  ;;  %v10771_v55 = vld [vmem:[#allocation6 + $0x40] sm:$0xff] }
 0x5ef   :  { %10460 = vmatprep.subr.bf16.mxu0 %v18706_v1  ;;  %v15920_v1 = vcombine.low %v10763_v58, %v10767_v32  ;;  %v18752_v32 = vld [vmem:[#allocation2 + $0x27c8] ss:$112 sps:$4 sm:$0xff]  }
 0x5f0   :  { %10605 = vmatpush1.bf16.msra.mxu1 %v18695_v56  ;;  %v10775_v56 = vld [vmem:[#allocation6 + $0x60] sm:$0xff] }
 0x5f1   :  { %10606 = vmatprep.subr.bf16.mxu1 %v18703_v3  ;;  %v18743_v3 = vld [vmem:[#allocation2 + $0x2528] ss:$112 sps:$4 sm:$0xff]  }
 0x5f2   :  { %10461 = vmatpush1.bf16.msra.mxu0 %v18704_v4  ;;  %v15929_v4 = vcombine.high %v10771_v55, %v10775_v56 }
 0x5f3   :  { %10462 = vmatprep.subr.bf16.mxu0 %v18712_v51  ;;  %v10779_v51 = vld [vmem:[#allocation6 + $0x80] sm:$0xff] }
 0x5f4   :  { %10607 = vmatpush1.bf16.msra.mxu1 %v18701_v5  ;;  %v18748_v5 = vld [vmem:[#allocation2 + $0x260c] ss:$112 sps:$4 sm:$0xff]  }
 0x5f5   :  { %10608 = vmatprep.subr.bf16.mxu1 %v18709_v6  ;;  %v10783_v6 = vld [vmem:[#allocation6 + $0xa0] sm:$0xff] }
 0x5f6   :  { %10463 = vmatpush1.bf16.msra.mxu0 %v18710_v18  ;;  %v15928_v18 = vcombine.low %v10771_v55, %v10775_v56  ;;  %v18760_v55 = vld [vmem:[#allocation2 + $0x298c] ss:$112 sps:$4 sm:$0xff]  }
 0x5f7   :  { %10464 = vmatprep.subr.bf16.mxu0 %v18718_v7  ;;  %v15937_v7 = vcombine.high %v10779_v51, %v10783_v6  ;;  %v10811_v56 = vld [vmem:[#allocation6 + $0x180] sm:$0xff] }
 0x5f8   :  { %10609 = vmatpush1.bf16.msra.mxu1 %v18707_v9  ;;  %v18746_v9 = vld [vmem:[#allocation2 + $0x2608] ss:$112 sps:$4 sm:$0xff]  }
 0x5f9   :  { %10610 = vmatprep.subr.bf16.mxu1 %v18715_v8  ;;  %v18751_v8 = vld [vmem:[#allocation2 + $0x26ec] ss:$112 sps:$4 sm:$0xff]  }
 0x5fa   :  { %10465 = vmatpush1.bf16.msra.mxu0 %v18716_v11  ;;  %v10787_v11 = vld [vmem:[#allocation6 + $0xc0] sm:$0xff] }
 0x5fb   :  { %10466 = vmatprep.subr.bf16.mxu0 %v18724_v12  ;;  %v15936_v12 = vcombine.low %v10779_v51, %v10783_v6  ;;  %v10764_v51 = vld [vmem:[#allocation6 + $0x8] sm:$0xff] }
 0x5fc   :  { %10611 = vmatpush1.bf16.msra.mxu1 %v18713_v24  ;;  %v10791_v24 = vld [vmem:[#allocation6 + $0xe0] sm:$0xff]  ;;  %v10768_v6 = vld [vmem:[#allocation6 + $0x28] sm:$0xff] }
 0x5fd   :  { %10612 = vmatprep.subr.bf16.mxu1 %v18721_v36  ;;  %v18749_v36 = vld [vmem:[#allocation2 + $0x26e8] ss:$112 sps:$4 sm:$0xff]   ;;  %v15944_v58 = vcombine.low %v10787_v11, %v10791_v24 }
 0x5fe   :  { %10467 = vmatpush1.bf16.msra.mxu0 %v18722_v13  ;;  %v15945_v13 = vcombine.high %v10787_v11, %v10791_v24  ;;  %v10831_v11 = vld [vmem:[#allocation6 + $0x220] sm:$0xff]  ;;  %v15923_v24 = vcombine.high %v10764_v51, %v10768_v6 }
 0x5ff   :  { %10468 = vmatprep.subr.bf16.mxu0 %v18730_v15  ;;  %v18754_v15 = vld [vmem:[#allocation2 + $0x27cc] ss:$112 sps:$4 sm:$0xff]  }
 0x600   :  { %10613 = vmatpush1.bf16.msra.mxu1 %v18719_v14 }
 0x601   :  { %10614 = vmatprep.subr.bf16.mxu1 %v18727_v17  ;;  %v10795_v17 = vld [vmem:[#allocation6 + $0x100] sm:$0xff] }
 0x602   :  { %10469 = vmatpush1.bf16.msra.mxu0 %v18728_v20  ;;  %v10799_v20 = vld [vmem:[#allocation6 + $0x120] sm:$0xff] }
 0x603   :  { %10479 = vmatprep.subr.bf16.mxu0 %v18736_v22 }
 0x604   :  { %10615 = vmatpush1.bf16.msra.mxu1 %v18725_v21 }
 0x605   :  { %10616 = vmatprep.subr.bf16.mxu1 %v18733_v30  ;;  %10471 = vmatmul.mubr.bf16.vlgmr.msra.gmra.mrb[24].mxu0 %v19207_v29 }
 0x606   :  { %10480 = vmatpush1.bf16.msra.mxu0 %v18734_v60  ;;  %10511 = vmatprep.mubr.bf16.mxu0 %v18995_v0 }
 0x607   :  { %13451 = vmatprep.subr.bf16.mxu0 %v15921_v57 }
 0x608   :  { %10617 = vmatpush1.bf16.msra.mxu1 %v18731_v34  ;;  %v15953_v34 = vcombine.high %v10795_v17, %v10799_v20 }
 0x609   :  { %10618 = vmatprep.subr.bf16.mxu1 %v18739_v38  ;;  %v18757_v38 = vld [vmem:[#allocation2 + $0x28ac] ss:$112 sps:$4 sm:$0xff]  }
 0x60c   :  { %10619 = vmatpush1.bf16.msra.mxu1 %v18737_v39  ;;  %v10803_v39 = vld [vmem:[#allocation6 + $0x140] sm:$0xff] }
 0x60d   :  { %10620 = vmatprep.subr.bf16.mxu1 %v18742_v40  ;;  %v10807_v40 = vld [vmem:[#allocation6 + $0x160] sm:$0xff] }
 0x610   :  { %10621 = vmatpush1.bf16.msra.mxu1 %v18740_v50  ;;  %v15952_v50 = vcombine.low %v10795_v17, %v10799_v20 }
 0x611   :  { %10622 = vmatprep.subr.bf16.mxu1 %v18745_v53  ;;  %15918 = vmatmul.mubr.msk.bf16.vlgmr.msra.gmra.mrb[24].mxu0 %vm8384_vm0, %v19165_v10  ;;  %v15961_v53 = vcombine.high %v10803_v39, %v10807_v40 }
 0x612   :  { %13452 = vmatpush1.bf16.msra.mxu0 %v15920_v1  ;;  %v10815_v1 = vld [vmem:[#allocation6 + $0x1a0] sm:$0xff] }
 0x613   :  { %13453 = vmatprep.subr.bf16.mxu0 %v15929_v4  ;;  %v15969_v63 = vcombine.high %v10811_v56, %v10815_v1  ;;  %v10823_v4 = vld [vmem:[#allocation6 + $0x1e0] sm:$0xff] }
 0x614   :  { %10623 = vmatpush1.bf16.msra.mxu1 %v18743_v3  ;;  %v15960_v3 = vcombine.low %v10803_v39, %v10807_v40  ;;  %v10851_v39 = vld [vmem:[#allocation6 + $0x2c0] sm:$0xff] }
 0x615   :  { %10624 = vmatprep.subr.bf16.mxu1 %v18748_v5  ;;  %v18763_v5 = vld [vmem:[#allocation2 + $0x2a6c] ss:$112 sps:$4 sm:$0xff]  }
 0x616   :  { %13454 = vmatpush1.bf16.msra.mxu0 %v15928_v18  ;;  %v15968_v18 = vcombine.low %v10811_v56, %v10815_v1  ;;  %v10855_v40 = vld [vmem:[#allocation6 + $0x2e0] sm:$0xff] }
 0x617   :  { %13455 = vmatprep.subr.bf16.mxu0 %v15937_v7  ;;  %v18761_v7 = vld [vmem:[#allocation2 + $0x2a68] ss:$112 sps:$4 sm:$0xff]   ;;  %v16009_v56 = vcombine.high %v10851_v39, %v10855_v40 }
 0x618   :  { %10625 = vmatpush1.bf16.msra.mxu1 %v18746_v9  ;;  %v19384_v14 = vpop.f32.mrb[20].mxu0 }
 0x619   :  { %10626 = vmatprep.subr.bf16.mxu1 %v18751_v8  ;;  %v10187_v21 = vpop.f32.mrb[21].mxu0  ;;  %v10827_v8 = vld [vmem:[#allocation6 + $0x200] sm:$0xff] }
 0x61a   :  { %13456 = vmatpush1.bf16.msra.mxu0 %v15936_v12  ;;  %v10691_v22 = vmax.f32 %v19342_v42, %v10187_v21  ;;  %v10189_v30 = vpop.f32.mrb[22].mxu0  ;;  %v18755_v42 = vld [vmem:[#allocation2 + $0x28a8] ss:$112 sps:$4 sm:$0xff]   ;;  %v15984_v17 = vcombine.low %v10827_v8, %v10831_v11 }
 0x61b   :  { %v10190_v60 = vpop.f32.mrb[23].mxu0  ;;  %13457 = vmatprep.subr.bf16.mxu0 %v15945_v13  ;;  %v10835_v13 = vld [vmem:[#allocation6 + $0x240] sm:$0xff]  ;;  %v10772_v30 = vld [vmem:[#allocation6 + $0x48] sm:$0xff] }
 0x61c   :  { %10627 = vmatpush1.bf16.msra.mxu1 %v18749_v36  ;;  %v19390_v57 = vmax.f32 %v10684_v2, %v10691_v22  ;;  %v10819_v2 = vld [vmem:[#allocation6 + $0x1c0] sm:$0xff]  ;;  %v15985_v36 = vcombine.high %v10827_v8, %v10831_v11  ;;  %v19399_v8 = vld [vmem:[#allocation4] sm:$0xff] }
 0x61d   :  { %10628 = vmatprep.subr.bf16.mxu1 %v18754_v15  ;;  %v15977_v9 = vcombine.high %v10819_v2, %v10823_v4  ;;  %v15976_v12 = vcombine.low %v10819_v2, %v10823_v4  ;;  %v10839_v15 = vld [vmem:[#allocation6 + $0x260] sm:$0xff]  ;;  %v10788_v2 = vld [vmem:[#allocation6 + $0xc8] sm:$0xff] }
 0x61e   :  { %13458 = vmatpush1.bf16.msra.mxu0 %v15944_v58  ;;  %v15993_v20 = vcombine.high %v10835_v13, %v10839_v15  ;;  %v10843_v21 = vld [vmem:[#allocation6 + $0x280] sm:$0xff]  ;;  %v10776_v58 = vld [vmem:[#allocation6 + $0x68] sm:$0xff] }
 0x61f   :  { %13459 = vmatprep.subr.bf16.mxu0 %v15953_v34  ;;  %v10847_v22 = vld [vmem:[#allocation6 + $0x2a0] sm:$0xff]  ;;  %v10707_v34 = vlaneseq  ;;  %v10792_v4 = vld [vmem:[#allocation6 + $0xe8] sm:$0xff] }
 0x620   :  { %10629 = vmatpush1.bf16.msra.mxu1 %v18752_v32  ;;  %v15922_v32 = vcombine.low %v10764_v51, %v10768_v6  ;;  %v16001_v60 = vcombine.high %v10843_v21, %v10847_v22  ;;  %v16008_v51 = vcombine.low %v10851_v39, %v10855_v40  ;;  %v10804_v39 = vld [vmem:[#allocation6 + $0x148] sm:$0xff] }
 0x621   :  { %10630 = vmatprep.subr.bf16.mxu1 %v18757_v38  ;;  %v15931_v38 = vcombine.high %v10772_v30, %v10776_v58  ;;  %v19396_v1 = vshrl.u32 %v10707_v34, 7  ;;  %v10879_v34 = vld [vmem:[#allocation6 + $0x3a0] sm:$0xff] }
 0x622   :  { %13460 = vmatpush1.bf16.msra.mxu0 %v15952_v50  ;;  %v10780_v50 = vld [vmem:[#allocation6 + $0x88] sm:$0xff] }
 0x623   :  { %13461 = vmatprep.subr.bf16.mxu0 %v15961_v53  ;;  %v16000_v53 = vcombine.low %v10843_v21, %v10847_v22 }
 0x624   :  { %10631 = vmatpush1.bf16.msra.mxu1 %v18755_v42  ;;  %v10784_v42 = vld [vmem:[#allocation6 + $0xa8] sm:$0xff] }
 0x625   :  { %10632 = vmatprep.subr.bf16.mxu1 %v18760_v55  ;;  %v15930_v55 = vcombine.low %v10772_v30, %v10776_v58  ;;  %v15946_v30 = vcombine.low %v10788_v2, %v10792_v4 }
 0x626   :  { %13462 = vmatpush1.bf16.msra.mxu0 %v15960_v3  ;;  %v15939_v3 = vcombine.high %v10780_v50, %v10784_v42 }
 0x627   :  { %13463 = vmatprep.subr.bf16.mxu0 %v15969_v63  ;;  %v10863_v63 = vld [vmem:[#allocation6 + $0x320] sm:$0xff] }
 0x628   :  { %10633 = vmatpush1.bf16.msra.mxu1 %v18758_v26  ;;  %v10859_v26 = vld [vmem:[#allocation6 + $0x300] sm:$0xff] }
 0x629   :  { %10643 = vmatprep.subr.bf16.mxu1 %v18763_v5  ;;  %v10713_v5 = vsub.s32 1, %v19396_v1  ;;  %v16017_v6 = vcombine.high %v10859_v26, %v10863_v63 }
 0x62a   :  { %13464 = vmatpush1.bf16.msra.mxu0 %v15968_v18  ;;  %v15947_v18 = vcombine.high %v10788_v2, %v10792_v4 }
 0x62b   :  { %10635 = vmatmul.mubr.bf16.vlgmr.msra.gmra.mrb[32].mxu1 %v19207_v29  ;;  %13465 = vmatprep.subr.bf16.mxu0 %v15977_v9  ;;  %v15992_v29 = vcombine.low %v10835_v13, %v10839_v15  ;;  %v10867_v9 = vld [vmem:[#allocation6 + $0x340] sm:$0xff]  ;;  %v10714_v13 = vrot.slane %v19399_v8, %v10713_v5 }
 0x62c   :  { %10644 = vmatpush1.bf16.msra.mxu1 %v18761_v7  ;;  %10675 = vmatprep.mubr.bf16.mxu1 %v18995_v0  ;;  %v10871_v7 = vld [vmem:[#allocation6 + $0x360] sm:$0xff] }
 0x62d   :  { %13615 = vmatprep.subr.bf16.mxu1 %v15923_v24  ;;  %v10796_v24 = vld [vmem:[#allocation6 + $0x108] sm:$0xff]  ;;  %v16025_v58 = vcombine.high %v10867_v9, %v10871_v7 }
 0x62e   :  { %13466 = vmatpush1.bf16.msra.mxu0 %v15976_v12  ;;  %v10800_v12 = vld [vmem:[#allocation6 + $0x128] sm:$0xff] }
 0x62f   :  { %13467 = vmatprep.subr.bf16.mxu0 %v15985_v36  ;;  %v15954_v33 = vcombine.low %v10796_v24, %v10800_v12 }
 0x632   :  { %13468 = vmatpush1.bf16.msra.mxu0 %v15984_v17  ;;  %v16016_v17 = vcombine.low %v10859_v26, %v10863_v63 }
 0x633   :  { %13469 = vmatprep.subr.bf16.mxu0 %v15993_v20  ;;  %v10709_v20 = vsub.s32 0, %v19396_v1 }
 0x635   :  { %v10710_v28 = vrot.slane %v19399_v8, %v10709_v20 }
 0x636   :  { %13470 = vmatpush1.bf16.msra.mxu0 %v15992_v29 }
 0x637   :  { %15919 = vmatmul.mubr.msk.bf16.vlgmr.msra.gmra.mrb[32].mxu1 %vm8384_vm0, %v19165_v10  ;;  %13471 = vmatprep.subr.bf16.mxu0 %v16001_v60  ;;  %v15938_v10 = vcombine.low %v10780_v50, %v10784_v42  ;;  %v10875_v60 = vld [vmem:[#allocation6 + $0x380] sm:$0xff]  ;;  %v16024_v50 = vcombine.low %v10867_v9, %v10871_v7  ;;  %v10742_v26 = vadd.f32 %v10710_v28, %v19390_v57 }
 0x638   :  { %13616 = vmatpush1.bf16.msra.mxu1 %v15922_v32  ;;  %v15955_v32 = vcombine.high %v10796_v24, %v10800_v12  ;;  %v10899_v12 = vld [vmem:[#allocation6 + $0x440] sm:$0xff] }
 0x639   :  { %13617 = vmatprep.subr.bf16.mxu1 %v15931_v38  ;;  %v10749_v7 = vmax.f32 %v10742_v26, 0.0  ;;  %v10919_v28 = vld [vmem:[#allocation6 + $0x4e0] sm:$0xff]  ;;  %v10856_v26 = vld [vmem:[#allocation6 + $0x2e8] sm:$0xff] }
 0x63a   :  { %13472 = vmatpush1.bf16.msra.mxu0 %v16000_v53 }
 0x63b   :  { %13473 = vmatprep.subr.bf16.mxu0 %v16009_v56 }
 0x63c   :  { %13618 = vmatpush1.bf16.msra.mxu1 %v15930_v55  ;;  %v10883_v55 = vld [vmem:[#allocation6 + $0x3c0] sm:$0xff] }
 0x63d   :  { %13619 = vmatprep.subr.bf16.mxu1 %v15939_v3  ;;  %v16032_v3 = vcombine.low %v10875_v60, %v10879_v34  ;;  %v16041_v2 = vcombine.high %v10883_v55, %v10887_v43  ;;  %v16040_v9 = vcombine.low %v10883_v55, %v10887_v43 }
 0x63e   :  { %v10349_v11 = vpop.f32.mrb[28].mxu1  ;;  %13474 = vmatpush1.bf16.msra.mxu0 %v16008_v51  ;;  %v10891_v51 = vld [vmem:[#allocation6 + $0x400] sm:$0xff] }
 0x63f   :  { %v10692_v36 = vmax.f32 %v19344_v48, %v10349_v11  ;;  %v10351_v15 = vpop.f32.mrb[29].mxu1  ;;  %13475 = vmatprep.subr.bf16.mxu0 %v16017_v6  ;;  %v10820_v6 = vld [vmem:[#allocation6 + $0x1c8] sm:$0xff] }
 0x640   :  { %13620 = vmatpush1.bf16.msra.mxu1 %v15938_v10  ;;  %v10693_v21 = vmax.f32 %v19359_v49, %v10351_v15  ;;  %v10353_v22 = vpop.f32.mrb[30].mxu1  ;;  %v10808_v49 = vld [vmem:[#allocation6 + $0x168] sm:$0xff]  ;;  %v10895_v10 = vld [vmem:[#allocation6 + $0x420] sm:$0xff] }
 0x641   :  { %v10699_v48 = vmax.f32 %v10685_v35, %v10692_v36  ;;  %v10354_v29 = vpop.f32.mrb[31].mxu1  ;;  %13621 = vmatprep.subr.bf16.mxu1 %v15947_v18  ;;  %v16033_v35 = vcombine.high %v10875_v60, %v10879_v34  ;;  %v15963_v53 = vcombine.high %v10804_v39, %v10808_v49  ;;  %v15962_v63 = vcombine.low %v10804_v39, %v10808_v49  ;;  %v10824_v18 = vld [vmem:[#allocation6 + $0x1e8] sm:$0xff]  ;;  %v10903_v36 = vld [vmem:[#allocation6 + $0x460] sm:$0xff] }
 0x642   :  { %v19413_v38 = vmax.f32 %v10686_v54, %v10693_v21  ;;  %13476 = vmatpush1.bf16.msra.mxu0 %v16016_v17  ;;  %v10816_v54 = vld [vmem:[#allocation6 + $0x1a8] sm:$0xff]  ;;  %v16049_v57 = vcombine.high %v10891_v51, %v10895_v10  ;;  %v15979_v24 = vcombine.high %v10820_v6, %v10824_v18  ;;  %v16048_v17 = vcombine.low %v10891_v51, %v10895_v10  ;;  %v10911_v29 = vld [vmem:[#allocation6 + $0x4a0] sm:$0xff] }
 0x643   :  { %v10743_v40 = vadd.f32 %v10714_v13, %v10699_v48  ;;  %13477 = vmatprep.subr.bf16.mxu0 %v16025_v58  ;;  %v15971_v4 = vcombine.high %v10812_v37, %v10816_v54  ;;  %v15970_v11 = vcombine.low %v10812_v37, %v10816_v54  ;;  %v10828_v13 = vld [vmem:[#allocation6 + $0x208] sm:$0xff]  ;;  %v19423_v21 = vpack.c.bf16 %v10749_v7, %v10749_v7  ;;  %v10907_v48 = vld [vmem:[#allocation6 + $0x480] sm:$0xff] }
 0x644   :  { %13622 = vmatpush1.bf16.msra.mxu1 %v15946_v30  ;;  %v10832_v15 = vld [vmem:[#allocation6 + $0x228] sm:$0xff]  ;;  %v15978_v22 = vcombine.low %v10820_v6, %v10824_v18  ;;  %v16057_v30 = vcombine.high %v10899_v12, %v10903_v36  ;;  %v16056_v34 = vcombine.low %v10899_v12, %v10903_v36  ;;  %v16065_v49 = vcombine.high %v10907_v48, %v10911_v29  ;;  %v10923_v37 = vld [vmem:[#allocation6 + $0x500] sm:$0xff] }
 0x645   :  { %v10750_v42 = vmax.f32 %v10743_v40, 0.0  ;;  %13623 = vmatprep.subr.bf16.mxu1 %v15955_v32  ;;  %v15987_v58 = vcombine.high %v10828_v13, %v10832_v15  ;;  %v10836_v32 = vld [vmem:[#allocation6 + $0x248] sm:$0xff]  ;;  %v15986_v39 = vcombine.low %v10828_v13, %v10832_v15  ;;  %v10927_v54 = vld [vmem:[#allocation6 + $0x520] sm:$0xff] }
 0x646   :  { %13478 = vmatpush1.bf16.msra.mxu0 %v16024_v50  ;;  %v10840_v60 = vld [vmem:[#allocation6 + $0x268] sm:$0xff]  ;;  %v10915_v50 = vld [vmem:[#allocation6 + $0x4c0] sm:$0xff]  ;;  %v16080_v7 = vcombine.low %v10923_v37, %v10927_v54 }
 0x647   :  { %v19418_v56 = vpack.c.bf16 %v10750_v42, %v10750_v42  ;;  %13479 = vmatprep.subr.bf16.mxu0 %v16033_v35  ;;  %v15995_v40 = vcombine.high %v10836_v32, %v10840_v60  ;;  %v10848_v35 = vld [vmem:[#allocation6 + $0x2a8] sm:$0xff]  ;;  %v16064_v42 = vcombine.low %v10907_v48, %v10911_v29  ;;  %v16073_v55 = vcombine.high %v10915_v50, %v10919_v28  ;;  %v10931_v10 = vld [vmem:[#allocation6 + $0x540] sm:$0xff] }
 0x648   :  { %13624 = vmatpush1.bf16.msra.mxu1 %v15954_v33  ;;  %v10844_v33 = vld [vmem:[#allocation6 + $0x288] sm:$0xff]  ;;  %v10935_v6 = vld [vmem:[#allocation6 + $0x560] sm:$0xff] }
 0x649   :  { %13483 = vmatprep.mubr.bf16.mxu0 %v19418_v56  ;;  %13625 = vmatprep.subr.bf16.mxu1 %v15963_v53  ;;  %v15994_v53 = vcombine.low %v10836_v32, %v10840_v60  ;;  %v16003_v43 = vcombine.high %v10844_v33, %v10848_v35  ;;  %v10860_v18 = vld [vmem:[#allocation6 + $0x308] sm:$0xff]  ;;  %v10939_v12 = vld [vmem:[#allocation6 + $0x580] sm:$0xff] }
 0x64a   :  { %13647 = vmatprep.mubr.bf16.mxu1 %v19418_v56  ;;  %13480 = vmatpush1.bf16.msra.mxu0 %v16032_v3  ;;  %v10852_v3 = vld [vmem:[#allocation6 + $0x2c8] sm:$0xff]  ;;  %v10943_v36 = vld [vmem:[#allocation6 + $0x5a0] sm:$0xff] }
 0x64b   :  { %13481 = vmatprep.subr.bf16.mxu0 %v16041_v2  ;;  %v16002_v2 = vcombine.low %v10844_v33, %v10848_v35  ;;  %v16011_v51 = vcombine.high %v10852_v3, %v10856_v26  ;;  %v10868_v13 = vld [vmem:[#allocation6 + $0x348] sm:$0xff]  ;;  %v10947_v48 = vld [vmem:[#allocation6 + $0x5c0] sm:$0xff] }
 0x64c   :  { %13626 = vmatpush1.bf16.msra.mxu1 %v15962_v63  ;;  %v16072_v63 = vcombine.low %v10915_v50, %v10919_v28  ;;  %v10872_v15 = vld [vmem:[#allocation6 + $0x368] sm:$0xff]  ;;  %v10951_v29 = vld [vmem:[#allocation6 + $0x5e0] sm:$0xff] }
 0x64d   :  { %13627 = vmatprep.subr.bf16.mxu1 %v15971_v4  ;;  %v16081_v4 = vcombine.high %v10923_v37, %v10927_v54  ;;  %v10876_v32 = vld [vmem:[#allocation6 + $0x388] sm:$0xff]  ;;  %v10955_v50 = vld [vmem:[#allocation6 + $0x600] sm:$0xff] }
 0x64e   :  { %13482 = vmatpush1.bf16.msra.mxu0 %v16040_v9  ;;  %v10864_v9 = vld [vmem:[#allocation6 + $0x328] sm:$0xff]  ;;  %v10959_v28 = vld [vmem:[#allocation6 + $0x620] sm:$0xff] }
 0x64f   :  { %13492 = vmatprep.subr.bf16.mxu0 %v16049_v57  ;;  %v16089_v57 = vcombine.high %v10931_v10, %v10935_v6  ;;  %v10880_v60 = vld [vmem:[#allocation6 + $0x3a8] sm:$0xff]  ;;  %v10963_v37 = vld [vmem:[#allocation6 + $0x640] sm:$0xff] }
 0x650   :  { %13628 = vmatpush1.bf16.msra.mxu1 %v15970_v11  ;;  %v16010_v11 = vcombine.low %v10852_v3, %v10856_v26  ;;  %v10884_v33 = vld [vmem:[#allocation6 + $0x3c8] sm:$0xff]  ;;  %v10967_v54 = vld [vmem:[#allocation6 + $0x660] sm:$0xff] }
 0x651   :  { %13629 = vmatprep.subr.bf16.mxu1 %v15979_v24  ;;  %13484 = vmatmul.mubr.bf16.vlgmr.msra.gmra.mrb[28].mxu0 %v19423_v21  ;;  %v16019_v24 = vcombine.high %v10860_v18, %v10864_v9  ;;  %v10888_v35 = vld [vmem:[#allocation6 + $0x3e8] sm:$0xff] }
 0x652   :  { %13493 = vmatpush1.bf16.msra.mxu0 %v16048_v17  ;;  %v16088_v17 = vcombine.low %v10931_v10, %v10935_v6  ;;  %v10892_v3 = vld [vmem:[#allocation6 + $0x408] sm:$0xff]  ;;  %v19428_v10 = vld [vmem:[#allocation6 + $0x820] sm:$0xff] }
 0x653   :  { %13494 = vmatprep.subr.bf16.mxu0 %v16057_v30  ;;  %v16097_v30 = vcombine.high %v10939_v12, %v10943_v36  ;;  %v10896_v26 = vld [vmem:[#allocation6 + $0x428] sm:$0xff] }
 0x654   :  { %13630 = vmatpush1.bf16.msra.mxu1 %v15978_v22  ;;  %v16018_v22 = vcombine.low %v10860_v18, %v10864_v9  ;;  %v16051_v6 = vcombine.high %v10892_v3, %v10896_v26  ;;  %v10971_v18 = vld [vmem:[#allocation6 + $0x680] sm:$0xff] }
 0x655   :  { %13631 = vmatprep.subr.bf16.mxu1 %v15987_v58  ;;  %v16027_v58 = vcombine.high %v10868_v13, %v10872_v15  ;;  %v10975_v9 = vld [vmem:[#allocation6 + $0x6a0] sm:$0xff] }
 0x656   :  { %13495 = vmatpush1.bf16.msra.mxu0 %v16056_v34  ;;  %v16096_v34 = vcombine.low %v10939_v12, %v10943_v36  ;;  %v16050_v12 = vcombine.low %v10892_v3, %v10896_v26  ;;  %v16129_v36 = vcombine.high %v10971_v18, %v10975_v9  ;;  %v11003_v26 = vld [vmem:[#allocation6 + $0x780] sm:$0xff] }
 0x657   :  { %13496 = vmatprep.subr.bf16.mxu0 %v16065_v49  ;;  %v16105_v49 = vcombine.high %v10947_v48, %v10951_v29 }
 0x658   :  { %13632 = vmatpush1.bf16.msra.mxu1 %v15986_v39  ;;  %v16026_v39 = vcombine.low %v10868_v13, %v10872_v15  ;;  %v10979_v15 = vld [vmem:[#allocation6 + $0x6c0] sm:$0xff] }
 0x659   :  { %13633 = vmatprep.subr.bf16.mxu1 %v15995_v40  ;;  %v16035_v40 = vcombine.high %v10876_v32, %v10880_v60 }
 0x65a   :  { %13497 = vmatpush1.bf16.msra.mxu0 %v16064_v42  ;;  %v16104_v42 = vcombine.low %v10947_v48, %v10951_v29 }
 0x65b   :  { %13498 = vmatprep.subr.bf16.mxu0 %v16073_v55  ;;  %v16113_v55 = vcombine.high %v10955_v50, %v10959_v28 }
 0x65c   :  { %13634 = vmatpush1.bf16.msra.mxu1 %v15994_v53  ;;  %v16034_v53 = vcombine.low %v10876_v32, %v10880_v60  ;;  %v10987_v60 = vld [vmem:[#allocation6 + $0x700] sm:$0xff] }
 0x65d   :  { %13635 = vmatprep.subr.bf16.mxu1 %v16003_v43  ;;  %v16043_v43 = vcombine.high %v10884_v33, %v10888_v35 }
 0x65e   :  { %13499 = vmatpush1.bf16.msra.mxu0 %v16072_v63  ;;  %v16112_v63 = vcombine.low %v10955_v50, %v10959_v28 }
 0x65f   :  { %13500 = vmatprep.subr.bf16.mxu0 %v16081_v4  ;;  %v16121_v4 = vcombine.high %v10963_v37, %v10967_v54 }
 0x660   :  { %13636 = vmatpush1.bf16.msra.mxu1 %v16002_v2  ;;  %v16042_v2 = vcombine.low %v10884_v33, %v10888_v35  ;;  %v10995_v35 = vld [vmem:[#allocation6 + $0x740] sm:$0xff] }
 0x661   :  { %13637 = vmatprep.subr.bf16.mxu1 %v16011_v51  ;;  %v19426_v51 = vld [vmem:[#allocation6 + $0x800] sm:$0xff] }
 0x662   :  { %13501 = vmatpush1.bf16.msra.mxu0 %v16080_v7  ;;  %v16176_v7 = vcombine.low %v19426_v51, %v19428_v10 }
 0x663   :  { %13502 = vmatprep.subr.bf16.mxu0 %v16089_v57  ;;  %v10904_v57 = vld [vmem:[#allocation6 + $0x468] sm:$0xff] }
 0x664   :  { %13638 = vmatpush1.bf16.msra.mxu1 %v16010_v11  ;;  %v10900_v11 = vld [vmem:[#allocation6 + $0x448] sm:$0xff] }
 0x665   :  { %13639 = vmatprep.subr.bf16.mxu1 %v16019_v24  ;;  %v16120_v24 = vcombine.low %v10963_v37, %v10967_v54  ;;  %v16059_v13 = vcombine.high %v10900_v11, %v10904_v57  ;;  %v16058_v48 = vcombine.low %v10900_v11, %v10904_v57  ;;  %v11011_v57 = vld [vmem:[#allocation6 + $0x7c0] sm:$0xff] }
 0x666   :  { %13503 = vmatpush1.bf16.msra.mxu0 %v16088_v17  ;;  %v10983_v17 = vld [vmem:[#allocation6 + $0x6e0] sm:$0xff] }
 0x667   :  { %13504 = vmatprep.subr.bf16.mxu0 %v16097_v30  ;;  %v10912_v30 = vld [vmem:[#allocation6 + $0x4a8] sm:$0xff]  ;;  %v16137_v29 = vcombine.high %v10979_v15, %v10983_v17 }
 0x668   :  { %13640 = vmatpush1.bf16.msra.mxu1 %v16018_v22  ;;  %v10908_v22 = vld [vmem:[#allocation6 + $0x488] sm:$0xff] }
 0x669   :  { %13641 = vmatprep.subr.bf16.mxu1 %v16027_v58  ;;  %v16128_v58 = vcombine.low %v10971_v18, %v10975_v9  ;;  %v16067_v32 = vcombine.high %v10908_v22, %v10912_v30  ;;  %v16066_v50 = vcombine.low %v10908_v22, %v10912_v30  ;;  %v10948_v30 = vld [vmem:[#allocation6 + $0x5c8] sm:$0xff] }
 0x66a   :  { %13505 = vmatpush1.bf16.msra.mxu0 %v16096_v34  ;;  %v10991_v34 = vld [vmem:[#allocation6 + $0x720] sm:$0xff] }
 0x66b   :  { %13506 = vmatprep.subr.bf16.mxu0 %v16105_v49  ;;  %v10920_v49 = vld [vmem:[#allocation6 + $0x4e8] sm:$0xff]  ;;  %v16145_v28 = vcombine.high %v10987_v60, %v10991_v34 }
 0x66c   :  { %13642 = vmatpush1.bf16.msra.mxu1 %v16026_v39  ;;  %v10916_v39 = vld [vmem:[#allocation6 + $0x4c8] sm:$0xff] }
 0x66d   :  { %13643 = vmatprep.subr.bf16.mxu1 %v16035_v40  ;;  %v16136_v40 = vcombine.low %v10979_v15, %v10983_v17  ;;  %v16075_v33 = vcombine.high %v10916_v39, %v10920_v49  ;;  %v16074_v37 = vcombine.low %v10916_v39, %v10920_v49  ;;  %v10960_v39 = vld [vmem:[#allocation6 + $0x628] sm:$0xff] }
 0x66e   :  { %13507 = vmatpush1.bf16.msra.mxu0 %v16104_v42  ;;  %v10999_v42 = vld [vmem:[#allocation6 + $0x760] sm:$0xff] }
 0x66f   :  { %13508 = vmatprep.subr.bf16.mxu0 %v16113_v55  ;;  %v10928_v55 = vld [vmem:[#allocation6 + $0x528] sm:$0xff]  ;;  %v16153_v54 = vcombine.high %v10995_v35, %v10999_v42 }
 0x670   :  { %13644 = vmatpush1.bf16.msra.mxu1 %v16034_v53  ;;  %v10924_v53 = vld [vmem:[#allocation6 + $0x508] sm:$0xff] }
 0x671   :  { %13645 = vmatprep.subr.bf16.mxu1 %v16043_v43  ;;  %v16144_v43 = vcombine.low %v10987_v60, %v10991_v34  ;;  %v16083_v3 = vcombine.high %v10924_v53, %v10928_v55  ;;  %v16082_v18 = vcombine.low %v10924_v53, %v10928_v55  ;;  %v10956_v34 = vld [vmem:[#allocation6 + $0x608] sm:$0xff] }
 0x672   :  { %13509 = vmatpush1.bf16.msra.mxu0 %v16112_v63  ;;  %v11007_v63 = vld [vmem:[#allocation6 + $0x7a0] sm:$0xff]  ;;  %v10976_v53 = vld [vmem:[#allocation6 + $0x6a8] sm:$0xff] }
 0x673   :  { %13510 = vmatprep.subr.bf16.mxu0 %v16121_v4  ;;  %v10936_v4 = vld [vmem:[#allocation6 + $0x568] sm:$0xff]  ;;  %v16161_v9 = vcombine.high %v11003_v26, %v11007_v63 }
 0x674   :  { %13646 = vmatpush1.bf16.msra.mxu1 %v16042_v2  ;;  %v10932_v2 = vld [vmem:[#allocation6 + $0x548] sm:$0xff] }
 0x675   :  { %13656 = vmatprep.subr.bf16.mxu1 %v16051_v6  ;;  %v16152_v6 = vcombine.low %v10995_v35, %v10999_v42  ;;  %v16091_v11 = vcombine.high %v10932_v2, %v10936_v4  ;;  %v16090_v15 = vcombine.low %v10932_v2, %v10936_v4  ;;  %v10972_v42 = vld [vmem:[#allocation6 + $0x688] sm:$0xff] }
 0x676   :  { %13511 = vmatpush1.bf16.msra.mxu0 %v16120_v24  ;;  %v11015_v24 = vld [vmem:[#allocation6 + $0x7e0] sm:$0xff]  ;;  %v10992_v2 = vld [vmem:[#allocation6 + $0x728] sm:$0xff] }
 0x677   :  { %13648 = vmatmul.mubr.bf16.vlgmr.msra.gmra.mrb[36].mxu1 %v19423_v21  ;;  %13512 = vmatprep.subr.bf16.mxu0 %v16129_v36  ;;  %v10944_v36 = vld [vmem:[#allocation6 + $0x5a8] sm:$0xff]  ;;  %v16169_v17 = vcombine.high %v11011_v57, %v11015_v24 }
 0x678   :  { %13657 = vmatpush1.bf16.msra.mxu1 %v16050_v12  ;;  %v10940_v12 = vld [vmem:[#allocation6 + $0x588] sm:$0xff] }
 0x679   :  { %13658 = vmatprep.subr.bf16.mxu1 %v16059_v13  ;;  %v16160_v13 = vcombine.low %v11003_v26, %v11007_v63  ;;  %v16099_v22 = vcombine.high %v10940_v12, %v10944_v36  ;;  %v10988_v63 = vld [vmem:[#allocation6 + $0x708] sm:$0xff] }
 0x67a   :  { %13513 = vmatpush1.bf16.msra.mxu0 %v16128_v58  ;;  %v10952_v58 = vld [vmem:[#allocation6 + $0x5e8] sm:$0xff] }
 0x67b   :  { %13514 = vmatprep.subr.bf16.mxu0 %v16137_v29  ;;  %v16098_v29 = vcombine.low %v10940_v12, %v10944_v36  ;;  %v16107_v60 = vcombine.high %v10948_v30, %v10952_v58  ;;  %v16106_v49 = vcombine.low %v10948_v30, %v10952_v58  ;;  %v11008_v12 = vld [vmem:[#allocation6 + $0x7a8] sm:$0xff] }
 0x67c   :  { %13659 = vmatpush1.bf16.msra.mxu1 %v16058_v48  ;;  %v16168_v48 = vcombine.low %v11011_v57, %v11015_v24  ;;  %v11004_v24 = vld [vmem:[#allocation6 + $0x788] sm:$0xff] }
 0x67d   :  { %13660 = vmatprep.subr.bf16.mxu1 %v16067_v32  ;;  %v16177_v32 = vcombine.high %v19426_v51, %v19428_v10  ;;  %v11020_v58 = vld [vmem:[#allocation6 + $0x808] sm:$0xff]  ;;  %v11051_v10 = vld [vmem:[#allocation6 + $0x900] sm:$0xff] }
 0x67e   :  { %13515 = vmatpush1.bf16.msra.mxu0 %v16136_v40  ;;  %v16115_v40 = vcombine.high %v10956_v34, %v10960_v39 }
 0x67f   :  { %13516 = vmatprep.subr.bf16.mxu0 %v16145_v28  ;;  %v10968_v28 = vld [vmem:[#allocation6 + $0x668] sm:$0xff] }
 0x680   :  { %13661 = vmatpush1.bf16.msra.mxu1 %v16066_v50  ;;  %v10964_v50 = vld [vmem:[#allocation6 + $0x648] sm:$0xff] }
 0x681   :  { %13662 = vmatprep.subr.bf16.mxu1 %v16075_v33  ;;  %v16114_v33 = vcombine.low %v10956_v34, %v10960_v39  ;;  %v16123_v35 = vcombine.high %v10964_v50, %v10968_v28  ;;  %v16122_v55 = vcombine.low %v10964_v50, %v10968_v28  ;;  %v10721_v34 = vsub.s32 3, %v19396_v1 }
 0x682   :  { %13517 = vmatpush1.bf16.msra.mxu0 %v16144_v43  ;;  %v16131_v43 = vcombine.high %v10972_v42, %v10976_v53 }
 0x683   :  { %13518 = vmatprep.subr.bf16.mxu0 %v16153_v54  ;;  %v10984_v54 = vld [vmem:[#allocation6 + $0x6e8] sm:$0xff]  ;;  %v10722_v50 = vrot.slane %v19399_v8, %v10721_v34  ;;  %v11063_v34 = vld [vmem:[#allocation6 + $0x960] sm:$0xff] }
 0x684   :  { %13663 = vmatpush1.bf16.msra.mxu1 %v16074_v37  ;;  %v10980_v37 = vld [vmem:[#allocation6 + $0x6c8] sm:$0xff] }
 0x685   :  { %13664 = vmatprep.subr.bf16.mxu1 %v16083_v3  ;;  %v16130_v3 = vcombine.low %v10972_v42, %v10976_v53  ;;  %v16139_v26 = vcombine.high %v10980_v37, %v10984_v54  ;;  %v16138_v4 = vcombine.low %v10980_v37, %v10984_v54  ;;  %v11027_v54 = vld [vmem:[#allocation6 + $0x840] sm:$0xff] }
 0x686   :  { %13519 = vmatpush1.bf16.msra.mxu0 %v16152_v6  ;;  %v16147_v6 = vcombine.high %v10988_v63, %v10992_v2 }
 0x687   :  { %13520 = vmatprep.subr.bf16.mxu0 %v16161_v9  ;;  %v11000_v9 = vld [vmem:[#allocation6 + $0x768] sm:$0xff] }
 0x688   :  { %13665 = vmatpush1.bf16.msra.mxu1 %v16082_v18  ;;  %v10996_v18 = vld [vmem:[#allocation6 + $0x748] sm:$0xff] }
 0x689   :  { %13666 = vmatprep.subr.bf16.mxu1 %v16091_v11  ;;  %v16146_v11 = vcombine.low %v10988_v63, %v10992_v2  ;;  %v16155_v57 = vcombine.high %v10996_v18, %v11000_v9  ;;  %v16154_v36 = vcombine.low %v10996_v18, %v11000_v9  ;;  %v11028_v63 = vld [vmem:[#allocation6 + $0x848] sm:$0xff] }
 0x68a   :  { %13521 = vmatpush1.bf16.msra.mxu0 %v16160_v13  ;;  %v16163_v13 = vcombine.high %v11004_v24, %v11008_v12 }
 0x68b   :  { %13522 = vmatprep.subr.bf16.mxu0 %v16169_v17  ;;  %v11016_v17 = vld [vmem:[#allocation6 + $0x7e8] sm:$0xff] }
 0x68c   :  { %13667 = vmatpush1.bf16.msra.mxu1 %v16090_v15  ;;  %v11012_v15 = vld [vmem:[#allocation6 + $0x7c8] sm:$0xff] }
 0x68d   :  { %13668 = vmatprep.subr.bf16.mxu1 %v16099_v22  ;;  %v16162_v22 = vcombine.low %v11004_v24, %v11008_v12  ;;  %v16171_v30 = vcombine.high %v11012_v15, %v11016_v17  ;;  %v11047_v24 = vld [vmem:[#allocation6 + $0x8e0] sm:$0xff]  ;;  %v11044_v12 = vld [vmem:[#allocation6 + $0x8c8] sm:$0xff] }
 0x68e   :  { %13523 = vmatpush1.bf16.msra.mxu0 %v16168_v48  ;;  %v11024_v48 = vld [vmem:[#allocation6 + $0x828] sm:$0xff] }
 0x68f   :  { %13533 = vmatprep.subr.bf16.mxu0 %v16177_v32  ;;  %v16179_v32 = vcombine.high %v11020_v58, %v11024_v48 }
 0x690   :  { %13669 = vmatpush1.bf16.msra.mxu1 %v16098_v29  ;;  %v16170_v29 = vcombine.low %v11012_v15, %v11016_v17 }
 0x691   :  { %13670 = vmatprep.subr.bf16.mxu1 %v16107_v60  ;;  %v10717_v60 = vsub.s32 2, %v19396_v1 }
 0x693   :  { %v10718_v39 = vrot.slane %v19399_v8, %v10717_v60  ;;  %v11059_v60 = vld [vmem:[#allocation6 + $0x940] sm:$0xff] }
 0x694   :  { %13671 = vmatpush1.bf16.msra.mxu1 %v16106_v49 }
 0x695   :  { %13672 = vmatprep.subr.bf16.mxu1 %v16115_v40 }
 0x698   :  { %13673 = vmatpush1.bf16.msra.mxu1 %v16114_v33  ;;  %v10744_v33 = vadd.f32 %v10718_v39, %v19413_v38  ;;  %v11032_v38 = vld [vmem:[#allocation6 + $0x868] sm:$0xff] }
 0x699   :  { %13674 = vmatprep.subr.bf16.mxu1 %v16123_v35  ;;  %v16187_v23 = vcombine.high %v11028_v63, %v11032_v38  ;;  %v16186_v18 = vcombine.low %v11028_v63, %v11032_v38  ;;  %v11060_v39 = vld [vmem:[#allocation6 + $0x948] sm:$0xff]  ;;  %v11079_v63 = vld [vmem:[#allocation6 + $0x9e0] sm:$0xff] }
 0x69a   :  { %v11076_v38 = vld [vmem:[#allocation6 + $0x9c8] sm:$0xff] }
 0x69c   :  { %13675 = vmatpush1.bf16.msra.mxu1 %v16122_v55 }
 0x69d   :  { %13676 = vmatprep.subr.bf16.mxu1 %v16131_v43 }
 0x6a0   :  { %13677 = vmatpush1.bf16.msra.mxu1 %v16130_v3 }
 0x6a1   :  { %13678 = vmatprep.subr.bf16.mxu1 %v16139_v26  ;;  %v11031_v26 = vld [vmem:[#allocation6 + $0x860] sm:$0xff] }
 0x6a2   :  { %v16185_v44 = vcombine.high %v11027_v54, %v11031_v26 }
 0x6a4   :  { %13679 = vmatpush1.bf16.msra.mxu1 %v16138_v4 }
 0x6a5   :  { %13680 = vmatprep.subr.bf16.mxu1 %v16147_v6  ;;  %v16184_v6 = vcombine.low %v11027_v54, %v11031_v26  ;;  %v11075_v26 = vld [vmem:[#allocation6 + $0x9c0] sm:$0xff] }
 0x6a8   :  { %13681 = vmatpush1.bf16.msra.mxu1 %v16146_v11 }
 0x6a9   :  { %13682 = vmatprep.subr.bf16.mxu1 %v16155_v57  ;;  %v11043_v57 = vld [vmem:[#allocation6 + $0x8c0] sm:$0xff] }
 0x6aa   :  { %v16201_v17 = vcombine.high %v11043_v57, %v11047_v24 }
 0x6ac   :  { %13683 = vmatpush1.bf16.msra.mxu1 %v16154_v36  ;;  %v11048_v36 = vld [vmem:[#allocation6 + $0x8e8] sm:$0xff] }
 0x6ad   :  { %13684 = vmatprep.subr.bf16.mxu1 %v16163_v13  ;;  %v16203_v51 = vcombine.high %v11044_v12, %v11048_v36 }
 0x6b0   :  { %13685 = vmatpush1.bf16.msra.mxu1 %v16162_v22  ;;  %v11052_v22 = vld [vmem:[#allocation6 + $0x908] sm:$0xff] }
 0x6b1   :  { %13686 = vmatprep.subr.bf16.mxu1 %v16171_v30  ;;  %v11056_v30 = vld [vmem:[#allocation6 + $0x928] sm:$0xff] }
 0x6b4   :  { %13687 = vmatpush1.bf16.msra.mxu1 %v16170_v29 }
 0x6b5   :  { %13697 = vmatprep.subr.bf16.mxu1 %v16179_v32  ;;  %v16211_v32 = vcombine.high %v11052_v22, %v11056_v30 }
 0x6e4   :  { %v10513_v49 = vpop.f32.mrb[24].mxu0 }
 0x6e5   :  { %v10694_v40 = vmax.f32 %v19361_v52, %v10513_v49  ;;  %v10515_v28 = vpop.f32.mrb[25].mxu0  ;;  %v10751_v52 = vmax.f32 %v10744_v33, 0.0  ;;  %v11064_v49 = vld [vmem:[#allocation6 + $0x968] sm:$0xff] }
 0x6e6   :  { %v10695_v35 = vmax.f32 %v19368_v59, %v10515_v28  ;;  %v10517_v42 = vpop.f32.mrb[26].mxu0  ;;  %v16178_v59 = vcombine.low %v11020_v58, %v11024_v48  ;;  %v16200_v58 = vcombine.low %v11043_v57, %v11047_v24  ;;  %v16202_v48 = vcombine.low %v11044_v12, %v11048_v36 }
 0x6e7   :  { %v10701_v53 = vmax.f32 %v10687_v25, %v10694_v40  ;;  %v10518_v55 = vpop.f32.mrb[27].mxu0  ;;  %v19452_v4 = vpack.c.bf16 %v10751_v52, %v10751_v52  ;;  %v11035_v25 = vld [vmem:[#allocation6 + $0x880] sm:$0xff]  ;;  %v16217_v28 = vcombine.high %v11059_v60, %v11063_v34  ;;  %v16219_v33 = vcombine.high %v11060_v39, %v11064_v49 }
 0x6e8   :  { %v19448_v43 = vmax.f32 %v10688_v31, %v10695_v35  ;;  %v11040_v31 = vld [vmem:[#allocation6 + $0x8a8] sm:$0xff]  ;;  %v16193_v9 = vcombine.high %v11035_v25, %v11039_v16  ;;  %v16192_v13 = vcombine.low %v11035_v25, %v11039_v16  ;;  %v11067_v35 = vld [vmem:[#allocation6 + $0x980] sm:$0xff]  ;;  %v16218_v52 = vcombine.low %v11060_v39, %v11064_v49 }
 0x6e9   :  { %v10745_v37 = vadd.f32 %v10722_v50, %v10701_v53  ;;  %v16195_v11 = vcombine.high %v11036_v27, %v11040_v31  ;;  %v16194_v15 = vcombine.low %v11036_v27, %v11040_v31  ;;  %v16210_v50 = vcombine.low %v11052_v22, %v11056_v30  ;;  %v11071_v42 = vld [vmem:[#allocation6 + $0x9a0] sm:$0xff]  ;;  %v11068_v53 = vld [vmem:[#allocation6 + $0x988] sm:$0xff] }
 0x6ea   :  { %v11072_v55 = vld [vmem:[#allocation6 + $0x9a8] sm:$0xff]  ;;  %v16225_v54 = vcombine.high %v11067_v35, %v11071_v42  ;;  %v16233_v16 = vcombine.high %v11075_v26, %v11079_v63  ;;  %v11083_v31 = vld [vmem:[#allocation6 + $0xa00] sm:$0xff]  ;;  %v16232_v24 = vcombine.low %v11075_v26, %v11079_v63 }
 0x6eb   :  { %v10752_v3 = vmax.f32 %v10745_v37, 0.0  ;;  %v16216_v37 = vcombine.low %v11059_v60, %v11063_v34  ;;  %v16226_v25 = vcombine.low %v11068_v53, %v11072_v55  ;;  %v11095_v22 = vld [vmem:[#allocation6 + $0xa60] sm:$0xff]  ;;  %v11092_v30 = vld [vmem:[#allocation6 + $0xa48] sm:$0xff] }
 0x6ec   :  { %v11099_v39 = vld [vmem:[#allocation6 + $0xa80] sm:$0xff]  ;;  %v11116_v26 = vld [vmem:[#allocation6 + $0xb08] sm:$0xff] }
 0x6ed   :  { %v19450_v2 = vpack.c.bf16 %v10752_v3, %v10752_v3  ;;  %v16227_v3 = vcombine.high %v11068_v53, %v11072_v55  ;;  %v11103_v49 = vld [vmem:[#allocation6 + $0xaa0] sm:$0xff]  ;;  %v11120_v63 = vld [vmem:[#allocation6 + $0xb28] sm:$0xff] }
 0x6ee   :  { %v16256_v53 = vcombine.low %v11099_v39, %v11103_v49 }
 0x6ef   :  { %13524 = vmatprep.mubr.bf16.mxu0 %v19450_v2  ;;  %13688 = vmatprep.mubr.bf16.mxu1 %v19450_v2 }
 0x6f0   :  { %13525 = vmatmul.mubr.bf16.vlgmr.msra.gmra.mrb[28].mxu0 %v19452_v4  ;;  %13689 = vmatmul.mubr.bf16.vlgmr.msra.gmra.mrb[36].mxu1 %v19452_v4 }
 0x6f1   :  { %13534 = vmatpush1.bf16.msra.mxu0 %v16176_v7  ;;  %13698 = vmatpush1.bf16.msra.mxu1 %v16178_v59  ;;  %v11055_v7 = vld [vmem:[#allocation6 + $0x920] sm:$0xff]  ;;  %v11080_v59 = vld [vmem:[#allocation6 + $0x9e8] sm:$0xff] }
 0x6f2   :  { %13535 = vmatprep.subr.bf16.mxu0 %v16185_v44  ;;  %13699 = vmatprep.subr.bf16.mxu1 %v16187_v23  ;;  %v16209_v29 = vcombine.high %v11051_v10, %v11055_v7  ;;  %v16208_v40 = vcombine.low %v11051_v10, %v11055_v7  ;;  %v10729_v44 = vsub.s32 5, %v19396_v1  ;;  %v16224_v23 = vcombine.low %v11067_v35, %v11071_v42  ;;  %v11108_v35 = vld [vmem:[#allocation6 + $0xac8] sm:$0xff] }
 0x6f3   :  { %v16235_v27 = vcombine.high %v11076_v38, %v11080_v59  ;;  %v16234_v12 = vcombine.low %v11076_v38, %v11080_v59  ;;  %v11112_v42 = vld [vmem:[#allocation6 + $0xae8] sm:$0xff] }
 0x6f4   :  { %v10730_v57 = vrot.slane %v19399_v8, %v10729_v44  ;;  %v16266_v59 = vcombine.low %v11108_v35, %v11112_v42 }
 0x6f5   :  { %13536 = vmatpush1.bf16.msra.mxu0 %v16184_v6  ;;  %13700 = vmatpush1.bf16.msra.mxu1 %v16186_v18  ;;  %v11087_v6 = vld [vmem:[#allocation6 + $0xa20] sm:$0xff]  ;;  %v11084_v18 = vld [vmem:[#allocation6 + $0xa08] sm:$0xff] }
 0x6f6   :  { %13537 = vmatprep.subr.bf16.mxu0 %v16193_v9  ;;  %13701 = vmatprep.subr.bf16.mxu1 %v16195_v11  ;;  %v11088_v9 = vld [vmem:[#allocation6 + $0xa28] sm:$0xff] }
 0x6f9   :  { %13538 = vmatpush1.bf16.msra.mxu0 %v16192_v13  ;;  %13702 = vmatpush1.bf16.msra.mxu1 %v16194_v15  ;;  %v16241_v15 = vcombine.high %v11083_v31, %v11087_v6 }
 0x6fa   :  { %13539 = vmatprep.subr.bf16.mxu0 %v16201_v17  ;;  %13703 = vmatprep.subr.bf16.mxu1 %v16203_v51  ;;  %v16243_v17 = vcombine.high %v11084_v18, %v11088_v9  ;;  %v11091_v51 = vld [vmem:[#allocation6 + $0xa40] sm:$0xff] }
 0x6fd   :  { %13540 = vmatpush1.bf16.msra.mxu0 %v16200_v58  ;;  %13704 = vmatpush1.bf16.msra.mxu1 %v16202_v48  ;;  %v11096_v58 = vld [vmem:[#allocation6 + $0xa68] sm:$0xff] }
 0x6fe   :  { %13541 = vmatprep.subr.bf16.mxu0 %v16209_v29  ;;  %13705 = vmatprep.subr.bf16.mxu1 %v16211_v32  ;;  %v16240_v29 = vcombine.low %v11083_v31, %v11087_v6  ;;  %v16242_v32 = vcombine.low %v11084_v18, %v11088_v9  ;;  %v16251_v34 = vcombine.high %v11092_v30, %v11096_v58  ;;  %v11128_v31 = vld [vmem:[#allocation6 + $0xb68] sm:$0xff]  ;;  %v10725_v9 = vsub.s32 4, %v19396_v1 }
 0x6ff   :  { %v16250_v62 = vcombine.low %v11092_v30, %v11096_v58  ;;  %v16274_v18 = vcombine.low %v11116_v26, %v11120_v63  ;;  %v11139_v30 = vld [vmem:[#allocation6 + $0xbc0] sm:$0xff] }
 0x700   :  { %v11143_v58 = vld [vmem:[#allocation6 + $0xbe0] sm:$0xff] }
 0x701   :  { %13542 = vmatpush1.bf16.msra.mxu0 %v16208_v40  ;;  %13706 = vmatpush1.bf16.msra.mxu1 %v16210_v50  ;;  %v11100_v40 = vld [vmem:[#allocation6 + $0xa88] sm:$0xff] }
 0x702   :  { %13543 = vmatprep.subr.bf16.mxu0 %v16217_v28  ;;  %13707 = vmatprep.subr.bf16.mxu1 %v16219_v33  ;;  %v16259_v50 = vcombine.high %v11100_v40, %v11104_v19  ;;  %v11107_v28 = vld [vmem:[#allocation6 + $0xac0] sm:$0xff]  ;;  %v16258_v55 = vcombine.low %v11100_v40, %v11104_v19  ;;  %v11148_v40 = vld [vmem:[#allocation6 + $0xc08] sm:$0xff] }
 0x703   :  { %v11111_v33 = vld [vmem:[#allocation6 + $0xae0] sm:$0xff]  ;;  %v11152_v19 = vld [vmem:[#allocation6 + $0xc28] sm:$0xff] }
 0x704   :  { %v16264_v38 = vcombine.low %v11107_v28, %v11111_v33 }
 0x705   :  { %13544 = vmatpush1.bf16.msra.mxu0 %v16216_v37  ;;  %13708 = vmatpush1.bf16.msra.mxu1 %v16218_v52  ;;  %v16265_v37 = vcombine.high %v11107_v28, %v11111_v33  ;;  %v16267_v52 = vcombine.high %v11108_v35, %v11112_v42  ;;  %v11155_v28 = vld [vmem:[#allocation6 + $0xc40] sm:$0xff]  ;;  %v11160_v35 = vld [vmem:[#allocation6 + $0xc68] sm:$0xff] }
 0x706   :  { %13545 = vmatprep.subr.bf16.mxu0 %v16225_v54  ;;  %13709 = vmatprep.subr.bf16.mxu1 %v16227_v3  ;;  %v11115_v54 = vld [vmem:[#allocation6 + $0xb00] sm:$0xff] }
 0x707   :  { %v11119_v3 = vld [vmem:[#allocation6 + $0xb20] sm:$0xff] }
 0x708   :  { %v16273_v44 = vcombine.high %v11115_v54, %v11119_v3  ;;  %v16272_v6 = vcombine.low %v11115_v54, %v11119_v3  ;;  %v11159_v33 = vld [vmem:[#allocation6 + $0xc60] sm:$0xff] }
 0x709   :  { %13546 = vmatpush1.bf16.msra.mxu0 %v16224_v23  ;;  %13710 = vmatpush1.bf16.msra.mxu1 %v16226_v25  ;;  %v16275_v23 = vcombine.high %v11116_v26, %v11120_v63  ;;  %v11123_v25 = vld [vmem:[#allocation6 + $0xb40] sm:$0xff]  ;;  %v11164_v26 = vld [vmem:[#allocation6 + $0xc88] sm:$0xff] }
 0x70a   :  { %v10677_v11 = vpop.f32.mrb[32].mxu1  ;;  %13547 = vmatprep.subr.bf16.mxu0 %v16233_v16  ;;  %13711 = vmatprep.subr.bf16.mxu1 %v16235_v27  ;;  %v11127_v16 = vld [vmem:[#allocation6 + $0xb60] sm:$0xff]  ;;  %v11124_v27 = vld [vmem:[#allocation6 + $0xb48] sm:$0xff] }
 0x70b   :  { %v10696_v36 = vmax.f32 %v19370_v61, %v10677_v11  ;;  %v10679_v13 = vpop.f32.mrb[33].mxu1  ;;  %v16281_v11 = vcombine.high %v11123_v25, %v11127_v16  ;;  %v11163_v54 = vld [vmem:[#allocation6 + $0xc80] sm:$0xff]  ;;  %v11168_v63 = vld [vmem:[#allocation6 + $0xca8] sm:$0xff] }
 0x70c   :  { %v10697_v10 = vmax.f32 %v19384_v14, %v10679_v13  ;;  %v10681_v7 = vpop.f32.mrb[34].mxu1  ;;  %v16249_v14 = vcombine.high %v11091_v51, %v11095_v22  ;;  %v11136_v13 = vld [vmem:[#allocation6 + $0xba8] sm:$0xff]  ;;  %v11167_v3 = vld [vmem:[#allocation6 + $0xca0] sm:$0xff] }
 0x70d   :  { %v10703_v8 = vmax.f32 %v10689_v45, %v10696_v36  ;;  %v10682_v48 = vpop.f32.mrb[35].mxu1  ;;  %13548 = vmatpush1.bf16.msra.mxu0 %v16232_v24  ;;  %13712 = vmatpush1.bf16.msra.mxu1 %v16234_v12  ;;  %v16248_v45 = vcombine.low %v11091_v51, %v11095_v22  ;;  %v11131_v24 = vld [vmem:[#allocation6 + $0xb80] sm:$0xff]  ;;  %v11132_v36 = vld [vmem:[#allocation6 + $0xb88] sm:$0xff]  ;;  %v19478_v51 = vld [vmem:[#allocation4] sm:$0xff] }
 0x70e   :  { %v19471_v61 = vmax.f32 %v10690_v47, %v10697_v10  ;;  %13549 = vmatprep.subr.bf16.mxu0 %v16241_v15  ;;  %13713 = vmatprep.subr.bf16.mxu1 %v16243_v17  ;;  %v16257_v47 = vcombine.high %v11099_v39, %v11103_v49  ;;  %v11135_v12 = vld [vmem:[#allocation6 + $0xba0] sm:$0xff]  ;;  %v16280_v15 = vcombine.low %v11123_v25, %v11127_v16  ;;  %v11144_v48 = vld [vmem:[#allocation6 + $0xbe8] sm:$0xff] }
 0x70f   :  { %v10747_v60 = vadd.f32 %v10730_v57, %v10703_v8  ;;  %v16283_v57 = vcombine.high %v11124_v27, %v11128_v31  ;;  %v16282_v17 = vcombine.low %v11124_v27, %v11128_v31  ;;  %v10726_v10 = vrot.slane %v19478_v51, %v10725_v9  ;;  %v11140_v8 = vld [vmem:[#allocation6 + $0xbc8] sm:$0xff]  ;;  %v11147_v39 = vld [vmem:[#allocation6 + $0xc00] sm:$0xff] }
 0x710   :  { %v16289_v7 = vcombine.high %v11131_v24, %v11135_v12  ;;  %v16291_v22 = vcombine.high %v11132_v36, %v11136_v13  ;;  %v11151_v49 = vld [vmem:[#allocation6 + $0xc20] sm:$0xff]  ;;  %v11172_v27 = vld [vmem:[#allocation6 + $0xcc8] sm:$0xff] }
 0x711   :  { %v10754_v41 = vmax.f32 %v10747_v60, 0.0  ;;  %13550 = vmatpush1.bf16.msra.mxu0 %v16240_v29  ;;  %13714 = vmatpush1.bf16.msra.mxu1 %v16242_v32  ;;  %v16288_v29 = vcombine.low %v11131_v24, %v11135_v12  ;;  %v16290_v32 = vcombine.low %v11132_v36, %v11136_v13  ;;  %v10746_v60 = vadd.f32 %v10726_v10, %v19448_v43  ;;  %v11156_v43 = vld [vmem:[#allocation6 + $0xc48] sm:$0xff]  ;;  %v11171_v25 = vld [vmem:[#allocation6 + $0xcc0] sm:$0xff] }
 0x712   :  { %13551 = vmatprep.subr.bf16.mxu0 %v16249_v14  ;;  %13715 = vmatprep.subr.bf16.mxu1 %v16251_v34  ;;  %v16297_v14 = vcombine.high %v11139_v30, %v11143_v58  ;;  %v16299_v34 = vcombine.high %v11140_v8, %v11144_v48  ;;  %v16304_v42 = vcombine.low %v11147_v39, %v11151_v49  ;;  %v11175_v16 = vld [vmem:[#allocation6 + $0xce0] sm:$0xff]  ;;  %v11176_v31 = vld [vmem:[#allocation6 + $0xce8] sm:$0xff] }
 0x713   :  { %v19473_v46 = vpack.c.bf16 %v10754_v41, %v10754_v41  ;;  %v16296_v41 = vcombine.low %v11139_v30, %v11143_v58  ;;  %v16329_v9 = vcombine.high %v11171_v25, %v11175_v16  ;;  %v11183_v24 = vld [vmem:[#allocation6 + $0xd20] sm:$0xff]  ;;  %v11180_v12 = vld [vmem:[#allocation6 + $0xd08] sm:$0xff]  ;;  %v16328_v13 = vcombine.low %v11171_v25, %v11175_v16  ;;  %v10777_v25 = vld [vmem:[#allocation6 + $0x70] sm:$0xff] }
 0x714   :  { %v11184_v36 = vld [vmem:[#allocation6 + $0xd28] sm:$0xff]  ;;  %v10778_v16 = vld [vmem:[#allocation6 + $0x78] sm:$0xff] }
 0x715   :  { %13565 = vmatprep.mubr.bf16.mxu0 %v19473_v46  ;;  %13729 = vmatprep.mubr.bf16.mxu1 %v19473_v46  ;;  %v16339_v10 = vcombine.high %v11180_v12, %v11184_v36  ;;  %v11188_v30 = vld [vmem:[#allocation6 + $0xd48] sm:$0xff] }
 0x716   :  { %13552 = vmatpush1.bf16.msra.mxu0 %v16248_v45  ;;  %13716 = vmatpush1.bf16.msra.mxu1 %v16250_v62  ;;  %v16298_v45 = vcombine.low %v11140_v8, %v11144_v48  ;;  %v10753_v62 = vmax.f32 %v10746_v60, 0.0  ;;  %v11192_v58 = vld [vmem:[#allocation6 + $0xd68] sm:$0xff]  ;;  %v16338_v48 = vcombine.low %v11180_v12, %v11184_v36  ;;  %v10786_v12 = vld [vmem:[#allocation6 + $0xb8] sm:$0xff] }
 0x717   :  { %13553 = vmatprep.subr.bf16.mxu0 %v16257_v47  ;;  %13717 = vmatprep.subr.bf16.mxu1 %v16259_v50  ;;  %v16305_v47 = vcombine.high %v11147_v39, %v11151_v49  ;;  %v16307_v50 = vcombine.high %v11148_v40, %v11152_v19  ;;  %v16347_v60 = vcombine.high %v11188_v30, %v11192_v58  ;;  %v11196_v39 = vld [vmem:[#allocation6 + $0xd88] sm:$0xff] }
 0x718   :  { %v11200_v49 = vld [vmem:[#allocation6 + $0xda8] sm:$0xff] }
 0x71a   :  { %13554 = vmatpush1.bf16.msra.mxu0 %v16256_v53  ;;  %13718 = vmatpush1.bf16.msra.mxu1 %v16258_v55  ;;  %v16306_v53 = vcombine.low %v11148_v40, %v11152_v19  ;;  %v19482_v55 = vpack.c.bf16 %v10753_v62, %v10753_v62  ;;  %v16346_v19 = vcombine.low %v11188_v30, %v11192_v58  ;;  %v10794_v30 = vld [vmem:[#allocation6 + $0xf8] sm:$0xff] }
 0x71b   :  { %13555 = vmatprep.subr.bf16.mxu0 %v16265_v37  ;;  %13719 = vmatprep.subr.bf16.mxu1 %v16267_v52  ;;  %v16313_v37 = vcombine.high %v11155_v28, %v11159_v33  ;;  %v16315_v52 = vcombine.high %v11156_v43, %v11160_v35  ;;  %v16355_v62 = vcombine.high %v11196_v39, %v11200_v49 }
 0x71e   :  { %13556 = vmatpush1.bf16.msra.mxu0 %v16264_v38  ;;  %13720 = vmatpush1.bf16.msra.mxu1 %v16266_v59  ;;  %v16312_v38 = vcombine.low %v11155_v28, %v11159_v33  ;;  %v16314_v59 = vcombine.low %v11156_v43, %v11160_v35  ;;  %v11204_v28 = vld [vmem:[#allocation6 + $0xdc8] sm:$0xff]  ;;  %v16354_v35 = vcombine.low %v11196_v39, %v11200_v49 }
 0x71f   :  { %13557 = vmatprep.subr.bf16.mxu0 %v16273_v44  ;;  %13721 = vmatprep.subr.bf16.mxu1 %v16275_v23  ;;  %v16321_v44 = vcombine.high %v11163_v54, %v11167_v3  ;;  %v16323_v23 = vcombine.high %v11164_v26, %v11168_v63  ;;  %v11208_v33 = vld [vmem:[#allocation6 + $0xde8] sm:$0xff] }
 0x722   :  { %13558 = vmatpush1.bf16.msra.mxu0 %v16272_v6  ;;  %13722 = vmatpush1.bf16.msra.mxu1 %v16274_v18  ;;  %v16320_v6 = vcombine.low %v11163_v54, %v11167_v3  ;;  %v16322_v18 = vcombine.low %v11164_v26, %v11168_v63  ;;  %v10766_v54 = vld [vmem:[#allocation6 + $0x18] sm:$0xff]  ;;  %v16362_v63 = vcombine.low %v11204_v28, %v11208_v33 }
 0x723   :  { %13559 = vmatprep.subr.bf16.mxu0 %v16281_v11  ;;  %13723 = vmatprep.subr.bf16.mxu1 %v16283_v57  ;;  %v16331_v11 = vcombine.high %v11172_v27, %v11176_v31  ;;  %v11179_v57 = vld [vmem:[#allocation6 + $0xd00] sm:$0xff]  ;;  %v10770_v3 = vld [vmem:[#allocation6 + $0x38] sm:$0xff] }
 0x724   :  { %v16336_v8 = vcombine.low %v11179_v57, %v11183_v24 }
 0x726   :  { %13560 = vmatpush1.bf16.msra.mxu0 %v16280_v15  ;;  %13724 = vmatpush1.bf16.msra.mxu1 %v16282_v17  ;;  %v16330_v15 = vcombine.low %v11172_v27, %v11176_v31  ;;  %v16337_v17 = vcombine.high %v11179_v57, %v11183_v24  ;;  %v10785_v57 = vld [vmem:[#allocation6 + $0xb0] sm:$0xff]  ;;  %v10782_v24 = vld [vmem:[#allocation6 + $0x98] sm:$0xff] }
 0x727   :  { %13561 = vmatprep.subr.bf16.mxu0 %v16289_v7  ;;  %13725 = vmatprep.subr.bf16.mxu1 %v16291_v22  ;;  %v11187_v7 = vld [vmem:[#allocation6 + $0xd40] sm:$0xff] }
 0x728   :  { %v11191_v22 = vld [vmem:[#allocation6 + $0xd60] sm:$0xff] }
 0x729   :  { %v16344_v40 = vcombine.low %v11187_v7, %v11191_v22 }
 0x72a   :  { %13562 = vmatpush1.bf16.msra.mxu0 %v16288_v29  ;;  %13726 = vmatpush1.bf16.msra.mxu1 %v16290_v32  ;;  %v10733_v29 = vsub.s32 6, %v19396_v1  ;;  %v16345_v32 = vcombine.high %v11187_v7, %v11191_v22  ;;  %v10793_v7 = vld [vmem:[#allocation6 + $0xf0] sm:$0xff]  ;;  %v10790_v22 = vld [vmem:[#allocation6 + $0xd8] sm:$0xff]  ;;  %v18786_v1 = vld [vmem:[%s19631_s7 + $0x30] sm:$0xff]  }
 0x72b   :  { %13563 = vmatprep.subr.bf16.mxu0 %v16297_v14  ;;  %13727 = vmatprep.subr.bf16.mxu1 %v16299_v34  ;;  %v11195_v14 = vld [vmem:[#allocation6 + $0xd80] sm:$0xff]  ;;  %v15950_v39 = vcombine.low %v10790_v22, %v10794_v30 }
 0x72c   :  { %v11199_v34 = vld [vmem:[#allocation6 + $0xda0] sm:$0xff] }
 0x72d   :  { %v16352_v43 = vcombine.low %v11195_v14, %v11199_v34 }
 0x72e   :  { %13564 = vmatpush1.bf16.msra.mxu0 %v16296_v41  ;;  %13728 = vmatpush1.bf16.msra.mxu1 %v16298_v45  ;;  %v10734_v41 = vrot.slane %v19478_v51, %v10733_v29  ;;  %v16353_v45 = vcombine.high %v11195_v14, %v11199_v34  ;;  %v10769_v51 = vld [vmem:[#allocation6 + $0x30] sm:$0xff]  ;;  %v15951_v29 = vcombine.high %v10790_v22, %v10794_v30  ;;  %v10802_v14 = vld [vmem:[#allocation6 + $0x138] sm:$0xff] }
 0x72f   :  { %13574 = vmatprep.subr.bf16.mxu0 %v16305_v47  ;;  %13738 = vmatprep.subr.bf16.mxu1 %v16307_v50  ;;  %v11203_v47 = vld [vmem:[#allocation6 + $0xdc0] sm:$0xff]  ;;  %v10845_v22 = vld [vmem:[#allocation6 + $0x290] sm:$0xff] }
 0x730   :  { %v11207_v50 = vld [vmem:[#allocation6 + $0xde0] sm:$0xff]  ;;  %v10849_v30 = vld [vmem:[#allocation6 + $0x2b0] sm:$0xff] }
 0x731   :  { %13566 = vmatmul.mubr.bf16.vlgmr.msra.gmra.mrb[28].mxu0 %v19482_v55  ;;  %13730 = vmatmul.mubr.bf16.vlgmr.msra.gmra.mrb[36].mxu1 %v19482_v55  ;;  %v16360_v26 = vcombine.low %v11203_v47, %v11207_v50 }
 0x732   :  { %13575 = vmatpush1.bf16.msra.mxu0 %v16304_v42  ;;  %13739 = vmatpush1.bf16.msra.mxu1 %v16306_v53  ;;  %v10748_v42 = vadd.f32 %v10734_v41, %v19471_v61  ;;  %v16361_v53 = vcombine.high %v11203_v47, %v11207_v50  ;;  %v10774_v61 = vld [vmem:[#allocation6 + $0x58] sm:$0xff]  ;;  %v10809_v41 = vld [vmem:[#allocation6 + $0x170] sm:$0xff] }
 0x733   :  { %13576 = vmatprep.subr.bf16.mxu0 %v16313_v37  ;;  %13740 = vmatprep.subr.bf16.mxu1 %v16315_v52  ;;  %v16363_v37 = vcombine.high %v11204_v28, %v11208_v33  ;;  %v10765_v52 = vld [vmem:[#allocation6 + $0x10] sm:$0xff] }
 0x734   :  { %13606 = vmatprep.mubr.bf16.mxu0 %v18995_v0  ;;  %13770 = vmatprep.mubr.bf16.mxu1 %v18995_v0  ;;  %v15924_v27 = vcombine.low %v10765_v52, %v10769_v51 }
 0x736   :  { %13577 = vmatpush1.bf16.msra.mxu0 %v16312_v38  ;;  %13741 = vmatpush1.bf16.msra.mxu1 %v16314_v59  ;;  %v10755_v38 = vmax.f32 %v10748_v42, 0.0  ;;  %v15925_v59 = vcombine.high %v10765_v52, %v10769_v51  ;;  %v10814_v42 = vld [vmem:[#allocation6 + $0x198] sm:$0xff] }
 0x737   :  { %13578 = vmatprep.subr.bf16.mxu0 %v16321_v44  ;;  %13742 = vmatprep.subr.bf16.mxu1 %v16323_v23  ;;  %v15927_v44 = vcombine.high %v10766_v54, %v10770_v3  ;;  %v10773_v23 = vld [vmem:[#allocation6 + $0x50] sm:$0xff] }
 0x738   :  { %v19491_v31 = vpack.c.bf16 %v10755_v38, %v10755_v38  ;;  %v15932_v36 = vcombine.low %v10773_v23, %v10777_v25  ;;  %v10826_v38 = vld [vmem:[#allocation6 + $0x1f8] sm:$0xff] }
 0x73a   :  { %13579 = vmatpush1.bf16.msra.mxu0 %v16320_v6  ;;  %13743 = vmatpush1.bf16.msra.mxu1 %v16322_v18  ;;  %v15926_v6 = vcombine.low %v10766_v54, %v10770_v3  ;;  %v15933_v18 = vcombine.high %v10773_v23, %v10777_v25  ;;  %v10821_v3 = vld [vmem:[#allocation6 + $0x1d0] sm:$0xff] }
 0x73b   :  { %13580 = vmatprep.subr.bf16.mxu0 %v16329_v9  ;;  %13744 = vmatprep.subr.bf16.mxu1 %v16331_v11  ;;  %v15935_v9 = vcombine.high %v10774_v61, %v10778_v16  ;;  %v10781_v11 = vld [vmem:[#allocation6 + $0x90] sm:$0xff] }
 0x73c   :  { %v15940_v58 = vcombine.low %v10781_v11, %v10785_v57 }
 0x73e   :  { %13581 = vmatpush1.bf16.msra.mxu0 %v16328_v13  ;;  %13745 = vmatpush1.bf16.msra.mxu1 %v16330_v15  ;;  %v15934_v13 = vcombine.low %v10774_v61, %v10778_v16  ;;  %v15941_v15 = vcombine.high %v10781_v11, %v10785_v57  ;;  %v10829_v61 = vld [vmem:[#allocation6 + $0x210] sm:$0xff] }
 0x73f   :  { %13582 = vmatprep.subr.bf16.mxu0 %v16337_v17  ;;  %13746 = vmatprep.subr.bf16.mxu1 %v16339_v10  ;;  %v15943_v17 = vcombine.high %v10782_v24, %v10786_v12  ;;  %v10789_v10 = vld [vmem:[#allocation6 + $0xd0] sm:$0xff] }
 0x740   :  { %v15948_v34 = vcombine.low %v10789_v10, %v10793_v7  ;;  %v10833_v16 = vld [vmem:[#allocation6 + $0x230] sm:$0xff] }
 0x741   :  { %v15989_v11 = vcombine.high %v10829_v61, %v10833_v16 }
 0x742   :  { %13583 = vmatpush1.bf16.msra.mxu0 %v16336_v8  ;;  %13747 = vmatpush1.bf16.msra.mxu1 %v16338_v48  ;;  %v15942_v8 = vcombine.low %v10782_v24, %v10786_v12  ;;  %v15949_v48 = vcombine.high %v10789_v10, %v10793_v7  ;;  %v10837_v24 = vld [vmem:[#allocation6 + $0x250] sm:$0xff] }
 0x743   :  { %13584 = vmatprep.subr.bf16.mxu0 %v16345_v32  ;;  %13748 = vmatprep.subr.bf16.mxu1 %v16347_v60  ;;  %v10797_v32 = vld [vmem:[#allocation6 + $0x110] sm:$0xff] }
 0x744   :  { %v10801_v60 = vld [vmem:[#allocation6 + $0x130] sm:$0xff] }
 0x745   :  { %v15957_v49 = vcombine.high %v10797_v32, %v10801_v60  ;;  %v15956_v47 = vcombine.low %v10797_v32, %v10801_v60  ;;  %v10841_v12 = vld [vmem:[#allocation6 + $0x270] sm:$0xff]  ;;  %v16005_v32 = vcombine.high %v10845_v22, %v10849_v30 }
 0x746   :  { %13585 = vmatpush1.bf16.msra.mxu0 %v16344_v40  ;;  %13749 = vmatpush1.bf16.msra.mxu1 %v16346_v19  ;;  %v10805_v19 = vld [vmem:[#allocation6 + $0x150] sm:$0xff]  ;;  %v15997_v10 = vcombine.high %v10837_v24, %v10841_v12 }
 0x747   :  { %13586 = vmatprep.subr.bf16.mxu0 %v16353_v45  ;;  %13750 = vmatprep.subr.bf16.mxu1 %v16355_v62  ;;  %v10806_v45 = vld [vmem:[#allocation6 + $0x158] sm:$0xff]  ;;  %v15965_v28 = vcombine.high %v10805_v19, %v10809_v41 }
 0x748   :  { %v10810_v62 = vld [vmem:[#allocation6 + $0x178] sm:$0xff] }
 0x749   :  { %v15967_v33 = vcombine.high %v10806_v45, %v10810_v62  ;;  %v15966_v52 = vcombine.low %v10806_v45, %v10810_v62  ;;  %v10861_v45 = vld [vmem:[#allocation6 + $0x310] sm:$0xff] }
 0x74a   :  { %13587 = vmatpush1.bf16.msra.mxu0 %v16352_v43  ;;  %13751 = vmatpush1.bf16.msra.mxu1 %v16354_v35  ;;  %v10813_v43 = vld [vmem:[#allocation6 + $0x190] sm:$0xff] }
 0x74b   :  { %13588 = vmatprep.subr.bf16.mxu0 %v16361_v53  ;;  %13752 = vmatprep.subr.bf16.mxu1 %v16363_v37  ;;  %v10817_v35 = vld [vmem:[#allocation6 + $0x1b0] sm:$0xff]  ;;  %v10818_v53 = vld [vmem:[#allocation6 + $0x1b8] sm:$0xff]  ;;  %v15964_v37 = vcombine.low %v10805_v19, %v10809_v41 }
 0x74c   :  { %v15973_v51 = vcombine.high %v10813_v43, %v10817_v35  ;;  %v15975_v54 = vcombine.high %v10814_v42, %v10818_v53  ;;  %v10865_v62 = vld [vmem:[#allocation6 + $0x330] sm:$0xff] }
 0x74e   :  { %13589 = vmatpush1.bf16.msra.mxu0 %v16360_v26  ;;  %13753 = vmatpush1.bf16.msra.mxu1 %v16362_v63  ;;  %v10825_v26 = vld [vmem:[#allocation6 + $0x1f0] sm:$0xff]  ;;  %v10822_v63 = vld [vmem:[#allocation6 + $0x1d8] sm:$0xff] }
 0x74f   :  { %13779 = vmatprep.subr.bf16.mxu0 %v15925_v59  ;;  %13943 = vmatprep.subr.bf16.mxu1 %v15927_v44  ;;  %v15972_v59 = vcombine.low %v10813_v43, %v10817_v35  ;;  %v15974_v44 = vcombine.low %v10814_v42, %v10818_v53  ;;  %v15981_v23 = vcombine.high %v10821_v3, %v10825_v26  ;;  %v10869_v42 = vld [vmem:[#allocation6 + $0x350] sm:$0xff] }
 0x750   :  { %v15983_v25 = vcombine.high %v10822_v63, %v10826_v38  ;;  %v16021_v43 = vcombine.high %v10861_v45, %v10865_v62  ;;  %v10873_v53 = vld [vmem:[#allocation6 + $0x370] sm:$0xff] }
 0x751   :  { %13607 = vmatmul.mubr.bf16.vlgmr.msra.gmra.mrb[28].mxu0 %v19491_v31  ;;  %13771 = vmatmul.mubr.bf16.vlgmr.msra.gmra.mrb[36].mxu1 %v19491_v31 }
 0x752   :  { %13780 = vmatpush1.bf16.msra.mxu0 %v15924_v27  ;;  %13811 = vmatprep.mubr.bf16.mxu0 %v19418_v56  ;;  %v10830_v27 = vld [vmem:[#allocation6 + $0x218] sm:$0xff] }
 0x753   :  { %13944 = vmatpush1.bf16.msra.mxu1 %v15926_v6  ;;  %13975 = vmatprep.mubr.bf16.mxu1 %v19418_v56  ;;  %v10798_v56 = vld [vmem:[#allocation6 + $0x118] sm:$0xff] }
 0x754   :  { %13781 = vmatprep.subr.bf16.mxu0 %v15933_v18  ;;  %13945 = vmatprep.subr.bf16.mxu1 %v15935_v9  ;;  %v15959_v40 = vcombine.high %v10798_v56, %v10802_v14  ;;  %v15958_v50 = vcombine.low %v10798_v56, %v10802_v14  ;;  %v10834_v6 = vld [vmem:[#allocation6 + $0x238] sm:$0xff]  ;;  %v15980_v18 = vcombine.low %v10821_v3, %v10825_v26  ;;  %v10853_v56 = vld [vmem:[#allocation6 + $0x2d0] sm:$0xff] }
 0x755   :  { %v15982_v9 = vcombine.low %v10822_v63, %v10826_v38  ;;  %v15991_v57 = vcombine.high %v10830_v27, %v10834_v6  ;;  %v10857_v14 = vld [vmem:[#allocation6 + $0x2f0] sm:$0xff]  ;;  %v16029_v3 = vcombine.high %v10869_v42, %v10873_v53 }
 0x756   :  { %13782 = vmatpush1.bf16.msra.mxu0 %v15932_v36  ;;  %v10838_v36 = vld [vmem:[#allocation6 + $0x258] sm:$0xff]  ;;  %v16013_v19 = vcombine.high %v10853_v56, %v10857_v14  ;;  %v10877_v63 = vld [vmem:[#allocation6 + $0x390] sm:$0xff] }
 0x757   :  { %13946 = vmatpush1.bf16.msra.mxu1 %v15934_v13  ;;  %13783 = vmatprep.subr.bf16.mxu0 %v15941_v15  ;;  %v10842_v13 = vld [vmem:[#allocation6 + $0x278] sm:$0xff]  ;;  %v15988_v15 = vcombine.low %v10829_v61, %v10833_v16  ;;  %v10881_v38 = vld [vmem:[#allocation6 + $0x3b0] sm:$0xff] }
 0x758   :  { %13947 = vmatprep.subr.bf16.mxu1 %v15943_v17  ;;  %v15990_v17 = vcombine.low %v10830_v27, %v10834_v6  ;;  %v15999_v7 = vcombine.high %v10838_v36, %v10842_v13  ;;  %v16037_v61 = vcombine.high %v10877_v63, %v10881_v38  ;;  %v10885_v27 = vld [vmem:[#allocation6 + $0x3d0] sm:$0xff] }
 0x759   :  { %v10889_v6 = vld [vmem:[#allocation6 + $0x3f0] sm:$0xff] }
 0x75a   :  { %13784 = vmatpush1.bf16.msra.mxu0 %v15940_v58  ;;  %v10846_v58 = vld [vmem:[#allocation6 + $0x298] sm:$0xff] }
 0x75b   :  { %13948 = vmatpush1.bf16.msra.mxu1 %v15942_v8  ;;  %13785 = vmatprep.subr.bf16.mxu0 %v15949_v48  ;;  %v10850_v8 = vld [vmem:[#allocation6 + $0x2b8] sm:$0xff]  ;;  %v15996_v48 = vcombine.low %v10837_v24, %v10841_v12  ;;  %v16045_v24 = vcombine.high %v10885_v27, %v10889_v6 }
 0x75c   :  { %13949 = vmatprep.subr.bf16.mxu1 %v15951_v29  ;;  %v15998_v29 = vcombine.low %v10838_v36, %v10842_v13  ;;  %v16007_v60 = vcombine.high %v10846_v58, %v10850_v8  ;;  %v10893_v36 = vld [vmem:[#allocation6 + $0x410] sm:$0xff] }
 0x75d   :  { %v10897_v13 = vld [vmem:[#allocation6 + $0x430] sm:$0xff] }
 0x75e   :  { %13786 = vmatpush1.bf16.msra.mxu0 %v15948_v34  ;;  %v10854_v34 = vld [vmem:[#allocation6 + $0x2d8] sm:$0xff] }
 0x75f   :  { %13950 = vmatpush1.bf16.msra.mxu1 %v15950_v39  ;;  %13787 = vmatprep.subr.bf16.mxu0 %v15957_v49  ;;  %v10858_v39 = vld [vmem:[#allocation6 + $0x2f8] sm:$0xff]  ;;  %v16004_v49 = vcombine.low %v10845_v22, %v10849_v30  ;;  %v16053_v22 = vcombine.high %v10893_v36, %v10897_v13 }
 0x760   :  { %13951 = vmatprep.subr.bf16.mxu1 %v15959_v40  ;;  %v16006_v40 = vcombine.low %v10846_v58, %v10850_v8  ;;  %v16015_v41 = vcombine.high %v10854_v34, %v10858_v39  ;;  %v10901_v58 = vld [vmem:[#allocation6 + $0x450] sm:$0xff] }
 0x761   :  { %v10905_v8 = vld [vmem:[#allocation6 + $0x470] sm:$0xff] }
 0x762   :  { %13788 = vmatpush1.bf16.msra.mxu0 %v15956_v47  ;;  %v10862_v47 = vld [vmem:[#allocation6 + $0x318] sm:$0xff] }
 0x763   :  { %13952 = vmatpush1.bf16.msra.mxu1 %v15958_v50  ;;  %13789 = vmatprep.subr.bf16.mxu0 %v15965_v28  ;;  %v10866_v50 = vld [vmem:[#allocation6 + $0x338] sm:$0xff]  ;;  %v16012_v28 = vcombine.low %v10853_v56, %v10857_v14  ;;  %v16061_v56 = vcombine.high %v10901_v58, %v10905_v8  ;;  %v10909_v14 = vld [vmem:[#allocation6 + $0x490] sm:$0xff] }
 0x764   :  { %13953 = vmatprep.subr.bf16.mxu1 %v15967_v33  ;;  %v16014_v33 = vcombine.low %v10854_v34, %v10858_v39  ;;  %v16023_v35 = vcombine.high %v10862_v47, %v10866_v50  ;;  %v10913_v34 = vld [vmem:[#allocation6 + $0x4b0] sm:$0xff] }
 0x766   :  { %13790 = vmatpush1.bf16.msra.mxu0 %v15964_v37  ;;  %v10870_v37 = vld [vmem:[#allocation6 + $0x358] sm:$0xff] }
 0x767   :  { %13954 = vmatpush1.bf16.msra.mxu1 %v15966_v52  ;;  %13791 = vmatprep.subr.bf16.mxu0 %v15973_v51  ;;  %v10874_v52 = vld [vmem:[#allocation6 + $0x378] sm:$0xff]  ;;  %v16020_v51 = vcombine.low %v10861_v45, %v10865_v62  ;;  %v16069_v45 = vcombine.high %v10909_v14, %v10913_v34 }
 0x768   :  { %13955 = vmatprep.subr.bf16.mxu1 %v15975_v54  ;;  %v16022_v54 = vcombine.low %v10862_v47, %v10866_v50  ;;  %v16031_v26 = vcombine.high %v10870_v37, %v10874_v52  ;;  %v10917_v47 = vld [vmem:[#allocation6 + $0x4d0] sm:$0xff] }
 0x769   :  { %v10921_v50 = vld [vmem:[#allocation6 + $0x4f0] sm:$0xff] }
 0x76a   :  { %13792 = vmatpush1.bf16.msra.mxu0 %v15972_v59  ;;  %v10878_v59 = vld [vmem:[#allocation6 + $0x398] sm:$0xff] }
 0x76b   :  { %13956 = vmatpush1.bf16.msra.mxu1 %v15974_v44  ;;  %13793 = vmatprep.subr.bf16.mxu0 %v15981_v23  ;;  %v10882_v44 = vld [vmem:[#allocation6 + $0x3b8] sm:$0xff]  ;;  %v16028_v23 = vcombine.low %v10869_v42, %v10873_v53  ;;  %v10925_v53 = vld [vmem:[#allocation6 + $0x510] sm:$0xff] }
 0x76c   :  { %13957 = vmatprep.subr.bf16.mxu1 %v15983_v25  ;;  %v16030_v25 = vcombine.low %v10870_v37, %v10874_v52  ;;  %v16039_v16 = vcombine.high %v10878_v59, %v10882_v44  ;;  %v10929_v37 = vld [vmem:[#allocation6 + $0x530] sm:$0xff]  ;;  %v10926_v52 = vld [vmem:[#allocation6 + $0x518] sm:$0xff] }
 0x76e   :  { %13794 = vmatpush1.bf16.msra.mxu0 %v15980_v18  ;;  %v10886_v18 = vld [vmem:[#allocation6 + $0x3d8] sm:$0xff] }
 0x76f   :  { %13958 = vmatpush1.bf16.msra.mxu1 %v15982_v9  ;;  %13795 = vmatprep.subr.bf16.mxu0 %v15989_v11  ;;  %v10890_v9 = vld [vmem:[#allocation6 + $0x3f8] sm:$0xff]  ;;  %v16036_v11 = vcombine.low %v10877_v63, %v10881_v38  ;;  %v10933_v63 = vld [vmem:[#allocation6 + $0x550] sm:$0xff] }
 0x770   :  { %13959 = vmatprep.subr.bf16.mxu1 %v15991_v57  ;;  %v16038_v57 = vcombine.low %v10878_v59, %v10882_v44  ;;  %v16047_v12 = vcombine.high %v10886_v18, %v10890_v9  ;;  %v10937_v38 = vld [vmem:[#allocation6 + $0x570] sm:$0xff]  ;;  %v10934_v59 = vld [vmem:[#allocation6 + $0x558] sm:$0xff] }
 0x771   :  { %v10938_v44 = vld [vmem:[#allocation6 + $0x578] sm:$0xff] }
 0x772   :  { %13796 = vmatpush1.bf16.msra.mxu0 %v15988_v15  ;;  %v10894_v15 = vld [vmem:[#allocation6 + $0x418] sm:$0xff] }
 0x773   :  { %13960 = vmatpush1.bf16.msra.mxu1 %v15990_v17  ;;  %13797 = vmatprep.subr.bf16.mxu0 %v15997_v10  ;;  %v10898_v17 = vld [vmem:[#allocation6 + $0x438] sm:$0xff]  ;;  %v16044_v10 = vcombine.low %v10885_v27, %v10889_v6  ;;  %v10941_v27 = vld [vmem:[#allocation6 + $0x590] sm:$0xff] }
 0x774   :  { %13961 = vmatprep.subr.bf16.mxu1 %v15999_v7  ;;  %v16046_v7 = vcombine.low %v10886_v18, %v10890_v9  ;;  %v16055_v30 = vcombine.high %v10894_v15, %v10898_v17  ;;  %v10945_v6 = vld [vmem:[#allocation6 + $0x5b0] sm:$0xff]  ;;  %v10942_v18 = vld [vmem:[#allocation6 + $0x598] sm:$0xff] }
 0x775   :  { %v10946_v9 = vld [vmem:[#allocation6 + $0x5b8] sm:$0xff] }
 0x776   :  { %13798 = vmatpush1.bf16.msra.mxu0 %v15996_v48  ;;  %v16052_v48 = vcombine.low %v10893_v36, %v10897_v13  ;;  %v10949_v36 = vld [vmem:[#allocation6 + $0x5d0] sm:$0xff] }
 0x777   :  { %13962 = vmatpush1.bf16.msra.mxu1 %v15998_v29  ;;  %13799 = vmatprep.subr.bf16.mxu0 %v16005_v32  ;;  %v10902_v29 = vld [vmem:[#allocation6 + $0x458] sm:$0xff]  ;;  %v10953_v13 = vld [vmem:[#allocation6 + $0x5f0] sm:$0xff] }
 0x778   :  { %13963 = vmatprep.subr.bf16.mxu1 %v16007_v60  ;;  %v10906_v32 = vld [vmem:[#allocation6 + $0x478] sm:$0xff]  ;;  %v16054_v60 = vcombine.low %v10894_v15, %v10898_v17 }
 0x779   :  { %v16063_v39 = vcombine.high %v10902_v29, %v10906_v32  ;;  %v10950_v15 = vld [vmem:[#allocation6 + $0x5d8] sm:$0xff] }
 0x77a   :  { %13800 = vmatpush1.bf16.msra.mxu0 %v16004_v49  ;;  %v10910_v49 = vld [vmem:[#allocation6 + $0x498] sm:$0xff] }
 0x77b   :  { %13964 = vmatpush1.bf16.msra.mxu1 %v16006_v40  ;;  %13801 = vmatprep.subr.bf16.mxu0 %v16013_v19  ;;  %v10914_v40 = vld [vmem:[#allocation6 + $0x4b8] sm:$0xff]  ;;  %v16060_v19 = vcombine.low %v10901_v58, %v10905_v8  ;;  %v10957_v58 = vld [vmem:[#allocation6 + $0x610] sm:$0xff] }
 0x77c   :  { %13965 = vmatprep.subr.bf16.mxu1 %v16015_v41  ;;  %v16062_v41 = vcombine.low %v10902_v29, %v10906_v32  ;;  %v16071_v62 = vcombine.high %v10910_v49, %v10914_v40  ;;  %v10954_v17 = vld [vmem:[#allocation6 + $0x5f8] sm:$0xff]  ;;  %v10961_v8 = vld [vmem:[#allocation6 + $0x630] sm:$0xff]  ;;  %v16108_v32 = vcombine.low %v10949_v36, %v10953_v13 }
 0x77d   :  { %v10962_v29 = vld [vmem:[#allocation6 + $0x638] sm:$0xff] }
 0x77e   :  { %13802 = vmatpush1.bf16.msra.mxu0 %v16012_v28  ;;  %v10918_v28 = vld [vmem:[#allocation6 + $0x4d8] sm:$0xff] }
 0x77f   :  { %13966 = vmatpush1.bf16.msra.mxu1 %v16014_v33  ;;  %13803 = vmatprep.subr.bf16.mxu0 %v16021_v43  ;;  %v10922_v33 = vld [vmem:[#allocation6 + $0x4f8] sm:$0xff]  ;;  %v16068_v43 = vcombine.low %v10909_v14, %v10913_v34  ;;  %v10965_v34 = vld [vmem:[#allocation6 + $0x650] sm:$0xff] }
 0x780   :  { %13967 = vmatprep.subr.bf16.mxu1 %v16023_v35  ;;  %v16077_v35 = vcombine.high %v10917_v47, %v10921_v50  ;;  %v16079_v42 = vcombine.high %v10918_v28, %v10922_v33 }
 0x782   :  { %13804 = vmatpush1.bf16.msra.mxu0 %v16020_v51  ;;  %v10930_v51 = vld [vmem:[#allocation6 + $0x538] sm:$0xff] }
 0x783   :  { %13968 = vmatpush1.bf16.msra.mxu1 %v16022_v54  ;;  %13805 = vmatprep.subr.bf16.mxu0 %v16029_v3  ;;  %v16078_v54 = vcombine.low %v10918_v28, %v10922_v33  ;;  %v16085_v3 = vcombine.high %v10925_v53, %v10929_v37  ;;  %v10974_v28 = vld [vmem:[#allocation6 + $0x698] sm:$0xff] }
 0x784   :  { %13969 = vmatprep.subr.bf16.mxu1 %v16031_v26  ;;  %v16087_v26 = vcombine.high %v10926_v52, %v10930_v51  ;;  %v10978_v33 = vld [vmem:[#allocation6 + $0x6b8] sm:$0xff] }
 0x786   :  { %13806 = vmatpush1.bf16.msra.mxu0 %v16028_v23  ;;  %v16084_v23 = vcombine.low %v10925_v53, %v10929_v37  ;;  %v10981_v53 = vld [vmem:[#allocation6 + $0x6d0] sm:$0xff] }
 0x787   :  { %13970 = vmatpush1.bf16.msra.mxu1 %v16030_v25  ;;  %13807 = vmatprep.subr.bf16.mxu0 %v16037_v61  ;;  %v16086_v25 = vcombine.low %v10926_v52, %v10930_v51  ;;  %v16093_v61 = vcombine.high %v10933_v63, %v10937_v38  ;;  %v10985_v37 = vld [vmem:[#allocation6 + $0x6f0] sm:$0xff]  ;;  %v10982_v52 = vld [vmem:[#allocation6 + $0x6d8] sm:$0xff] }
 0x788   :  { %13971 = vmatprep.subr.bf16.mxu1 %v16039_v16  ;;  %v16095_v16 = vcombine.high %v10934_v59, %v10938_v44  ;;  %v10986_v51 = vld [vmem:[#allocation6 + $0x6f8] sm:$0xff] }
 0x78a   :  { %13808 = vmatpush1.bf16.msra.mxu0 %v16036_v11  ;;  %v16092_v11 = vcombine.low %v10933_v63, %v10937_v38  ;;  %v10989_v63 = vld [vmem:[#allocation6 + $0x710] sm:$0xff] }
 0x78b   :  { %13972 = vmatpush1.bf16.msra.mxu1 %v16038_v57  ;;  %13809 = vmatprep.subr.bf16.mxu0 %v16045_v24  ;;  %v16094_v57 = vcombine.low %v10934_v59, %v10938_v44  ;;  %v16101_v24 = vcombine.high %v10941_v27, %v10945_v6  ;;  %v10993_v38 = vld [vmem:[#allocation6 + $0x730] sm:$0xff]  ;;  %v10990_v59 = vld [vmem:[#allocation6 + $0x718] sm:$0xff] }
 0x78c   :  { %13973 = vmatprep.subr.bf16.mxu1 %v16047_v12  ;;  %v16103_v12 = vcombine.high %v10942_v18, %v10946_v9  ;;  %v10994_v44 = vld [vmem:[#allocation6 + $0x738] sm:$0xff] }
 0x78e   :  { %13810 = vmatpush1.bf16.msra.mxu0 %v16044_v10  ;;  %v16100_v10 = vcombine.low %v10941_v27, %v10945_v6  ;;  %v10997_v27 = vld [vmem:[#allocation6 + $0x750] sm:$0xff] }
 0x78f   :  { %13974 = vmatpush1.bf16.msra.mxu1 %v16046_v7  ;;  %13820 = vmatprep.subr.bf16.mxu0 %v16053_v22  ;;  %v16102_v7 = vcombine.low %v10942_v18, %v10946_v9  ;;  %v16109_v22 = vcombine.high %v10949_v36, %v10953_v13  ;;  %v11001_v6 = vld [vmem:[#allocation6 + $0x770] sm:$0xff]  ;;  %v10998_v18 = vld [vmem:[#allocation6 + $0x758] sm:$0xff] }
 0x790   :  { %13984 = vmatprep.subr.bf16.mxu1 %v16055_v30  ;;  %v16111_v30 = vcombine.high %v10950_v15, %v10954_v17  ;;  %v11002_v9 = vld [vmem:[#allocation6 + $0x778] sm:$0xff]  ;;  %v11005_v36 = vld [vmem:[#allocation6 + $0x790] sm:$0xff] }
 0x791   :  { %13812 = vmatmul.mubr.bf16.vlgmr.msra.gmra.mrb[32].mxu0 %v19423_v21  ;;  %v11009_v13 = vld [vmem:[#allocation6 + $0x7b0] sm:$0xff] }
 0x792   :  { %13976 = vmatmul.mubr.bf16.vlgmr.msra.gmra.mrb[40].mxu1 %v19423_v21  ;;  %13821 = vmatpush1.bf16.msra.mxu0 %v16052_v48  ;;  %v16070_v21 = vcombine.low %v10910_v49, %v10914_v40  ;;  %v10958_v48 = vld [vmem:[#allocation6 + $0x618] sm:$0xff] }
 0x793   :  { %13852 = vmatprep.mubr.bf16.mxu0 %v19450_v2  ;;  %13985 = vmatpush1.bf16.msra.mxu1 %v16054_v60  ;;  %v16110_v60 = vcombine.low %v10950_v15, %v10954_v17  ;;  %v16119_v14 = vcombine.high %v10958_v48, %v10962_v29  ;;  %v10966_v49 = vld [vmem:[#allocation6 + $0x658] sm:$0xff] }
 0x794   :  { %14016 = vmatprep.mubr.bf16.mxu1 %v19450_v2  ;;  %13822 = vmatprep.subr.bf16.mxu0 %v16061_v56  ;;  %v16076_v2 = vcombine.low %v10917_v47, %v10921_v50  ;;  %v16117_v56 = vcombine.high %v10957_v58, %v10961_v8  ;;  %v10970_v40 = vld [vmem:[#allocation6 + $0x678] sm:$0xff]  ;;  %v10973_v47 = vld [vmem:[#allocation6 + $0x690] sm:$0xff] }
 0x795   :  { %13986 = vmatprep.subr.bf16.mxu1 %v16063_v39  ;;  %v10969_v39 = vld [vmem:[#allocation6 + $0x670] sm:$0xff]  ;;  %v11006_v15 = vld [vmem:[#allocation6 + $0x798] sm:$0xff] }
 0x796   :  { %13823 = vmatpush1.bf16.msra.mxu0 %v16060_v19  ;;  %v16116_v19 = vcombine.low %v10957_v58, %v10961_v8  ;;  %v10977_v50 = vld [vmem:[#allocation6 + $0x6b0] sm:$0xff]  ;;  %v11010_v17 = vld [vmem:[#allocation6 + $0x7b8] sm:$0xff] }
 0x797   :  { %13987 = vmatpush1.bf16.msra.mxu1 %v16062_v41  ;;  %13824 = vmatprep.subr.bf16.mxu0 %v16069_v45  ;;  %v16118_v41 = vcombine.low %v10958_v48, %v10962_v29  ;;  %v16125_v45 = vcombine.high %v10965_v34, %v10969_v39  ;;  %v11013_v58 = vld [vmem:[#allocation6 + $0x7d0] sm:$0xff]  ;;  %v11014_v48 = vld [vmem:[#allocation6 + $0x7d8] sm:$0xff] }
 0x798   :  { %13988 = vmatprep.subr.bf16.mxu1 %v16071_v62  ;;  %v16127_v62 = vcombine.high %v10966_v49, %v10970_v40  ;;  %v11017_v8 = vld [vmem:[#allocation6 + $0x7f0] sm:$0xff]  ;;  %v11018_v29 = vld [vmem:[#allocation6 + $0x7f8] sm:$0xff] }
 0x79a   :  { %13825 = vmatpush1.bf16.msra.mxu0 %v16068_v43  ;;  %v16124_v43 = vcombine.low %v10965_v34, %v10969_v39  ;;  %v11021_v34 = vld [vmem:[#allocation6 + $0x810] sm:$0xff] }
 0x79b   :  { %13989 = vmatpush1.bf16.msra.mxu1 %v16070_v21  ;;  %13826 = vmatprep.subr.bf16.mxu0 %v16077_v35  ;;  %v16126_v21 = vcombine.low %v10966_v49, %v10970_v40  ;;  %v16133_v35 = vcombine.high %v10973_v47, %v10977_v50  ;;  %v11025_v39 = vld [vmem:[#allocation6 + $0x830] sm:$0xff]  ;;  %v11022_v49 = vld [vmem:[#allocation6 + $0x818] sm:$0xff] }
 0x79c   :  { %13990 = vmatprep.subr.bf16.mxu1 %v16079_v42  ;;  %v16135_v42 = vcombine.high %v10974_v28, %v10978_v33  ;;  %v11026_v40 = vld [vmem:[#allocation6 + $0x838] sm:$0xff] }
 0x79e   :  { %13827 = vmatpush1.bf16.msra.mxu0 %v16076_v2  ;;  %v16132_v2 = vcombine.low %v10973_v47, %v10977_v50  ;;  %v11029_v47 = vld [vmem:[#allocation6 + $0x850] sm:$0xff] }
 0x79f   :  { %13991 = vmatpush1.bf16.msra.mxu1 %v16078_v54  ;;  %13828 = vmatprep.subr.bf16.mxu0 %v16085_v3  ;;  %v16134_v54 = vcombine.low %v10974_v28, %v10978_v33  ;;  %v16141_v3 = vcombine.high %v10981_v53, %v10985_v37  ;;  %v11033_v50 = vld [vmem:[#allocation6 + $0x870] sm:$0xff]  ;;  %v16180_v28 = vcombine.low %v11021_v34, %v11025_v39  ;;  %v11030_v33 = vld [vmem:[#allocation6 + $0x858] sm:$0xff] }
 0x7a0   :  { %13992 = vmatprep.subr.bf16.mxu1 %v16087_v26  ;;  %v16143_v26 = vcombine.high %v10982_v52, %v10986_v51 }
 0x7a2   :  { %13829 = vmatpush1.bf16.msra.mxu0 %v16084_v23  ;;  %v16140_v23 = vcombine.low %v10981_v53, %v10985_v37  ;;  %v11041_v53 = vld [vmem:[#allocation6 + $0x8b0] sm:$0xff] }
 0x7a3   :  { %13993 = vmatpush1.bf16.msra.mxu1 %v16086_v25  ;;  %13830 = vmatprep.subr.bf16.mxu0 %v16093_v61  ;;  %v16142_v25 = vcombine.low %v10982_v52, %v10986_v51  ;;  %v16149_v61 = vcombine.high %v10989_v63, %v10993_v38  ;;  %v11038_v52 = vld [vmem:[#allocation6 + $0x898] sm:$0xff] }
 0x7a4   :  { %13994 = vmatprep.subr.bf16.mxu1 %v16095_v16  ;;  %v16151_v16 = vcombine.high %v10990_v59, %v10994_v44  ;;  %v11042_v51 = vld [vmem:[#allocation6 + $0x8b8] sm:$0xff] }
 0x7a6   :  { %13831 = vmatpush1.bf16.msra.mxu0 %v16092_v11  ;;  %v16148_v11 = vcombine.low %v10989_v63, %v10993_v38  ;;  %v11045_v63 = vld [vmem:[#allocation6 + $0x8d0] sm:$0xff] }
 0x7a7   :  { %13995 = vmatpush1.bf16.msra.mxu1 %v16094_v57  ;;  %13832 = vmatprep.subr.bf16.mxu0 %v16101_v24  ;;  %v16150_v57 = vcombine.low %v10990_v59, %v10994_v44  ;;  %v16157_v24 = vcombine.high %v10997_v27, %v11001_v6  ;;  %v11049_v38 = vld [vmem:[#allocation6 + $0x8f0] sm:$0xff]  ;;  %v11046_v59 = vld [vmem:[#allocation6 + $0x8d8] sm:$0xff] }
 0x7a8   :  { %13996 = vmatprep.subr.bf16.mxu1 %v16103_v12  ;;  %v16159_v12 = vcombine.high %v10998_v18, %v11002_v9  ;;  %v11050_v44 = vld [vmem:[#allocation6 + $0x8f8] sm:$0xff] }
 0x7aa   :  { %13833 = vmatpush1.bf16.msra.mxu0 %v16100_v10  ;;  %v16156_v10 = vcombine.low %v10997_v27, %v11001_v6  ;;  %v11057_v27 = vld [vmem:[#allocation6 + $0x930] sm:$0xff]  ;;  %v11054_v6 = vld [vmem:[#allocation6 + $0x918] sm:$0xff] }
 0x7ab   :  { %13997 = vmatpush1.bf16.msra.mxu1 %v16102_v7  ;;  %13834 = vmatprep.subr.bf16.mxu0 %v16109_v22  ;;  %v16158_v7 = vcombine.low %v10998_v18, %v11002_v9  ;;  %v16165_v22 = vcombine.high %v11005_v36, %v11009_v13  ;;  %v11058_v18 = vld [vmem:[#allocation6 + $0x938] sm:$0xff]  ;;  %v16206_v9 = vcombine.low %v11046_v59, %v11050_v44 }
 0x7ac   :  { %13998 = vmatprep.subr.bf16.mxu1 %v16111_v30  ;;  %v16167_v30 = vcombine.high %v11006_v15, %v11010_v17 }
 0x7ae   :  { %13835 = vmatpush1.bf16.msra.mxu0 %v16108_v32  ;;  %v16164_v32 = vcombine.low %v11005_v36, %v11009_v13  ;;  %v11062_v36 = vld [vmem:[#allocation6 + $0x958] sm:$0xff] }
 0x7af   :  { %13999 = vmatpush1.bf16.msra.mxu1 %v16110_v60  ;;  %13836 = vmatprep.subr.bf16.mxu0 %v16117_v56  ;;  %v16166_v60 = vcombine.low %v11006_v15, %v11010_v17  ;;  %v16173_v56 = vcombine.high %v11013_v58, %v11017_v8  ;;  %v11066_v13 = vld [vmem:[#allocation6 + $0x978] sm:$0xff]  ;;  %v16214_v17 = vcombine.low %v11054_v6, %v11058_v18 }
 0x7b0   :  { %14000 = vmatprep.subr.bf16.mxu1 %v16119_v14  ;;  %v16175_v14 = vcombine.high %v11014_v48, %v11018_v29 }
 0x7b2   :  { %13837 = vmatpush1.bf16.msra.mxu0 %v16116_v19  ;;  %v16172_v19 = vcombine.low %v11013_v58, %v11017_v8  ;;  %v11070_v58 = vld [vmem:[#allocation6 + $0x998] sm:$0xff] }
 0x7b3   :  { %14001 = vmatpush1.bf16.msra.mxu1 %v16118_v41  ;;  %13838 = vmatprep.subr.bf16.mxu0 %v16125_v45  ;;  %v16174_v41 = vcombine.low %v11014_v48, %v11018_v29  ;;  %v16181_v45 = vcombine.high %v11021_v34, %v11025_v39  ;;  %v11074_v8 = vld [vmem:[#allocation6 + $0x9b8] sm:$0xff]  ;;  %v16222_v29 = vcombine.low %v11062_v36, %v11066_v13 }
 0x7b4   :  { %14002 = vmatprep.subr.bf16.mxu1 %v16127_v62  ;;  %v16183_v62 = vcombine.high %v11022_v49, %v11026_v40  ;;  %v11078_v34 = vld [vmem:[#allocation6 + $0x9d8] sm:$0xff] }
 0x7b5   :  { %v11082_v39 = vld [vmem:[#allocation6 + $0x9f8] sm:$0xff] }
 0x7b6   :  { %13839 = vmatpush1.bf16.msra.mxu0 %v16124_v43  ;;  %v11034_v43 = vld [vmem:[#allocation6 + $0x878] sm:$0xff] }
 0x7b7   :  { %14003 = vmatpush1.bf16.msra.mxu1 %v16126_v21  ;;  %13840 = vmatprep.subr.bf16.mxu0 %v16133_v35  ;;  %v16182_v21 = vcombine.low %v11022_v49, %v11026_v40  ;;  %v16189_v35 = vcombine.high %v11029_v47, %v11033_v50  ;;  %v16191_v37 = vcombine.high %v11030_v33, %v11034_v43 }
 0x7b8   :  { %14004 = vmatprep.subr.bf16.mxu1 %v16135_v42  ;;  %v11037_v42 = vld [vmem:[#allocation6 + $0x890] sm:$0xff]  ;;  %v16230_v40 = vcombine.low %v11070_v58, %v11074_v8 }
 0x7ba   :  { %13841 = vmatpush1.bf16.msra.mxu0 %v16132_v2  ;;  %v16188_v2 = vcombine.low %v11029_v47, %v11033_v50  ;;  %v11086_v47 = vld [vmem:[#allocation6 + $0xa18] sm:$0xff] }
 0x7bb   :  { %14005 = vmatpush1.bf16.msra.mxu1 %v16134_v54  ;;  %13842 = vmatprep.subr.bf16.mxu0 %v16141_v3  ;;  %v16190_v54 = vcombine.low %v11030_v33, %v11034_v43  ;;  %v16197_v3 = vcombine.high %v11037_v42, %v11041_v53  ;;  %v11090_v50 = vld [vmem:[#allocation6 + $0xa38] sm:$0xff]  ;;  %v16238_v33 = vcombine.low %v11078_v34, %v11082_v39 }
 0x7bc   :  { %14006 = vmatprep.subr.bf16.mxu1 %v16143_v26  ;;  %v16199_v26 = vcombine.high %v11038_v52, %v11042_v51 }
 0x7be   :  { %13843 = vmatpush1.bf16.msra.mxu0 %v16140_v23  ;;  %v16196_v23 = vcombine.low %v11037_v42, %v11041_v53  ;;  %v11097_v42 = vld [vmem:[#allocation6 + $0xa70] sm:$0xff]  ;;  %v11094_v53 = vld [vmem:[#allocation6 + $0xa58] sm:$0xff] }
 0x7bf   :  { %14007 = vmatpush1.bf16.msra.mxu1 %v16142_v25  ;;  %13844 = vmatprep.subr.bf16.mxu0 %v16149_v61  ;;  %v16205_v25 = vcombine.high %v11045_v63, %v11049_v38  ;;  %v16207_v61 = vcombine.high %v11046_v59, %v11050_v44 }
 0x7c0   :  { %14008 = vmatprep.subr.bf16.mxu1 %v16151_v16  ;;  %v11053_v16 = vld [vmem:[#allocation6 + $0x910] sm:$0xff] }
 0x7c1   :  { %v16212_v15 = vcombine.low %v11053_v16, %v11057_v27 }
 0x7c2   :  { %13845 = vmatpush1.bf16.msra.mxu0 %v16148_v11  ;;  %v16213_v11 = vcombine.high %v11053_v16, %v11057_v27  ;;  %v11110_v16 = vld [vmem:[#allocation6 + $0xad8] sm:$0xff] }
 0x7c3   :  { %14009 = vmatpush1.bf16.msra.mxu1 %v16150_v57  ;;  %13846 = vmatprep.subr.bf16.mxu0 %v16157_v24  ;;  %v16215_v57 = vcombine.high %v11054_v6, %v11058_v18  ;;  %v11061_v24 = vld [vmem:[#allocation6 + $0x950] sm:$0xff]  ;;  %v11114_v27 = vld [vmem:[#allocation6 + $0xaf8] sm:$0xff] }
 0x7c4   :  { %14010 = vmatprep.subr.bf16.mxu1 %v16159_v12  ;;  %v11065_v12 = vld [vmem:[#allocation6 + $0x970] sm:$0xff] }
 0x7c5   :  { %v16220_v48 = vcombine.low %v11061_v24, %v11065_v12 }
 0x7c6   :  { %13847 = vmatpush1.bf16.msra.mxu0 %v16156_v10  ;;  %v16221_v10 = vcombine.high %v11061_v24, %v11065_v12  ;;  %v11118_v24 = vld [vmem:[#allocation6 + $0xb18] sm:$0xff] }
 0x7c7   :  { %14011 = vmatpush1.bf16.msra.mxu1 %v16158_v7  ;;  %13848 = vmatprep.subr.bf16.mxu0 %v16165_v22  ;;  %v16223_v7 = vcombine.high %v11062_v36, %v11066_v13  ;;  %v11069_v22 = vld [vmem:[#allocation6 + $0x990] sm:$0xff]  ;;  %v11122_v12 = vld [vmem:[#allocation6 + $0xb38] sm:$0xff]  ;;  %v16270_v13 = vcombine.low %v11110_v16, %v11114_v27 }
 0x7c8   :  { %14012 = vmatprep.subr.bf16.mxu1 %v16167_v30  ;;  %v11073_v30 = vld [vmem:[#allocation6 + $0x9b0] sm:$0xff] }
 0x7c9   :  { %v16228_v49 = vcombine.low %v11069_v22, %v11073_v30 }
 0x7ca   :  { %13849 = vmatpush1.bf16.msra.mxu0 %v16164_v32  ;;  %v16229_v32 = vcombine.high %v11069_v22, %v11073_v30  ;;  %v11126_v22 = vld [vmem:[#allocation6 + $0xb58] sm:$0xff] }
 0x7cb   :  { %14013 = vmatpush1.bf16.msra.mxu1 %v16166_v60  ;;  %13850 = vmatprep.subr.bf16.mxu0 %v16173_v56  ;;  %v16231_v60 = vcombine.high %v11070_v58, %v11074_v8  ;;  %v11077_v56 = vld [vmem:[#allocation6 + $0x9d0] sm:$0xff]  ;;  %v11130_v30 = vld [vmem:[#allocation6 + $0xb78] sm:$0xff]  ;;  %v16278_v8 = vcombine.low %v11118_v24, %v11122_v12 }
 0x7cc   :  { %14014 = vmatprep.subr.bf16.mxu1 %v16175_v14  ;;  %v11081_v14 = vld [vmem:[#allocation6 + $0x9f0] sm:$0xff] }
 0x7ce   :  { %13851 = vmatpush1.bf16.msra.mxu0 %v16172_v19  ;;  %v16237_v19 = vcombine.high %v11077_v56, %v11081_v14 }
 0x7cf   :  { %14015 = vmatpush1.bf16.msra.mxu1 %v16174_v41  ;;  %13861 = vmatprep.subr.bf16.mxu0 %v16181_v45  ;;  %v16239_v41 = vcombine.high %v11078_v34, %v11082_v39  ;;  %v11085_v45 = vld [vmem:[#allocation6 + $0xa10] sm:$0xff]  ;;  %v16286_v39 = vcombine.low %v11126_v22, %v11130_v30 }
 0x7d0   :  { %14025 = vmatprep.subr.bf16.mxu1 %v16183_v62  ;;  %v11089_v62 = vld [vmem:[#allocation6 + $0xa30] sm:$0xff] }
 0x7d1   :  { %13853 = vmatmul.mubr.bf16.vlgmr.msra.gmra.mrb[32].mxu0 %v19452_v4  ;;  %v16245_v43 = vcombine.high %v11085_v45, %v11089_v62 }
 0x7d2   :  { %14017 = vmatmul.mubr.bf16.vlgmr.msra.gmra.mrb[40].mxu1 %v19452_v4  ;;  %13862 = vmatpush1.bf16.msra.mxu0 %v16180_v28  ;;  %v16198_v4 = vcombine.low %v11038_v52, %v11042_v51  ;;  %v16236_v28 = vcombine.low %v11077_v56, %v11081_v14  ;;  %v16244_v52 = vcombine.low %v11085_v45, %v11089_v62  ;;  %v11134_v56 = vld [vmem:[#allocation6 + $0xb98] sm:$0xff] }
 0x7d3   :  { %13893 = vmatprep.mubr.bf16.mxu0 %v19473_v46  ;;  %14026 = vmatpush1.bf16.msra.mxu1 %v16182_v21  ;;  %v16247_v21 = vcombine.high %v11086_v47, %v11090_v50  ;;  %v16246_v51 = vcombine.low %v11086_v47, %v11090_v50  ;;  %v11138_v14 = vld [vmem:[#allocation6 + $0xbb8] sm:$0xff] }
 0x7d4   :  { %14057 = vmatprep.mubr.bf16.mxu1 %v19473_v46  ;;  %13863 = vmatprep.subr.bf16.mxu0 %v16189_v35  ;;  %v16204_v46 = vcombine.low %v11045_v63, %v11049_v38  ;;  %v11093_v35 = vld [vmem:[#allocation6 + $0xa50] sm:$0xff]  ;;  %v11102_v63 = vld [vmem:[#allocation6 + $0xa98] sm:$0xff]  ;;  %v16294_v50 = vcombine.low %v11134_v56, %v11138_v14 }
 0x7d5   :  { %14027 = vmatprep.subr.bf16.mxu1 %v16191_v37  ;;  %v11098_v37 = vld [vmem:[#allocation6 + $0xa78] sm:$0xff]  ;;  %v16252_v59 = vcombine.low %v11093_v35, %v11097_v42 }
 0x7d6   :  { %13864 = vmatpush1.bf16.msra.mxu0 %v16188_v2  ;;  %v16253_v2 = vcombine.high %v11093_v35, %v11097_v42  ;;  %v11106_v38 = vld [vmem:[#allocation6 + $0xab8] sm:$0xff]  ;;  %v16254_v44 = vcombine.low %v11094_v53, %v11098_v37 }
 0x7d7   :  { %14028 = vmatpush1.bf16.msra.mxu1 %v16190_v54  ;;  %13865 = vmatprep.subr.bf16.mxu0 %v16197_v3  ;;  %v16255_v54 = vcombine.high %v11094_v53, %v11098_v37  ;;  %v11101_v3 = vld [vmem:[#allocation6 + $0xa90] sm:$0xff]  ;;  %v16262_v18 = vcombine.low %v11102_v63, %v11106_v38  ;;  %v11142_v45 = vld [vmem:[#allocation6 + $0xbd8] sm:$0xff] }
 0x7d8   :  { %14029 = vmatprep.subr.bf16.mxu1 %v16199_v26  ;;  %v11105_v26 = vld [vmem:[#allocation6 + $0xab0] sm:$0xff]  ;;  %v11146_v62 = vld [vmem:[#allocation6 + $0xbf8] sm:$0xff] }
 0x7d9   :  { %v16260_v6 = vcombine.low %v11101_v3, %v11105_v26  ;;  %v11150_v35 = vld [vmem:[#allocation6 + $0xc18] sm:$0xff]  ;;  %v16302_v37 = vcombine.low %v11142_v45, %v11146_v62 }
 0x7da   :  { %13866 = vmatpush1.bf16.msra.mxu0 %v16196_v23  ;;  %v16261_v23 = vcombine.high %v11101_v3, %v11105_v26  ;;  %v11154_v42 = vld [vmem:[#allocation6 + $0xc38] sm:$0xff] }
 0x7db   :  { %14030 = vmatpush1.bf16.msra.mxu1 %v16198_v4  ;;  %13867 = vmatprep.subr.bf16.mxu0 %v16205_v25  ;;  %v16263_v4 = vcombine.high %v11102_v63, %v11106_v38  ;;  %v11109_v25 = vld [vmem:[#allocation6 + $0xad0] sm:$0xff]  ;;  %v11158_v3 = vld [vmem:[#allocation6 + $0xc58] sm:$0xff]  ;;  %v16310_v38 = vcombine.low %v11150_v35, %v11154_v42 }
 0x7dc   :  { %14031 = vmatprep.subr.bf16.mxu1 %v16207_v61  ;;  %v11113_v61 = vld [vmem:[#allocation6 + $0xaf0] sm:$0xff]  ;;  %v11162_v26 = vld [vmem:[#allocation6 + $0xc78] sm:$0xff] }
 0x7dd   :  { %v16268_v36 = vcombine.low %v11109_v25, %v11113_v61 }
 0x7de   :  { %13868 = vmatpush1.bf16.msra.mxu0 %v16204_v46  ;;  %v16269_v46 = vcombine.high %v11109_v25, %v11113_v61  ;;  %v11166_v25 = vld [vmem:[#allocation6 + $0xc98] sm:$0xff] }
 0x7df   :  { %14032 = vmatpush1.bf16.msra.mxu1 %v16206_v9  ;;  %13869 = vmatprep.subr.bf16.mxu0 %v16213_v11  ;;  %v16271_v9 = vcombine.high %v11110_v16, %v11114_v27  ;;  %v11117_v11 = vld [vmem:[#allocation6 + $0xb10] sm:$0xff]  ;;  %v11170_v61 = vld [vmem:[#allocation6 + $0xcb8] sm:$0xff]  ;;  %v16318_v27 = vcombine.low %v11158_v3, %v11162_v26 }
 0x7e0   :  { %14033 = vmatprep.subr.bf16.mxu1 %v16215_v57  ;;  %v11121_v57 = vld [vmem:[#allocation6 + $0xb30] sm:$0xff] }
 0x7e1   :  { %v16276_v58 = vcombine.low %v11117_v11, %v11121_v57 }
 0x7e2   :  { %13870 = vmatpush1.bf16.msra.mxu0 %v16212_v15  ;;  %v16277_v15 = vcombine.high %v11117_v11, %v11121_v57  ;;  %v11174_v11 = vld [vmem:[#allocation6 + $0xcd8] sm:$0xff] }
 0x7e3   :  { %14034 = vmatpush1.bf16.msra.mxu1 %v16214_v17  ;;  %13871 = vmatprep.subr.bf16.mxu0 %v16221_v10  ;;  %v16279_v17 = vcombine.high %v11118_v24, %v11122_v12  ;;  %v11125_v10 = vld [vmem:[#allocation6 + $0xb50] sm:$0xff]  ;;  %v11178_v57 = vld [vmem:[#allocation6 + $0xcf8] sm:$0xff] }
 0x7e4   :  { %14035 = vmatprep.subr.bf16.mxu1 %v16223_v7  ;;  %v11129_v7 = vld [vmem:[#allocation6 + $0xb70] sm:$0xff] }
 0x7e5   :  { %v16284_v34 = vcombine.low %v11125_v10, %v11129_v7 }
 0x7e6   :  { %13872 = vmatpush1.bf16.msra.mxu0 %v16220_v48  ;;  %v16285_v48 = vcombine.high %v11125_v10, %v11129_v7  ;;  %v11186_v10 = vld [vmem:[#allocation6 + $0xd38] sm:$0xff] }
 0x7e7   :  { %14036 = vmatpush1.bf16.msra.mxu1 %v16222_v29  ;;  %13873 = vmatprep.subr.bf16.mxu0 %v16229_v32  ;;  %v16287_v29 = vcombine.high %v11126_v22, %v11130_v30  ;;  %v11133_v32 = vld [vmem:[#allocation6 + $0xb90] sm:$0xff]  ;;  %v16334_v22 = vcombine.low %v11174_v11, %v11178_v57 }
 0x7e8   :  { %14037 = vmatprep.subr.bf16.mxu1 %v16231_v60  ;;  %v11137_v60 = vld [vmem:[#allocation6 + $0xbb0] sm:$0xff] }
 0x7e9   :  { %v16292_v47 = vcombine.low %v11133_v32, %v11137_v60 }
 0x7ea   :  { %13874 = vmatpush1.bf16.msra.mxu0 %v16228_v49  ;;  %v16293_v49 = vcombine.high %v11133_v32, %v11137_v60 }
 0x7eb   :  { %14038 = vmatpush1.bf16.msra.mxu1 %v16230_v40  ;;  %13875 = vmatprep.subr.bf16.mxu0 %v16237_v19  ;;  %v16295_v40 = vcombine.high %v11134_v56, %v11138_v14  ;;  %v11141_v19 = vld [vmem:[#allocation6 + $0xbd0] sm:$0xff] }
 0x7ec   :  { %14039 = vmatprep.subr.bf16.mxu1 %v16239_v41  ;;  %v11145_v41 = vld [vmem:[#allocation6 + $0xbf0] sm:$0xff] }
 0x7ed   :  { %v16300_v53 = vcombine.low %v11141_v19, %v11145_v41 }
 0x7ee   :  { %13876 = vmatpush1.bf16.msra.mxu0 %v16236_v28  ;;  %v16301_v28 = vcombine.high %v11141_v19, %v11145_v41 }
 0x7ef   :  { %14040 = vmatpush1.bf16.msra.mxu1 %v16238_v33  ;;  %13877 = vmatprep.subr.bf16.mxu0 %v16245_v43  ;;  %v16303_v33 = vcombine.high %v11142_v45, %v11146_v62  ;;  %v11149_v43 = vld [vmem:[#allocation6 + $0xc10] sm:$0xff] }
 0x7f0   :  { %14041 = vmatprep.subr.bf16.mxu1 %v16247_v21  ;;  %v11153_v21 = vld [vmem:[#allocation6 + $0xc30] sm:$0xff] }
 0x7f1   :  { %v16308_v63 = vcombine.low %v11149_v43, %v11153_v21 }
 0x7f2   :  { %13878 = vmatpush1.bf16.msra.mxu0 %v16244_v52  ;;  %v16309_v52 = vcombine.high %v11149_v43, %v11153_v21 }
 0x7f3   :  { %14042 = vmatpush1.bf16.msra.mxu1 %v16246_v51  ;;  %13879 = vmatprep.subr.bf16.mxu0 %v16253_v2  ;;  %v16311_v51 = vcombine.high %v11150_v35, %v11154_v42  ;;  %v11157_v2 = vld [vmem:[#allocation6 + $0xc50] sm:$0xff]  ;;  %v11206_v42 = vld [vmem:[#allocation6 + $0xdd8] sm:$0xff] }
 0x7f4   :  { %14043 = vmatprep.subr.bf16.mxu1 %v16255_v54  ;;  %v11161_v54 = vld [vmem:[#allocation6 + $0xc70] sm:$0xff] }
 0x7f5   :  { %v16316_v16 = vcombine.low %v11157_v2, %v11161_v54 }
 0x7f6   :  { %13880 = vmatpush1.bf16.msra.mxu0 %v16252_v59  ;;  %v16317_v59 = vcombine.high %v11157_v2, %v11161_v54 }
 0x7f7   :  { %14044 = vmatpush1.bf16.msra.mxu1 %v16254_v44  ;;  %13881 = vmatprep.subr.bf16.mxu0 %v16261_v23  ;;  %v16319_v44 = vcombine.high %v11158_v3, %v11162_v26  ;;  %v11165_v23 = vld [vmem:[#allocation6 + $0xc90] sm:$0xff] }
 0x7f8   :  { %14045 = vmatprep.subr.bf16.mxu1 %v16263_v4  ;;  %v11169_v4 = vld [vmem:[#allocation6 + $0xcb0] sm:$0xff] }
 0x7f9   :  { %v16324_v24 = vcombine.low %v11165_v23, %v11169_v4 }
 0x7fa   :  { %13882 = vmatpush1.bf16.msra.mxu0 %v16260_v6  ;;  %v16325_v6 = vcombine.high %v11165_v23, %v11169_v4  ;;  %v18764_v23 = vld [vmem:[%s19629_s5 + $0x40] sm:$0xff]  }
 0x7fb   :  { %14046 = vmatpush1.bf16.msra.mxu1 %v16262_v18  ;;  %13883 = vmatprep.subr.bf16.mxu0 %v16269_v46  ;;  %v16327_v18 = vcombine.high %v11166_v25, %v11170_v61  ;;  %v11173_v46 = vld [vmem:[#allocation6 + $0xcd0] sm:$0xff]  ;;  %v18765_v4 = vld [vmem:[%s19629_s5] sm:$0xff]  }
 0x7fc   :  { %14047 = vmatprep.subr.bf16.mxu1 %v16271_v9  ;;  %v11177_v9 = vld [vmem:[#allocation6 + $0xcf0] sm:$0xff] }
 0x7fd   :  { %v16333_v12 = vcombine.high %v11173_v46, %v11177_v9  ;;  %v16332_v7 = vcombine.low %v11173_v46, %v11177_v9  ;;  %v18773_v46 = vld [vmem:[%s19629_s5 + $0x20] sm:$0xff]   ;;  %v18774_v9 = vld [vmem:[%s19629_s5 + $0x68] sm:$0xff]  }
 0x7fe   :  { %13884 = vmatpush1.bf16.msra.mxu0 %v16268_v36  ;;  %v16335_v36 = vcombine.high %v11174_v11, %v11178_v57  ;;  %v18775_v11 = vld [vmem:[%s19629_s5 + $0x28] sm:$0xff]   ;;  %v18776_v57 = vld [vmem:[%s19629_s5 + $0x70] sm:$0xff]  }
 0x7ff   :  { %14048 = vmatpush1.bf16.msra.mxu1 %v16270_v13  ;;  %13885 = vmatprep.subr.bf16.mxu0 %v16277_v15  ;;  %v11181_v13 = vld [vmem:[#allocation6 + $0xd10] sm:$0xff] }
 0x800   :  { %14049 = vmatprep.subr.bf16.mxu1 %v16279_v17  ;;  %v11185_v15 = vld [vmem:[#allocation6 + $0xd30] sm:$0xff]  ;;  %v11182_v17 = vld [vmem:[#allocation6 + $0xd18] sm:$0xff] }
 0x801   :  { %v16341_v30 = vcombine.high %v11181_v13, %v11185_v15  ;;  %v16340_v32 = vcombine.low %v11181_v13, %v11185_v15  ;;  %v16342_v60 = vcombine.low %v11182_v17, %v11186_v10  ;;  %v18996_v13 = vmov 0.0   ;;  %v18781_v15 = vld [vmem:[%s19631_s7 + $0x8] sm:$0xff]  }
 0x802   :  { %13886 = vmatpush1.bf16.msra.mxu0 %v16276_v58  ;;  %v11189_v58 = vld [vmem:[#allocation6 + $0xd50] sm:$0xff] }
 0x803   :  { %14050 = vmatpush1.bf16.msra.mxu1 %v16278_v8  ;;  %13887 = vmatprep.subr.bf16.mxu0 %v16285_v48  ;;  %v11193_v8 = vld [vmem:[#allocation6 + $0xd70] sm:$0xff]  ;;  %v11190_v48 = vld [vmem:[#allocation6 + $0xd58] sm:$0xff] }
 0x804   :  { %14051 = vmatprep.subr.bf16.mxu1 %v16287_v29  ;;  %v11194_v29 = vld [vmem:[#allocation6 + $0xd78] sm:$0xff]  ;;  %v16349_v56 = vcombine.high %v11189_v58, %v11193_v8  ;;  %v16348_v19 = vcombine.low %v11189_v58, %v11193_v8 }
 0x805   :  { %v16351_v14 = vcombine.high %v11190_v48, %v11194_v29  ;;  %v16350_v41 = vcombine.low %v11190_v48, %v11194_v29 }
 0x806   :  { %13888 = vmatpush1.bf16.msra.mxu0 %v16284_v34  ;;  %v11197_v34 = vld [vmem:[#allocation6 + $0xd90] sm:$0xff] }
 0x807   :  { %14052 = vmatpush1.bf16.msra.mxu1 %v16286_v39  ;;  %13889 = vmatprep.subr.bf16.mxu0 %v16293_v49  ;;  %v11201_v39 = vld [vmem:[#allocation6 + $0xdb0] sm:$0xff]  ;;  %v11198_v49 = vld [vmem:[#allocation6 + $0xd98] sm:$0xff] }
 0x808   :  { %14053 = vmatprep.subr.bf16.mxu1 %v16295_v40  ;;  %v11202_v40 = vld [vmem:[#allocation6 + $0xdb8] sm:$0xff]  ;;  %v16357_v45 = vcombine.high %v11197_v34, %v11201_v39  ;;  %v16356_v2 = vcombine.low %v11197_v34, %v11201_v39 }
 0x809   :  { %v16358_v26 = vcombine.low %v11198_v49, %v11202_v40 }
 0x80a   :  { %13890 = vmatpush1.bf16.msra.mxu0 %v16292_v47 }
 0x80b   :  { %14054 = vmatpush1.bf16.msra.mxu1 %v16294_v50  ;;  %13891 = vmatprep.subr.bf16.mxu0 %v16301_v28  ;;  %v16359_v50 = vcombine.high %v11198_v49, %v11202_v40  ;;  %v11205_v28 = vld [vmem:[#allocation6 + $0xdd0] sm:$0xff] }
 0x80c   :  { %14055 = vmatprep.subr.bf16.mxu1 %v16303_v33  ;;  %v11209_v33 = vld [vmem:[#allocation6 + $0xdf0] sm:$0xff] }
 0x80e   :  { %13892 = vmatpush1.bf16.msra.mxu0 %v16300_v53  ;;  %v11210_v53 = vld [vmem:[#allocation6 + $0xdf8] sm:$0xff] }
 0x80f   :  { %14056 = vmatpush1.bf16.msra.mxu1 %v16302_v37  ;;  %13902 = vmatprep.subr.bf16.mxu0 %v16309_v52 }
 0x810   :  { %14066 = vmatprep.subr.bf16.mxu1 %v16311_v51 }
 0x811   :  { %13894 = vmatmul.mubr.bf16.vlgmr.msra.gmra.mrb[32].mxu0 %v19482_v55 }
 0x812   :  { %14058 = vmatmul.mubr.bf16.vlgmr.msra.gmra.mrb[40].mxu1 %v19482_v55  ;;  %13903 = vmatpush1.bf16.msra.mxu0 %v16308_v63  ;;  %v16326_v55 = vcombine.low %v11166_v25, %v11170_v61  ;;  %v16365_v63 = vcombine.high %v11205_v28, %v11209_v33  ;;  %v18766_v25 = vld [vmem:[%s19629_s5 + $0x48] sm:$0xff]  }
 0x813   :  { %14067 = vmatpush1.bf16.msra.mxu1 %v16310_v38  ;;  %13904 = vmatprep.subr.bf16.mxu0 %v16317_v59  ;;  %v16367_v38 = vcombine.high %v11206_v42, %v11210_v53  ;;  %v16364_v59 = vcombine.low %v11205_v28, %v11209_v33  ;;  %v18767_v61 = vld [vmem:[%s19629_s5 + $0x8] sm:$0xff]  }
 0x814   :  { %14068 = vmatprep.subr.bf16.mxu1 %v16319_v44  ;;  %13934 = vmatprep.mubr.bf16.mxu0 %v18995_v0  ;;  %v16366_v44 = vcombine.low %v11206_v42, %v11210_v53  ;;  %v16368_v53 = vld [vmem:[#allocation9] ss:$0 sm:$0xff] }
 0x815   :  { %14098 = vmatprep.mubr.bf16.mxu1 %v18995_v0  ;;  %v16343_v0 = vcombine.high %v11182_v17, %v11186_v10  ;;  %v18782_v17 = vld [vmem:[%s19631_s7 + $0x10] sm:$0xff]   ;;  %v18783_v10 = vld [vmem:[%s19631_s7 + $0x18] sm:$0xff]  }
 0x816   :  { %13905 = vmatpush1.bf16.msra.mxu0 %v16316_v16  ;;  %v18768_v16 = vld [vmem:[%s19629_s5 + $0x50] sm:$0xff]  }
 0x817   :  { %14069 = vmatpush1.bf16.msra.mxu1 %v16318_v27  ;;  %13906 = vmatprep.subr.bf16.mxu0 %v16325_v6  ;;  %v18769_v27 = vld [vmem:[%s19629_s5 + $0x10] sm:$0xff]   ;;  %v18771_v6 = vld [vmem:[%s19629_s5 + $0x18] sm:$0xff]  }
 0x818   :  { %14070 = vmatprep.subr.bf16.mxu1 %v16327_v18  ;;  %v18772_v18 = vld [vmem:[%s19629_s5 + $0x60] sm:$0xff]  }
 0x81a   :  { %13907 = vmatpush1.bf16.msra.mxu0 %v16324_v24  ;;  %v18777_v24 = vld [vmem:[%s19629_s5 + $0x30] sm:$0xff]  }
 0x81b   :  { %14071 = vmatpush1.bf16.msra.mxu1 %v16326_v55  ;;  %13908 = vmatprep.subr.bf16.mxu0 %v16333_v12  ;;  %v18778_v55 = vld [vmem:[%s19629_s5 + $0x78] sm:$0xff]  }
 0x81c   :  { %14072 = vmatprep.subr.bf16.mxu1 %v16335_v36  ;;  %v18779_v12 = vld [vmem:[%s19629_s5 + $0x38] sm:$0xff]   ;;  %v18780_v36 = vld [vmem:[%s19631_s7] sm:$0xff]  }
 0x81e   :  { %13909 = vmatpush1.bf16.msra.mxu0 %v16332_v7  ;;  %v18784_v7 = vld [vmem:[%s19631_s7 + $0x20] sm:$0xff]  }
 0x81f   :  { %14073 = vmatpush1.bf16.msra.mxu1 %v16334_v22  ;;  %13910 = vmatprep.subr.bf16.mxu0 %v16341_v30  ;;  %v18785_v22 = vld [vmem:[%s19631_s7 + $0x28] sm:$0xff]  }
 0x820   :  { %14074 = vmatprep.subr.bf16.mxu1 %v16343_v0  ;;  %v14113_v30 = vld [vmem:[#allocation7] sm:$0x3] }
 0x821   :  { %v14118_v29 = vrot.slane %v14113_v30, %v10709_v20 }
 0x822   :  { %13911 = vmatpush1.bf16.msra.mxu0 %v16340_v32 }
 0x823   :  { %14075 = vmatpush1.bf16.msra.mxu1 %v16342_v60  ;;  %13912 = vmatprep.subr.bf16.mxu0 %v16349_v56 }
 0x824   :  { %v19509_v62 = vpop.f32.mrb[28].mxu0  ;;  %v19511_v47 = vpop.f32.mrb[36].mxu1  ;;  %14076 = vmatprep.subr.bf16.mxu1 %v16351_v14  ;;  %v14122_v14 = vrot.slane %v14113_v30, %v10713_v5  ;;  %v18787_v5 = vld [vmem:[%s19631_s7 + $0x38] ss:$0 sps:$4 sm:$0xff]  }
 0x825   :  { %v14107_v43 = vmax.f32 %v19509_v62, %v19511_v47  ;;  %v19515_v21 = vpop.f32.mrb[29].mxu0  ;;  %v19517_v35 = vpop.f32.mrb[37].mxu1  ;;  %v14381_v62 = vsel %vm14379_vm1, %v18787_v5, 0  ;;  %v18788_v47 = vld [vmem:[#allocation12] sm:$0xff]  }
 0x826   :  { %v14108_v37 = vmax.f32 %v19515_v21, %v19517_v35  ;;  %v13612_v52 = vpop.f32.mrb[30].mxu0  ;;  %v13776_v51 = vpop.f32.mrb[38].mxu1  ;;  %13913 = vmatpush1.bf16.msra.mxu0 %v16348_v19  ;;  %v18790_v21 = vld [vmem:[#allocation12 + $0x10] sm:$0xff]   ;;  %v18791_v35 = vld [vmem:[#allocation12 + $0x18] sm:$0xff]  }
 0x827   :  { %14077 = vmatpush1.bf16.msra.mxu1 %v16350_v41  ;;  %v13613_v54 = vpop.f32.mrb[31].mxu0  ;;  %v13777_v3 = vpop.f32.mrb[39].mxu1  ;;  %13914 = vmatprep.subr.bf16.mxu0 %v16357_v45 }
 0x828   :  { %14078 = vmatprep.subr.bf16.mxu1 %v16359_v50 }
 0x82a   :  { %13915 = vmatpush1.bf16.msra.mxu0 %v16356_v2 }
 0x82b   :  { %14079 = vmatpush1.bf16.msra.mxu1 %v16358_v26  ;;  %13916 = vmatprep.subr.bf16.mxu0 %v16365_v63  ;;  %v18792_v63 = vld [vmem:[#allocation12 + $0x20] sm:$0xff]  }
 0x82c   :  { %14080 = vmatprep.subr.bf16.mxu1 %v16367_v38  ;;  %v18793_v38 = vld [vmem:[#allocation12 + $0x28] ss:$0 sps:$4 sm:$0x33]  }
 0x82e   :  { %13917 = vmatpush1.bf16.msra.mxu0 %v16364_v59  ;;  %v14482_v59 = vsel %vm14480_vm4, %v18793_v38, 0 }
 0x82f   :  { %14081 = vmatpush1.bf16.msra.mxu1 %v16366_v44  ;;  %16403 = vmatprep.subr.bf16.mxu0 %v18764_v23  ;;  %v16385_v44 = vld [vmem:[#allocation10] ss:$0 sm:$0xff] }
 0x830   :  { %16441 = vmatprep.subr.bf16.mxu1 %v18996_v13 }
 0x831   :  { %13935 = vmatmul.mubr.bf16.vlgmr.msra.gmra.mrb[32].mxu0 %v19491_v31 }
 0x832   :  { %14099 = vmatmul.mubr.bf16.vlgmr.msra.gmra.mrb[40].mxu1 %v19491_v31  ;;  %16404 = vmatpush3.bf16.msra.mxu0 %v18765_v4  ;;  %v18770_v31 = vld [vmem:[%s19629_s5 + $0x58] sm:$0xff]  }
 0x833   :  { %16405 = vmatprep.subr.bf16.mxu0 %v18766_v25  ;;  %16442 = vmatpush3.bf16.msra.mxu1 %v18780_v36 }
 0x834   :  { %16443 = vmatprep.subr.bf16.mxu1 %v18996_v13  ;;  %16457 = vmatprep.mubr.msk.bf16.mxu1 %vm18997_vm2, %v18996_v13 }
 0x836   :  { %16406 = vmatpush3.bf16.msra.mxu0 %v18767_v61 }
 0x837   :  { %16407 = vmatprep.subr.bf16.mxu0 %v18768_v16  ;;  %16444 = vmatpush3.bf16.msra.mxu1 %v18781_v15 }
 0x838   :  { %16445 = vmatprep.subr.bf16.mxu1 %v18996_v13 }
 0x83a   :  { %16408 = vmatpush3.bf16.msra.mxu0 %v18769_v27 }
 0x83b   :  { %16409 = vmatprep.subr.bf16.mxu0 %v18770_v31  ;;  %16446 = vmatpush3.bf16.msra.mxu1 %v18782_v17 }
 0x83c   :  { %16447 = vmatprep.subr.bf16.mxu1 %v18996_v13 }
 0x83e   :  { %16410 = vmatpush3.bf16.msra.mxu0 %v18771_v6  ;;  %v16395_v6 = vld [vmem:[#allocation13] ss:$0 sm:$0xff] }
 0x83f   :  { %16411 = vmatprep.subr.bf16.mxu0 %v18772_v18  ;;  %16448 = vmatpush3.bf16.msra.mxu1 %v18783_v10 }
 0x840   :  { %16449 = vmatprep.subr.bf16.mxu1 %v18996_v13 }
 0x842   :  { %16412 = vmatpush3.bf16.msra.mxu0 %v18773_v46 }
 0x843   :  { %16413 = vmatprep.subr.bf16.mxu0 %v18774_v9  ;;  %16450 = vmatpush3.bf16.msra.mxu1 %v18784_v7 }
 0x844   :  { %16451 = vmatprep.subr.bf16.mxu1 %v18996_v13 }
 0x846   :  { %16414 = vmatpush3.bf16.msra.mxu0 %v18775_v11 }
 0x847   :  { %16415 = vmatprep.subr.bf16.mxu0 %v18776_v57  ;;  %16452 = vmatpush3.bf16.msra.mxu1 %v18785_v22 }
 0x848   :  { %16453 = vmatprep.subr.bf16.mxu1 %v18996_v13 }
 0x84a   :  { %16416 = vmatpush3.bf16.msra.mxu0 %v18777_v24 }
 0x84b   :  { %16417 = vmatprep.subr.bf16.mxu0 %v18778_v55  ;;  %16454 = vmatpush3.bf16.msra.mxu1 %v18786_v1 }
 0x84c   :  { %16455 = vmatprep.subr.bf16.mxu1 %v18996_v13 }
 0x84e   :  { %16418 = vmatpush3.bf16.msra.mxu0 %v18779_v12 }
 0x84f   :  { %16461 = vmatprep.subr.bf16.mxu0 %v18996_v13  ;;  %16456 = vmatpush3.bf16.msra.mxu1 %v14381_v62 }
 0x904   :  { %v13936_v0 = vpop.f32.mrb[32].mxu0 }
 0x905   :  { %v14100_v58 = vpop.f32.mrb[40].mxu1  ;;  %v13938_v8 = vpop.f32.mrb[33].mxu0 }
 0x906   :  { %v14109_v48 = vmax.f32 %v13936_v0, %v14100_v58  ;;  %v14102_v32 = vpop.f32.mrb[41].mxu1  ;;  %v13940_v60 = vpop.f32.mrb[34].mxu0 }
 0x907   :  { %v14110_v56 = vmax.f32 %v13938_v8, %v14102_v32  ;;  %v14104_v34 = vpop.f32.mrb[42].mxu1  ;;  %v13941_v39 = vpop.f32.mrb[35].mxu0 }
 0x908   :  { %v14111_v49 = vmax.f32 %v14107_v43, %v14109_v48  ;;  %v14105_v40 = vpop.f32.mrb[43].mxu1  ;;  %v18789_v43 = vld [vmem:[#allocation12 + $0x8] sm:$0xff]  }
 0x909   :  { %v14112_v19 = vmax.f32 %v14108_v37, %v14110_v56 }
 0x90a   :  { %v14125_v41 = vadd.f32 %v14118_v29, %v14111_v49 }
 0x90b   :  { %v14126_v45 = vadd.f32 %v14122_v14, %v14112_v19 }
 0x90c   :  { %v14127_v20 = vmax.f32 %v14125_v41, 0.0 }
 0x90d   :  { %v14128_v50 = vmax.f32 %v14126_v45, 0.0 }
 0x90e   :  { %v14129_v33 = vpack.c.bf16 %v14127_v20, %v14127_v20 }
 0x90f   :  { %v14130_v28 = vpack.c.bf16 %v14128_v50, %v14128_v50 }
 0x911   :  { %14298 = vmatprep.mubr.bf16.mxu0 %v14130_v28 }
 0x912   :  { %14299 = vmatmul.mubr.bf16.vlgmr.msra.gmra.mrb[36].mxu0 %v14129_v33 }
 0x913   :  { %16473 = vmatprep.mubr.msk.bf16.mxu0 %vm18997_vm2, %v18996_v13  ;;  %16462 = vmatpush3.bf16.msra.mxu0 %v18788_v47 }
 0x914   :  { %16463 = vmatprep.subr.bf16.mxu0 %v18996_v13 }
 0x917   :  { %16464 = vmatpush3.bf16.msra.mxu0 %v18789_v43 }
 0x918   :  { %16465 = vmatprep.subr.bf16.mxu0 %v18996_v13 }
 0x91b   :  { %16466 = vmatpush3.bf16.msra.mxu0 %v18790_v21 }
 0x91c   :  { %16467 = vmatprep.subr.bf16.mxu0 %v18996_v13 }
 0x91f   :  { %16468 = vmatpush3.bf16.msra.mxu0 %v18791_v35 }
 0x920   :  { %16469 = vmatprep.subr.bf16.mxu0 %v18996_v13 }
 0x923   :  { %16470 = vmatpush3.bf16.msra.mxu0 %v18792_v63 }
 0x924   :  { %16471 = vmatprep.subr.bf16.mxu0 %v18996_v13 }
 0x927   :  { %16472 = vmatpush3.bf16.msra.mxu0 %v14482_v59 }
 0x9e5   :  { %v16419_v42 = vpop.f32.mrb[36].mxu0 }
 0x9e6   :  { %v16420_v37 = vpop.f32.mrb[37].mxu0 }
 0x9e7   :  { %v16421_v52 = vadd.f32 %v16420_v37, %v16419_v42  ;;  %v16422_v51 = vpop.f32.mrb[38].mxu0 }
 0x9e8   :  { %v16423_v2 = vpop.f32.mrb[39].mxu0 }
 0x9e9   :  { %v14301_v54 = vadd.f32 %v16421_v52, %v16368_v53 }
 0x9eb   :  { %v14306_v3 = vmax.f32 %v14301_v54, 0.0 }
 0x9ed   :  { %v14307_v26 = vpack.c.bf16 %v14306_v3, %v14306_v3 }
 0x9ef   :  { %16458 = vmatmul.mubr.msk.bf16.vlgmr.msra.gmra.mrb[44].mxu1 %vm14375_vm3, %v14307_v26 }
 0xac2   :  { %v14417_v23 = vpop.f32.mrb[44].mxu1 }
 0xac3   :  { %v14418_v4 = vadd.f32 %v16385_v44, %v14417_v23  ;;  %v16459_v25 = vpop.f32.mrb[45].mxu1 }
 0xac4   :  { %v14420_v61 = vpop.f32.mrb[46].mxu1 }
 0xac5   :  { %v14423_v16 = vmax.f32 %v14418_v4, 0.0  ;;  %v16460_v27 = vpop.f32.mrb[47].mxu1 }
 0xac7   :  { %v14424_v31 = vpack.c.bf16 %v14423_v16, %v14423_v16 }
 0xac9   :  { %16474 = vmatmul.mubr.msk.bf16.vlgmr.msra.gmra.mrb[40].mxu0 %vm14476_vm5, %v14424_v31 }
 0xb9c   :  { %v14518_v18 = vpop.f32.mrb[40].mxu0 }
 0xb9d   :  { %v14519_v46 = vadd.f32 %v16395_v6, %v14518_v18  ;;  %v16475_v9 = vpop.f32.mrb[41].mxu0 }
 0xb9e   :  { %v14521_v11 = vpop.f32.mrb[42].mxu0 }
 0xb9f   :  { %14524 = vst [vmem:[%s19635_s11] sm:$0xff] %v14519_v46  ;;  %v16476_v57 = vpop.f32.mrb[43].mxu0 }
 0xba0   :  { %14529 = vsyncpa [#allocation3], 1 }
 0xba1   :  { %14530 = vsyncpa [#allocation5], 1 }
 0xba2   :  { %14531 = vsyncpa [#allocation8], 1 }
 0xba3   :  { %14532 = vsyncpa [#allocation11], 1 }
 0xba4   :  { %14533 = vsyncpa [#allocation14], 1 }

</bundles_post_ra>
